<compile_context>
chip_gen: v6e
topology: v6e:2x2x1
jax: 0.10.0
libtpu: 0.0.40
codegen_flags: <defaults>
</compile_context>

<pallas_src>
import functools

import jax
import jax.numpy as jnp
from jax.experimental import pallas as pl
from jax.experimental.pallas import tpu as pltpu

BASE_FEATURE = 64
ALPHA = 0.2       # LeakyReLU negative slope
BN_EPS = 1e-5

# Static per-layer output channel counts (architecture constant).
LAYER_COUT = {
    "w1": BASE_FEATURE,
    "w2": BASE_FEATURE * 2,
    "w3": BASE_FEATURE * 4,
    "w4": BASE_FEATURE * 8,
    "w5": 1,
}

_VMEM_LIMIT = 32 * 1024 * 1024


def _round_up(x, m):
    return (x + m - 1) // m * m


_TWO_CORES = None


def _multi_core():
    """True on chips with 2 TensorCores per chip (v7x); used to shrink tn for sharding."""
    global _TWO_CORES
    if _TWO_CORES is None:
        try:
            kind = jax.devices()[0].device_kind.lower()
            _TWO_CORES = ("v7" in kind) or ("7x" in kind)
        except Exception:  # pragma: no cover - defensive
            _TWO_CORES = False
    return _TWO_CORES


def _tiles(M, Kp, Np):
    """Pick (Mp, tm, tn, tk) tile sizes for the matmul kernels."""
    Mp = _round_up(M, 16)                    # bf16 sublane packing
    tm = min(512, Mp)                        # big M tile: fewer grid steps, better pipeline
    Mp = _round_up(Mp, tm)
    tn = min(256, Np)
    if Np % tn:
        tn = 128
    if _multi_core() and Np // tn < 2 and Np >= 256:
        tn = 128                             # give the 2nd TensorCore an N tile (v7x)
    tk = min(1024, Kp)                       # <=1 MiB bf16 weight block, >=2 K steps on big K
    while Kp % tk:
        tk //= 2
    assert Mp % tm == 0 and Np % tn == 0 and Kp % tk == 0
    return Mp, tm, tn, tk


# ----------------------------------------------------------------------------
# Pallas kernel 1a: (N, M, K)-tiled matmul, bf16 operands, f32 VMEM accumulator,
# bf16 output, fused activation epilogue on the last K step.
# ----------------------------------------------------------------------------
def _matmul_act_kernel(a_ref, b_ref, o_ref, acc_ref, *, activation):
    k = pl.program_id(2)

    @pl.when(k == 0)
    def _():
        acc_ref[...] = jnp.zeros_like(acc_ref)

    acc_ref[...] += jnp.dot(a_ref[...], b_ref[...], preferred_element_type=jnp.float32)

    @pl.when(k == pl.num_programs(2) - 1)
    def _():
        y = acc_ref[...]
        if activation == "leaky":
            y = jnp.where(y >= 0, y, ALPHA * y)
        elif activation == "sigmoid":
            y = jax.nn.sigmoid(y)
        o_ref[...] = y.astype(o_ref.dtype)


def matmul_act(a, b_padded, n_out, activation="none"):
    """a: [M, K] bf16, b_padded: [Kp, Np] bf16 pre-padded weight matrix.

    Returns activation(a @ b)[:, :n_out] in bf16."""
    M, K = a.shape
    Kp, Np = b_padded.shape
    Mp, tm, tn, tk = _tiles(M, Kp, Np)

    a = a.astype(jnp.bfloat16)
    if Mp != M or Kp != K:
        a = jnp.pad(a, ((0, Mp - M), (0, Kp - K)))

    out = pl.pallas_call(
        functools.partial(_matmul_act_kernel, activation=activation),
        out_shape=jax.ShapeDtypeStruct((Mp, Np), jnp.bfloat16),
        grid_spec=pltpu.PrefetchScalarGridSpec(
            num_scalar_prefetch=0,
            grid=(Np // tn, Mp // tm, Kp // tk),
            in_specs=[pl.BlockSpec((tm, tk), lambda j, i, k: (i, k)),
                      pl.BlockSpec((tk, tn), lambda j, i, k: (k, j))],
            out_specs=pl.BlockSpec((tm, tn), lambda j, i, k: (i, j)),
            scratch_shapes=[pltpu.VMEM((tm, tn), jnp.float32)]),
        compiler_params=pltpu.CompilerParams(
            dimension_semantics=("parallel", "parallel", "arbitrary"),
            vmem_limit_bytes=_VMEM_LIMIT),
    )(a, b_padded)
    return out[:M, :n_out]


# ----------------------------------------------------------------------------
# Pallas kernel 1b: same matmul, but also accumulates per-channel sum / sum-of-
# squares (BatchNorm batch statistics) in small resident f32 outputs.  The M and
# K grid axes are sequential ("arbitrary"); N stays "parallel".
# ----------------------------------------------------------------------------
def _matmul_stats_kernel(a_ref, b_ref, o_ref, sum_ref, sq_ref, acc_ref):
    i = pl.program_id(1)   # M tile
    k = pl.program_id(2)   # K tile (innermost)

    @pl.when(k == 0)
    def _():
        acc_ref[...] = jnp.zeros_like(acc_ref)

    acc_ref[...] += jnp.dot(a_ref[...], b_ref[...], preferred_element_type=jnp.float32)

    @pl.when(k == pl.num_programs(2) - 1)
    def _():
        y = acc_ref[...]

        @pl.when(i == 0)
        def _():
            sum_ref[...] = jnp.zeros_like(sum_ref)
            sq_ref[...] = jnp.zeros_like(sq_ref)

        # Padded M rows are exactly zero -> contribute nothing; divide by true M later.
        sum_ref[...] += jnp.sum(y, axis=0, keepdims=True)        # broadcast over 8 rows
        sq_ref[...] += jnp.sum(y * y, axis=0, keepdims=True)
        o_ref[...] = y.astype(o_ref.dtype)


def matmul_with_stats(a, b_padded):
    M, K = a.shape
    Kp, Np = b_padded.shape
    Mp, tm, tn, tk = _tiles(M, Kp, Np)

    a = a.astype(jnp.bfloat16)
    if Mp != M or Kp != K:
        a = jnp.pad(a, ((0, Mp - M), (0, Kp - K)))

    y, ssum, ssq = pl.pallas_call(
        _matmul_stats_kernel,
        out_shape=(jax.ShapeDtypeStruct((Mp, Np), jnp.bfloat16),
                   jax.ShapeDtypeStruct((8, Np), jnp.float32),
                   jax.ShapeDtypeStruct((8, Np), jnp.float32)),
        grid_spec=pltpu.PrefetchScalarGridSpec(
            num_scalar_prefetch=0,
            grid=(Np // tn, Mp // tm, Kp // tk),
            in_specs=[pl.BlockSpec((tm, tk), lambda j, i, k: (i, k)),
                      pl.BlockSpec((tk, tn), lambda j, i, k: (k, j))],
            out_specs=[pl.BlockSpec((tm, tn), lambda j, i, k: (i, j)),
                       pl.BlockSpec((8, tn), lambda j, i, k: (0, j)),
                       pl.BlockSpec((8, tn), lambda j, i, k: (0, j))],
            scratch_shapes=[pltpu.VMEM((tm, tn), jnp.float32)]),
        compiler_params=pltpu.CompilerParams(
            dimension_semantics=("parallel", "arbitrary", "arbitrary"),
            vmem_limit_bytes=_VMEM_LIMIT),
    )(a, b_padded)
    return y, ssum, ssq, M


# ----------------------------------------------------------------------------
# Pallas kernel 2: normalize (with precomputed batch stats) + LeakyReLU(0.2),
# tiled over M and C so the VMEM block is bounded on every TPU generation.
# ----------------------------------------------------------------------------
def _bn_apply_kernel(y_ref, sum_ref, sq_ref, g_ref, b_ref, o_ref, *, inv_count):
    s = sum_ref[...]
    q = sq_ref[...]
    mean = s[0:1, :] * inv_count
    var = jnp.maximum(q[0:1, :] * inv_count - mean * mean, 0.0)   # clamp cancellation error
    scale = g_ref[...] * jax.lax.rsqrt(var + BN_EPS)
    shift = b_ref[...] - mean * scale
    y = y_ref[...].astype(jnp.float32) * scale + shift
    o_ref[...] = jnp.where(y >= 0, y, ALPHA * y).astype(o_ref.dtype)


def bn_apply(y, ssum, ssq, gamma, beta, count):
    Mp, Np = y.shape
    assert gamma.shape == (1, Np) and beta.shape == (1, Np)
    tm = min(512, Mp)
    while Mp % tm:
        tm //= 2
    cblk = 128
    return pl.pallas_call(
        functools.partial(_bn_apply_kernel, inv_count=1.0 / count),
        out_shape=jax.ShapeDtypeStruct((Mp, Np), jnp.bfloat16),
        grid=(Mp // tm, Np // cblk),
        in_specs=[pl.BlockSpec((tm, cblk), lambda i, j: (i, j)),
                  pl.BlockSpec((8, cblk), lambda i, j: (0, j)),
                  pl.BlockSpec((8, cblk), lambda i, j: (0, j)),
                  pl.BlockSpec((1, cblk), lambda i, j: (0, j)),
                  pl.BlockSpec((1, cblk), lambda i, j: (0, j))],
        out_specs=pl.BlockSpec((tm, cblk), lambda i, j: (i, j)),
        compiler_params=pltpu.CompilerParams(
            dimension_semantics=("parallel", "parallel"),
            vmem_limit_bytes=_VMEM_LIMIT),
    )(y, ssum, ssq, gamma, beta)


def conv_bn_lrelu(a, b_padded, gamma, beta, n_out):
    y, ssum, ssq, M = matmul_with_stats(a, b_padded)
    out = bn_apply(y, ssum, ssq, gamma, beta, count=M)
    return out[:M, :n_out]


# ----------------------------------------------------------------------------
# Pallas kernel 3: conv5 (512 -> 1, 4x4, valid) + sigmoid as a VPU dot against a
# [1, 8192] bf16 weight vector (no 128x zero-padded MXU weight).
# ----------------------------------------------------------------------------
def _conv5_kernel(a_ref, w_ref, o_ref):
    prod = a_ref[...].astype(jnp.float32) * w_ref[...].astype(jnp.float32)
    s = jnp.sum(prod, axis=-1, keepdims=True)       # [tm, 1]
    o_ref[...] = jax.nn.sigmoid(s)


def conv5_sigmoid(a, w_vec):
    M, K = a.shape
    assert w_vec.shape == (1, K)
    Mp = _round_up(M, 16)
    tm = min(128, Mp)
    Mp = _round_up(Mp, tm)
    a = a.astype(jnp.bfloat16)
    if Mp != M:
        a = jnp.pad(a, ((0, Mp - M), (0, 0)))
    out = pl.pallas_call(
        _conv5_kernel,
        out_shape=jax.ShapeDtypeStruct((Mp, 1), jnp.float32),
        grid=(Mp // tm,),
        in_specs=[pl.BlockSpec((tm, K), lambda i: (i, 0)),
                  pl.BlockSpec((1, K), lambda i: (0, 0))],
        out_specs=pl.BlockSpec((tm, 1), lambda i: (i, 0)),
        compiler_params=pltpu.CompilerParams(
            dimension_semantics=("parallel",),
            vmem_limit_bytes=_VMEM_LIMIT),
    )(a, w_vec)
    return out[:M]


# ----------------------------------------------------------------------------
# Glue: im2col (NHWC, natural (kh, kw, Cin) column order — no big transpose).
# Runs on bf16 activations so the duplicated patch tensor is half the bytes.
# ----------------------------------------------------------------------------
def im2col_nhwc(x, ksize, stride, pad):
    B, H, W, C = x.shape
    if pad:
        x = jnp.pad(x, ((0, 0), (pad, pad), (pad, pad), (0, 0)))
    Ho = (H + 2 * pad - ksize) // stride + 1
    Wo = (W + 2 * pad - ksize) // stride + 1
    cols = [x[:, kh:kh + stride * Ho:stride, kw:kw + stride * Wo:stride, :]
            for kh in range(ksize) for kw in range(ksize)]      # each [B,Ho,Wo,C]
    patches = jnp.concatenate(cols, axis=-1)                    # [B,Ho,Wo,16*C]
    return patches.reshape(B * Ho * Wo, ksize * ksize * C), Ho, Wo


def prepare_params(params):
    """One-time conversion: PyTorch conv weights -> padded bf16 [Kp, Np] matmul matrices
    in (kh, kw, cin) column order matching im2col_nhwc; conv5 -> [1, K] bf16 vector;
    BN params as [1, C] f32."""
    prep = {}
    for name in ("w1", "w2", "w3", "w4"):
        w = params[name]                            # [Cout, Cin, KH, KW]
        cout, cin, kh, kw = w.shape
        K = kh * kw * cin
        wm = jnp.transpose(w, (2, 3, 1, 0)).reshape(K, cout)    # rows: (kh, kw, cin)
        Kp = _round_up(K, 128)
        Np = _round_up(cout, 128)
        prep[name] = jnp.pad(wm, ((0, Kp - K), (0, Np - cout))).astype(jnp.bfloat16)
    # conv5 (cout == 1): keep as a dense [1, K] vector for the VPU dot kernel.
    w5 = params["w5"]
    prep["w5"] = jnp.transpose(w5, (2, 3, 1, 0)).reshape(1, -1).astype(jnp.bfloat16)
    for i in (2, 3, 4):
        c = params[f"g{i}"].shape[0]
        prep[f"g{i}"] = params[f"g{i}"].reshape(1, c).astype(jnp.float32)
        prep[f"b{i}"] = params[f"b{i}"].reshape(1, c).astype(jnp.float32)
    return prep


# ----------------------------------------------------------------------------
# Discriminator forward
# ----------------------------------------------------------------------------
def discriminator_forward(x_nchw, prep):
    B = x_nchw.shape[0]
    x = jnp.transpose(x_nchw, (0, 2, 3, 1)).astype(jnp.bfloat16)   # NHWC, bf16 path

    # conv1 (7 -> 64, k4 s2 p1) + LeakyReLU fused in the matmul epilogue
    p, Ho, Wo = im2col_nhwc(x, 4, 2, 1)
    y = matmul_act(p, prep["w1"], LAYER_COUT["w1"], "leaky")
    x = y.reshape(B, Ho, Wo, LAYER_COUT["w1"])

    # conv2..4 (k4 s2 p1) + BatchNorm2d (batch stats fused into the matmul) + LeakyReLU
    for wk, gk, bk in (("w2", "g2", "b2"), ("w3", "g3", "b3"), ("w4", "g4", "b4")):
        p, Ho, Wo = im2col_nhwc(x, 4, 2, 1)
        y = conv_bn_lrelu(p, prep[wk], prep[gk], prep[bk], LAYER_COUT[wk])
        x = y.reshape(B, Ho, Wo, LAYER_COUT[wk])

    # conv5 (512 -> 1, k4 s1 p0) + Sigmoid: VPU dot against [1, 8192] weight vector
    p, Ho, Wo = im2col_nhwc(x, 4, 1, 0)
    y = conv5_sigmoid(p, prep["w5"])                 # [B, 1] f32
    return y.reshape(B, -1)        # matches x.reshape(x.shape[0], -1) on [B,1,1,1]


def init_params(key):
    bf = BASE_FEATURE
    shapes = {
        "w1": (bf, 7, 4, 4),
        "w2": (bf * 2, bf, 4, 4),
        "w3": (bf * 4, bf * 2, 4, 4),
        "w4": (bf * 8, bf * 4, 4, 4),
        "w5": (1, bf * 8, 4, 4),
    }
    params = {}
    for name, shp in shapes.items():
        key, sub = jax.random.split(key)
        params[name] = 0.02 * jax.random.normal(sub, shp, dtype=jnp.float32)
    for i, c in zip((2, 3, 4), (bf * 2, bf * 4, bf * 8)):
        params[f"g{i}"] = jnp.ones((c,), jnp.float32)    # BN gamma (default init)
        params[f"b{i}"] = jnp.zeros((c,), jnp.float32)   # BN beta
    return params


if __name__ == "__main__":
    key = jax.random.PRNGKey(0)
    k_x, k_p = jax.random.split(key)
    # Smallest spatial size consistent with the architecture: 64x64 -> 1x1 output.
    x = jax.random.normal(k_x, (2, 7, 64, 64), dtype=jnp.float32)
    params = init_params(k_p)
    prep = prepare_params(params)          # one-time weight permute/pad/cast

    fwd = jax.jit(discriminator_forward)
    out = fwd(x, prep)
    jax.block_until_ready(out)
    assert out.shape == (2, 1)
    assert bool(jnp.all(jnp.isfinite(out)))
    assert bool(jnp.all((out >= 0.0) & (out <= 1.0)))
    print("KERNEL_OK")
</pallas_src>

<mosaic_0001>
module attributes {stable_mosaic.version = 11 : i64} {
  func.func @_matmul_act_kernel(%arg0: i32, %arg1: i32, %arg2: i32, %arg3: memref<512x128xbf16, #tpu.memory_space<vmem>>, %arg4: memref<128x128xbf16, #tpu.memory_space<vmem>>, %arg5: memref<512x128xbf16, #tpu.memory_space<vmem>>, %arg6: memref<512x128xf32, #tpu.memory_space<vmem>>) attributes {dimension_semantics = [#tpu.dimension_semantics<parallel>, #tpu.dimension_semantics<parallel>, #tpu.dimension_semantics<arbitrary>], iteration_bounds = array<i64: 1, 4, 1>, scalar_prefetch = 0 : i64, scratch_operands = 1 : i64, tpu.core_type = #tpu.core_type<tc>, window_params = [{transform_indices = @transform_0, window_bounds = array<i64: 512, 128>}, {transform_indices = @transform_1, window_bounds = array<i64: 128, 128>}, {transform_indices = @transform_2, window_bounds = array<i64: 512, 128>}]} {
    %c0_i32 = arith.constant 0 : i32
    %0 = arith.cmpi eq, %arg2, %c0_i32 : i32
    %1 = arith.extui %0 : i1 to i32
    %c0_i32_0 = arith.constant 0 : i32
    %2 = arith.cmpi ne, %1, %c0_i32_0 : i32
    scf.if %2 {
      %cst_10 = arith.constant 0.000000e+00 : f32
      %12 = vector.broadcast %cst_10 : f32 to vector<512x128xf32>
      %c0_11 = arith.constant 0 : index
      %c0_12 = arith.constant 0 : index
      %13 = vector.load %arg6[%c0_11, %c0_12] : memref<512x128xf32, #tpu.memory_space<vmem>>, vector<512x128xf32>
      tpu.vector_store %arg6[%c0_11, %c0_12], %12 {strides = array<i32>} : memref<512x128xf32, #tpu.memory_space<vmem>>, vector<512x128xf32>,
    } else {
    }
    %c0 = arith.constant 0 : index
    %c0_1 = arith.constant 0 : index
    %3 = vector.load %arg6[%c0, %c0_1] : memref<512x128xf32, #tpu.memory_space<vmem>>, vector<512x128xf32>
    %c0_2 = arith.constant 0 : index
    %c0_3 = arith.constant 0 : index
    %4 = vector.load %arg3[%c0_2, %c0_3] : memref<512x128xbf16, #tpu.memory_space<vmem>>, vector<512x128xbf16>
    %c0_4 = arith.constant 0 : index
    %c0_5 = arith.constant 0 : index
    %5 = vector.load %arg4[%c0_4, %c0_5] : memref<128x128xbf16, #tpu.memory_space<vmem>>, vector<128x128xbf16>
    %cst = arith.constant dense<0.000000e+00> : vector<512x128xf32>
    %6 = tpu.matmul %4, %5, %cst {dimension_numbers = #tpu.dot_dimension_numbers<[1], [0], [0], [1], [0, 0, 1, 1], [], []>} : vector<512x128xbf16>, vector<128x128xbf16>, vector<512x128xf32> -> vector<512x128xf32>
    %7 = arith.addf %3, %6 : vector<512x128xf32>
    %c0_6 = arith.constant 0 : index
    %c0_7 = arith.constant 0 : index
    %8 = vector.load %arg6[%c0_6, %c0_7] : memref<512x128xf32, #tpu.memory_space<vmem>>, vector<512x128xf32>
    tpu.vector_store %arg6[%c0_6, %c0_7], %7 {strides = array<i32>} : memref<512x128xf32, #tpu.memory_space<vmem>>, vector<512x128xf32>,
    %c0_i32_8 = arith.constant 0 : i32
    %9 = arith.cmpi eq, %arg2, %c0_i32_8 : i32
    %10 = arith.extui %9 : i1 to i32
    %c0_i32_9 = arith.constant 0 : i32
    %11 = arith.cmpi ne, %10, %c0_i32_9 : i32
    scf.if %11 {
      %c0_10 = arith.constant 0 : index
      %c0_11 = arith.constant 0 : index
      %12 = vector.load %arg6[%c0_10, %c0_11] : memref<512x128xf32, #tpu.memory_space<vmem>>, vector<512x128xf32>
      %cst_12 = arith.constant 0.000000e+00 : f32
      %13 = vector.broadcast %cst_12 : f32 to vector<512x128xf32>
      %14 = arith.cmpf oge, %12, %13 : vector<512x128xf32>
      %cst_13 = arith.constant 2.000000e-01 : f32
      %15 = vector.broadcast %cst_13 : f32 to vector<512x128xf32>
      %16 = arith.mulf %15, %12 : vector<512x128xf32>
      %17 = arith.select %14, %12, %16 : vector<512x128xi1>, vector<512x128xf32>
      %18 = arith.truncf %17 : vector<512x128xf32> to vector<512x128xbf16>
      %c0_14 = arith.constant 0 : index
      %c0_15 = arith.constant 0 : index
      %19 = vector.load %arg5[%c0_14, %c0_15] : memref<512x128xbf16, #tpu.memory_space<vmem>>, vector<512x128xbf16>
      tpu.vector_store %arg5[%c0_14, %c0_15], %18 {strides = array<i32>} : memref<512x128xbf16, #tpu.memory_space<vmem>>, vector<512x128xbf16>,
    } else {
    }
    return
  }
  func.func @transform_0(%arg0: i32, %arg1: i32, %arg2: i32) -> (i32, i32) {
    %c0_i32 = arith.constant 0 : i32
    return %arg1, %arg2 : i32, i32
  }
  func.func @transform_1(%arg0: i32, %arg1: i32, %arg2: i32) -> (i32, i32) {
    %c0_i32 = arith.constant 0 : i32
    return %arg2, %arg0 : i32, i32
  }
  func.func @transform_2(%arg0: i32, %arg1: i32, %arg2: i32) -> (i32, i32) {
    %c0_i32 = arith.constant 0 : i32
    return %arg1, %arg0 : i32, i32
  }
}

module attributes {stable_mosaic.version = 11 : i64} {
  func.func @_bn_apply_kernel(%arg0: i32, %arg1: i32, %arg2: memref<512x128xbf16, #tpu.memory_space<vmem>>, %arg3: memref<8x128xf32, #tpu.memory_space<vmem>>, %arg4: memref<8x128xf32, #tpu.memory_space<vmem>>, %arg5: memref<1x128xf32, #tpu.memory_space<vmem>>, %arg6: memref<1x128xf32, #tpu.memory_space<vmem>>, %arg7: memref<512x128xbf16, #tpu.memory_space<vmem>>) attributes {dimension_semantics = [#tpu.dimension_semantics<parallel>, #tpu.dimension_semantics<parallel>], iteration_bounds = array<i64: 1, 1>, scalar_prefetch = 0 : i64, scratch_operands = 0 : i64, tpu.core_type = #tpu.core_type<tc>, window_params = [{transform_indices = @transform_0, window_bounds = array<i64: 512, 128>}, {transform_indices = @transform_1, window_bounds = array<i64: 8, 128>}, {transform_indices = @transform_2, window_bounds = array<i64: 8, 128>}, {transform_indices = @transform_3, window_bounds = array<i64: 1, 128>}, {transform_indices = @transform_4, window_bounds = array<i64: 1, 128>}, {transform_indices = @transform_5, window_bounds = array<i64: 512, 128>}]} {
    %c0 = arith.constant 0 : index
    %c0_0 = arith.constant 0 : index
    %0 = vector.load %arg3[%c0, %c0_0] : memref<8x128xf32, #tpu.memory_space<vmem>>, vector<8x128xf32>
    %c0_1 = arith.constant 0 : index
    %c0_2 = arith.constant 0 : index
    %1 = vector.load %arg4[%c0_1, %c0_2] : memref<8x128xf32, #tpu.memory_space<vmem>>, vector<8x128xf32>
    %2 = vector.extract_strided_slice %0 {offsets = [0, 0], sizes = [1, 128], strides = [1, 1]} : vector<8x128xf32> to vector<1x128xf32>
    %cst = arith.constant 0.001953125 : f32
    %3 = vector.broadcast %cst : f32 to vector<1x128xf32>
    %4 = arith.mulf %2, %3 : vector<1x128xf32>
    %5 = vector.extract_strided_slice %1 {offsets = [0, 0], sizes = [1, 128], strides = [1, 1]} : vector<8x128xf32> to vector<1x128xf32>
    %cst_3 = arith.constant 0.001953125 : f32
    %6 = vector.broadcast %cst_3 : f32 to vector<1x128xf32>
    %7 = arith.mulf %5, %6 : vector<1x128xf32>
    %8 = arith.mulf %4, %4 : vector<1x128xf32>
    %9 = arith.subf %7, %8 : vector<1x128xf32>
    %cst_4 = arith.constant 0.000000e+00 : f32
    %10 = vector.broadcast %cst_4 : f32 to vector<1x128xf32>
    %11 = arith.maximumf %9, %10 : vector<1x128xf32>
    %c0_5 = arith.constant 0 : index
    %c0_6 = arith.constant 0 : index
    %12 = vector.load %arg5[%c0_5, %c0_6] : memref<1x128xf32, #tpu.memory_space<vmem>>, vector<1x128xf32>
    %cst_7 = arith.constant 9.99999974E-6 : f32
    %13 = vector.broadcast %cst_7 : f32 to vector<1x128xf32>
    %14 = arith.addf %11, %13 : vector<1x128xf32>
    %15 = math.rsqrt %14 : vector<1x128xf32>
    %16 = arith.mulf %12, %15 : vector<1x128xf32>
    %c0_8 = arith.constant 0 : index
    %c0_9 = arith.constant 0 : index
    %17 = vector.load %arg6[%c0_8, %c0_9] : memref<1x128xf32, #tpu.memory_space<vmem>>, vector<1x128xf32>
    %18 = arith.mulf %4, %16 : vector<1x128xf32>
    %19 = arith.subf %17, %18 : vector<1x128xf32>
    %c0_10 = arith.constant 0 : index
    %c0_11 = arith.constant 0 : index
    %20 = vector.load %arg2[%c0_10, %c0_11] : memref<512x128xbf16, #tpu.memory_space<vmem>>, vector<512x128xbf16>
    %21 = arith.extf %20 : vector<512x128xbf16> to vector<512x128xf32>
    %22 = vector.broadcast %16 : vector<1x128xf32> to vector<512x128xf32>
    %23 = arith.mulf %21, %22 : vector<512x128xf32>
    %24 = vector.broadcast %19 : vector<1x128xf32> to vector<512x128xf32>
    %25 = arith.addf %23, %24 : vector<512x128xf32>
    %cst_12 = arith.constant 0.000000e+00 : f32
    %26 = vector.broadcast %cst_12 : f32 to vector<512x128xf32>
    %27 = arith.cmpf oge, %25, %26 : vector<512x128xf32>
    %cst_13 = arith.constant 2.000000e-01 : f32
    %28 = vector.broadcast %cst_13 : f32 to vector<512x128xf32>
    %29 = arith.mulf %28, %25 : vector<512x128xf32>
    %30 = arith.select %27, %25, %29 : vector<512x128xi1>, vector<512x128xf32>
    %31 = arith.truncf %30 : vector<512x128xf32> to vector<512x128xbf16>
    %c0_14 = arith.constant 0 : index
    %c0_15 = arith.constant 0 : index
    %32 = vector.load %arg7[%c0_14, %c0_15] : memref<512x128xbf16, #tpu.memory_space<vmem>>, vector<512x128xbf16>
    tpu.vector_store %arg7[%c0_14, %c0_15], %31 {strides = array<i32>} : memref<512x128xbf16, #tpu.memory_space<vmem>>, vector<512x128xbf16>,
    return
  }
  func.func @transform_0(%arg0: i32, %arg1: i32) -> (i32, i32) {
    %c0_i32 = arith.constant 0 : i32
    return %arg0, %arg1 : i32, i32
  }
  func.func @transform_1(%arg0: i32, %arg1: i32) -> (i32, i32) {
    %c0_i32 = arith.constant 0 : i32
    %c0_i32_0 = arith.constant 0 : i32
    return %c0_i32, %arg1 : i32, i32
  }
  func.func @transform_2(%arg0: i32, %arg1: i32) -> (i32, i32) {
    %c0_i32 = arith.constant 0 : i32
    %c0_i32_0 = arith.constant 0 : i32
    return %c0_i32, %arg1 : i32, i32
  }
  func.func @transform_3(%arg0: i32, %arg1: i32) -> (i32, i32) {
    %c0_i32 = arith.constant 0 : i32
    %c0_i32_0 = arith.constant 0 : i32
    return %c0_i32, %arg1 : i32, i32
  }
  func.func @transform_4(%arg0: i32, %arg1: i32) -> (i32, i32) {
    %c0_i32 = arith.constant 0 : i32
    %c0_i32_0 = arith.constant 0 : i32
    return %c0_i32, %arg1 : i32, i32
  }
  func.func @transform_5(%arg0: i32, %arg1: i32) -> (i32, i32) {
    %c0_i32 = arith.constant 0 : i32
    return %arg0, %arg1 : i32, i32
  }
}

module attributes {stable_mosaic.version = 11 : i64} {
  func.func @_matmul_stats_kernel(%arg0: i32, %arg1: i32, %arg2: i32, %arg3: memref<512x1024xbf16, #tpu.memory_space<vmem>>, %arg4: memref<1024x128xbf16, #tpu.memory_space<vmem>>, %arg5: memref<512x128xbf16, #tpu.memory_space<vmem>>, %arg6: memref<8x128xf32, #tpu.memory_space<vmem>>, %arg7: memref<8x128xf32, #tpu.memory_space<vmem>>, %arg8: memref<512x128xf32, #tpu.memory_space<vmem>>) attributes {dimension_semantics = [#tpu.dimension_semantics<parallel>, #tpu.dimension_semantics<arbitrary>, #tpu.dimension_semantics<arbitrary>], iteration_bounds = array<i64: 1, 1, 1>, scalar_prefetch = 0 : i64, scratch_operands = 1 : i64, tpu.core_type = #tpu.core_type<tc>, window_params = [{transform_indices = @transform_0, window_bounds = array<i64: 512, 1024>}, {transform_indices = @transform_1, window_bounds = array<i64: 1024, 128>}, {transform_indices = @transform_2, window_bounds = array<i64: 512, 128>}, {transform_indices = @transform_3, window_bounds = array<i64: 8, 128>}, {transform_indices = @transform_4, window_bounds = array<i64: 8, 128>}]} {
    %c0_i32 = arith.constant 0 : i32
    %0 = arith.cmpi eq, %arg2, %c0_i32 : i32
    %1 = arith.extui %0 : i1 to i32
    %c0_i32_0 = arith.constant 0 : i32
    %2 = arith.cmpi ne, %1, %c0_i32_0 : i32
    scf.if %2 {
      %cst_10 = arith.constant 0.000000e+00 : f32
      %12 = vector.broadcast %cst_10 : f32 to vector<512x128xf32>
      %c0_11 = arith.constant 0 : index
      %c0_12 = arith.constant 0 : index
      %13 = vector.load %arg8[%c0_11, %c0_12] : memref<512x128xf32, #tpu.memory_space<vmem>>, vector<512x128xf32>
      tpu.vector_store %arg8[%c0_11, %c0_12], %12 {strides = array<i32>} : memref<512x128xf32, #tpu.memory_space<vmem>>, vector<512x128xf32>,
    } else {
    }
    %c0 = arith.constant 0 : index
    %c0_1 = arith.constant 0 : index
    %3 = vector.load %arg8[%c0, %c0_1] : memref<512x128xf32, #tpu.memory_space<vmem>>, vector<512x128xf32>
    %c0_2 = arith.constant 0 : index
    %c0_3 = arith.constant 0 : index
    %4 = vector.load %arg3[%c0_2, %c0_3] : memref<512x1024xbf16, #tpu.memory_space<vmem>>, vector<512x1024xbf16>
    %c0_4 = arith.constant 0 : index
    %c0_5 = arith.constant 0 : index
    %5 = vector.load %arg4[%c0_4, %c0_5] : memref<1024x128xbf16, #tpu.memory_space<vmem>>, vector<1024x128xbf16>
    %cst = arith.constant dense<0.000000e+00> : vector<512x128xf32>
    %6 = tpu.matmul %4, %5, %cst {dimension_numbers = #tpu.dot_dimension_numbers<[1], [0], [0], [1], [0, 0, 1, 1], [], []>} : vector<512x1024xbf16>, vector<1024x128xbf16>, vector<512x128xf32> -> vector<512x128xf32>
    %7 = arith.addf %3, %6 : vector<512x128xf32>
    %c0_6 = arith.constant 0 : index
    %c0_7 = arith.constant 0 : index
    %8 = vector.load %arg8[%c0_6, %c0_7] : memref<512x128xf32, #tpu.memory_space<vmem>>, vector<512x128xf32>
    tpu.vector_store %arg8[%c0_6, %c0_7], %7 {strides = array<i32>} : memref<512x128xf32, #tpu.memory_space<vmem>>, vector<512x128xf32>,
    %c0_i32_8 = arith.constant 0 : i32
    %9 = arith.cmpi eq, %arg2, %c0_i32_8 : i32
    %10 = arith.extui %9 : i1 to i32
    %c0_i32_9 = arith.constant 0 : i32
    %11 = arith.cmpi ne, %10, %c0_i32_9 : i32
    scf.if %11 {
      %c0_10 = arith.constant 0 : index
      %c0_11 = arith.constant 0 : index
      %12 = vector.load %arg8[%c0_10, %c0_11] : memref<512x128xf32, #tpu.memory_space<vmem>>, vector<512x128xf32>
      %c0_i32_12 = arith.constant 0 : i32
      %13 = arith.cmpi eq, %arg1, %c0_i32_12 : i32
      %14 = arith.extui %13 : i1 to i32
      %c0_i32_13 = arith.constant 0 : i32
      %15 = arith.cmpi ne, %14, %c0_i32_13 : i32
      scf.if %15 {
        %cst_26 = arith.constant 0.000000e+00 : f32
        %31 = vector.broadcast %cst_26 : f32 to vector<8x128xf32>
        %c0_27 = arith.constant 0 : index
        %c0_28 = arith.constant 0 : index
        %32 = vector.load %arg6[%c0_27, %c0_28] : memref<8x128xf32, #tpu.memory_space<vmem>>, vector<8x128xf32>
        tpu.vector_store %arg6[%c0_27, %c0_28], %31 {strides = array<i32>} : memref<8x128xf32, #tpu.memory_space<vmem>>, vector<8x128xf32>,
        %cst_29 = arith.constant 0.000000e+00 : f32
        %33 = vector.broadcast %cst_29 : f32 to vector<8x128xf32>
        %c0_30 = arith.constant 0 : index
        %c0_31 = arith.constant 0 : index
        %34 = vector.load %arg7[%c0_30, %c0_31] : memref<8x128xf32, #tpu.memory_space<vmem>>, vector<8x128xf32>
        tpu.vector_store %arg7[%c0_30, %c0_31], %33 {strides = array<i32>} : memref<8x128xf32, #tpu.memory_space<vmem>>, vector<8x128xf32>,
      } else {
      }
      %c0_14 = arith.constant 0 : index
      %c0_15 = arith.constant 0 : index
      %16 = vector.load %arg6[%c0_14, %c0_15] : memref<8x128xf32, #tpu.memory_space<vmem>>, vector<8x128xf32>
      %cst_16 = arith.constant dense<0.000000e+00> : vector<128xf32>
      %17 = vector.multi_reduction <add>, %12, %cst_16 [0] : vector<512x128xf32> to vector<128xf32>
      %18 = vector.shape_cast %17 : vector<128xf32> to vector<1x128xf32>
      %19 = vector.broadcast %18 : vector<1x128xf32> to vector<8x128xf32>
      %20 = arith.addf %16, %19 : vector<8x128xf32>
      %c0_17 = arith.constant 0 : index
      %c0_18 = arith.constant 0 : index
      %21 = vector.load %arg6[%c0_17, %c0_18] : memref<8x128xf32, #tpu.memory_space<vmem>>, vector<8x128xf32>
      tpu.vector_store %arg6[%c0_17, %c0_18], %20 {strides = array<i32>} : memref<8x128xf32, #tpu.memory_space<vmem>>, vector<8x128xf32>,
      %c0_19 = arith.constant 0 : index
      %c0_20 = arith.constant 0 : index
      %22 = vector.load %arg7[%c0_19, %c0_20] : memref<8x128xf32, #tpu.memory_space<vmem>>, vector<8x128xf32>
      %23 = arith.mulf %12, %12 : vector<512x128xf32>
      %cst_21 = arith.constant dense<0.000000e+00> : vector<128xf32>
      %24 = vector.multi_reduction <add>, %23, %cst_21 [0] : vector<512x128xf32> to vector<128xf32>
      %25 = vector.shape_cast %24 : vector<128xf32> to vector<1x128xf32>
      %26 = vector.broadcast %25 : vector<1x128xf32> to vector<8x128xf32>
      %27 = arith.addf %22, %26 : vector<8x128xf32>
      %c0_22 = arith.constant 0 : index
      %c0_23 = arith.constant 0 : index
      %28 = vector.load %arg7[%c0_22, %c0_23] : memref<8x128xf32, #tpu.memory_space<vmem>>, vector<8x128xf32>
      tpu.vector_store %arg7[%c0_22, %c0_23], %27 {strides = array<i32>} : memref<8x128xf32, #tpu.memory_space<vmem>>, vector<8x128xf32>,
      %29 = arith.truncf %12 : vector<512x128xf32> to vector<512x128xbf16>
      %c0_24 = arith.constant 0 : index
      %c0_25 = arith.constant 0 : index
      %30 = vector.load %arg5[%c0_24, %c0_25] : memref<512x128xbf16, #tpu.memory_space<vmem>>, vector<512x128xbf16>
      tpu.vector_store %arg5[%c0_24, %c0_25], %29 {strides = array<i32>} : memref<512x128xbf16, #tpu.memory_space<vmem>>, vector<512x128xbf16>,
    } else {
    }
    return
  }
  func.func @transform_0(%arg0: i32, %arg1: i32, %arg2: i32) -> (i32, i32) {
    %c0_i32 = arith.constant 0 : i32
    return %arg1, %arg2 : i32, i32
  }
  func.func @transform_1(%arg0: i32, %arg1: i32, %arg2: i32) -> (i32, i32) {
    %c0_i32 = arith.constant 0 : i32
    return %arg2, %arg0 : i32, i32
  }
  func.func @transform_2(%arg0: i32, %arg1: i32, %arg2: i32) -> (i32, i32) {
    %c0_i32 = arith.constant 0 : i32
    return %arg1, %arg0 : i32, i32
  }
  func.func @transform_3(%arg0: i32, %arg1: i32, %arg2: i32) -> (i32, i32) {
    %c0_i32 = arith.constant 0 : i32
    %c0_i32_0 = arith.constant 0 : i32
    return %c0_i32, %arg0 : i32, i32
  }
  func.func @transform_4(%arg0: i32, %arg1: i32, %arg2: i32) -> (i32, i32) {
    %c0_i32 = arith.constant 0 : i32
    %c0_i32_0 = arith.constant 0 : i32
    return %c0_i32, %arg0 : i32, i32
  }
}

module attributes {stable_mosaic.version = 11 : i64} {
  func.func @_matmul_stats_kernel(%arg0: i32, %arg1: i32, %arg2: i32, %arg3: memref<128x1024xbf16, #tpu.memory_space<vmem>>, %arg4: memref<1024x256xbf16, #tpu.memory_space<vmem>>, %arg5: memref<128x256xbf16, #tpu.memory_space<vmem>>, %arg6: memref<8x256xf32, #tpu.memory_space<vmem>>, %arg7: memref<8x256xf32, #tpu.memory_space<vmem>>, %arg8: memref<128x256xf32, #tpu.memory_space<vmem>>) attributes {dimension_semantics = [#tpu.dimension_semantics<parallel>, #tpu.dimension_semantics<arbitrary>, #tpu.dimension_semantics<arbitrary>], iteration_bounds = array<i64: 1, 1, 2>, scalar_prefetch = 0 : i64, scratch_operands = 1 : i64, tpu.core_type = #tpu.core_type<tc>, window_params = [{transform_indices = @transform_0, window_bounds = array<i64: 128, 1024>}, {transform_indices = @transform_1, window_bounds = array<i64: 1024, 256>}, {transform_indices = @transform_2, window_bounds = array<i64: 128, 256>}, {transform_indices = @transform_3, window_bounds = array<i64: 8, 256>}, {transform_indices = @transform_4, window_bounds = array<i64: 8, 256>}]} {
    %c0_i32 = arith.constant 0 : i32
    %0 = arith.cmpi eq, %arg2, %c0_i32 : i32
    %1 = arith.extui %0 : i1 to i32
    %c0_i32_0 = arith.constant 0 : i32
    %2 = arith.cmpi ne, %1, %c0_i32_0 : i32
    scf.if %2 {
      %cst_9 = arith.constant 0.000000e+00 : f32
      %12 = vector.broadcast %cst_9 : f32 to vector<128x256xf32>
      %c0_10 = arith.constant 0 : index
      %c0_11 = arith.constant 0 : index
      %13 = vector.load %arg8[%c0_10, %c0_11] : memref<128x256xf32, #tpu.memory_space<vmem>>, vector<128x256xf32>
      tpu.vector_store %arg8[%c0_10, %c0_11], %12 {strides = array<i32>} : memref<128x256xf32, #tpu.memory_space<vmem>>, vector<128x256xf32>,
    } else {
    }
    %c0 = arith.constant 0 : index
    %c0_1 = arith.constant 0 : index
    %3 = vector.load %arg8[%c0, %c0_1] : memref<128x256xf32, #tpu.memory_space<vmem>>, vector<128x256xf32>
    %c0_2 = arith.constant 0 : index
    %c0_3 = arith.constant 0 : index
    %4 = vector.load %arg3[%c0_2, %c0_3] : memref<128x1024xbf16, #tpu.memory_space<vmem>>, vector<128x1024xbf16>
    %c0_4 = arith.constant 0 : index
    %c0_5 = arith.constant 0 : index
    %5 = vector.load %arg4[%c0_4, %c0_5] : memref<1024x256xbf16, #tpu.memory_space<vmem>>, vector<1024x256xbf16>
    %cst = arith.constant dense<0.000000e+00> : vector<128x256xf32>
    %6 = tpu.matmul %4, %5, %cst {dimension_numbers = #tpu.dot_dimension_numbers<[1], [0], [0], [1], [0, 0, 1, 1], [], []>} : vector<128x1024xbf16>, vector<1024x256xbf16>, vector<128x256xf32> -> vector<128x256xf32>
    %7 = arith.addf %3, %6 : vector<128x256xf32>
    %c0_6 = arith.constant 0 : index
    %c0_7 = arith.constant 0 : index
    %8 = vector.load %arg8[%c0_6, %c0_7] : memref<128x256xf32, #tpu.memory_space<vmem>>, vector<128x256xf32>
    tpu.vector_store %arg8[%c0_6, %c0_7], %7 {strides = array<i32>} : memref<128x256xf32, #tpu.memory_space<vmem>>, vector<128x256xf32>,
    %c1_i32 = arith.constant 1 : i32
    %9 = arith.cmpi eq, %arg2, %c1_i32 : i32
    %10 = arith.extui %9 : i1 to i32
    %c0_i32_8 = arith.constant 0 : i32
    %11 = arith.cmpi ne, %10, %c0_i32_8 : i32
    scf.if %11 {
      %c0_9 = arith.constant 0 : index
      %c0_10 = arith.constant 0 : index
      %12 = vector.load %arg8[%c0_9, %c0_10] : memref<128x256xf32, #tpu.memory_space<vmem>>, vector<128x256xf32>
      %c0_i32_11 = arith.constant 0 : i32
      %13 = arith.cmpi eq, %arg1, %c0_i32_11 : i32
      %14 = arith.extui %13 : i1 to i32
      %c0_i32_12 = arith.constant 0 : i32
      %15 = arith.cmpi ne, %14, %c0_i32_12 : i32
      scf.if %15 {
        %cst_25 = arith.constant 0.000000e+00 : f32
        %31 = vector.broadcast %cst_25 : f32 to vector<8x256xf32>
        %c0_26 = arith.constant 0 : index
        %c0_27 = arith.constant 0 : index
        %32 = vector.load %arg6[%c0_26, %c0_27] : memref<8x256xf32, #tpu.memory_space<vmem>>, vector<8x256xf32>
        tpu.vector_store %arg6[%c0_26, %c0_27], %31 {strides = array<i32>} : memref<8x256xf32, #tpu.memory_space<vmem>>, vector<8x256xf32>,
        %cst_28 = arith.constant 0.000000e+00 : f32
        %33 = vector.broadcast %cst_28 : f32 to vector<8x256xf32>
        %c0_29 = arith.constant 0 : index
        %c0_30 = arith.constant 0 : index
        %34 = vector.load %arg7[%c0_29, %c0_30] : memref<8x256xf32, #tpu.memory_space<vmem>>, vector<8x256xf32>
        tpu.vector_store %arg7[%c0_29, %c0_30], %33 {strides = array<i32>} : memref<8x256xf32, #tpu.memory_space<vmem>>, vector<8x256xf32>,
      } else {
      }
      %c0_13 = arith.constant 0 : index
      %c0_14 = arith.constant 0 : index
      %16 = vector.load %arg6[%c0_13, %c0_14] : memref<8x256xf32, #tpu.memory_space<vmem>>, vector<8x256xf32>
      %cst_15 = arith.constant dense<0.000000e+00> : vector<256xf32>
      %17 = vector.multi_reduction <add>, %12, %cst_15 [0] : vector<128x256xf32> to vector<256xf32>
      %18 = vector.shape_cast %17 : vector<256xf32> to vector<1x256xf32>
      %19 = vector.broadcast %18 : vector<1x256xf32> to vector<8x256xf32>
      %20 = arith.addf %16, %19 : vector<8x256xf32>
      %c0_16 = arith.constant 0 : index
      %c0_17 = arith.constant 0 : index
      %21 = vector.load %arg6[%c0_16, %c0_17] : memref<8x256xf32, #tpu.memory_space<vmem>>, vector<8x256xf32>
      tpu.vector_store %arg6[%c0_16, %c0_17], %20 {strides = array<i32>} : memref<8x256xf32, #tpu.memory_space<vmem>>, vector<8x256xf32>,
      %c0_18 = arith.constant 0 : index
      %c0_19 = arith.constant 0 : index
      %22 = vector.load %arg7[%c0_18, %c0_19] : memref<8x256xf32, #tpu.memory_space<vmem>>, vector<8x256xf32>
      %23 = arith.mulf %12, %12 : vector<128x256xf32>
      %cst_20 = arith.constant dense<0.000000e+00> : vector<256xf32>
      %24 = vector.multi_reduction <add>, %23, %cst_20 [0] : vector<128x256xf32> to vector<256xf32>
      %25 = vector.shape_cast %24 : vector<256xf32> to vector<1x256xf32>
      %26 = vector.broadcast %25 : vector<1x256xf32> to vector<8x256xf32>
      %27 = arith.addf %22, %26 : vector<8x256xf32>
      %c0_21 = arith.constant 0 : index
      %c0_22 = arith.constant 0 : index
      %28 = vector.load %arg7[%c0_21, %c0_22] : memref<8x256xf32, #tpu.memory_space<vmem>>, vector<8x256xf32>
      tpu.vector_store %arg7[%c0_21, %c0_22], %27 {strides = array<i32>} : memref<8x256xf32, #tpu.memory_space<vmem>>, vector<8x256xf32>,
      %29 = arith.truncf %12 : vector<128x256xf32> to vector<128x256xbf16>
      %c0_23 = arith.constant 0 : index
      %c0_24 = arith.constant 0 : index
      %30 = vector.load %arg5[%c0_23, %c0_24] : memref<128x256xbf16, #tpu.memory_space<vmem>>, vector<128x256xbf16>
      tpu.vector_store %arg5[%c0_23, %c0_24], %29 {strides = array<i32>} : memref<128x256xbf16, #tpu.memory_space<vmem>>, vector<128x256xbf16>,
    } else {
    }
    return
  }
  func.func @transform_0(%arg0: i32, %arg1: i32, %arg2: i32) -> (i32, i32) {
    %c0_i32 = arith.constant 0 : i32
    return %arg1, %arg2 : i32, i32
  }
  func.func @transform_1(%arg0: i32, %arg1: i32, %arg2: i32) -> (i32, i32) {
    %c0_i32 = arith.constant 0 : i32
    return %arg2, %arg0 : i32, i32
  }
  func.func @transform_2(%arg0: i32, %arg1: i32, %arg2: i32) -> (i32, i32) {
    %c0_i32 = arith.constant 0 : i32
    return %arg1, %arg0 : i32, i32
  }
  func.func @transform_3(%arg0: i32, %arg1: i32, %arg2: i32) -> (i32, i32) {
    %c0_i32 = arith.constant 0 : i32
    %c0_i32_0 = arith.constant 0 : i32
    return %c0_i32, %arg0 : i32, i32
  }
  func.func @transform_4(%arg0: i32, %arg1: i32, %arg2: i32) -> (i32, i32) {
    %c0_i32 = arith.constant 0 : i32
    %c0_i32_0 = arith.constant 0 : i32
    return %c0_i32, %arg0 : i32, i32
  }
}

module attributes {stable_mosaic.version = 11 : i64} {
  func.func @_bn_apply_kernel(%arg0: i32, %arg1: i32, %arg2: memref<128x128xbf16, #tpu.memory_space<vmem>>, %arg3: memref<8x128xf32, #tpu.memory_space<vmem>>, %arg4: memref<8x128xf32, #tpu.memory_space<vmem>>, %arg5: memref<1x128xf32, #tpu.memory_space<vmem>>, %arg6: memref<1x128xf32, #tpu.memory_space<vmem>>, %arg7: memref<128x128xbf16, #tpu.memory_space<vmem>>) attributes {dimension_semantics = [#tpu.dimension_semantics<parallel>, #tpu.dimension_semantics<parallel>], iteration_bounds = array<i64: 1, 2>, scalar_prefetch = 0 : i64, scratch_operands = 0 : i64, tpu.core_type = #tpu.core_type<tc>, window_params = [{transform_indices = @transform_0, window_bounds = array<i64: 128, 128>}, {transform_indices = @transform_1, window_bounds = array<i64: 8, 128>}, {transform_indices = @transform_2, window_bounds = array<i64: 8, 128>}, {transform_indices = @transform_3, window_bounds = array<i64: 1, 128>}, {transform_indices = @transform_4, window_bounds = array<i64: 1, 128>}, {transform_indices = @transform_5, window_bounds = array<i64: 128, 128>}]} {
    %c0 = arith.constant 0 : index
    %c0_0 = arith.constant 0 : index
    %0 = vector.load %arg3[%c0, %c0_0] : memref<8x128xf32, #tpu.memory_space<vmem>>, vector<8x128xf32>
    %c0_1 = arith.constant 0 : index
    %c0_2 = arith.constant 0 : index
    %1 = vector.load %arg4[%c0_1, %c0_2] : memref<8x128xf32, #tpu.memory_space<vmem>>, vector<8x128xf32>
    %2 = vector.extract_strided_slice %0 {offsets = [0, 0], sizes = [1, 128], strides = [1, 1]} : vector<8x128xf32> to vector<1x128xf32>
    %cst = arith.constant 7.812500e-03 : f32
    %3 = vector.broadcast %cst : f32 to vector<1x128xf32>
    %4 = arith.mulf %2, %3 : vector<1x128xf32>
    %5 = vector.extract_strided_slice %1 {offsets = [0, 0], sizes = [1, 128], strides = [1, 1]} : vector<8x128xf32> to vector<1x128xf32>
    %cst_3 = arith.constant 7.812500e-03 : f32
    %6 = vector.broadcast %cst_3 : f32 to vector<1x128xf32>
    %7 = arith.mulf %5, %6 : vector<1x128xf32>
    %8 = arith.mulf %4, %4 : vector<1x128xf32>
    %9 = arith.subf %7, %8 : vector<1x128xf32>
    %cst_4 = arith.constant 0.000000e+00 : f32
    %10 = vector.broadcast %cst_4 : f32 to vector<1x128xf32>
    %11 = arith.maximumf %9, %10 : vector<1x128xf32>
    %c0_5 = arith.constant 0 : index
    %c0_6 = arith.constant 0 : index
    %12 = vector.load %arg5[%c0_5, %c0_6] : memref<1x128xf32, #tpu.memory_space<vmem>>, vector<1x128xf32>
    %cst_7 = arith.constant 9.99999974E-6 : f32
    %13 = vector.broadcast %cst_7 : f32 to vector<1x128xf32>
    %14 = arith.addf %11, %13 : vector<1x128xf32>
    %15 = math.rsqrt %14 : vector<1x128xf32>
    %16 = arith.mulf %12, %15 : vector<1x128xf32>
    %c0_8 = arith.constant 0 : index
    %c0_9 = arith.constant 0 : index
    %17 = vector.load %arg6[%c0_8, %c0_9] : memref<1x128xf32, #tpu.memory_space<vmem>>, vector<1x128xf32>
    %18 = arith.mulf %4, %16 : vector<1x128xf32>
    %19 = arith.subf %17, %18 : vector<1x128xf32>
    %c0_10 = arith.constant 0 : index
    %c0_11 = arith.constant 0 : index
    %20 = vector.load %arg2[%c0_10, %c0_11] : memref<128x128xbf16, #tpu.memory_space<vmem>>, vector<128x128xbf16>
    %21 = arith.extf %20 : vector<128x128xbf16> to vector<128x128xf32>
    %22 = vector.broadcast %16 : vector<1x128xf32> to vector<128x128xf32>
    %23 = arith.mulf %21, %22 : vector<128x128xf32>
    %24 = vector.broadcast %19 : vector<1x128xf32> to vector<128x128xf32>
    %25 = arith.addf %23, %24 : vector<128x128xf32>
    %cst_12 = arith.constant 0.000000e+00 : f32
    %26 = vector.broadcast %cst_12 : f32 to vector<128x128xf32>
    %27 = arith.cmpf oge, %25, %26 : vector<128x128xf32>
    %cst_13 = arith.constant 2.000000e-01 : f32
    %28 = vector.broadcast %cst_13 : f32 to vector<128x128xf32>
    %29 = arith.mulf %28, %25 : vector<128x128xf32>
    %30 = arith.select %27, %25, %29 : vector<128x128xi1>, vector<128x128xf32>
    %31 = arith.truncf %30 : vector<128x128xf32> to vector<128x128xbf16>
    %c0_14 = arith.constant 0 : index
    %c0_15 = arith.constant 0 : index
    %32 = vector.load %arg7[%c0_14, %c0_15] : memref<128x128xbf16, #tpu.memory_space<vmem>>, vector<128x128xbf16>
    tpu.vector_store %arg7[%c0_14, %c0_15], %31 {strides = array<i32>} : memref<128x128xbf16, #tpu.memory_space<vmem>>, vector<128x128xbf16>,
    return
  }
  func.func @transform_0(%arg0: i32, %arg1: i32) -> (i32, i32) {
    %c0_i32 = arith.constant 0 : i32
    return %arg0, %arg1 : i32, i32
  }
  func.func @transform_1(%arg0: i32, %arg1: i32) -> (i32, i32) {
    %c0_i32 = arith.constant 0 : i32
    %c0_i32_0 = arith.constant 0 : i32
    return %c0_i32, %arg1 : i32, i32
  }
  func.func @transform_2(%arg0: i32, %arg1: i32) -> (i32, i32) {
    %c0_i32 = arith.constant 0 : i32
    %c0_i32_0 = arith.constant 0 : i32
    return %c0_i32, %arg1 : i32, i32
  }
  func.func @transform_3(%arg0: i32, %arg1: i32) -> (i32, i32) {
    %c0_i32 = arith.constant 0 : i32
    %c0_i32_0 = arith.constant 0 : i32
    return %c0_i32, %arg1 : i32, i32
  }
  func.func @transform_4(%arg0: i32, %arg1: i32) -> (i32, i32) {
    %c0_i32 = arith.constant 0 : i32
    %c0_i32_0 = arith.constant 0 : i32
    return %c0_i32, %arg1 : i32, i32
  }
  func.func @transform_5(%arg0: i32, %arg1: i32) -> (i32, i32) {
    %c0_i32 = arith.constant 0 : i32
    return %arg0, %arg1 : i32, i32
  }
}

module attributes {stable_mosaic.version = 11 : i64} {
  func.func @_bn_apply_kernel(%arg0: i32, %arg1: i32, %arg2: memref<32x128xbf16, #tpu.memory_space<vmem>>, %arg3: memref<8x128xf32, #tpu.memory_space<vmem>>, %arg4: memref<8x128xf32, #tpu.memory_space<vmem>>, %arg5: memref<1x128xf32, #tpu.memory_space<vmem>>, %arg6: memref<1x128xf32, #tpu.memory_space<vmem>>, %arg7: memref<32x128xbf16, #tpu.memory_space<vmem>>) attributes {dimension_semantics = [#tpu.dimension_semantics<parallel>, #tpu.dimension_semantics<parallel>], iteration_bounds = array<i64: 1, 4>, scalar_prefetch = 0 : i64, scratch_operands = 0 : i64, tpu.core_type = #tpu.core_type<tc>, window_params = [{transform_indices = @transform_0, window_bounds = array<i64: 32, 128>}, {transform_indices = @transform_1, window_bounds = array<i64: 8, 128>}, {transform_indices = @transform_2, window_bounds = array<i64: 8, 128>}, {transform_indices = @transform_3, window_bounds = array<i64: 1, 128>}, {transform_indices = @transform_4, window_bounds = array<i64: 1, 128>}, {transform_indices = @transform_5, window_bounds = array<i64: 32, 128>}]} {
    %c0 = arith.constant 0 : index
    %c0_0 = arith.constant 0 : index
    %0 = vector.load %arg3[%c0, %c0_0] : memref<8x128xf32, #tpu.memory_space<vmem>>, vector<8x128xf32>
    %c0_1 = arith.constant 0 : index
    %c0_2 = arith.constant 0 : index
    %1 = vector.load %arg4[%c0_1, %c0_2] : memref<8x128xf32, #tpu.memory_space<vmem>>, vector<8x128xf32>
    %2 = vector.extract_strided_slice %0 {offsets = [0, 0], sizes = [1, 128], strides = [1, 1]} : vector<8x128xf32> to vector<1x128xf32>
    %cst = arith.constant 3.125000e-02 : f32
    %3 = vector.broadcast %cst : f32 to vector<1x128xf32>
    %4 = arith.mulf %2, %3 : vector<1x128xf32>
    %5 = vector.extract_strided_slice %1 {offsets = [0, 0], sizes = [1, 128], strides = [1, 1]} : vector<8x128xf32> to vector<1x128xf32>
    %cst_3 = arith.constant 3.125000e-02 : f32
    %6 = vector.broadcast %cst_3 : f32 to vector<1x128xf32>
    %7 = arith.mulf %5, %6 : vector<1x128xf32>
    %8 = arith.mulf %4, %4 : vector<1x128xf32>
    %9 = arith.subf %7, %8 : vector<1x128xf32>
    %cst_4 = arith.constant 0.000000e+00 : f32
    %10 = vector.broadcast %cst_4 : f32 to vector<1x128xf32>
    %11 = arith.maximumf %9, %10 : vector<1x128xf32>
    %c0_5 = arith.constant 0 : index
    %c0_6 = arith.constant 0 : index
    %12 = vector.load %arg5[%c0_5, %c0_6] : memref<1x128xf32, #tpu.memory_space<vmem>>, vector<1x128xf32>
    %cst_7 = arith.constant 9.99999974E-6 : f32
    %13 = vector.broadcast %cst_7 : f32 to vector<1x128xf32>
    %14 = arith.addf %11, %13 : vector<1x128xf32>
    %15 = math.rsqrt %14 : vector<1x128xf32>
    %16 = arith.mulf %12, %15 : vector<1x128xf32>
    %c0_8 = arith.constant 0 : index
    %c0_9 = arith.constant 0 : index
    %17 = vector.load %arg6[%c0_8, %c0_9] : memref<1x128xf32, #tpu.memory_space<vmem>>, vector<1x128xf32>
    %18 = arith.mulf %4, %16 : vector<1x128xf32>
    %19 = arith.subf %17, %18 : vector<1x128xf32>
    %c0_10 = arith.constant 0 : index
    %c0_11 = arith.constant 0 : index
    %20 = vector.load %arg2[%c0_10, %c0_11] : memref<32x128xbf16, #tpu.memory_space<vmem>>, vector<32x128xbf16>
    %21 = arith.extf %20 : vector<32x128xbf16> to vector<32x128xf32>
    %22 = vector.broadcast %16 : vector<1x128xf32> to vector<32x128xf32>
    %23 = arith.mulf %21, %22 : vector<32x128xf32>
    %24 = vector.broadcast %19 : vector<1x128xf32> to vector<32x128xf32>
    %25 = arith.addf %23, %24 : vector<32x128xf32>
    %cst_12 = arith.constant 0.000000e+00 : f32
    %26 = vector.broadcast %cst_12 : f32 to vector<32x128xf32>
    %27 = arith.cmpf oge, %25, %26 : vector<32x128xf32>
    %cst_13 = arith.constant 2.000000e-01 : f32
    %28 = vector.broadcast %cst_13 : f32 to vector<32x128xf32>
    %29 = arith.mulf %28, %25 : vector<32x128xf32>
    %30 = arith.select %27, %25, %29 : vector<32x128xi1>, vector<32x128xf32>
    %31 = arith.truncf %30 : vector<32x128xf32> to vector<32x128xbf16>
    %c0_14 = arith.constant 0 : index
    %c0_15 = arith.constant 0 : index
    %32 = vector.load %arg7[%c0_14, %c0_15] : memref<32x128xbf16, #tpu.memory_space<vmem>>, vector<32x128xbf16>
    tpu.vector_store %arg7[%c0_14, %c0_15], %31 {strides = array<i32>} : memref<32x128xbf16, #tpu.memory_space<vmem>>, vector<32x128xbf16>,
    return
  }
  func.func @transform_0(%arg0: i32, %arg1: i32) -> (i32, i32) {
    %c0_i32 = arith.constant 0 : i32
    return %arg0, %arg1 : i32, i32
  }
  func.func @transform_1(%arg0: i32, %arg1: i32) -> (i32, i32) {
    %c0_i32 = arith.constant 0 : i32
    %c0_i32_0 = arith.constant 0 : i32
    return %c0_i32, %arg1 : i32, i32
  }
  func.func @transform_2(%arg0: i32, %arg1: i32) -> (i32, i32) {
    %c0_i32 = arith.constant 0 : i32
    %c0_i32_0 = arith.constant 0 : i32
    return %c0_i32, %arg1 : i32, i32
  }
  func.func @transform_3(%arg0: i32, %arg1: i32) -> (i32, i32) {
    %c0_i32 = arith.constant 0 : i32
    %c0_i32_0 = arith.constant 0 : i32
    return %c0_i32, %arg1 : i32, i32
  }
  func.func @transform_4(%arg0: i32, %arg1: i32) -> (i32, i32) {
    %c0_i32 = arith.constant 0 : i32
    %c0_i32_0 = arith.constant 0 : i32
    return %c0_i32, %arg1 : i32, i32
  }
  func.func @transform_5(%arg0: i32, %arg1: i32) -> (i32, i32) {
    %c0_i32 = arith.constant 0 : i32
    return %arg0, %arg1 : i32, i32
  }
}

module attributes {stable_mosaic.version = 11 : i64} {
  func.func @_matmul_stats_kernel(%arg0: i32, %arg1: i32, %arg2: i32, %arg3: memref<32x1024xbf16, #tpu.memory_space<vmem>>, %arg4: memref<1024x256xbf16, #tpu.memory_space<vmem>>, %arg5: memref<32x256xbf16, #tpu.memory_space<vmem>>, %arg6: memref<8x256xf32, #tpu.memory_space<vmem>>, %arg7: memref<8x256xf32, #tpu.memory_space<vmem>>, %arg8: memref<32x256xf32, #tpu.memory_space<vmem>>) attributes {dimension_semantics = [#tpu.dimension_semantics<parallel>, #tpu.dimension_semantics<arbitrary>, #tpu.dimension_semantics<arbitrary>], iteration_bounds = array<i64: 2, 1, 4>, scalar_prefetch = 0 : i64, scratch_operands = 1 : i64, tpu.core_type = #tpu.core_type<tc>, window_params = [{transform_indices = @transform_0, window_bounds = array<i64: 32, 1024>}, {transform_indices = @transform_1, window_bounds = array<i64: 1024, 256>}, {transform_indices = @transform_2, window_bounds = array<i64: 32, 256>}, {transform_indices = @transform_3, window_bounds = array<i64: 8, 256>}, {transform_indices = @transform_4, window_bounds = array<i64: 8, 256>}]} {
    %c0_i32 = arith.constant 0 : i32
    %0 = arith.cmpi eq, %arg2, %c0_i32 : i32
    %1 = arith.extui %0 : i1 to i32
    %c0_i32_0 = arith.constant 0 : i32
    %2 = arith.cmpi ne, %1, %c0_i32_0 : i32
    scf.if %2 {
      %cst_9 = arith.constant 0.000000e+00 : f32
      %12 = vector.broadcast %cst_9 : f32 to vector<32x256xf32>
      %c0_10 = arith.constant 0 : index
      %c0_11 = arith.constant 0 : index
      %13 = vector.load %arg8[%c0_10, %c0_11] : memref<32x256xf32, #tpu.memory_space<vmem>>, vector<32x256xf32>
      tpu.vector_store %arg8[%c0_10, %c0_11], %12 {strides = array<i32>} : memref<32x256xf32, #tpu.memory_space<vmem>>, vector<32x256xf32>,
    } else {
    }
    %c0 = arith.constant 0 : index
    %c0_1 = arith.constant 0 : index
    %3 = vector.load %arg8[%c0, %c0_1] : memref<32x256xf32, #tpu.memory_space<vmem>>, vector<32x256xf32>
    %c0_2 = arith.constant 0 : index
    %c0_3 = arith.constant 0 : index
    %4 = vector.load %arg3[%c0_2, %c0_3] : memref<32x1024xbf16, #tpu.memory_space<vmem>>, vector<32x1024xbf16>
    %c0_4 = arith.constant 0 : index
    %c0_5 = arith.constant 0 : index
    %5 = vector.load %arg4[%c0_4, %c0_5] : memref<1024x256xbf16, #tpu.memory_space<vmem>>, vector<1024x256xbf16>
    %cst = arith.constant dense<0.000000e+00> : vector<32x256xf32>
    %6 = tpu.matmul %4, %5, %cst {dimension_numbers = #tpu.dot_dimension_numbers<[1], [0], [0], [1], [0, 0, 1, 1], [], []>} : vector<32x1024xbf16>, vector<1024x256xbf16>, vector<32x256xf32> -> vector<32x256xf32>
    %7 = arith.addf %3, %6 : vector<32x256xf32>
    %c0_6 = arith.constant 0 : index
    %c0_7 = arith.constant 0 : index
    %8 = vector.load %arg8[%c0_6, %c0_7] : memref<32x256xf32, #tpu.memory_space<vmem>>, vector<32x256xf32>
    tpu.vector_store %arg8[%c0_6, %c0_7], %7 {strides = array<i32>} : memref<32x256xf32, #tpu.memory_space<vmem>>, vector<32x256xf32>,
    %c3_i32 = arith.constant 3 : i32
    %9 = arith.cmpi eq, %arg2, %c3_i32 : i32
    %10 = arith.extui %9 : i1 to i32
    %c0_i32_8 = arith.constant 0 : i32
    %11 = arith.cmpi ne, %10, %c0_i32_8 : i32
    scf.if %11 {
      %c0_9 = arith.constant 0 : index
      %c0_10 = arith.constant 0 : index
      %12 = vector.load %arg8[%c0_9, %c0_10] : memref<32x256xf32, #tpu.memory_space<vmem>>, vector<32x256xf32>
      %c0_i32_11 = arith.constant 0 : i32
      %13 = arith.cmpi eq, %arg1, %c0_i32_11 : i32
      %14 = arith.extui %13 : i1 to i32
      %c0_i32_12 = arith.constant 0 : i32
      %15 = arith.cmpi ne, %14, %c0_i32_12 : i32
      scf.if %15 {
        %cst_25 = arith.constant 0.000000e+00 : f32
        %31 = vector.broadcast %cst_25 : f32 to vector<8x256xf32>
        %c0_26 = arith.constant 0 : index
        %c0_27 = arith.constant 0 : index
        %32 = vector.load %arg6[%c0_26, %c0_27] : memref<8x256xf32, #tpu.memory_space<vmem>>, vector<8x256xf32>
        tpu.vector_store %arg6[%c0_26, %c0_27], %31 {strides = array<i32>} : memref<8x256xf32, #tpu.memory_space<vmem>>, vector<8x256xf32>,
        %cst_28 = arith.constant 0.000000e+00 : f32
        %33 = vector.broadcast %cst_28 : f32 to vector<8x256xf32>
        %c0_29 = arith.constant 0 : index
        %c0_30 = arith.constant 0 : index
        %34 = vector.load %arg7[%c0_29, %c0_30] : memref<8x256xf32, #tpu.memory_space<vmem>>, vector<8x256xf32>
        tpu.vector_store %arg7[%c0_29, %c0_30], %33 {strides = array<i32>} : memref<8x256xf32, #tpu.memory_space<vmem>>, vector<8x256xf32>,
      } else {
      }
      %c0_13 = arith.constant 0 : index
      %c0_14 = arith.constant 0 : index
      %16 = vector.load %arg6[%c0_13, %c0_14] : memref<8x256xf32, #tpu.memory_space<vmem>>, vector<8x256xf32>
      %cst_15 = arith.constant dense<0.000000e+00> : vector<256xf32>
      %17 = vector.multi_reduction <add>, %12, %cst_15 [0] : vector<32x256xf32> to vector<256xf32>
      %18 = vector.shape_cast %17 : vector<256xf32> to vector<1x256xf32>
      %19 = vector.broadcast %18 : vector<1x256xf32> to vector<8x256xf32>
      %20 = arith.addf %16, %19 : vector<8x256xf32>
      %c0_16 = arith.constant 0 : index
      %c0_17 = arith.constant 0 : index
      %21 = vector.load %arg6[%c0_16, %c0_17] : memref<8x256xf32, #tpu.memory_space<vmem>>, vector<8x256xf32>
      tpu.vector_store %arg6[%c0_16, %c0_17], %20 {strides = array<i32>} : memref<8x256xf32, #tpu.memory_space<vmem>>, vector<8x256xf32>,
      %c0_18 = arith.constant 0 : index
      %c0_19 = arith.constant 0 : index
      %22 = vector.load %arg7[%c0_18, %c0_19] : memref<8x256xf32, #tpu.memory_space<vmem>>, vector<8x256xf32>
      %23 = arith.mulf %12, %12 : vector<32x256xf32>
      %cst_20 = arith.constant dense<0.000000e+00> : vector<256xf32>
      %24 = vector.multi_reduction <add>, %23, %cst_20 [0] : vector<32x256xf32> to vector<256xf32>
      %25 = vector.shape_cast %24 : vector<256xf32> to vector<1x256xf32>
      %26 = vector.broadcast %25 : vector<1x256xf32> to vector<8x256xf32>
      %27 = arith.addf %22, %26 : vector<8x256xf32>
      %c0_21 = arith.constant 0 : index
      %c0_22 = arith.constant 0 : index
      %28 = vector.load %arg7[%c0_21, %c0_22] : memref<8x256xf32, #tpu.memory_space<vmem>>, vector<8x256xf32>
      tpu.vector_store %arg7[%c0_21, %c0_22], %27 {strides = array<i32>} : memref<8x256xf32, #tpu.memory_space<vmem>>, vector<8x256xf32>,
      %29 = arith.truncf %12 : vector<32x256xf32> to vector<32x256xbf16>
      %c0_23 = arith.constant 0 : index
      %c0_24 = arith.constant 0 : index
      %30 = vector.load %arg5[%c0_23, %c0_24] : memref<32x256xbf16, #tpu.memory_space<vmem>>, vector<32x256xbf16>
      tpu.vector_store %arg5[%c0_23, %c0_24], %29 {strides = array<i32>} : memref<32x256xbf16, #tpu.memory_space<vmem>>, vector<32x256xbf16>,
    } else {
    }
    return
  }
  func.func @transform_0(%arg0: i32, %arg1: i32, %arg2: i32) -> (i32, i32) {
    %c0_i32 = arith.constant 0 : i32
    return %arg1, %arg2 : i32, i32
  }
  func.func @transform_1(%arg0: i32, %arg1: i32, %arg2: i32) -> (i32, i32) {
    %c0_i32 = arith.constant 0 : i32
    return %arg2, %arg0 : i32, i32
  }
  func.func @transform_2(%arg0: i32, %arg1: i32, %arg2: i32) -> (i32, i32) {
    %c0_i32 = arith.constant 0 : i32
    return %arg1, %arg0 : i32, i32
  }
  func.func @transform_3(%arg0: i32, %arg1: i32, %arg2: i32) -> (i32, i32) {
    %c0_i32 = arith.constant 0 : i32
    %c0_i32_0 = arith.constant 0 : i32
    return %c0_i32, %arg0 : i32, i32
  }
  func.func @transform_4(%arg0: i32, %arg1: i32, %arg2: i32) -> (i32, i32) {
    %c0_i32 = arith.constant 0 : i32
    %c0_i32_0 = arith.constant 0 : i32
    return %c0_i32, %arg0 : i32, i32
  }
}

module attributes {stable_mosaic.version = 11 : i64} {
  func.func @_conv5_kernel(%arg0: i32, %arg1: memref<16x8192xbf16, #tpu.memory_space<vmem>>, %arg2: memref<1x8192xbf16, #tpu.memory_space<vmem>>, %arg3: memref<16x1xf32, #tpu.memory_space<vmem>>) attributes {dimension_semantics = [#tpu.dimension_semantics<parallel>], iteration_bounds = array<i64: 1>, scalar_prefetch = 0 : i64, scratch_operands = 0 : i64, tpu.core_type = #tpu.core_type<tc>, window_params = [{transform_indices = @transform_0, window_bounds = array<i64: 16, 8192>}, {pipeline_mode = #tpu.pipeline_mode<synchronous>, transform_indices = @transform_1, window_bounds = array<i64: 1, 8192>}, {transform_indices = @transform_2, window_bounds = array<i64: 16, 1>}]} {
    %c0 = arith.constant 0 : index
    %c0_0 = arith.constant 0 : index
    %0 = vector.load %arg1[%c0, %c0_0] : memref<16x8192xbf16, #tpu.memory_space<vmem>>, vector<16x8192xbf16>
    %1 = arith.extf %0 : vector<16x8192xbf16> to vector<16x8192xf32>
    %c0_1 = arith.constant 0 : index
    %c0_2 = arith.constant 0 : index
    %2 = vector.load %arg2[%c0_1, %c0_2] : memref<1x8192xbf16, #tpu.memory_space<vmem>>, vector<1x8192xbf16>
    %3 = arith.extf %2 : vector<1x8192xbf16> to vector<1x8192xf32>
    %4 = vector.broadcast %3 : vector<1x8192xf32> to vector<16x8192xf32>
    %5 = arith.mulf %1, %4 : vector<16x8192xf32>
    %cst = arith.constant dense<0.000000e+00> : vector<16xf32>
    %6 = vector.multi_reduction <add>, %5, %cst [1] : vector<16x8192xf32> to vector<16xf32>
    %7 = vector.shape_cast %6 : vector<16xf32> to vector<16x1xf32>
    %8 = arith.negf %7 : vector<16x1xf32>
    %9 = math.exp %8 : vector<16x1xf32>
    %cst_3 = arith.constant 1.000000e+00 : f32
    %10 = vector.broadcast %cst_3 : f32 to vector<16x1xf32>
    %11 = arith.addf %10, %9 : vector<16x1xf32>
    %12 = arith.divf %10, %11 : vector<16x1xf32>
    %c0_4 = arith.constant 0 : index
    %c0_5 = arith.constant 0 : index
    %13 = vector.load %arg3[%c0_4, %c0_5] : memref<16x1xf32, #tpu.memory_space<vmem>>, vector<16x1xf32>
    tpu.vector_store %arg3[%c0_4, %c0_5], %12 {strides = array<i32>} : memref<16x1xf32, #tpu.memory_space<vmem>>, vector<16x1xf32>,
    return
  }
  func.func @transform_0(%arg0: i32) -> (i32, i32) {
    %c0_i32 = arith.constant 0 : i32
    %c0_i32_0 = arith.constant 0 : i32
    return %arg0, %c0_i32 : i32, i32
  }
  func.func @transform_1(%arg0: i32) -> (i32, i32) {
    %c0_i32 = arith.constant 0 : i32
    %c0_i32_0 = arith.constant 0 : i32
    %c0_i32_1 = arith.constant 0 : i32
    return %c0_i32, %c0_i32_0 : i32, i32
  }
  func.func @transform_2(%arg0: i32) -> (i32, i32) {
    %c0_i32 = arith.constant 0 : i32
    %c0_i32_0 = arith.constant 0 : i32
    return %arg0, %c0_i32 : i32, i32
  }
}

</mosaic_0001>

<bundles_post_ra>
// kernel: discriminator_forward.8
= control target key start
LH: loop header
LB: loop body
LE: loop exit
PB: predicated region body
PF: predicated region fallthrough
CT: control target
= control target key end

     0   :  { %s2376_s9 = smov 0   ;;  %s2378_s10 = smov 0   ;;  %s2517_s0 = inlined_call_operand.vmem [shape: bf16[2048,128], index: 0, kind: input, shape index: {}]   ;;  %s2518_s1 = inlined_call_operand.vmem [shape: bf16[128,128], index: 1, kind: input, shape index: {}]   ;;  %s2519_s2 = inlined_call_operand.vmem [shape: bf16[2048,128], index: 2, kind: output, shape index: {}]  }
   0x1   :  { %s2380_s11 = smov 0  }
   0x2 LB: > { %s27_s12 = sadd.s32 1, %s2355_s10  ;;  %p1771_p0 = scmp.ge.s32.totalorder %s2359_s11, 1  ;;  %s2359_s11 = sphi %s2380_s11, %s12_s11   ;;  %s2355_s10 = sphi %s2378_s10, %s2521_s10   ;;  %s2351_s9 = sphi %s2376_s9, %s2520_s9  }
   0x3   : > { %p29_p1 = scmp.ge.s32.totalorder %s27_s12, 4  ;;  %p155_p2 = scmp.lt.s32.totalorder %s2359_s11, 5 }
   0x5   : > { %s2523_s12 = smov (%p29_p1, %s27_s12), 0  ;;  %p156_p3 = pnand %p1771_p0, %p155_p2 }
   0x6   : > { %s1772_s15 = sshll.u32 (!%p156_p3), %s2351_s9, 6 }
   0x7   : > { %159 = sbr.rel (%p156_p3) target bundleno = 307 (0x133), region = 28  ;;  %p192_p4 = scmp.lt.s32.totalorder (!%p156_p3), %s1772_s15, 255 }
   0xc   : > { %v2297_v0 = vld [vmem:[%s2518_s1 + $0x38] sm:$0xff]   ;;  %v2298_v1 = vld [vmem:[%s2518_s1 + $0x30] sm:$0xff]   ;;  %s2525_s15 = smov (!%p192_p4, %s1772_s15), 255  ;;  %v2299_v2 = vld [vmem:[%s2518_s1 + $0x28] sm:$0xff]  }
   0xd   : > { %2177 = vmatprep.subr.bf16.mxu0 %v2297_v0  ;;  %2257 = vmatprep.subr.bf16.mxu1 %v2297_v0  ;;  %s1773_s20 = sshll.u32 %s2525_s15, 2  ;;  %v2300_v3 = vld [vmem:[%s2518_s1 + $0x20] sm:$0xff]   ;;  %v2301_v6 = vld [vmem:[%s2518_s1 + $0x18] sm:$0xff]   ;;  %v2302_v7 = vld [vmem:[%s2518_s1 + $0x10] sm:$0xff]  }
   0xe   : > { %2178 = vmatpush3.bf16.msra.mxu0 %v2297_v0  ;;  %2265 = vmatpush3.bf16.msra.mxu1 %v2297_v0  ;;  %s2411_s23 = scalar_lea.vmem %s2517_s0, %s1773_s20  ;;  %v2303_v8 = vld [vmem:[%s2518_s1 + $0x8] sm:$0xff]   ;;  %v2304_v9 = vld [vmem:[%s2518_s1] sm:$0xff]   ;;  %s2465_s8 = scalar_lea.vmem %s2519_s2, %s1773_s20 }
   0xf   : > { %2179 = vmatprep.subr.bf16.mxu0 %v2298_v1  ;;  %2258 = vmatprep.subr.bf16.mxu1 %v2298_v1  ;;  %v2305_v4 = vld [vmem:[%s2411_s23] sm:$0xff]   ;;  %v2307_v10 = vld [vmem:[%s2411_s23 + $0x8] sm:$0xff]   ;;  %v2309_v12 = vld [vmem:[%s2411_s23 + $0x10] sm:$0xff]  }
  0x10   : > { %v2306_v5 = vld [vmem:[%s2411_s23 + $0x80] sm:$0xff]   ;;  %2193 = vmatprep.mubr.bf16.mxu0 %v2305_v4  ;;  %v2308_v11 = vld [vmem:[%s2411_s23 + $0x88] sm:$0xff]   ;;  %v2310_v13 = vld [vmem:[%s2411_s23 + $0x90] sm:$0xff]  }
  0x11   : > { %2225 = vmatprep.mubr.bf16.mxu1 %v2306_v5  ;;  %v2311_v14 = vld [vmem:[%s2411_s23 + $0x18] sm:$0xff]   ;;  %v2313_v16 = vld [vmem:[%s2411_s23 + $0x20] sm:$0xff]   ;;  %v2315_v18 = vld [vmem:[%s2411_s23 + $0x28] sm:$0xff]  }
  0x12   : > { %2180 = vmatpush3.bf16.msra.mxu0 %v2298_v1  ;;  %2266 = vmatpush3.bf16.msra.mxu1 %v2298_v1  ;;  %v2312_v15 = vld [vmem:[%s2411_s23 + $0x98] sm:$0xff]   ;;  %v2314_v17 = vld [vmem:[%s2411_s23 + $0xa0] sm:$0xff]   ;;  %v2316_v19 = vld [vmem:[%s2411_s23 + $0xa8] sm:$0xff]  }
  0x13   : > { %2181 = vmatprep.subr.bf16.mxu0 %v2299_v2  ;;  %2259 = vmatprep.subr.bf16.mxu1 %v2299_v2  ;;  %v2317_v20 = vld [vmem:[%s2411_s23 + $0x30] sm:$0xff]   ;;  %v2319_v22 = vld [vmem:[%s2411_s23 + $0x38] sm:$0xff]   ;;  %v2321_v24 = vld [vmem:[%s2411_s23 + $0x40] sm:$0xff]  }
  0x14   : > { %v2318_v21 = vld [vmem:[%s2411_s23 + $0xb0] sm:$0xff]   ;;  %v2320_v23 = vld [vmem:[%s2411_s23 + $0xb8] sm:$0xff]   ;;  %v2322_v25 = vld [vmem:[%s2411_s23 + $0xc0] sm:$0xff]  }
  0x15   : > { %v2323_v26 = vld [vmem:[%s2411_s23 + $0x48] sm:$0xff]   ;;  %v2325_v28 = vld [vmem:[%s2411_s23 + $0x50] sm:$0xff]   ;;  %v2327_v30 = vld [vmem:[%s2411_s23 + $0x58] sm:$0xff]  }
  0x16   : > { %2182 = vmatpush3.bf16.msra.mxu0 %v2299_v2  ;;  %2267 = vmatpush3.bf16.msra.mxu1 %v2299_v2  ;;  %v2324_v27 = vld [vmem:[%s2411_s23 + $0xc8] sm:$0xff]   ;;  %v2326_v29 = vld [vmem:[%s2411_s23 + $0xd0] sm:$0xff]   ;;  %v2328_v31 = vld [vmem:[%s2411_s23 + $0xd8] sm:$0xff]  }
  0x17   : > { %2183 = vmatprep.subr.bf16.mxu0 %v2300_v3  ;;  %2260 = vmatprep.subr.bf16.mxu1 %v2300_v3  ;;  %v2329_v32 = vld [vmem:[%s2411_s23 + $0x60] sm:$0xff]   ;;  %v2331_v34 = vld [vmem:[%s2411_s23 + $0x68] sm:$0xff]   ;;  %v2333_v36 = vld [vmem:[%s2411_s23 + $0x70] sm:$0xff]  }
  0x18   : > { %v2330_v33 = vld [vmem:[%s2411_s23 + $0xe0] sm:$0xff]   ;;  %v2332_v35 = vld [vmem:[%s2411_s23 + $0xe8] sm:$0xff]   ;;  %v2334_v37 = vld [vmem:[%s2411_s23 + $0xf0] sm:$0xff]  }
  0x19   : > { %v2335_v38 = vld [vmem:[%s2411_s23 + $0x78] sm:$0xff]  }
  0x1a   : > { %2184 = vmatpush3.bf16.msra.mxu0 %v2300_v3  ;;  %2268 = vmatpush3.bf16.msra.mxu1 %v2300_v3  ;;  %v2336_v39 = vld [vmem:[%s2411_s23 + $0xf8] sm:$0xff]  }
  0x1b   : > { %2185 = vmatprep.subr.bf16.mxu0 %v2301_v6  ;;  %2261 = vmatprep.subr.bf16.mxu1 %v2301_v6 }
  0x1e   : > { %2186 = vmatpush3.bf16.msra.mxu0 %v2301_v6  ;;  %2269 = vmatpush3.bf16.msra.mxu1 %v2301_v6 }
  0x1f   : > { %2187 = vmatprep.subr.bf16.mxu0 %v2302_v7  ;;  %2262 = vmatprep.subr.bf16.mxu1 %v2302_v7 }
  0x22   : > { %2188 = vmatpush3.bf16.msra.mxu0 %v2302_v7  ;;  %2270 = vmatpush3.bf16.msra.mxu1 %v2302_v7 }
  0x23   : > { %2189 = vmatprep.subr.bf16.mxu0 %v2303_v8  ;;  %2263 = vmatprep.subr.bf16.mxu1 %v2303_v8 }
  0x26   : > { %2190 = vmatpush3.bf16.msra.mxu0 %v2303_v8  ;;  %2271 = vmatpush3.bf16.msra.mxu1 %v2303_v8 }
  0x27   : > { %2191 = vmatprep.subr.bf16.mxu0 %v2304_v9  ;;  %2264 = vmatprep.subr.bf16.mxu1 %v2304_v9 }
  0x2a   : > { %2192 = vmatpush3.bf16.msra.mxu0 %v2304_v9  ;;  %2272 = vmatpush3.bf16.msra.mxu1 %v2304_v9 }
  0x2d   : > { %2194 = vmatmul.mubr.bf16.vlgmr.msra.gmra.mxu0 %v2307_v10  ;;  %2226 = vmatmul.mubr.bf16.vlgmr.msra.gmra.mxu1 %v2308_v11 }
  0x2e   : > { %2197 = vmatprep.mubr.bf16.mxu0 %v2309_v12  ;;  %2229 = vmatprep.mubr.bf16.mxu1 %v2310_v13 }
  0x35   : > { %2198 = vmatmul.mubr.bf16.gmra.mxu0 %v2311_v14  ;;  %2230 = vmatmul.mubr.bf16.gmra.mxu1 %v2312_v15 }
  0x36   : > { %2201 = vmatprep.mubr.bf16.mxu0 %v2313_v16  ;;  %2233 = vmatprep.mubr.bf16.mxu1 %v2314_v17 }
  0x3d   : > { %2202 = vmatmul.mubr.bf16.gmra.mxu0 %v2315_v18  ;;  %2234 = vmatmul.mubr.bf16.gmra.mxu1 %v2316_v19 }
  0x3e   : > { %2205 = vmatprep.mubr.bf16.mxu0 %v2317_v20  ;;  %2237 = vmatprep.mubr.bf16.mxu1 %v2318_v21 }
  0x45   : > { %2206 = vmatmul.mubr.bf16.gmra.mxu0 %v2319_v22  ;;  %2238 = vmatmul.mubr.bf16.gmra.mxu1 %v2320_v23 }
  0x46   : > { %2209 = vmatprep.mubr.bf16.mxu0 %v2321_v24  ;;  %2241 = vmatprep.mubr.bf16.mxu1 %v2322_v25 }
  0x4d   : > { %2210 = vmatmul.mubr.bf16.gmra.mxu0 %v2323_v26  ;;  %2242 = vmatmul.mubr.bf16.gmra.mxu1 %v2324_v27 }
  0x4e   : > { %2213 = vmatprep.mubr.bf16.mxu0 %v2325_v28  ;;  %2245 = vmatprep.mubr.bf16.mxu1 %v2326_v29 }
  0x55   : > { %2214 = vmatmul.mubr.bf16.gmra.mxu0 %v2327_v30  ;;  %2246 = vmatmul.mubr.bf16.gmra.mxu1 %v2328_v31 }
  0x56   : > { %2217 = vmatprep.mubr.bf16.mxu0 %v2329_v32  ;;  %2249 = vmatprep.mubr.bf16.mxu1 %v2330_v33 }
  0x5d   : > { %2218 = vmatmul.mubr.bf16.gmra.mxu0 %v2331_v34  ;;  %2250 = vmatmul.mubr.bf16.gmra.mxu1 %v2332_v35 }
  0x5e   : > { %2221 = vmatprep.mubr.bf16.mxu0 %v2333_v36  ;;  %2253 = vmatprep.mubr.bf16.mxu1 %v2334_v37 }
  0x65   : > { %2222 = vmatmul.mubr.bf16.gmra.mxu0 %v2335_v38  ;;  %2254 = vmatmul.mubr.bf16.gmra.mxu1 %v2336_v39 }
  0xed   : > { %v2195_v40 = vpop.f32.mrf.mxu0  ;;  %v2227_v41 = vpop.f32.mrf.mxu1 }
  0xee   : > { %vm1157_vm0 = vcmp.ge.f32.partialorder %v2195_v40, 0.0  ;;  %v1221_v42 = vmul.f32 0.2, %v2195_v40  ;;  %v1253_v43 = vmul.f32 0.2, %v2227_v41  ;;  %vm1189_vm1 = vcmp.ge.f32.partialorder %v2227_v41, 0.0 }
  0xef   : > { %v705_v44 = vpop.f32.mrf.mxu0  ;;  %v833_v45 = vpop.f32.mrf.mxu1 }
  0xf0   : > { %v1285_v46 = vsel %vm1157_vm0, %v2195_v40, %v1221_v42  ;;  %v1219_v47 = vmul.f32 0.2, %v705_v44  ;;  %vm1155_vm2 = vcmp.ge.f32.partialorder %v705_v44, 0.0  ;;  %v1317_v51 = vsel %vm1189_vm1, %v2227_v41, %v1253_v43 }
  0xf1   : > { %v2196_v48 = vpop.f32.mrf.mxu0  ;;  %v2228_v49 = vpop.f32.mrf.mxu1  ;;  %vm1187_vm5 = vcmp.ge.f32.partialorder %v833_v45, 0.0  ;;  %v1251_v52 = vmul.f32 0.2, %v833_v45 }
  0xf2   : > { %vm1158_vm3 = vcmp.ge.f32.partialorder %v2196_v48, 0.0  ;;  %v1222_v50 = vmul.f32 0.2, %v2196_v48  ;;  %vm1190_vm4 = vcmp.ge.f32.partialorder %v2228_v49, 0.0  ;;  %v1254_v53 = vmul.f32 0.2, %v2228_v49 }
  0xf3   : > { %v708_v54 = vpop.f32.mrf.mxu0  ;;  %v836_v55 = vpop.f32.mrf.mxu1  ;;  %v1283_v58 = vsel %vm1155_vm2, %v705_v44, %v1219_v47  ;;  %v1315_v3 = vsel %vm1187_vm5, %v833_v45, %v1251_v52 }
  0xf4   : > { %v1286_v56 = vsel %vm1158_vm3, %v2196_v48, %v1222_v50  ;;  %vm1156_vm6 = vcmp.ge.f32.partialorder %v708_v54, 0.0  ;;  %v1220_v57 = vmul.f32 0.2, %v708_v54  ;;  %vm1188_vm7 = vcmp.ge.f32.partialorder %v836_v55, 0.0 }
  0xf5   : > { %v1954_v59 = vpack.c.bf16 %v1286_v56, %v1285_v46  ;;  %v1318_v60 = vsel %vm1190_vm4, %v2228_v49, %v1254_v53  ;;  %v1252_v61 = vmul.f32 0.2, %v836_v55  ;;  %v2199_v62 = vpop.f32.mrf.mxu0  ;;  %v2231_v63 = vpop.f32.mrf.mxu1 }
  0xf6   : > { %v2034_v0 = vpack.c.bf16 %v1318_v60, %v1317_v51  ;;  %v1284_v1 = vsel %vm1156_vm6, %v708_v54, %v1220_v57  ;;  %vm1161_vm8 = vcmp.ge.f32.partialorder %v2199_v62, 0.0  ;;  %v1225_v2 = vmul.f32 0.2, %v2199_v62 }
  0xf7   : > { %2106 = vst [vmem:[%s2465_s8 + $0x8] sm:$0xff] %v1954_v59   ;;  %v1949_v4 = vpack.c.bf16 %v1284_v1, %v1283_v58  ;;  %v1316_v5 = vsel %vm1188_vm7, %v836_v55, %v1252_v61  ;;  %v1257_v6 = vmul.f32 0.2, %v2231_v63  ;;  %v721_v7 = vpop.f32.mrf.mxu0  ;;  %v849_v8 = vpop.f32.mrf.mxu1  ;;  %vm1193_vm9 = vcmp.ge.f32.partialorder %v2231_v63, 0.0 }
  0xf8   : > { %2122 = vst [vmem:[%s2465_s8 + $0x88] sm:$0xff] %v2034_v0   ;;  %v2029_v9 = vpack.c.bf16 %v1316_v5, %v1315_v3  ;;  %v1289_v10 = vsel %vm1161_vm8, %v2199_v62, %v1225_v2  ;;  %v1223_v11 = vmul.f32 0.2, %v721_v7  ;;  %vm1159_vm10 = vcmp.ge.f32.partialorder %v721_v7, 0.0 }
  0xf9   : > { %1950 = vst [vmem:[%s2465_s8] sm:$0xff] %v1949_v4   ;;  %v2200_v12 = vpop.f32.mrf.mxu0  ;;  %v2232_v13 = vpop.f32.mrf.mxu1  ;;  %v1321_v15 = vsel %vm1193_vm9, %v2231_v63, %v1257_v6  ;;  %vm1191_vm13 = vcmp.ge.f32.partialorder %v849_v8, 0.0  ;;  %v1255_v16 = vmul.f32 0.2, %v849_v8 }
  0xfa   : > { %2121 = vst [vmem:[%s2465_s8 + $0x80] sm:$0xff] %v2029_v9   ;;  %vm1162_vm11 = vcmp.ge.f32.partialorder %v2200_v12, 0.0  ;;  %v1226_v14 = vmul.f32 0.2, %v2200_v12  ;;  %vm1194_vm12 = vcmp.ge.f32.partialorder %v2232_v13, 0.0  ;;  %v1287_v22 = vsel %vm1159_vm10, %v721_v7, %v1223_v11 }
  0xfb   : > { %v1258_v17 = vmul.f32 0.2, %v2232_v13  ;;  %v724_v18 = vpop.f32.mrf.mxu0  ;;  %v852_v19 = vpop.f32.mrf.mxu1  ;;  %v1319_v31 = vsel %vm1191_vm13, %v849_v8, %v1255_v16 }
  0xfc   : > { %v1290_v20 = vsel %vm1162_vm11, %v2200_v12, %v1226_v14  ;;  %vm1160_vm14 = vcmp.ge.f32.partialorder %v724_v18, 0.0  ;;  %v1224_v21 = vmul.f32 0.2, %v724_v18  ;;  %vm1192_vm15 = vcmp.ge.f32.partialorder %v852_v19, 0.0 }
  0xfd   : > { %v1964_v23 = vpack.c.bf16 %v1290_v20, %v1289_v10  ;;  %v1322_v24 = vsel %vm1194_vm12, %v2232_v13, %v1258_v17  ;;  %v1256_v25 = vmul.f32 0.2, %v852_v19  ;;  %v2203_v26 = vpop.f32.mrf.mxu0  ;;  %v2235_v27 = vpop.f32.mrf.mxu1 }
  0xfe   : > { %v2044_v28 = vpack.c.bf16 %v1322_v24, %v1321_v15  ;;  %v1288_v29 = vsel %vm1160_vm14, %v724_v18, %v1224_v21  ;;  %vm1165_vm0 = vcmp.ge.f32.partialorder %v2203_v26, 0.0  ;;  %v1229_v30 = vmul.f32 0.2, %v2203_v26 }
  0xff   : > { %2108 = vst [vmem:[%s2465_s8 + $0x18] sm:$0xff] %v1964_v23   ;;  %v1959_v32 = vpack.c.bf16 %v1288_v29, %v1287_v22  ;;  %v1320_v33 = vsel %vm1192_vm15, %v852_v19, %v1256_v25  ;;  %v1261_v34 = vmul.f32 0.2, %v2235_v27  ;;  %v737_v35 = vpop.f32.mrf.mxu0  ;;  %v865_v36 = vpop.f32.mrf.mxu1  ;;  %vm1197_vm1 = vcmp.ge.f32.partialorder %v2235_v27, 0.0 }
 0x100   : > { %2124 = vst [vmem:[%s2465_s8 + $0x98] sm:$0xff] %v2044_v28   ;;  %v2039_v37 = vpack.c.bf16 %v1320_v33, %v1319_v31  ;;  %v1293_v38 = vsel %vm1165_vm0, %v2203_v26, %v1229_v30  ;;  %v1227_v39 = vmul.f32 0.2, %v737_v35  ;;  %vm1163_vm2 = vcmp.ge.f32.partialorder %v737_v35, 0.0 }
 0x101   : > { %2107 = vst [vmem:[%s2465_s8 + $0x10] sm:$0xff] %v1959_v32   ;;  %v2204_v40 = vpop.f32.mrf.mxu0  ;;  %v2236_v41 = vpop.f32.mrf.mxu1  ;;  %v1325_v43 = vsel %vm1197_vm1, %v2235_v27, %v1261_v34  ;;  %vm1195_vm5 = vcmp.ge.f32.partialorder %v865_v36, 0.0  ;;  %v1259_v44 = vmul.f32 0.2, %v865_v36 }
 0x102   : > { %2123 = vst [vmem:[%s2465_s8 + $0x90] sm:$0xff] %v2039_v37   ;;  %vm1166_vm3 = vcmp.ge.f32.partialorder %v2204_v40, 0.0  ;;  %v1230_v42 = vmul.f32 0.2, %v2204_v40  ;;  %vm1198_vm4 = vcmp.ge.f32.partialorder %v2236_v41, 0.0  ;;  %v1291_v50 = vsel %vm1163_vm2, %v737_v35, %v1227_v39 }
 0x103   : > { %v1262_v45 = vmul.f32 0.2, %v2236_v41  ;;  %v740_v46 = vpop.f32.mrf.mxu0  ;;  %v868_v47 = vpop.f32.mrf.mxu1  ;;  %v1323_v59 = vsel %vm1195_vm5, %v865_v36, %v1259_v44 }
 0x104   : > { %v1294_v48 = vsel %vm1166_vm3, %v2204_v40, %v1230_v42  ;;  %vm1164_vm6 = vcmp.ge.f32.partialorder %v740_v46, 0.0  ;;  %v1228_v49 = vmul.f32 0.2, %v740_v46  ;;  %vm1196_vm7 = vcmp.ge.f32.partialorder %v868_v47, 0.0 }
 0x105   : > { %v1974_v51 = vpack.c.bf16 %v1294_v48, %v1293_v38  ;;  %v1326_v52 = vsel %vm1198_vm4, %v2236_v41, %v1262_v45  ;;  %v1260_v53 = vmul.f32 0.2, %v868_v47  ;;  %v2207_v54 = vpop.f32.mrf.mxu0  ;;  %v2239_v55 = vpop.f32.mrf.mxu1 }
 0x106   : > { %v2054_v56 = vpack.c.bf16 %v1326_v52, %v1325_v43  ;;  %v1292_v57 = vsel %vm1164_vm6, %v740_v46, %v1228_v49  ;;  %vm1169_vm8 = vcmp.ge.f32.partialorder %v2207_v54, 0.0  ;;  %v1233_v58 = vmul.f32 0.2, %v2207_v54 }
 0x107   : > { %2110 = vst [vmem:[%s2465_s8 + $0x28] sm:$0xff] %v1974_v51   ;;  %v1969_v60 = vpack.c.bf16 %v1292_v57, %v1291_v50  ;;  %v1324_v61 = vsel %vm1196_vm7, %v868_v47, %v1260_v53  ;;  %v1265_v62 = vmul.f32 0.2, %v2239_v55  ;;  %v753_v63 = vpop.f32.mrf.mxu0  ;;  %v881_v0 = vpop.f32.mrf.mxu1  ;;  %vm1201_vm9 = vcmp.ge.f32.partialorder %v2239_v55, 0.0 }
 0x108   : > { %2126 = vst [vmem:[%s2465_s8 + $0xa8] sm:$0xff] %v2054_v56   ;;  %v2049_v1 = vpack.c.bf16 %v1324_v61, %v1323_v59  ;;  %v1297_v2 = vsel %vm1169_vm8, %v2207_v54, %v1233_v58  ;;  %v1231_v3 = vmul.f32 0.2, %v753_v63  ;;  %vm1167_vm10 = vcmp.ge.f32.partialorder %v753_v63, 0.0 }
 0x109   : > { %2109 = vst [vmem:[%s2465_s8 + $0x20] sm:$0xff] %v1969_v60   ;;  %v2208_v4 = vpop.f32.mrf.mxu0  ;;  %v2240_v5 = vpop.f32.mrf.mxu1  ;;  %v1329_v7 = vsel %vm1201_vm9, %v2239_v55, %v1265_v62  ;;  %vm1199_vm13 = vcmp.ge.f32.partialorder %v881_v0, 0.0  ;;  %v1263_v8 = vmul.f32 0.2, %v881_v0 }
 0x10a   : > { %2125 = vst [vmem:[%s2465_s8 + $0xa0] sm:$0xff] %v2049_v1   ;;  %vm1170_vm11 = vcmp.ge.f32.partialorder %v2208_v4, 0.0  ;;  %v1234_v6 = vmul.f32 0.2, %v2208_v4  ;;  %vm1202_vm12 = vcmp.ge.f32.partialorder %v2240_v5, 0.0  ;;  %v1295_v14 = vsel %vm1167_vm10, %v753_v63, %v1231_v3 }
 0x10b   : > { %v1266_v9 = vmul.f32 0.2, %v2240_v5  ;;  %v756_v10 = vpop.f32.mrf.mxu0  ;;  %v884_v11 = vpop.f32.mrf.mxu1  ;;  %v1327_v23 = vsel %vm1199_vm13, %v881_v0, %v1263_v8 }
 0x10c   : > { %v1298_v12 = vsel %vm1170_vm11, %v2208_v4, %v1234_v6  ;;  %vm1168_vm14 = vcmp.ge.f32.partialorder %v756_v10, 0.0  ;;  %v1232_v13 = vmul.f32 0.2, %v756_v10  ;;  %vm1200_vm15 = vcmp.ge.f32.partialorder %v884_v11, 0.0 }
 0x10d   : > { %v1984_v15 = vpack.c.bf16 %v1298_v12, %v1297_v2  ;;  %v1330_v16 = vsel %vm1202_vm12, %v2240_v5, %v1266_v9  ;;  %v1264_v17 = vmul.f32 0.2, %v884_v11  ;;  %v2211_v18 = vpop.f32.mrf.mxu0  ;;  %v2243_v19 = vpop.f32.mrf.mxu1 }
 0x10e   : > { %v2064_v20 = vpack.c.bf16 %v1330_v16, %v1329_v7  ;;  %v1296_v21 = vsel %vm1168_vm14, %v756_v10, %v1232_v13  ;;  %vm1173_vm0 = vcmp.ge.f32.partialorder %v2211_v18, 0.0  ;;  %v1237_v22 = vmul.f32 0.2, %v2211_v18 }
 0x10f   : > { %2112 = vst [vmem:[%s2465_s8 + $0x38] sm:$0xff] %v1984_v15   ;;  %v1979_v24 = vpack.c.bf16 %v1296_v21, %v1295_v14  ;;  %v1328_v25 = vsel %vm1200_vm15, %v884_v11, %v1264_v17  ;;  %v1269_v26 = vmul.f32 0.2, %v2243_v19  ;;  %v769_v27 = vpop.f32.mrf.mxu0  ;;  %v897_v28 = vpop.f32.mrf.mxu1  ;;  %vm1205_vm1 = vcmp.ge.f32.partialorder %v2243_v19, 0.0 }
 0x110   : > { %2128 = vst [vmem:[%s2465_s8 + $0xb8] sm:$0xff] %v2064_v20   ;;  %v2059_v29 = vpack.c.bf16 %v1328_v25, %v1327_v23  ;;  %v1301_v30 = vsel %vm1173_vm0, %v2211_v18, %v1237_v22  ;;  %v1235_v31 = vmul.f32 0.2, %v769_v27  ;;  %vm1171_vm2 = vcmp.ge.f32.partialorder %v769_v27, 0.0 }
 0x111   : > { %2111 = vst [vmem:[%s2465_s8 + $0x30] sm:$0xff] %v1979_v24   ;;  %v2212_v32 = vpop.f32.mrf.mxu0  ;;  %v2244_v33 = vpop.f32.mrf.mxu1  ;;  %v1333_v35 = vsel %vm1205_vm1, %v2243_v19, %v1269_v26  ;;  %vm1203_vm5 = vcmp.ge.f32.partialorder %v897_v28, 0.0  ;;  %v1267_v36 = vmul.f32 0.2, %v897_v28 }
 0x112   : > { %2127 = vst [vmem:[%s2465_s8 + $0xb0] sm:$0xff] %v2059_v29   ;;  %vm1174_vm3 = vcmp.ge.f32.partialorder %v2212_v32, 0.0  ;;  %v1238_v34 = vmul.f32 0.2, %v2212_v32  ;;  %vm1206_vm4 = vcmp.ge.f32.partialorder %v2244_v33, 0.0  ;;  %v1299_v42 = vsel %vm1171_vm2, %v769_v27, %v1235_v31 }
 0x113   : > { %v1270_v37 = vmul.f32 0.2, %v2244_v33  ;;  %v772_v38 = vpop.f32.mrf.mxu0  ;;  %v900_v39 = vpop.f32.mrf.mxu1  ;;  %v1331_v51 = vsel %vm1203_vm5, %v897_v28, %v1267_v36 }
 0x114   : > { %v1302_v40 = vsel %vm1174_vm3, %v2212_v32, %v1238_v34  ;;  %vm1172_vm6 = vcmp.ge.f32.partialorder %v772_v38, 0.0  ;;  %v1236_v41 = vmul.f32 0.2, %v772_v38  ;;  %vm1204_vm7 = vcmp.ge.f32.partialorder %v900_v39, 0.0 }
 0x115   : > { %v1994_v43 = vpack.c.bf16 %v1302_v40, %v1301_v30  ;;  %v1334_v44 = vsel %vm1206_vm4, %v2244_v33, %v1270_v37  ;;  %v1268_v45 = vmul.f32 0.2, %v900_v39  ;;  %v2215_v46 = vpop.f32.mrf.mxu0  ;;  %v2247_v47 = vpop.f32.mrf.mxu1 }
 0x116   : > { %v2074_v48 = vpack.c.bf16 %v1334_v44, %v1333_v35  ;;  %v1300_v49 = vsel %vm1172_vm6, %v772_v38, %v1236_v41  ;;  %vm1177_vm8 = vcmp.ge.f32.partialorder %v2215_v46, 0.0  ;;  %v1241_v50 = vmul.f32 0.2, %v2215_v46 }
 0x117   : > { %2114 = vst [vmem:[%s2465_s8 + $0x48] sm:$0xff] %v1994_v43   ;;  %v1989_v52 = vpack.c.bf16 %v1300_v49, %v1299_v42  ;;  %v1332_v53 = vsel %vm1204_vm7, %v900_v39, %v1268_v45  ;;  %v1273_v54 = vmul.f32 0.2, %v2247_v47  ;;  %v785_v55 = vpop.f32.mrf.mxu0  ;;  %v913_v56 = vpop.f32.mrf.mxu1  ;;  %vm1209_vm9 = vcmp.ge.f32.partialorder %v2247_v47, 0.0 }
 0x118   : > { %2130 = vst [vmem:[%s2465_s8 + $0xc8] sm:$0xff] %v2074_v48   ;;  %v2069_v57 = vpack.c.bf16 %v1332_v53, %v1331_v51  ;;  %v1305_v58 = vsel %vm1177_vm8, %v2215_v46, %v1241_v50  ;;  %v1239_v59 = vmul.f32 0.2, %v785_v55  ;;  %vm1175_vm10 = vcmp.ge.f32.partialorder %v785_v55, 0.0 }
 0x119   : > { %2113 = vst [vmem:[%s2465_s8 + $0x40] sm:$0xff] %v1989_v52   ;;  %v2216_v60 = vpop.f32.mrf.mxu0  ;;  %v2248_v61 = vpop.f32.mrf.mxu1  ;;  %v1337_v63 = vsel %vm1209_vm9, %v2247_v47, %v1273_v54  ;;  %vm1207_vm13 = vcmp.ge.f32.partialorder %v913_v56, 0.0  ;;  %v1271_v0 = vmul.f32 0.2, %v913_v56 }
 0x11a   : > { %2129 = vst [vmem:[%s2465_s8 + $0xc0] sm:$0xff] %v2069_v57   ;;  %vm1178_vm11 = vcmp.ge.f32.partialorder %v2216_v60, 0.0  ;;  %v1242_v62 = vmul.f32 0.2, %v2216_v60  ;;  %vm1210_vm12 = vcmp.ge.f32.partialorder %v2248_v61, 0.0  ;;  %v1303_v6 = vsel %vm1175_vm10, %v785_v55, %v1239_v59 }
 0x11b   : > { %v1274_v1 = vmul.f32 0.2, %v2248_v61  ;;  %v788_v2 = vpop.f32.mrf.mxu0  ;;  %v916_v3 = vpop.f32.mrf.mxu1  ;;  %v1335_v15 = vsel %vm1207_vm13, %v913_v56, %v1271_v0 }
 0x11c   : > { %v1306_v4 = vsel %vm1178_vm11, %v2216_v60, %v1242_v62  ;;  %vm1176_vm14 = vcmp.ge.f32.partialorder %v788_v2, 0.0  ;;  %v1240_v5 = vmul.f32 0.2, %v788_v2  ;;  %vm1208_vm15 = vcmp.ge.f32.partialorder %v916_v3, 0.0 }
 0x11d   : > { %v2004_v7 = vpack.c.bf16 %v1306_v4, %v1305_v58  ;;  %v1338_v8 = vsel %vm1210_vm12, %v2248_v61, %v1274_v1  ;;  %v1272_v9 = vmul.f32 0.2, %v916_v3  ;;  %v2219_v10 = vpop.f32.mrf.mxu0  ;;  %v2251_v11 = vpop.f32.mrf.mxu1 }
 0x11e   : > { %v2084_v12 = vpack.c.bf16 %v1338_v8, %v1337_v63  ;;  %v1304_v13 = vsel %vm1176_vm14, %v788_v2, %v1240_v5  ;;  %vm1181_vm0 = vcmp.ge.f32.partialorder %v2219_v10, 0.0  ;;  %v1245_v14 = vmul.f32 0.2, %v2219_v10 }
 0x11f   : > { %2116 = vst [vmem:[%s2465_s8 + $0x58] sm:$0xff] %v2004_v7   ;;  %v1999_v16 = vpack.c.bf16 %v1304_v13, %v1303_v6  ;;  %v1336_v17 = vsel %vm1208_vm15, %v916_v3, %v1272_v9  ;;  %v1277_v18 = vmul.f32 0.2, %v2251_v11  ;;  %v801_v19 = vpop.f32.mrf.mxu0  ;;  %v929_v20 = vpop.f32.mrf.mxu1  ;;  %vm1213_vm1 = vcmp.ge.f32.partialorder %v2251_v11, 0.0 }
 0x120   : > { %2132 = vst [vmem:[%s2465_s8 + $0xd8] sm:$0xff] %v2084_v12   ;;  %v2079_v21 = vpack.c.bf16 %v1336_v17, %v1335_v15  ;;  %v1309_v22 = vsel %vm1181_vm0, %v2219_v10, %v1245_v14  ;;  %v1243_v23 = vmul.f32 0.2, %v801_v19  ;;  %vm1179_vm2 = vcmp.ge.f32.partialorder %v801_v19, 0.0 }
 0x121   : > { %2115 = vst [vmem:[%s2465_s8 + $0x50] sm:$0xff] %v1999_v16   ;;  %v2220_v24 = vpop.f32.mrf.mxu0  ;;  %v2252_v25 = vpop.f32.mrf.mxu1  ;;  %v1341_v27 = vsel %vm1213_vm1, %v2251_v11, %v1277_v18  ;;  %vm1211_vm5 = vcmp.ge.f32.partialorder %v929_v20, 0.0  ;;  %v1275_v28 = vmul.f32 0.2, %v929_v20 }
 0x122   : > { %2131 = vst [vmem:[%s2465_s8 + $0xd0] sm:$0xff] %v2079_v21   ;;  %vm1182_vm3 = vcmp.ge.f32.partialorder %v2220_v24, 0.0  ;;  %v1246_v26 = vmul.f32 0.2, %v2220_v24  ;;  %vm1214_vm4 = vcmp.ge.f32.partialorder %v2252_v25, 0.0  ;;  %v1307_v34 = vsel %vm1179_vm2, %v801_v19, %v1243_v23 }
 0x123   : > { %v1278_v29 = vmul.f32 0.2, %v2252_v25  ;;  %v804_v30 = vpop.f32.mrf.mxu0  ;;  %v932_v31 = vpop.f32.mrf.mxu1  ;;  %v1339_v43 = vsel %vm1211_vm5, %v929_v20, %v1275_v28 }
 0x124   : > { %v1310_v32 = vsel %vm1182_vm3, %v2220_v24, %v1246_v26  ;;  %vm1180_vm6 = vcmp.ge.f32.partialorder %v804_v30, 0.0  ;;  %v1244_v33 = vmul.f32 0.2, %v804_v30  ;;  %vm1212_vm7 = vcmp.ge.f32.partialorder %v932_v31, 0.0 }
 0x125   : > { %v2014_v35 = vpack.c.bf16 %v1310_v32, %v1309_v22  ;;  %v1342_v36 = vsel %vm1214_vm4, %v2252_v25, %v1278_v29  ;;  %v1276_v37 = vmul.f32 0.2, %v932_v31  ;;  %v2223_v38 = vpop.f32.mrf.mxu0  ;;  %v2255_v39 = vpop.f32.mrf.mxu1 }
 0x126   : > { %v2094_v40 = vpack.c.bf16 %v1342_v36, %v1341_v27  ;;  %v1308_v41 = vsel %vm1180_vm6, %v804_v30, %v1244_v33  ;;  %vm1185_vm8 = vcmp.ge.f32.partialorder %v2223_v38, 0.0  ;;  %v1249_v42 = vmul.f32 0.2, %v2223_v38 }
 0x127   : > { %2118 = vst [vmem:[%s2465_s8 + $0x68] sm:$0xff] %v2014_v35   ;;  %v2009_v44 = vpack.c.bf16 %v1308_v41, %v1307_v34  ;;  %v1340_v45 = vsel %vm1212_vm7, %v932_v31, %v1276_v37  ;;  %v817_v46 = vpop.f32.mrf.mxu0  ;;  %v945_v47 = vpop.f32.mrf.mxu1  ;;  %vm1217_vm9 = vcmp.ge.f32.partialorder %v2255_v39, 0.0  ;;  %v1281_v50 = vmul.f32 0.2, %v2255_v39 }
 0x128   : > { %2134 = vst [vmem:[%s2465_s8 + $0xe8] sm:$0xff] %v2094_v40   ;;  %v2089_v48 = vpack.c.bf16 %v1340_v45, %v1339_v43  ;;  %v1313_v49 = vsel %vm1185_vm8, %v2223_v38, %v1249_v42  ;;  %v1247_v53 = vmul.f32 0.2, %v817_v46  ;;  %vm1183_vm12 = vcmp.ge.f32.partialorder %v817_v46, 0.0 }
 0x129   : > { %2117 = vst [vmem:[%s2465_s8 + $0x60] sm:$0xff] %v2009_v44   ;;  %v2224_v51 = vpop.f32.mrf.mxu0  ;;  %v2256_v52 = vpop.f32.mrf.mxu1  ;;  %vm1215_vm13 = vcmp.ge.f32.partialorder %v945_v47, 0.0  ;;  %v1279_v55 = vmul.f32 0.2, %v945_v47  ;;  %v1345_v61 = vsel %vm1217_vm9, %v2255_v39, %v1281_v50 }
 0x12a   : > { %2133 = vst [vmem:[%s2465_s8 + $0xe0] sm:$0xff] %v2089_v48   ;;  %vm1186_vm10 = vcmp.ge.f32.partialorder %v2224_v51, 0.0  ;;  %v1250_v54 = vmul.f32 0.2, %v2224_v51  ;;  %vm1218_vm11 = vcmp.ge.f32.partialorder %v2256_v52, 0.0  ;;  %v1311_v1 = vsel %vm1183_vm12, %v817_v46, %v1247_v53 }
 0x12b   : > { %v1282_v56 = vmul.f32 0.2, %v2256_v52  ;;  %v820_v57 = vpop.f32.mrf.mxu0  ;;  %v948_v58 = vpop.f32.mrf.mxu1  ;;  %v1343_v4 = vsel %vm1215_vm13, %v945_v47, %v1279_v55 }
 0x12c   : > { %v1314_v59 = vsel %vm1186_vm10, %v2224_v51, %v1250_v54  ;;  %vm1184_vm14 = vcmp.ge.f32.partialorder %v820_v57, 0.0  ;;  %v1248_v60 = vmul.f32 0.2, %v820_v57  ;;  %vm1216_vm15 = vcmp.ge.f32.partialorder %v948_v58, 0.0 }
 0x12d   : > { %v2024_v62 = vpack.c.bf16 %v1314_v59, %v1313_v49  ;;  %v1346_v63 = vsel %vm1218_vm11, %v2256_v52, %v1282_v56  ;;  %v1280_v0 = vmul.f32 0.2, %v948_v58 }
 0x12e   : > { %v2104_v2 = vpack.c.bf16 %v1346_v63, %v1345_v61  ;;  %v1312_v3 = vsel %vm1184_vm14, %v820_v57, %v1248_v60 }
 0x12f   : > { %2120 = vst [vmem:[%s2465_s8 + $0x78] sm:$0xff] %v2024_v62   ;;  %v2019_v5 = vpack.c.bf16 %v1312_v3, %v1311_v1  ;;  %v1344_v6 = vsel %vm1216_vm15, %v948_v58, %v1280_v0 }
 0x130   : > { %2136 = vst [vmem:[%s2465_s8 + $0xf8] sm:$0xff] %v2104_v2   ;;  %v2099_v7 = vpack.c.bf16 %v1344_v6, %v1343_v4 }
 0x131   : > { %2119 = vst [vmem:[%s2465_s8 + $0x70] sm:$0xff] %v2019_v5  }
 0x132   : > { %2135 = vst [vmem:[%s2465_s8 + $0xf0] sm:$0xff] %v2099_v7  }
 0x133 PF: > { %s12_s11 = sadd.s32 1, %s2359_s11   ;;  %s2520_s9 = smov %s2355_s10 }
 0x134   : > { %p9_p5 = scmp.ge.s32.totalorder %s12_s11, 6   ;;  %s2521_s10 = smov %s2523_s12 }
 0x136   :  { %11 = sbr.rel (!%p9_p5) target bundleno = 2 (0x2), region = 69 }

// kernel: discriminator_forward.10
= control target key start
LH: loop header
LB: loop body
LE: loop exit
PB: predicated region body
PF: predicated region fallthrough
CT: control target
= control target key end

     0   :  { %v163_v5 = vlaneseq  ;;  %s1932_s1 = inlined_call_operand.vmem [shape: f32[8,128], index: 1, kind: input, shape index: {}]   ;;  %s1933_s2 = inlined_call_operand.vmem [shape: f32[8,128], index: 2, kind: input, shape index: {}]   ;;  %s1934_s0 = inlined_call_operand.vmem [shape: bf16[512,128], index: 0, kind: input, shape index: {}]   ;;  %s1935_s3 = inlined_call_operand.vmem [shape: f32[1,128], index: 3, kind: input, shape index: {}]   ;;  %s1936_s4 = inlined_call_operand.vmem [shape: f32[1,128], index: 4, kind: input, shape index: {}]   ;;  %s1937_s5 = inlined_call_operand.vmem [shape: bf16[512,128], index: 5, kind: output, shape index: {}]  }
   0x1   :  { %v20_v0 = vld [vmem:[%s1932_s1] sm:$0xff]  ;;  %v1348_v11 = vld [vmem:[%s1934_s0 + $0x8] sm:$0xff]   ;;  %v1353_v12 = vld [vmem:[%s1934_s0 + $0x10] sm:$0xff]  }
   0x2   :  { %v21_v1 = vld [vmem:[%s1933_s2] sm:$0xff]  ;;  %v1334_v2 = vmul.f32 0.001953125, %v20_v0  ;;  %v1338_v8 = vshrl.u32 %v163_v5, 7  ;;  %v1358_v13 = vld [vmem:[%s1934_s0 + $0x18] sm:$0xff]   ;;  %v1368_v15 = vld [vmem:[%s1934_s0 + $0x28] sm:$0xff]   ;;  %v952_v19 = vunpack.c.l.bf16 %v1348_v11  ;;  %v953_v22 = vunpack.c.h.bf16 %v1348_v11 }
   0x3   :  { %v23_v3 = vmul.f32 0.001953125, %v21_v1  ;;  %v1343_v10 = vld [vmem:[%s1934_s0] sm:$0xff]   ;;  %v1377_v20 = vld [vmem:[%s1934_s0 + $0x30] sm:$0xff]   ;;  %v1382_v21 = vld [vmem:[%s1934_s0 + $0x38] sm:$0xff]   ;;  %v956_v23 = vunpack.c.l.bf16 %v1353_v12  ;;  %v957_v24 = vunpack.c.h.bf16 %v1353_v12  ;;  %v960_v25 = vunpack.c.l.bf16 %v1358_v13 }
   0x4   :  { %v24_v4 = vmul.f32 %v1334_v2, %v1334_v2  ;;  %v1363_v14 = vld [vmem:[%s1934_s0 + $0x20] sm:$0xff]   ;;  %v948_v16 = vunpack.c.l.bf16 %v1343_v10  ;;  %v949_v17 = vunpack.c.h.bf16 %v1343_v10  ;;  %v165_v18 = vsub.s32 0, %v1338_v8  ;;  %v1396_v27 = vld [vmem:[%s1934_s0 + $0x48] sm:$0xff]   ;;  %v1405_v32 = vld [vmem:[%s1934_s0 + $0x50] sm:$0xff]  }
   0x5   :  { %v1391_v26 = vld [vmem:[%s1934_s0 + $0x40] sm:$0xff]   ;;  %v961_v28 = vunpack.c.h.bf16 %v1358_v13  ;;  %v964_v29 = vunpack.c.l.bf16 %v1363_v14  ;;  %v965_v30 = vunpack.c.h.bf16 %v1363_v14  ;;  %v968_v31 = vunpack.c.l.bf16 %v1368_v15  ;;  %v1410_v33 = vld [vmem:[%s1934_s0 + $0x58] sm:$0xff]   ;;  %v1424_v39 = vld [vmem:[%s1934_s0 + $0x68] sm:$0xff]  }
   0x6   :  { %v25_v6 = vsub.f32 %v23_v3, %v24_v4  ;;  %v969_v34 = vunpack.c.h.bf16 %v1368_v15  ;;  %v972_v35 = vunpack.c.l.bf16 %v1377_v20  ;;  %v973_v36 = vunpack.c.h.bf16 %v1377_v20  ;;  %v1419_v38 = vld [vmem:[%s1934_s0 + $0x60] sm:$0xff]   ;;  %v1433_v44 = vld [vmem:[%s1934_s0 + $0x70] sm:$0xff]   ;;  %v1438_v45 = vld [vmem:[%s1934_s0 + $0x78] sm:$0xff]  }
   0x7   :  { %v976_v37 = vunpack.c.l.bf16 %v1382_v21  ;;  %v977_v40 = vunpack.c.h.bf16 %v1382_v21  ;;  %v980_v41 = vunpack.c.l.bf16 %v1391_v26  ;;  %v1447_v50 = vld [vmem:[%s1934_s0 + $0x80] sm:$0xff]   ;;  %v1452_v51 = vld [vmem:[%s1934_s0 + $0x88] sm:$0xff]   ;;  %v1461_v56 = vld [vmem:[%s1934_s0 + $0x90] sm:$0xff]  }
   0x8   :  { %v26_v7 = vmax.f32 %v25_v6, 0.0  ;;  %v1466_v57 = vld [vmem:[%s1934_s0 + $0x98] sm:$0xff]   ;;  %v1475_v62 = vld [vmem:[%s1934_s0 + $0xa0] sm:$0xff]   ;;  %v1480_v63 = vld [vmem:[%s1934_s0 + $0xa8] sm:$0xff]  }
   0x9   :  { %v1489_v5 = vld [vmem:[%s1934_s0 + $0xb0] sm:$0xff]   ;;  %v1494_v6 = vld [vmem:[%s1934_s0 + $0xb8] sm:$0xff]   ;;  %v1503_v4 = vld [vmem:[%s1934_s0 + $0xc0] sm:$0xff]  }
   0xa   :  { %v28_v9 = vadd.f32 1e-05, %v26_v7  ;;  %v1508_v0 = vld [vmem:[%s1934_s0 + $0xc8] sm:$0xff]   ;;  %v27_v7 = vld [vmem:[%s1935_s3] sm:$0x1]  ;;  %v1520_v60 = vld [vmem:[%s1934_s0 + $0xd0] sm:$0xff]  }
   0xb   :  { %v1529_v1 = vld [vmem:[%s1934_s0 + $0xd8] sm:$0xff]   ;;  %v1534_v61 = vld [vmem:[%s1934_s0 + $0xe0] sm:$0xff]   ;;  %v1543_v54 = vld [vmem:[%s1934_s0 + $0xe8] sm:$0xff]  }
   0xc   :  { %1296 = vrsqrt.f32 %v28_v9  ;;  %v1551_v59 = vld [vmem:[%s1934_s0 + $0xf0] sm:$0xff]   ;;  %v1556_v55 = vld [vmem:[%s1934_s0 + $0xf8] sm:$0xff]   ;;  %v1061_v52 = vunpack.c.h.bf16 %v1534_v61  ;;  %v1064_v47 = vunpack.c.l.bf16 %v1543_v54 }
   0xd   :  { %v1068_v43 = vunpack.c.l.bf16 %v1551_v59  ;;  %v1072_v49 = vunpack.c.l.bf16 %v1556_v55  ;;  %v1073_v48 = vunpack.c.h.bf16 %v1556_v55 }
  0x19   :  { %v1297_v3 = vpop.eup %1296 }
  0x1a   :  { %v30_v53 = vmul.f32 %v1297_v3, %v27_v7  ;;  %v31_v3 = vld [vmem:[%s1936_s4] sm:$0x1] }
  0x1c   :  { %v32_v58 = vmul.f32 %v30_v53, %v1334_v2  ;;  %v1568_v9 = vrot.slane %v30_v53, %v165_v18 }
  0x1e   :  { %v33_v42 = vsub.f32 %v31_v3, %v32_v58  ;;  %v168_v2 = vmul.f32 %v948_v16, %v1568_v9  ;;  %v169_v53 = vmul.f32 %v949_v17, %v1568_v9  ;;  %v170_v46 = vmul.f32 %v952_v19, %v1568_v9 }
  0x1f   :  { %v171_v7 = vmul.f32 %v953_v22, %v1568_v9  ;;  %v172_v58 = vmul.f32 %v956_v23, %v1568_v9  ;;  %v173_v16 = vmul.f32 %v957_v24, %v1568_v9  ;;  %v174_v10 = vmul.f32 %v960_v25, %v1568_v9 }
  0x20   :  { %v1599_v17 = vrot.slane %v33_v42, %v165_v18  ;;  %v175_v11 = vmul.f32 %v961_v28, %v1568_v9  ;;  %v176_v19 = vmul.f32 %v964_v29, %v1568_v9  ;;  %v177_v12 = vmul.f32 %v965_v30, %v1568_v9 }
  0x21   :  { %v178_v22 = vmul.f32 %v968_v31, %v1568_v9  ;;  %v179_v8 = vmul.f32 %v969_v34, %v1568_v9  ;;  %v180_v13 = vmul.f32 %v972_v35, %v1568_v9  ;;  %v181_v18 = vmul.f32 %v973_v36, %v1568_v9 }
  0x22   :  { %v238_v23 = vadd.f32 %v1599_v17, %v168_v2  ;;  %v239_v14 = vadd.f32 %v1599_v17, %v169_v53  ;;  %v240_v24 = vadd.f32 %v1599_v17, %v170_v46  ;;  %v241_v25 = vadd.f32 %v1599_v17, %v171_v7 }
  0x23   :  { %v242_v28 = vadd.f32 %v1599_v17, %v172_v58  ;;  %v243_v15 = vadd.f32 %v1599_v17, %v173_v16  ;;  %v244_v29 = vadd.f32 %v1599_v17, %v174_v10  ;;  %v245_v30 = vadd.f32 %v1599_v17, %v175_v11 }
  0x24   :  { %vm302_vm0 = vcmp.ge.f32.partialorder %v238_v23, 0.0  ;;  %vm303_vm1 = vcmp.ge.f32.partialorder %v239_v14, 0.0  ;;  %v366_v20 = vmul.f32 0.2, %v238_v23  ;;  %v367_v31 = vmul.f32 0.2, %v239_v14 }
  0x25   :  { %vm304_vm2 = vcmp.ge.f32.partialorder %v240_v24, 0.0  ;;  %vm305_vm3 = vcmp.ge.f32.partialorder %v241_v25, 0.0  ;;  %v368_v34 = vmul.f32 0.2, %v240_v24  ;;  %v369_v35 = vmul.f32 0.2, %v241_v25 }
  0x26   :  { %v430_v36 = vsel %vm302_vm0, %v238_v23, %v366_v20  ;;  %v431_v42 = vsel %vm303_vm1, %v239_v14, %v367_v31  ;;  %vm306_vm4 = vcmp.ge.f32.partialorder %v242_v28, 0.0  ;;  %vm307_vm5 = vcmp.ge.f32.partialorder %v243_v15, 0.0 }
  0x27   :  { %v1077_v46 = vpack.c.bf16 %v431_v42, %v430_v36  ;;  %v432_v3 = vsel %vm304_vm2, %v240_v24, %v368_v34  ;;  %v433_v7 = vsel %vm305_vm3, %v241_v25, %v369_v35  ;;  %v370_v2 = vmul.f32 0.2, %v242_v28 }
  0x28   :  { %v1082_v53 = vpack.c.bf16 %v433_v7, %v432_v3  ;;  %v371_v58 = vmul.f32 0.2, %v243_v15  ;;  %vm308_vm6 = vcmp.ge.f32.partialorder %v244_v29, 0.0  ;;  %vm309_vm7 = vcmp.ge.f32.partialorder %v245_v30, 0.0 }
  0x29   :  { %1078 = vst [vmem:[%s1937_s5] sm:$0xff] %v1077_v46   ;;  %v434_v16 = vsel %vm306_vm4, %v242_v28, %v370_v2  ;;  %v372_v10 = vmul.f32 0.2, %v244_v29  ;;  %v373_v11 = vmul.f32 0.2, %v245_v30  ;;  %v246_v23 = vadd.f32 %v1599_v17, %v176_v19 }
  0x2a   :  { %1265 = vst [vmem:[%s1937_s5 + $0x8] sm:$0xff] %v1082_v53   ;;  %v435_v14 = vsel %vm307_vm5, %v243_v15, %v371_v58  ;;  %v247_v24 = vadd.f32 %v1599_v17, %v177_v12  ;;  %v248_v25 = vadd.f32 %v1599_v17, %v178_v22  ;;  %v249_v20 = vadd.f32 %v1599_v17, %v179_v8 }
  0x2b   :  { %v1087_v31 = vpack.c.bf16 %v435_v14, %v434_v16  ;;  %v436_v34 = vsel %vm308_vm6, %v244_v29, %v372_v10  ;;  %v437_v35 = vsel %vm309_vm7, %v245_v30, %v373_v11  ;;  %vm310_vm8 = vcmp.ge.f32.partialorder %v246_v23, 0.0 }
  0x2c   :  { %v1092_v28 = vpack.c.bf16 %v437_v35, %v436_v34  ;;  %vm311_vm9 = vcmp.ge.f32.partialorder %v247_v24, 0.0  ;;  %v374_v36 = vmul.f32 0.2, %v246_v23  ;;  %v375_v42 = vmul.f32 0.2, %v247_v24 }
  0x2d   :  { %1266 = vst [vmem:[%s1937_s5 + $0x10] sm:$0xff] %v1087_v31   ;;  %vm312_vm10 = vcmp.ge.f32.partialorder %v248_v25, 0.0  ;;  %vm313_vm11 = vcmp.ge.f32.partialorder %v249_v20, 0.0  ;;  %v376_v19 = vmul.f32 0.2, %v248_v25  ;;  %v250_v15 = vadd.f32 %v1599_v17, %v180_v13 }
  0x2e   :  { %v377_v12 = vmul.f32 0.2, %v249_v20  ;;  %1267 = vst [vmem:[%s1937_s5 + $0x18] sm:$0xff] %v1092_v28   ;;  %v438_v22 = vsel %vm310_vm8, %v246_v23, %v374_v36  ;;  %v439_v8 = vsel %vm311_vm9, %v247_v24, %v375_v42  ;;  %v251_v29 = vadd.f32 %v1599_v17, %v181_v18 }
  0x2f   :  { %v1097_v30 = vpack.c.bf16 %v439_v8, %v438_v22  ;;  %v440_v46 = vsel %vm312_vm10, %v248_v25, %v376_v19  ;;  %v182_v7 = vmul.f32 %v976_v37, %v1568_v9  ;;  %vm314_vm12 = vcmp.ge.f32.partialorder %v250_v15, 0.0 }
  0x30   :  { %v441_v3 = vsel %vm313_vm11, %v249_v20, %v377_v12  ;;  %vm315_vm13 = vcmp.ge.f32.partialorder %v251_v29, 0.0  ;;  %v378_v53 = vmul.f32 0.2, %v250_v15  ;;  %v379_v58 = vmul.f32 0.2, %v251_v29 }
  0x31   :  { %v1102_v2 = vpack.c.bf16 %v441_v3, %v440_v46  ;;  %1268 = vst [vmem:[%s1937_s5 + $0x20] sm:$0xff] %v1097_v30   ;;  %v183_v13 = vmul.f32 %v977_v40, %v1568_v9  ;;  %v252_v18 = vadd.f32 %v1599_v17, %v182_v7  ;;  %v184_v16 = vmul.f32 %v980_v41, %v1568_v9 }
  0x32   :  { %v442_v37 = vsel %vm314_vm12, %v250_v15, %v378_v53  ;;  %v1938_v10 = vunpack.c.h.bf16 %v1391_v26  ;;  %v1939_v23 = vunpack.c.l.bf16 %v1396_v27  ;;  %v1940_v40 = vunpack.c.h.bf16 %v1396_v27 }
  0x33   :  { %1269 = vst [vmem:[%s1937_s5 + $0x28] sm:$0xff] %v1102_v2   ;;  %v443_v24 = vsel %vm315_vm13, %v251_v29, %v379_v58  ;;  %v253_v41 = vadd.f32 %v1599_v17, %v183_v13  ;;  %vm316_vm14 = vcmp.ge.f32.partialorder %v252_v18, 0.0  ;;  %v380_v25 = vmul.f32 0.2, %v252_v18 }
  0x34   :  { %v185_v11 = vmul.f32 %v1938_v10, %v1568_v9  ;;  %v186_v21 = vmul.f32 %v1939_v23, %v1568_v9  ;;  %v187_v14 = vmul.f32 %v1940_v40, %v1568_v9  ;;  %v1107_v20 = vpack.c.bf16 %v443_v24, %v442_v37 }
  0x35   :  { %v254_v31 = vadd.f32 %v1599_v17, %v184_v16  ;;  %vm317_vm15 = vcmp.ge.f32.partialorder %v253_v41, 0.0  ;;  %v381_v35 = vmul.f32 0.2, %v253_v41  ;;  %v444_v28 = vsel %vm316_vm14, %v252_v18, %v380_v25 }
  0x36   :  { %v255_v34 = vadd.f32 %v1599_v17, %v185_v11  ;;  %v256_v26 = vadd.f32 %v1599_v17, %v186_v21  ;;  %v257_v36 = vadd.f32 %v1599_v17, %v187_v14  ;;  %1270 = vst [vmem:[%s1937_s5 + $0x30] sm:$0xff] %v1107_v20   ;;  %v1941_v3 = vunpack.c.l.bf16 %v1405_v32 }
  0x37   :  { %vm318_vm0 = vcmp.ge.f32.partialorder %v254_v31, 0.0  ;;  %v382_v27 = vmul.f32 0.2, %v254_v31  ;;  %v445_v19 = vsel %vm317_vm15, %v253_v41, %v381_v35  ;;  %v1942_v2 = vunpack.c.h.bf16 %v1405_v32 }
  0x38   :  { %vm319_vm1 = vcmp.ge.f32.partialorder %v255_v34, 0.0  ;;  %v383_v42 = vmul.f32 0.2, %v255_v34  ;;  %vm320_vm2 = vcmp.ge.f32.partialorder %v256_v26, 0.0  ;;  %vm321_vm3 = vcmp.ge.f32.partialorder %v257_v36, 0.0 }
  0x39   :  { %v384_v12 = vmul.f32 0.2, %v256_v26  ;;  %v1112_v22 = vpack.c.bf16 %v445_v19, %v444_v28  ;;  %v446_v8 = vsel %vm318_vm0, %v254_v31, %v382_v27  ;;  %v385_v29 = vmul.f32 0.2, %v257_v36 }
  0x3a   :  { %v447_v15 = vsel %vm319_vm1, %v255_v34, %v383_v42  ;;  %v188_v7 = vmul.f32 %v1941_v3, %v1568_v9  ;;  %v189_v53 = vmul.f32 %v1942_v2, %v1568_v9  ;;  %v1943_v13 = vunpack.c.l.bf16 %v1410_v33 }
  0x3b   :  { %v1117_v30 = vpack.c.bf16 %v447_v15, %v446_v8  ;;  %v448_v46 = vsel %vm320_vm2, %v256_v26, %v384_v12  ;;  %1271 = vst [vmem:[%s1937_s5 + $0x38] sm:$0xff] %v1112_v22   ;;  %v449_v58 = vsel %vm321_vm3, %v257_v36, %v385_v29  ;;  %v1944_v16 = vunpack.c.h.bf16 %v1410_v33 }
  0x3c   :  { %v190_v18 = vmul.f32 %v1943_v13, %v1568_v9  ;;  %v1945_v10 = vunpack.c.l.bf16 %v1419_v38  ;;  %v1122_v32 = vpack.c.bf16 %v449_v58, %v448_v46  ;;  %v258_v23 = vadd.f32 %v1599_v17, %v188_v7 }
  0x3d   :  { %v191_v37 = vmul.f32 %v1944_v16, %v1568_v9  ;;  %1272 = vst [vmem:[%s1937_s5 + $0x40] sm:$0xff] %v1117_v30   ;;  %v259_v21 = vadd.f32 %v1599_v17, %v189_v53  ;;  %v1946_v40 = vunpack.c.h.bf16 %v1419_v38  ;;  %v1947_v25 = vunpack.c.l.bf16 %v1424_v39 }
  0x3e   :  { %v192_v11 = vmul.f32 %v1945_v10, %v1568_v9  ;;  %v260_v33 = vadd.f32 %v1599_v17, %v190_v18  ;;  %1273 = vst [vmem:[%s1937_s5 + $0x48] sm:$0xff] %v1122_v32   ;;  %vm322_vm4 = vcmp.ge.f32.partialorder %v258_v23, 0.0  ;;  %v386_v31 = vmul.f32 0.2, %v258_v23 }
  0x3f   :  { %v193_v14 = vmul.f32 %v1946_v40, %v1568_v9  ;;  %v261_v24 = vadd.f32 %v1599_v17, %v191_v37  ;;  %v194_v20 = vmul.f32 %v1947_v25, %v1568_v9  ;;  %vm323_vm5 = vcmp.ge.f32.partialorder %v259_v21, 0.0 }
  0x40   :  { %v262_v41 = vadd.f32 %v1599_v17, %v192_v11  ;;  %v387_v34 = vmul.f32 0.2, %v259_v21  ;;  %vm324_vm6 = vcmp.ge.f32.partialorder %v260_v33, 0.0  ;;  %v388_v38 = vmul.f32 0.2, %v260_v33 }
  0x41   :  { %vm325_vm7 = vcmp.ge.f32.partialorder %v261_v24, 0.0  ;;  %v389_v26 = vmul.f32 0.2, %v261_v24  ;;  %v450_v35 = vsel %vm322_vm4, %v258_v23, %v386_v31  ;;  %v263_v36 = vadd.f32 %v1599_v17, %v193_v14 }
  0x42   :  { %v451_v28 = vsel %vm323_vm5, %v259_v21, %v387_v34  ;;  %vm326_vm8 = vcmp.ge.f32.partialorder %v262_v41, 0.0  ;;  %v452_v42 = vsel %vm324_vm6, %v260_v33, %v388_v38  ;;  %v390_v12 = vmul.f32 0.2, %v262_v41 }
  0x43   :  { %v1127_v27 = vpack.c.bf16 %v451_v28, %v450_v35  ;;  %v453_v19 = vsel %vm325_vm7, %v261_v24, %v389_v26  ;;  %vm327_vm9 = vcmp.ge.f32.partialorder %v263_v36, 0.0  ;;  %v391_v8 = vmul.f32 0.2, %v263_v36 }
  0x44   :  { %v1132_v22 = vpack.c.bf16 %v453_v19, %v452_v42  ;;  %v1948_v15 = vunpack.c.h.bf16 %v1424_v39  ;;  %v454_v30 = vsel %vm326_vm8, %v262_v41, %v390_v12  ;;  %v264_v46 = vadd.f32 %v1599_v17, %v194_v20 }
  0x45   :  { %1274 = vst [vmem:[%s1937_s5 + $0x50] sm:$0xff] %v1127_v27   ;;  %v1949_v3 = vunpack.c.l.bf16 %v1433_v44  ;;  %v1950_v2 = vunpack.c.h.bf16 %v1433_v44  ;;  %v455_v39 = vsel %vm327_vm9, %v263_v36, %v391_v8  ;;  %v1951_v13 = vunpack.c.l.bf16 %v1438_v45 }
  0x46   :  { %v195_v29 = vmul.f32 %v1948_v15, %v1568_v9  ;;  %1275 = vst [vmem:[%s1937_s5 + $0x58] sm:$0xff] %v1132_v22   ;;  %v1952_v16 = vunpack.c.h.bf16 %v1438_v45  ;;  %v1137_v10 = vpack.c.bf16 %v455_v39, %v454_v30  ;;  %vm328_vm10 = vcmp.ge.f32.partialorder %v264_v46, 0.0 }
  0x47   :  { %v196_v7 = vmul.f32 %v1949_v3, %v1568_v9  ;;  %v197_v53 = vmul.f32 %v1950_v2, %v1568_v9  ;;  %v198_v18 = vmul.f32 %v1951_v13, %v1568_v9  ;;  %v392_v11 = vmul.f32 0.2, %v264_v46 }
  0x48   :  { %v265_v58 = vadd.f32 %v1599_v17, %v195_v29  ;;  %v199_v37 = vmul.f32 %v1952_v16, %v1568_v9  ;;  %1276 = vst [vmem:[%s1937_s5 + $0x60] sm:$0xff] %v1137_v10   ;;  %v1953_v38 = vunpack.c.l.bf16 %v1447_v50  ;;  %v1954_v35 = vunpack.c.h.bf16 %v1447_v50 }
  0x49   :  { %v266_v44 = vadd.f32 %v1599_v17, %v196_v7  ;;  %v267_v23 = vadd.f32 %v1599_v17, %v197_v53  ;;  %v268_v21 = vadd.f32 %v1599_v17, %v198_v18  ;;  %v456_v40 = vsel %vm328_vm10, %v264_v46, %v392_v11 }
  0x4a   :  { %vm329_vm11 = vcmp.ge.f32.partialorder %v265_v58, 0.0  ;;  %v393_v32 = vmul.f32 0.2, %v265_v58  ;;  %v269_v45 = vadd.f32 %v1599_v17, %v199_v37  ;;  %v200_v26 = vmul.f32 %v1953_v38, %v1568_v9 }
  0x4b   :  { %vm330_vm12 = vcmp.ge.f32.partialorder %v266_v44, 0.0  ;;  %v394_v14 = vmul.f32 0.2, %v266_v44  ;;  %vm331_vm13 = vcmp.ge.f32.partialorder %v267_v23, 0.0  ;;  %v395_v24 = vmul.f32 0.2, %v267_v23 }
  0x4c   :  { %v457_v33 = vsel %vm329_vm11, %v265_v58, %v393_v32  ;;  %vm332_vm14 = vcmp.ge.f32.partialorder %v268_v21, 0.0  ;;  %vm333_vm15 = vcmp.ge.f32.partialorder %v269_v45, 0.0  ;;  %v396_v20 = vmul.f32 0.2, %v268_v21 }
  0x4d   :  { %v1142_v41 = vpack.c.bf16 %v457_v33, %v456_v40  ;;  %v458_v25 = vsel %vm330_vm12, %v266_v44, %v394_v14  ;;  %v459_v31 = vsel %vm331_vm13, %v267_v23, %v395_v24  ;;  %v397_v34 = vmul.f32 0.2, %v269_v45 }
  0x4e   :  { %v201_v28 = vmul.f32 %v1954_v35, %v1568_v9  ;;  %v1147_v36 = vpack.c.bf16 %v459_v31, %v458_v25  ;;  %v460_v27 = vsel %vm332_vm14, %v268_v21, %v396_v20  ;;  %v1955_v42 = vunpack.c.l.bf16 %v1452_v51 }
  0x4f   :  { %1277 = vst [vmem:[%s1937_s5 + $0x68] sm:$0xff] %v1142_v41   ;;  %v1956_v12 = vunpack.c.h.bf16 %v1452_v51  ;;  %v461_v8 = vsel %vm333_vm15, %v269_v45, %v397_v34  ;;  %v270_v15 = vadd.f32 %v1599_v17, %v200_v26  ;;  %v1957_v29 = vunpack.c.l.bf16 %v1461_v56 }
  0x50   :  { %v202_v19 = vmul.f32 %v1955_v42, %v1568_v9  ;;  %v271_v50 = vadd.f32 %v1599_v17, %v201_v28  ;;  %1278 = vst [vmem:[%s1937_s5 + $0x70] sm:$0xff] %v1147_v36   ;;  %v1152_v46 = vpack.c.bf16 %v461_v8, %v460_v27  ;;  %v1958_v51 = vunpack.c.h.bf16 %v1461_v56 }
  0x51   :  { %v203_v22 = vmul.f32 %v1956_v12, %v1568_v9  ;;  %v204_v30 = vmul.f32 %v1957_v29, %v1568_v9  ;;  %vm334_vm0 = vcmp.ge.f32.partialorder %v270_v15, 0.0  ;;  %v398_v53 = vmul.f32 0.2, %v270_v15 }
  0x52   :  { %v272_v3 = vadd.f32 %v1599_v17, %v202_v19  ;;  %v205_v2 = vmul.f32 %v1958_v51, %v1568_v9  ;;  %vm335_vm1 = vcmp.ge.f32.partialorder %v271_v50, 0.0  ;;  %v399_v39 = vmul.f32 0.2, %v271_v50  ;;  %1279 = vst [vmem:[%s1937_s5 + $0x78] sm:$0xff] %v1152_v46  }
  0x53   :  { %v273_v7 = vadd.f32 %v1599_v17, %v203_v22  ;;  %v462_v18 = vsel %vm334_vm0, %v270_v15, %v398_v53  ;;  %v274_v37 = vadd.f32 %v1599_v17, %v204_v30  ;;  %v1959_v32 = vunpack.c.l.bf16 %v1466_v57 }
  0x54   :  { %vm336_vm2 = vcmp.ge.f32.partialorder %v272_v3, 0.0  ;;  %v400_v58 = vmul.f32 0.2, %v272_v3  ;;  %v463_v16 = vsel %vm335_vm1, %v271_v50, %v399_v39  ;;  %v275_v10 = vadd.f32 %v1599_v17, %v205_v2 }
  0x55   :  { %vm337_vm3 = vcmp.ge.f32.partialorder %v273_v7, 0.0  ;;  %v401_v13 = vmul.f32 0.2, %v273_v7  ;;  %v1157_v56 = vpack.c.bf16 %v463_v16, %v462_v18  ;;  %v206_v23 = vmul.f32 %v1959_v32, %v1568_v9 }
  0x56   :  { %v464_v11 = vsel %vm336_vm2, %v272_v3, %v400_v58  ;;  %vm338_vm4 = vcmp.ge.f32.partialorder %v274_v37, 0.0  ;;  %vm339_vm5 = vcmp.ge.f32.partialorder %v275_v10, 0.0  ;;  %v402_v40 = vmul.f32 0.2, %v274_v37 }
  0x57   :  { %v465_v44 = vsel %vm337_vm3, %v273_v7, %v401_v13  ;;  %1280 = vst [vmem:[%s1937_s5 + $0x80] sm:$0xff] %v1157_v56   ;;  %v403_v14 = vmul.f32 0.2, %v275_v10  ;;  %v1960_v45 = vunpack.c.h.bf16 %v1466_v57  ;;  %v276_v24 = vadd.f32 %v1599_v17, %v206_v23 }
  0x58   :  { %v1162_v21 = vpack.c.bf16 %v465_v44, %v464_v11  ;;  %v1961_v41 = vunpack.c.l.bf16 %v1475_v62  ;;  %v466_v20 = vsel %vm338_vm4, %v274_v37, %v402_v40  ;;  %v1962_v31 = vunpack.c.h.bf16 %v1475_v62 }
  0x59   :  { %v207_v33 = vmul.f32 %v1960_v45, %v1568_v9  ;;  %v1963_v38 = vunpack.c.l.bf16 %v1480_v63  ;;  %v1964_v26 = vunpack.c.h.bf16 %v1480_v63  ;;  %v467_v28 = vsel %vm339_vm5, %v275_v10, %v403_v14 }
  0x5a   :  { %v208_v25 = vmul.f32 %v1961_v41, %v1568_v9  ;;  %1281 = vst [vmem:[%s1937_s5 + $0x88] sm:$0xff] %v1162_v21   ;;  %v209_v34 = vmul.f32 %v1962_v31, %v1568_v9  ;;  %vm340_vm6 = vcmp.ge.f32.partialorder %v276_v24, 0.0  ;;  %v404_v27 = vmul.f32 0.2, %v276_v24 }
  0x5b   :  { %v210_v57 = vmul.f32 %v1963_v38, %v1568_v9  ;;  %v211_v35 = vmul.f32 %v1964_v26, %v1568_v9  ;;  %v277_v36 = vadd.f32 %v1599_v17, %v207_v33  ;;  %v1167_v42 = vpack.c.bf16 %v467_v28, %v466_v20 }
  0x5c   :  { %v278_v19 = vadd.f32 %v1599_v17, %v208_v25  ;;  %v279_v12 = vadd.f32 %v1599_v17, %v209_v34  ;;  %v468_v8 = vsel %vm340_vm6, %v276_v24, %v404_v27  ;;  %v1965_v39 = vunpack.c.l.bf16 %v1489_v5 }
  0x5d   :  { %v280_v62 = vadd.f32 %v1599_v17, %v210_v57  ;;  %vm341_vm7 = vcmp.ge.f32.partialorder %v277_v36, 0.0  ;;  %v405_v22 = vmul.f32 0.2, %v277_v36  ;;  %v281_v15 = vadd.f32 %v1599_v17, %v211_v35  ;;  %1282 = vst [vmem:[%s1937_s5 + $0x90] sm:$0xff] %v1167_v42  }
  0x5e   :  { %vm342_vm8 = vcmp.ge.f32.partialorder %v278_v19, 0.0  ;;  %vm343_vm9 = vcmp.ge.f32.partialorder %v279_v12, 0.0  ;;  %v406_v63 = vmul.f32 0.2, %v278_v19  ;;  %v407_v50 = vmul.f32 0.2, %v279_v12 }
  0x5f   :  { %v469_v29 = vsel %vm341_vm7, %v277_v36, %v405_v22  ;;  %vm344_vm10 = vcmp.ge.f32.partialorder %v280_v62, 0.0  ;;  %vm345_vm11 = vcmp.ge.f32.partialorder %v281_v15, 0.0  ;;  %v408_v30 = vmul.f32 0.2, %v280_v62 }
  0x60   :  { %v1172_v46 = vpack.c.bf16 %v469_v29, %v468_v8  ;;  %v470_v3 = vsel %vm342_vm8, %v278_v19, %v406_v63  ;;  %v471_v7 = vsel %vm343_vm9, %v279_v12, %v407_v50  ;;  %v409_v51 = vmul.f32 0.2, %v281_v15 }
  0x61   :  { %v1177_v2 = vpack.c.bf16 %v471_v7, %v470_v3  ;;  %v472_v53 = vsel %vm344_vm10, %v280_v62, %v408_v30  ;;  %v212_v58 = vmul.f32 %v1965_v39, %v1568_v9  ;;  %v1966_v13 = vunpack.c.h.bf16 %v1489_v5 }
  0x62   :  { %1283 = vst [vmem:[%s1937_s5 + $0x98] sm:$0xff] %v1172_v46   ;;  %v473_v16 = vsel %vm345_vm11, %v281_v15, %v409_v51  ;;  %v1967_v37 = vunpack.c.l.bf16 %v1494_v6  ;;  %v1968_v56 = vunpack.c.h.bf16 %v1494_v6  ;;  %v1969_v44 = vunpack.c.l.bf16 %v1503_v4 }
  0x63   :  { %v213_v18 = vmul.f32 %v1966_v13, %v1568_v9  ;;  %1284 = vst [vmem:[%s1937_s5 + $0xa0] sm:$0xff] %v1177_v2   ;;  %v1182_v5 = vpack.c.bf16 %v473_v16, %v472_v53  ;;  %v282_v23 = vadd.f32 %v1599_v17, %v212_v58  ;;  %v1970_v40 = vunpack.c.h.bf16 %v1503_v4 }
  0x64   :  { %v214_v10 = vmul.f32 %v1967_v37, %v1568_v9  ;;  %v215_v11 = vmul.f32 %v1968_v56, %v1568_v9  ;;  %v216_v32 = vmul.f32 %v1969_v44, %v1568_v9  ;;  %v1971_v24 = vunpack.c.l.bf16 %v1508_v0 }
  0x65   :  { %v283_v21 = vadd.f32 %v1599_v17, %v213_v18  ;;  %v217_v14 = vmul.f32 %v1970_v40, %v1568_v9  ;;  %1285 = vst [vmem:[%s1937_s5 + $0xa8] sm:$0xff] %v1182_v5   ;;  %vm346_vm12 = vcmp.ge.f32.partialorder %v282_v23, 0.0  ;;  %v410_v25 = vmul.f32 0.2, %v282_v23 }
  0x66   :  { %v284_v6 = vadd.f32 %v1599_v17, %v214_v10  ;;  %v285_v45 = vadd.f32 %v1599_v17, %v215_v11  ;;  %v286_v33 = vadd.f32 %v1599_v17, %v216_v32  ;;  %v218_v41 = vmul.f32 %v1971_v24, %v1568_v9 }
  0x67   :  { %vm347_vm13 = vcmp.ge.f32.partialorder %v283_v21, 0.0  ;;  %v411_v20 = vmul.f32 0.2, %v283_v21  ;;  %v474_v34 = vsel %vm346_vm12, %v282_v23, %v410_v25  ;;  %v287_v57 = vadd.f32 %v1599_v17, %v217_v14 }
  0x68   :  { %vm348_vm14 = vcmp.ge.f32.partialorder %v284_v6, 0.0  ;;  %vm349_vm15 = vcmp.ge.f32.partialorder %v285_v45, 0.0  ;;  %v412_v4 = vmul.f32 0.2, %v284_v6  ;;  %v413_v31 = vmul.f32 0.2, %v285_v45 }
  0x69   :  { %v475_v38 = vsel %vm347_vm13, %v283_v21, %v411_v20  ;;  %vm350_vm0 = vcmp.ge.f32.partialorder %v286_v33, 0.0  ;;  %v414_v36 = vmul.f32 0.2, %v286_v33  ;;  %vm351_vm1 = vcmp.ge.f32.partialorder %v287_v57, 0.0 }
  0x6a   :  { %v1187_v26 = vpack.c.bf16 %v475_v38, %v474_v34  ;;  %v476_v35 = vsel %vm348_vm14, %v284_v6, %v412_v4  ;;  %v477_v28 = vsel %vm349_vm15, %v285_v45, %v413_v31  ;;  %v415_v42 = vmul.f32 0.2, %v287_v57 }
  0x6b   :  { %v1192_v27 = vpack.c.bf16 %v477_v28, %v476_v35  ;;  %v1972_v19 = vunpack.c.h.bf16 %v1508_v0  ;;  %v478_v62 = vsel %vm350_vm0, %v286_v33, %v414_v36  ;;  %v288_v22 = vadd.f32 %v1599_v17, %v218_v41 }
  0x6c   :  { %1286 = vst [vmem:[%s1937_s5 + $0xb0] sm:$0xff] %v1187_v26   ;;  %v1973_v8 = vunpack.c.l.bf16 %v1520_v60  ;;  %v1974_v63 = vunpack.c.h.bf16 %v1520_v60  ;;  %v479_v0 = vsel %vm351_vm1, %v287_v57, %v415_v42  ;;  %v1975_v30 = vunpack.c.l.bf16 %v1529_v1 }
  0x6d   :  { %v219_v12 = vmul.f32 %v1972_v19, %v1568_v9  ;;  %1287 = vst [vmem:[%s1937_s5 + $0xb8] sm:$0xff] %v1192_v27   ;;  %v1976_v3 = vunpack.c.h.bf16 %v1529_v1  ;;  %v1197_v51 = vpack.c.bf16 %v479_v0, %v478_v62  ;;  %vm352_vm2 = vcmp.ge.f32.partialorder %v288_v22, 0.0 }
  0x6e   :  { %v220_v15 = vmul.f32 %v1973_v8, %v1568_v9  ;;  %v221_v50 = vmul.f32 %v1974_v63, %v1568_v9  ;;  %v222_v46 = vmul.f32 %v1975_v30, %v1568_v9  ;;  %v416_v2 = vmul.f32 0.2, %v288_v22 }
  0x6f   :  { %v289_v29 = vadd.f32 %v1599_v17, %v219_v12  ;;  %v223_v7 = vmul.f32 %v1976_v3, %v1568_v9  ;;  %1288 = vst [vmem:[%s1937_s5 + $0xc0] sm:$0xff] %v1197_v51   ;;  %v1977_v5 = vunpack.c.l.bf16 %v1534_v61  ;;  %v225_v21 = vmul.f32 %v1061_v52, %v1568_v9 }
  0x70   :  { %v290_v60 = vadd.f32 %v1599_v17, %v220_v15  ;;  %v291_v39 = vadd.f32 %v1599_v17, %v221_v50  ;;  %v292_v58 = vadd.f32 %v1599_v17, %v222_v46  ;;  %v480_v13 = vsel %vm352_vm2, %v288_v22, %v416_v2 }
  0x71   :  { %vm353_vm3 = vcmp.ge.f32.partialorder %v289_v29, 0.0  ;;  %v417_v53 = vmul.f32 0.2, %v289_v29  ;;  %v293_v1 = vadd.f32 %v1599_v17, %v223_v7  ;;  %v224_v23 = vmul.f32 %v1977_v5, %v1568_v9 }
  0x72   :  { %vm354_vm4 = vcmp.ge.f32.partialorder %v290_v60, 0.0  ;;  %v418_v18 = vmul.f32 0.2, %v290_v60  ;;  %vm355_vm5 = vcmp.ge.f32.partialorder %v291_v39, 0.0  ;;  %v419_v37 = vmul.f32 0.2, %v291_v39 }
  0x73   :  { %v481_v16 = vsel %vm353_vm3, %v289_v29, %v417_v53  ;;  %vm356_vm6 = vcmp.ge.f32.partialorder %v292_v58, 0.0  ;;  %vm357_vm7 = vcmp.ge.f32.partialorder %v293_v1, 0.0  ;;  %v420_v11 = vmul.f32 0.2, %v292_v58 }
  0x74   :  { %v1202_v10 = vpack.c.bf16 %v481_v16, %v480_v13  ;;  %v482_v56 = vsel %vm354_vm4, %v290_v60, %v418_v18  ;;  %v483_v44 = vsel %vm355_vm5, %v291_v39, %v419_v37  ;;  %v421_v32 = vmul.f32 0.2, %v293_v1 }
  0x75   :  { %v1207_v40 = vpack.c.bf16 %v483_v44, %v482_v56  ;;  %v484_v14 = vsel %vm356_vm6, %v292_v58, %v420_v11  ;;  %v226_v6 = vmul.f32 %v1064_v47, %v1568_v9  ;;  %v1978_v45 = vunpack.c.h.bf16 %v1543_v54 }
  0x76   :  { %1289 = vst [vmem:[%s1937_s5 + $0xc8] sm:$0xff] %v1202_v10   ;;  %v485_v24 = vsel %vm357_vm7, %v293_v1, %v421_v32  ;;  %v294_v41 = vadd.f32 %v1599_v17, %v224_v23  ;;  %v295_v61 = vadd.f32 %v1599_v17, %v225_v21  ;;  %v228_v52 = vmul.f32 %v1068_v43, %v1568_v9 }
  0x77   :  { %v227_v33 = vmul.f32 %v1978_v45, %v1568_v9  ;;  %1290 = vst [vmem:[%s1937_s5 + $0xd0] sm:$0xff] %v1207_v40   ;;  %v1212_v25 = vpack.c.bf16 %v485_v24, %v484_v14  ;;  %v296_v47 = vadd.f32 %v1599_v17, %v226_v6  ;;  %v1979_v54 = vunpack.c.h.bf16 %v1551_v59 }
  0x78   :  { %vm358_vm8 = vcmp.ge.f32.partialorder %v294_v41, 0.0  ;;  %vm359_vm9 = vcmp.ge.f32.partialorder %v295_v61, 0.0  ;;  %v422_v31 = vmul.f32 0.2, %v294_v41  ;;  %v423_v34 = vmul.f32 0.2, %v295_v61 }
  0x79   :  { %v297_v20 = vadd.f32 %v1599_v17, %v227_v33  ;;  %v229_v4 = vmul.f32 %v1979_v54, %v1568_v9  ;;  %1291 = vst [vmem:[%s1937_s5 + $0xd8] sm:$0xff] %v1212_v25   ;;  %vm360_vm10 = vcmp.ge.f32.partialorder %v296_v47, 0.0  ;;  %v424_v43 = vmul.f32 0.2, %v296_v47 }
  0x7a   :  { %v486_v57 = vsel %vm358_vm8, %v294_v41, %v422_v31  ;;  %v487_v26 = vsel %vm359_vm9, %v295_v61, %v423_v34  ;;  %v298_v35 = vadd.f32 %v1599_v17, %v228_v52  ;;  %v230_v42 = vmul.f32 %v1072_v49, %v1568_v9 }
  0x7b   :  { %vm361_vm11 = vcmp.ge.f32.partialorder %v297_v20, 0.0  ;;  %v425_v38 = vmul.f32 0.2, %v297_v20  ;;  %v299_v28 = vadd.f32 %v1599_v17, %v229_v4  ;;  %v1217_v59 = vpack.c.bf16 %v487_v26, %v486_v57 }
  0x7c   :  { %v488_v36 = vsel %vm360_vm10, %v296_v47, %v424_v43  ;;  %vm362_vm12 = vcmp.ge.f32.partialorder %v298_v35, 0.0  ;;  %v426_v12 = vmul.f32 0.2, %v298_v35  ;;  %v231_v22 = vmul.f32 %v1073_v48, %v1568_v9 }
  0x7d   :  { %v489_v27 = vsel %vm361_vm11, %v297_v20, %v425_v38  ;;  %vm363_vm13 = vcmp.ge.f32.partialorder %v299_v28, 0.0  ;;  %1292 = vst [vmem:[%s1937_s5 + $0xe0] sm:$0xff] %v1217_v59   ;;  %v427_v62 = vmul.f32 0.2, %v299_v28  ;;  %v300_v8 = vadd.f32 %v1599_v17, %v230_v42 }
  0x7e   :  { %v1222_v19 = vpack.c.bf16 %v489_v27, %v488_v36  ;;  %v490_v49 = vsel %vm362_vm12, %v298_v35, %v426_v12  ;;  %v301_v63 = vadd.f32 %v1599_v17, %v231_v22 }
  0x7f   :  { %v491_v15 = vsel %vm363_vm13, %v299_v28, %v427_v62  ;;  %vm364_vm14 = vcmp.ge.f32.partialorder %v300_v8, 0.0  ;;  %v428_v50 = vmul.f32 0.2, %v300_v8 }
  0x80   :  { %1293 = vst [vmem:[%s1937_s5 + $0xe8] sm:$0xff] %v1222_v19   ;;  %v1227_v0 = vpack.c.bf16 %v491_v15, %v490_v49  ;;  %vm365_vm15 = vcmp.ge.f32.partialorder %v301_v63, 0.0  ;;  %v429_v29 = vmul.f32 0.2, %v301_v63 }
  0x81   :  { %v492_v30 = vsel %vm364_vm14, %v300_v8, %v428_v50 }
  0x82   :  { %1294 = vst [vmem:[%s1937_s5 + $0xf0] sm:$0xff] %v1227_v0   ;;  %v493_v48 = vsel %vm365_vm15, %v301_v63, %v429_v29 }
  0x83   :  { %v1232_v55 = vpack.c.bf16 %v493_v48, %v492_v30 }
  0x85   :  { %1295 = vst [vmem:[%s1937_s5 + $0xf8] sm:$0xff] %v1232_v55  }

// kernel: discriminator_forward.9
= control target key start
LH: loop header
LB: loop body
LE: loop exit
PB: predicated region body
PF: predicated region fallthrough
CT: control target
= control target key end

     0   :  { %v4797_v0 = vmov 0   ;;  %s6157_s1 = inlined_call_operand.vmem [shape: bf16[1024,128], index: 1, kind: input, shape index: {}]   ;;  %s6158_s0 = inlined_call_operand.vmem [shape: bf16[512,1024], index: 0, kind: input, shape index: {}]   ;;  %s6159_s2 = inlined_call_operand.vmem [shape: bf16[512,128], index: 2, kind: output, shape index: {0}]   ;;  %s6160_s3 = inlined_call_operand.vmem [shape: f32[8,128], index: 3, kind: output, shape index: {1}]   ;;  %s6161_s4 = inlined_call_operand.vmem [shape: f32[8,128], index: 4, kind: output, shape index: {2}]  }
   0x1   :  { %2195 = vmatprep.subr.bf16.mxu0 %v4797_v0  ;;  %2484 = vmatprep.subr.bf16.mxu1 %v4797_v0  ;;  %v4733_v1 = vld [vmem:[%s6157_s1 + $0x38] sm:$0xff]   ;;  %v4735_v3 = vld [vmem:[%s6157_s1 + $0x30] sm:$0xff]   ;;  %v4737_v5 = vld [vmem:[%s6157_s1 + $0x28] sm:$0xff]  }
   0x2   :  { %v4734_v2 = vld [vmem:[%s6157_s1 + $0xb8] sm:$0xff]   ;;  %2196 = vmatpush1.bf16.msra.mxu0 %v4733_v1  ;;  %v4736_v4 = vld [vmem:[%s6157_s1 + $0xb0] sm:$0xff]   ;;  %v4738_v6 = vld [vmem:[%s6157_s1 + $0xa8] sm:$0xff]  }
   0x3   :  { %2485 = vmatpush1.bf16.msra.mxu1 %v4734_v2  ;;  %2197 = vmatprep.subr.bf16.mxu0 %v4797_v0  ;;  %v4739_v7 = vld [vmem:[%s6157_s1 + $0x20] sm:$0xff]   ;;  %v4741_v9 = vld [vmem:[%s6157_s1 + $0x18] sm:$0xff]   ;;  %v4743_v11 = vld [vmem:[%s6157_s1 + $0x10] sm:$0xff]  }
   0x4   :  { %2486 = vmatprep.subr.bf16.mxu1 %v4797_v0  ;;  %v4740_v8 = vld [vmem:[%s6157_s1 + $0xa0] sm:$0xff]   ;;  %v4742_v10 = vld [vmem:[%s6157_s1 + $0x98] sm:$0xff]   ;;  %v4744_v12 = vld [vmem:[%s6157_s1 + $0x90] sm:$0xff]  }
   0x5   :  { %v4745_v13 = vld [vmem:[%s6157_s1 + $0x8] sm:$0xff]   ;;  %v4747_v15 = vld [vmem:[%s6157_s1] sm:$0xff]   ;;  %v4749_v17 = vld [vmem:[%s6157_s1 + $0x78] sm:$0xff]  }
   0x6   :  { %2198 = vmatpush1.bf16.msra.mxu0 %v4735_v3  ;;  %v4746_v14 = vld [vmem:[%s6157_s1 + $0x88] sm:$0xff]   ;;  %v4748_v16 = vld [vmem:[%s6157_s1 + $0x80] sm:$0xff]   ;;  %v4750_v18 = vld [vmem:[%s6157_s1 + $0xf8] sm:$0xff]  }
   0x7   :  { %2487 = vmatpush1.bf16.msra.mxu1 %v4736_v4  ;;  %2199 = vmatprep.subr.bf16.mxu0 %v4797_v0  ;;  %v4898_v19 = vld [vmem:[%s6158_s0] sm:$0xff]  ;;  %v4908_v21 = vld [vmem:[%s6158_s0 + $0x8] sm:$0xff]  ;;  %v4751_v24 = vld [vmem:[%s6157_s1 + $0x70] sm:$0xff]  }
   0x8   :  { %2488 = vmatprep.subr.bf16.mxu1 %v4797_v0  ;;  %v4903_v20 = vld [vmem:[%s6158_s0 + $0x20] sm:$0xff]  ;;  %v4915_v23 = vld [vmem:[%s6158_s0 + $0x28] sm:$0xff]  ;;  %v4752_v26 = vld [vmem:[%s6157_s1 + $0xf0] sm:$0xff]  }
   0x9   :  { %v4093_v22 = vcombine.high %v4898_v19, %v4903_v20  ;;  %v4095_v25 = vcombine.high %v4908_v21, %v4915_v23  ;;  %v4753_v27 = vld [vmem:[%s6157_s1 + $0x68] sm:$0xff]   ;;  %v4755_v29 = vld [vmem:[%s6157_s1 + $0x60] sm:$0xff]   ;;  %v4757_v31 = vld [vmem:[%s6157_s1 + $0x58] sm:$0xff]   ;;  %v4092_v42 = vcombine.low %v4898_v19, %v4903_v20  ;;  %v4094_v44 = vcombine.low %v4908_v21, %v4915_v23 }
   0xa   :  { %2200 = vmatpush1.bf16.msra.mxu0 %v4737_v5  ;;  %v4754_v28 = vld [vmem:[%s6157_s1 + $0xe8] sm:$0xff]   ;;  %v4756_v30 = vld [vmem:[%s6157_s1 + $0xe0] sm:$0xff]   ;;  %v4758_v32 = vld [vmem:[%s6157_s1 + $0xd8] sm:$0xff]  }
   0xb   :  { %2489 = vmatpush1.bf16.msra.mxu1 %v4738_v6  ;;  %2201 = vmatprep.subr.bf16.mxu0 %v4797_v0  ;;  %v4759_v33 = vld [vmem:[%s6157_s1 + $0x50] sm:$0xff]   ;;  %v4761_v35 = vld [vmem:[%s6157_s1 + $0x48] sm:$0xff]   ;;  %v4763_v37 = vld [vmem:[%s6157_s1 + $0x40] sm:$0xff]  }
   0xc   :  { %2490 = vmatprep.subr.bf16.mxu1 %v4797_v0  ;;  %2227 = vmatprep.mubr.bf16.mxu0 %v4093_v22  ;;  %v4760_v34 = vld [vmem:[%s6157_s1 + $0xd0] sm:$0xff]   ;;  %v4762_v36 = vld [vmem:[%s6157_s1 + $0xc8] sm:$0xff]   ;;  %v4764_v38 = vld [vmem:[%s6157_s1 + $0xc0] sm:$0xff]  }
   0xd   :  { %2516 = vmatprep.mubr.bf16.mxu1 %v4095_v25  ;;  %v155_v39 = vld [vmem:[%s6158_s0 + $0x40] sm:$0xff]  ;;  %v156_v41 = vld [vmem:[%s6158_s0 + $0x48] sm:$0xff]  ;;  %v4765_v45 = vld [vmem:[%s6157_s1 + $0x138] sm:$0xff]  }
   0xe   :  { %2202 = vmatpush1.bf16.msra.mxu0 %v4739_v7  ;;  %v159_v40 = vld [vmem:[%s6158_s0 + $0x60] sm:$0xff]  ;;  %v160_v43 = vld [vmem:[%s6158_s0 + $0x68] sm:$0xff]  ;;  %v4766_v46 = vld [vmem:[%s6157_s1 + $0x1b8] sm:$0xff]  }
   0xf   :  { %2491 = vmatpush1.bf16.msra.mxu1 %v4740_v8  ;;  %2203 = vmatprep.subr.bf16.mxu0 %v4797_v0  ;;  %v4101_v47 = vcombine.high %v155_v39, %v159_v40  ;;  %v4103_v48 = vcombine.high %v156_v41, %v160_v43  ;;  %v163_v49 = vld [vmem:[%s6158_s0 + $0x80] sm:$0xff]  ;;  %v4767_v51 = vld [vmem:[%s6157_s1 + $0x130] sm:$0xff]   ;;  %v164_v53 = vld [vmem:[%s6158_s0 + $0x88] sm:$0xff]  ;;  %v4100_v55 = vcombine.low %v155_v39, %v159_v40 }
  0x10   :  { %2492 = vmatprep.subr.bf16.mxu1 %v4797_v0  ;;  %v167_v50 = vld [vmem:[%s6158_s0 + $0xa0] sm:$0xff]  ;;  %v4768_v52 = vld [vmem:[%s6157_s1 + $0x1b0] sm:$0xff]   ;;  %v168_v54 = vld [vmem:[%s6158_s0 + $0xa8] sm:$0xff]  ;;  %v4102_v56 = vcombine.low %v156_v41, %v160_v43 }
  0x11   :  { %v4109_v57 = vcombine.high %v163_v49, %v167_v50  ;;  %v4111_v58 = vcombine.high %v164_v53, %v168_v54  ;;  %v4769_v59 = vld [vmem:[%s6157_s1 + $0x128] sm:$0xff]   ;;  %v171_v61 = vld [vmem:[%s6158_s0 + $0xc0] sm:$0xff]  ;;  %v4108_v4 = vcombine.low %v163_v49, %v167_v50  ;;  %v4773_v5 = vld [vmem:[%s6157_s1 + $0x118] sm:$0xff]   ;;  %v4110_v6 = vcombine.low %v164_v53, %v168_v54 }
  0x12   :  { %2204 = vmatpush1.bf16.msra.mxu0 %v4741_v9  ;;  %v4770_v60 = vld [vmem:[%s6157_s1 + $0x1a8] sm:$0xff]   ;;  %v175_v62 = vld [vmem:[%s6158_s0 + $0xe0] sm:$0xff]  ;;  %v4774_v8 = vld [vmem:[%s6157_s1 + $0x198] sm:$0xff]  }
  0x13   :  { %2493 = vmatpush1.bf16.msra.mxu1 %v4742_v10  ;;  %2205 = vmatprep.subr.bf16.mxu0 %v4797_v0  ;;  %v172_v63 = vld [vmem:[%s6158_s0 + $0xc8] sm:$0xff]  ;;  %v4771_v2 = vld [vmem:[%s6157_s1 + $0x120] sm:$0xff]   ;;  %v4117_v7 = vcombine.high %v171_v61, %v175_v62  ;;  %v4784_v39 = vld [vmem:[%s6157_s1 + $0x1f0] sm:$0xff]  }
  0x14   :  { %2494 = vmatprep.subr.bf16.mxu1 %v4797_v0  ;;  %v176_v1 = vld [vmem:[%s6158_s0 + $0xe8] sm:$0xff]  ;;  %v4772_v3 = vld [vmem:[%s6157_s1 + $0x1a0] sm:$0xff]  }
  0x15   :  { %v4119_v9 = vcombine.high %v172_v63, %v176_v1  ;;  %v179_v10 = vld [vmem:[%s6158_s0 + $0x100] sm:$0xff]  ;;  %v4777_v20 = vld [vmem:[%s6157_s1 + $0x108] sm:$0xff]  }
  0x16   :  { %2206 = vmatpush1.bf16.msra.mxu0 %v4743_v11  ;;  %v183_v11 = vld [vmem:[%s6158_s0 + $0x120] sm:$0xff]  ;;  %v4778_v21 = vld [vmem:[%s6157_s1 + $0x188] sm:$0xff]  }
  0x17   :  { %2495 = vmatpush1.bf16.msra.mxu1 %v4744_v12  ;;  %2207 = vmatprep.subr.bf16.mxu0 %v4797_v0  ;;  %v180_v12 = vld [vmem:[%s6158_s0 + $0x108] sm:$0xff]  ;;  %v187_v22 = vld [vmem:[%s6158_s0 + $0x140] sm:$0xff] }
  0x18   :  { %2496 = vmatprep.subr.bf16.mxu1 %v4797_v0  ;;  %v191_v23 = vld [vmem:[%s6158_s0 + $0x160] sm:$0xff]  ;;  %v188_v25 = vld [vmem:[%s6158_s0 + $0x148] sm:$0xff] }
  0x19   :  { %v4132_v40 = vcombine.low %v187_v22, %v191_v23  ;;  %v208_v49 = vld [vmem:[%s6158_s0 + $0x1e8] sm:$0xff]  ;;  %v4787_v54 = vld [vmem:[%s6157_s1 + $0x160] sm:$0xff]  }
  0x1a   :  { %2208 = vmatpush1.bf16.msra.mxu0 %v4745_v13  ;;  %v184_v13 = vld [vmem:[%s6158_s0 + $0x128] sm:$0xff] }
  0x1b   :  { %2497 = vmatpush1.bf16.msra.mxu1 %v4746_v14  ;;  %2209 = vmatprep.subr.bf16.mxu0 %v4797_v0  ;;  %v4775_v14 = vld [vmem:[%s6157_s1 + $0x110] sm:$0xff]   ;;  %v4127_v19 = vcombine.high %v180_v12, %v184_v13 }
  0x1c   :  { %2498 = vmatprep.subr.bf16.mxu1 %v4797_v0 }
  0x1e   :  { %2210 = vmatpush1.bf16.msra.mxu0 %v4747_v15  ;;  %v4776_v15 = vld [vmem:[%s6157_s1 + $0x190] sm:$0xff]  }
  0x1f   :  { %2499 = vmatpush1.bf16.msra.mxu1 %v4748_v16  ;;  %2211 = vmatprep.subr.bf16.mxu0 %v4797_v0  ;;  %v4116_v16 = vcombine.low %v171_v61, %v175_v62 }
  0x20   :  { %2500 = vmatprep.subr.bf16.mxu1 %v4797_v0 }
  0x22   :  { %2212 = vmatpush2.bf16.msra.mxu0 %v4749_v17  ;;  %v4118_v17 = vcombine.low %v172_v63, %v176_v1  ;;  %v219_v1 = vld [vmem:[%s6158_s0 + $0x240] sm:$0xff] }
  0x23   :  { %2501 = vmatpush2.bf16.msra.mxu1 %v4750_v18  ;;  %2213 = vmatprep.subr.bf16.mxu0 %v4797_v0  ;;  %v4125_v18 = vcombine.high %v179_v10, %v183_v11 }
  0x24   :  { %2502 = vmatprep.subr.bf16.mxu1 %v4797_v0 }
  0x26   :  { %2214 = vmatpush2.bf16.msra.mxu0 %v4751_v24  ;;  %v4779_v24 = vld [vmem:[%s6157_s1 + $0x100] sm:$0xff]  }
  0x27   :  { %2503 = vmatpush2.bf16.msra.mxu1 %v4752_v26  ;;  %2215 = vmatprep.subr.bf16.mxu0 %v4797_v0  ;;  %v192_v26 = vld [vmem:[%s6158_s0 + $0x168] sm:$0xff] }
  0x28   :  { %2504 = vmatprep.subr.bf16.mxu1 %v4797_v0  ;;  %v4134_v41 = vcombine.low %v188_v25, %v192_v26 }
  0x2a   :  { %2216 = vmatpush2.bf16.msra.mxu0 %v4753_v27  ;;  %v4780_v27 = vld [vmem:[%s6157_s1 + $0x180] sm:$0xff]  }
  0x2b   :  { %2505 = vmatpush2.bf16.msra.mxu1 %v4754_v28  ;;  %2217 = vmatprep.subr.bf16.mxu0 %v4797_v0  ;;  %v4124_v28 = vcombine.low %v179_v10, %v183_v11  ;;  %v231_v10 = vld [vmem:[%s6158_s0 + $0x2a0] sm:$0xff]  ;;  %v4789_v11 = vld [vmem:[%s6157_s1 + $0x158] sm:$0xff]  }
  0x2c   :  { %2506 = vmatprep.subr.bf16.mxu1 %v4797_v0 }
  0x2e   :  { %2218 = vmatpush2.bf16.msra.mxu0 %v4755_v29  ;;  %v4126_v29 = vcombine.low %v180_v12, %v184_v13  ;;  %v228_v12 = vld [vmem:[%s6158_s0 + $0x288] sm:$0xff] }
  0x2f   :  { %2507 = vmatpush2.bf16.msra.mxu1 %v4756_v30  ;;  %2219 = vmatprep.subr.bf16.mxu0 %v4797_v0  ;;  %v4133_v30 = vcombine.high %v187_v22, %v191_v23  ;;  %v232_v13 = vld [vmem:[%s6158_s0 + $0x2a8] sm:$0xff] }
  0x30   :  { %2508 = vmatprep.subr.bf16.mxu1 %v4797_v0  ;;  %v240_v22 = vld [vmem:[%s6158_s0 + $0x2e8] sm:$0xff] }
  0x32   :  { %2220 = vmatpush2.bf16.msra.mxu0 %v4757_v31  ;;  %v4135_v31 = vcombine.high %v188_v25, %v192_v26 }
  0x33   :  { %2509 = vmatpush2.bf16.msra.mxu1 %v4758_v32  ;;  %2221 = vmatprep.subr.bf16.mxu0 %v4797_v0  ;;  %v4781_v32 = vld [vmem:[%s6157_s1 + $0x178] sm:$0xff]  }
  0x34   :  { %2510 = vmatprep.subr.bf16.mxu1 %v4797_v0 }
  0x36   :  { %2222 = vmatpush2.bf16.msra.mxu0 %v4759_v33  ;;  %v4782_v33 = vld [vmem:[%s6157_s1 + $0x1f8] sm:$0xff]  }
  0x37   :  { %2511 = vmatpush2.bf16.msra.mxu1 %v4760_v34  ;;  %2223 = vmatprep.subr.bf16.mxu0 %v4797_v0  ;;  %v195_v34 = vld [vmem:[%s6158_s0 + $0x180] sm:$0xff] }
  0x38   :  { %2512 = vmatprep.subr.bf16.mxu1 %v4797_v0 }
  0x3a   :  { %2224 = vmatpush2.bf16.msra.mxu0 %v4761_v35  ;;  %v199_v35 = vld [vmem:[%s6158_s0 + $0x1a0] sm:$0xff] }
  0x3b   :  { %2513 = vmatpush2.bf16.msra.mxu1 %v4762_v36  ;;  %2225 = vmatprep.subr.bf16.mxu0 %v4797_v0  ;;  %v4783_v36 = vld [vmem:[%s6157_s1 + $0x170] sm:$0xff]   ;;  %v4140_v50 = vcombine.low %v195_v34, %v199_v35 }
  0x3c   :  { %2514 = vmatprep.subr.bf16.mxu1 %v4797_v0 }
  0x3e   :  { %2226 = vmatpush2.bf16.msra.mxu0 %v4763_v37  ;;  %v196_v37 = vld [vmem:[%s6158_s0 + $0x188] sm:$0xff] }
  0x3f   :  { %2515 = vmatpush2.bf16.msra.mxu1 %v4764_v38  ;;  %2773 = vmatprep.subr.bf16.mxu0 %v4797_v0  ;;  %v200_v38 = vld [vmem:[%s6158_s0 + $0x1a8] sm:$0xff] }
  0x40   :  { %3062 = vmatprep.subr.bf16.mxu1 %v4797_v0  ;;  %v4143_v43 = vcombine.high %v196_v37, %v200_v38 }
  0x41   :  { %2228 = vmatmul.mubr.bf16.vlgmr.msra.gmra.mxu0 %v4092_v42  ;;  %v4141_v42 = vcombine.high %v195_v34, %v199_v35 }
  0x42   :  { %2517 = vmatmul.mubr.bf16.vlgmr.msra.gmra.mxu1 %v4094_v44  ;;  %2774 = vmatpush1.bf16.msra.mxu0 %v4765_v45  ;;  %v4785_v44 = vld [vmem:[%s6157_s1 + $0x168] sm:$0xff]  }
  0x43   :  { %3063 = vmatpush1.bf16.msra.mxu1 %v4766_v46  ;;  %2235 = vmatprep.mubr.bf16.mxu0 %v4101_v47  ;;  %v4786_v45 = vld [vmem:[%s6157_s1 + $0x1e8] sm:$0xff]   ;;  %v203_v46 = vld [vmem:[%s6158_s0 + $0x1c0] sm:$0xff] }
  0x44   :  { %2524 = vmatprep.mubr.bf16.mxu1 %v4103_v48  ;;  %2775 = vmatprep.subr.bf16.mxu0 %v4797_v0  ;;  %v207_v47 = vld [vmem:[%s6158_s0 + $0x1e0] sm:$0xff]  ;;  %v204_v48 = vld [vmem:[%s6158_s0 + $0x1c8] sm:$0xff] }
  0x45   :  { %3064 = vmatprep.subr.bf16.mxu1 %v4797_v0  ;;  %v4151_v53 = vcombine.high %v204_v48, %v208_v49  ;;  %v4150_v61 = vcombine.low %v204_v48, %v208_v49  ;;  %v260_v48 = vld [vmem:[%s6158_s0 + $0x388] sm:$0xff] }
  0x46   :  { %2776 = vmatpush1.bf16.msra.mxu0 %v4767_v51  ;;  %v4142_v51 = vcombine.low %v196_v37, %v200_v38  ;;  %v251_v37 = vld [vmem:[%s6158_s0 + $0x340] sm:$0xff]  ;;  %v264_v49 = vld [vmem:[%s6158_s0 + $0x3a8] sm:$0xff] }
  0x47   :  { %3065 = vmatpush1.bf16.msra.mxu1 %v4768_v52  ;;  %2777 = vmatprep.subr.bf16.mxu0 %v4797_v0  ;;  %v4149_v52 = vcombine.high %v203_v46, %v207_v47  ;;  %v255_v38 = vld [vmem:[%s6158_s0 + $0x360] sm:$0xff] }
  0x48   :  { %3066 = vmatprep.subr.bf16.mxu1 %v4797_v0 }
  0x49   :  { %2236 = vmatmul.mubr.bf16.gmra.mxu0 %v4100_v55  ;;  %v4788_v55 = vld [vmem:[%s6157_s1 + $0x1e0] sm:$0xff]  }
  0x4a   :  { %2525 = vmatmul.mubr.bf16.gmra.mxu1 %v4102_v56  ;;  %2243 = vmatprep.mubr.bf16.mxu0 %v4109_v57  ;;  %v211_v56 = vld [vmem:[%s6158_s0 + $0x200] sm:$0xff] }
  0x4b   :  { %2532 = vmatprep.mubr.bf16.mxu1 %v4111_v58  ;;  %2778 = vmatpush1.bf16.msra.mxu0 %v4769_v59  ;;  %v215_v57 = vld [vmem:[%s6158_s0 + $0x220] sm:$0xff]  ;;  %v212_v58 = vld [vmem:[%s6158_s0 + $0x208] sm:$0xff] }
  0x4c   :  { %3067 = vmatpush1.bf16.msra.mxu1 %v4770_v60  ;;  %2779 = vmatprep.subr.bf16.mxu0 %v4797_v0  ;;  %v216_v59 = vld [vmem:[%s6158_s0 + $0x228] sm:$0xff]  ;;  %v4148_v60 = vcombine.low %v203_v46, %v207_v47  ;;  %v4157_v62 = vcombine.high %v211_v56, %v215_v57  ;;  %v263_v46 = vld [vmem:[%s6158_s0 + $0x3a0] sm:$0xff] }
  0x4d   :  { %3068 = vmatprep.subr.bf16.mxu1 %v4797_v0  ;;  %v4159_v63 = vcombine.high %v212_v58, %v216_v59  ;;  %v4793_v47 = vld [vmem:[%s6157_s1 + $0x148] sm:$0xff]  }
  0x4f   :  { %2780 = vmatpush1.bf16.msra.mxu0 %v4771_v2  ;;  %v223_v2 = vld [vmem:[%s6158_s0 + $0x260] sm:$0xff] }
  0x50   :  { %3069 = vmatpush1.bf16.msra.mxu1 %v4772_v3  ;;  %2781 = vmatprep.subr.bf16.mxu0 %v4797_v0  ;;  %v220_v3 = vld [vmem:[%s6158_s0 + $0x248] sm:$0xff] }
  0x51   :  { %2244 = vmatmul.mubr.bf16.gmra.mxu0 %v4108_v4  ;;  %3070 = vmatprep.subr.bf16.mxu1 %v4797_v0  ;;  %v224_v4 = vld [vmem:[%s6158_s0 + $0x268] sm:$0xff] }
  0x52   :  { %2533 = vmatmul.mubr.bf16.gmra.mxu1 %v4110_v6  ;;  %2251 = vmatprep.mubr.bf16.mxu0 %v4117_v7  ;;  %v4158_v6 = vcombine.low %v212_v58, %v216_v59  ;;  %v4165_v7 = vcombine.high %v219_v1, %v223_v2  ;;  %v4206_v59 = vcombine.low %v260_v48, %v264_v49 }
  0x53   :  { %2540 = vmatprep.mubr.bf16.mxu1 %v4119_v9  ;;  %2782 = vmatpush1.bf16.msra.mxu0 %v4773_v5  ;;  %v4156_v5 = vcombine.low %v211_v56, %v215_v57  ;;  %v227_v9 = vld [vmem:[%s6158_s0 + $0x280] sm:$0xff]  ;;  %v268_v57 = vld [vmem:[%s6158_s0 + $0x3c8] sm:$0xff] }
  0x54   :  { %3071 = vmatpush1.bf16.msra.mxu1 %v4774_v8  ;;  %2783 = vmatprep.subr.bf16.mxu0 %v4797_v0  ;;  %v4167_v8 = vcombine.high %v220_v3, %v224_v4  ;;  %v4172_v23 = vcombine.low %v227_v9, %v231_v10  ;;  %v271_v56 = vld [vmem:[%s6158_s0 + $0x3e0] sm:$0xff] }
  0x55   :  { %3072 = vmatprep.subr.bf16.mxu1 %v4797_v0 }
  0x57   :  { %2784 = vmatpush1.bf16.msra.mxu0 %v4775_v14  ;;  %v4790_v14 = vld [vmem:[%s6157_s1 + $0x1d8] sm:$0xff]  }
  0x58   :  { %3073 = vmatpush1.bf16.msra.mxu1 %v4776_v15  ;;  %2785 = vmatprep.subr.bf16.mxu0 %v4797_v0  ;;  %v4164_v15 = vcombine.low %v219_v1, %v223_v2  ;;  %v4795_v1 = vld [vmem:[%s6157_s1 + $0x140] sm:$0xff]   ;;  %v276_v2 = vld [vmem:[%s6158_s0 + $0x408] sm:$0xff] }
  0x59   :  { %2252 = vmatmul.mubr.bf16.gmra.mxu0 %v4116_v16  ;;  %3074 = vmatprep.subr.bf16.mxu1 %v4797_v0  ;;  %v4166_v16 = vcombine.low %v220_v3, %v224_v4  ;;  %v280_v3 = vld [vmem:[%s6158_s0 + $0x428] sm:$0xff]  ;;  %v4796_v4 = vld [vmem:[%s6157_s1 + $0x1c0] sm:$0xff]  }
  0x5a   :  { %2541 = vmatmul.mubr.bf16.gmra.mxu1 %v4118_v17  ;;  %2259 = vmatprep.mubr.bf16.mxu0 %v4125_v18  ;;  %v4173_v17 = vcombine.high %v227_v9, %v231_v10  ;;  %v4175_v18 = vcombine.high %v228_v12, %v232_v13  ;;  %v283_v9 = vld [vmem:[%s6158_s0 + $0x440] sm:$0xff] }
  0x5b   :  { %2548 = vmatprep.mubr.bf16.mxu1 %v4127_v19  ;;  %2786 = vmatpush1.bf16.msra.mxu0 %v4777_v20  ;;  %v235_v19 = vld [vmem:[%s6158_s0 + $0x2c0] sm:$0xff] }
  0x5c   :  { %3075 = vmatpush1.bf16.msra.mxu1 %v4778_v21  ;;  %2787 = vmatprep.subr.bf16.mxu0 %v4797_v0  ;;  %v239_v20 = vld [vmem:[%s6158_s0 + $0x2e0] sm:$0xff]  ;;  %v236_v21 = vld [vmem:[%s6158_s0 + $0x2c8] sm:$0xff] }
  0x5d   :  { %3076 = vmatprep.subr.bf16.mxu1 %v4797_v0  ;;  %v4181_v25 = vcombine.high %v235_v19, %v239_v20  ;;  %v4183_v26 = vcombine.high %v236_v21, %v240_v22  ;;  %v4182_v34 = vcombine.low %v236_v21, %v240_v22  ;;  %v287_v10 = vld [vmem:[%s6158_s0 + $0x460] sm:$0xff] }
  0x5e   :  { %v4228_v21 = vcombine.low %v283_v9, %v287_v10 }
  0x5f   :  { %2788 = vmatpush1.bf16.msra.mxu0 %v4779_v24  ;;  %v4174_v24 = vcombine.low %v228_v12, %v232_v13  ;;  %v288_v12 = vld [vmem:[%s6158_s0 + $0x468] sm:$0xff] }
  0x60   :  { %3077 = vmatpush1.bf16.msra.mxu1 %v4780_v27  ;;  %2789 = vmatprep.subr.bf16.mxu0 %v4797_v0  ;;  %v243_v27 = vld [vmem:[%s6158_s0 + $0x300] sm:$0xff] }
  0x61   :  { %2260 = vmatmul.mubr.bf16.gmra.mxu0 %v4124_v28  ;;  %3078 = vmatprep.subr.bf16.mxu1 %v4797_v0  ;;  %v247_v28 = vld [vmem:[%s6158_s0 + $0x320] sm:$0xff] }
  0x62   :  { %2549 = vmatmul.mubr.bf16.gmra.mxu1 %v4126_v29  ;;  %2267 = vmatprep.mubr.bf16.mxu0 %v4133_v30  ;;  %v4791_v29 = vld [vmem:[%s6157_s1 + $0x150] sm:$0xff]   ;;  %v244_v30 = vld [vmem:[%s6158_s0 + $0x308] sm:$0xff]  ;;  %v4189_v35 = vcombine.high %v243_v27, %v247_v28 }
  0x63   :  { %2556 = vmatprep.mubr.bf16.mxu1 %v4135_v31  ;;  %2790 = vmatpush2.bf16.msra.mxu0 %v4781_v32  ;;  %v248_v31 = vld [vmem:[%s6158_s0 + $0x328] sm:$0xff]  ;;  %v4792_v32 = vld [vmem:[%s6157_s1 + $0x1d0] sm:$0xff]  }
  0x64   :  { %3079 = vmatpush2.bf16.msra.mxu1 %v4782_v33  ;;  %2791 = vmatprep.subr.bf16.mxu0 %v4797_v0  ;;  %v4180_v33 = vcombine.low %v235_v19, %v239_v20  ;;  %v292_v19 = vld [vmem:[%s6158_s0 + $0x488] sm:$0xff] }
  0x65   :  { %3080 = vmatprep.subr.bf16.mxu1 %v4797_v0  ;;  %v296_v20 = vld [vmem:[%s6158_s0 + $0x4a8] sm:$0xff] }
  0x67   :  { %2792 = vmatpush2.bf16.msra.mxu0 %v4783_v36  ;;  %v4191_v36 = vcombine.high %v244_v30, %v248_v31 }
  0x68   :  { %3081 = vmatpush2.bf16.msra.mxu1 %v4784_v39  ;;  %2793 = vmatprep.subr.bf16.mxu0 %v4797_v0  ;;  %v252_v39 = vld [vmem:[%s6158_s0 + $0x348] sm:$0xff] }
  0x69   :  { %2268 = vmatmul.mubr.bf16.gmra.mxu0 %v4132_v40  ;;  %3082 = vmatprep.subr.bf16.mxu1 %v4797_v0  ;;  %v256_v40 = vld [vmem:[%s6158_s0 + $0x368] sm:$0xff] }
  0x6a   :  { %2557 = vmatmul.mubr.bf16.gmra.mxu1 %v4134_v41  ;;  %2275 = vmatprep.mubr.bf16.mxu0 %v4141_v42  ;;  %v4188_v41 = vcombine.low %v243_v27, %v247_v28  ;;  %v4190_v42 = vcombine.low %v244_v30, %v248_v31  ;;  %v300_v27 = vld [vmem:[%s6158_s0 + $0x4c8] sm:$0xff]  ;;  %v4238_v30 = vcombine.low %v292_v19, %v296_v20 }
  0x6b   :  { %2564 = vmatprep.mubr.bf16.mxu1 %v4143_v43  ;;  %2794 = vmatpush2.bf16.msra.mxu0 %v4785_v44  ;;  %v4197_v43 = vcombine.high %v251_v37, %v255_v38  ;;  %v4199_v44 = vcombine.high %v252_v39, %v256_v40  ;;  %v304_v28 = vld [vmem:[%s6158_s0 + $0x4e8] sm:$0xff] }
  0x6c   :  { %3083 = vmatpush2.bf16.msra.mxu1 %v4786_v45  ;;  %2795 = vmatprep.subr.bf16.mxu0 %v4797_v0  ;;  %v259_v45 = vld [vmem:[%s6158_s0 + $0x380] sm:$0xff] }
  0x6d   :  { %3084 = vmatprep.subr.bf16.mxu1 %v4797_v0  ;;  %v4204_v58 = vcombine.low %v259_v45, %v263_v46 }
  0x6f   :  { %2796 = vmatpush2.bf16.msra.mxu0 %v4787_v54  ;;  %v4207_v54 = vcombine.high %v260_v48, %v264_v49  ;;  %v323_v49 = vld [vmem:[%s6158_s0 + $0x580] sm:$0xff] }
  0x70   :  { %3085 = vmatpush2.bf16.msra.mxu1 %v4788_v55  ;;  %2797 = vmatprep.subr.bf16.mxu0 %v4797_v0  ;;  %v267_v55 = vld [vmem:[%s6158_s0 + $0x3c0] sm:$0xff] }
  0x71   :  { %2276 = vmatmul.mubr.bf16.gmra.mxu0 %v4140_v50  ;;  %3086 = vmatprep.subr.bf16.mxu1 %v4797_v0  ;;  %v4794_v50 = vld [vmem:[%s6157_s1 + $0x1c8] sm:$0xff]  }
  0x72   :  { %2565 = vmatmul.mubr.bf16.gmra.mxu1 %v4142_v51  ;;  %2283 = vmatprep.mubr.bf16.mxu0 %v4149_v52  ;;  %v4196_v51 = vcombine.low %v251_v37, %v255_v38  ;;  %v4198_v52 = vcombine.low %v252_v39, %v256_v40  ;;  %v4246_v38 = vcombine.low %v300_v27, %v304_v28 }
  0x73   :  { %2572 = vmatprep.mubr.bf16.mxu1 %v4151_v53  ;;  %2798 = vmatpush2.bf16.msra.mxu0 %v4789_v11  ;;  %v4205_v53 = vcombine.high %v259_v45, %v263_v46  ;;  %v284_v11 = vld [vmem:[%s6158_s0 + $0x448] sm:$0xff] }
  0x74   :  { %3087 = vmatpush2.bf16.msra.mxu1 %v4790_v14  ;;  %2799 = vmatprep.subr.bf16.mxu0 %v4797_v0  ;;  %v4222_v14 = vcombine.low %v276_v2, %v280_v3  ;;  %v4230_v22 = vcombine.low %v284_v11, %v288_v12 }
  0x75   :  { %3088 = vmatprep.subr.bf16.mxu1 %v4797_v0 }
  0x77   :  { %2800 = vmatpush2.bf16.msra.mxu0 %v4791_v29 }
  0x78   :  { %3089 = vmatpush2.bf16.msra.mxu1 %v4792_v32  ;;  %2801 = vmatprep.subr.bf16.mxu0 %v4797_v0  ;;  %v4247_v32 = vcombine.high %v300_v27, %v304_v28 }
  0x79   :  { %2284 = vmatmul.mubr.bf16.gmra.mxu0 %v4148_v60  ;;  %3090 = vmatprep.subr.bf16.mxu1 %v4797_v0  ;;  %v4213_v60 = vcombine.high %v267_v55, %v271_v56 }
  0x7a   :  { %2573 = vmatmul.mubr.bf16.gmra.mxu1 %v4150_v61  ;;  %2291 = vmatprep.mubr.bf16.mxu0 %v4157_v62  ;;  %v275_v62 = vld [vmem:[%s6158_s0 + $0x400] sm:$0xff] }
  0x7b   :  { %2580 = vmatprep.mubr.bf16.mxu1 %v4159_v63  ;;  %2802 = vmatpush2.bf16.msra.mxu0 %v4793_v47  ;;  %v279_v63 = vld [vmem:[%s6158_s0 + $0x420] sm:$0xff] }
  0x7c   :  { %3091 = vmatpush2.bf16.msra.mxu1 %v4794_v50  ;;  %2803 = vmatprep.subr.bf16.mxu0 %v4797_v0  ;;  %v4220_v13 = vcombine.low %v275_v62, %v279_v63  ;;  %v327_v50 = vld [vmem:[%s6158_s0 + $0x5a0] sm:$0xff] }
  0x7d   :  { %3092 = vmatprep.subr.bf16.mxu1 %v4797_v0  ;;  %v272_v0 = vld [vmem:[%s6158_s0 + $0x3e8] sm:$0xff] }
  0x7e   :  { %v4215_v61 = vcombine.high %v268_v57, %v272_v0 }
  0x7f   :  { %2804 = vmatpush2.bf16.msra.mxu0 %v4795_v1  ;;  %v339_v1 = vld [vmem:[%s6158_s0 + $0x600] sm:$0xff] }
  0x80   :  { %3093 = vmatpush2.bf16.msra.mxu1 %v4796_v4  ;;  %v344_v4 = vld [vmem:[%s6158_s0 + $0x628] sm:$0xff] }
  0x81   :  { %2292 = vmatmul.mubr.bf16.gmra.mxu0 %v4156_v5  ;;  %v4212_v5 = vcombine.low %v267_v55, %v271_v56  ;;  %v4269_v55 = vcombine.high %v323_v49, %v327_v50 }
  0x82   :  { %2581 = vmatmul.mubr.bf16.gmra.mxu1 %v4158_v6  ;;  %2299 = vmatprep.mubr.bf16.mxu0 %v4165_v7  ;;  %v4214_v6 = vcombine.low %v268_v57, %v272_v0  ;;  %v4221_v7 = vcombine.high %v275_v62, %v279_v63  ;;  %v331_v57 = vld [vmem:[%s6158_s0 + $0x5c0] sm:$0xff] }
  0x83   :  { %2588 = vmatprep.mubr.bf16.mxu1 %v4167_v8  ;;  %v4223_v8 = vcombine.high %v276_v2, %v280_v3  ;;  %v335_v0 = vld [vmem:[%s6158_s0 + $0x5e0] sm:$0xff]  ;;  %v340_v3 = vld [vmem:[%s6158_s0 + $0x608] sm:$0xff] }
  0x84   :  { %v4277_v62 = vcombine.high %v331_v57, %v335_v0  ;;  %v343_v2 = vld [vmem:[%s6158_s0 + $0x620] sm:$0xff] }
  0x89   :  { %2300 = vmatmul.mubr.bf16.gmra.mxu0 %v4164_v15  ;;  %v4229_v15 = vcombine.high %v283_v9, %v287_v10  ;;  %v347_v9 = vld [vmem:[%s6158_s0 + $0x640] sm:$0xff] }
  0x8a   :  { %2589 = vmatmul.mubr.bf16.gmra.mxu1 %v4166_v16  ;;  %2307 = vmatprep.mubr.bf16.mxu0 %v4173_v17  ;;  %v4231_v16 = vcombine.high %v284_v11, %v288_v12  ;;  %v291_v17 = vld [vmem:[%s6158_s0 + $0x480] sm:$0xff]  ;;  %v348_v11 = vld [vmem:[%s6158_s0 + $0x648] sm:$0xff] }
  0x8b   :  { %2596 = vmatprep.mubr.bf16.mxu1 %v4175_v18  ;;  %v295_v18 = vld [vmem:[%s6158_s0 + $0x4a0] sm:$0xff]  ;;  %v352_v12 = vld [vmem:[%s6158_s0 + $0x668] sm:$0xff] }
  0x8c   :  { %v4236_v29 = vcombine.low %v291_v17, %v295_v18  ;;  %v351_v10 = vld [vmem:[%s6158_s0 + $0x660] sm:$0xff] }
  0x8d   :  { %v4292_v27 = vcombine.low %v347_v9, %v351_v10 }
  0x91   :  { %2308 = vmatmul.mubr.bf16.gmra.mxu0 %v4172_v23  ;;  %v4237_v23 = vcombine.high %v291_v17, %v295_v18 }
  0x92   :  { %2597 = vmatmul.mubr.bf16.gmra.mxu1 %v4174_v24  ;;  %2315 = vmatprep.mubr.bf16.mxu0 %v4181_v25  ;;  %v4239_v24 = vcombine.high %v292_v19, %v296_v20  ;;  %v299_v25 = vld [vmem:[%s6158_s0 + $0x4c0] sm:$0xff] }
  0x93   :  { %2604 = vmatprep.mubr.bf16.mxu1 %v4183_v26  ;;  %v303_v26 = vld [vmem:[%s6158_s0 + $0x4e0] sm:$0xff] }
  0x94   :  { %v4245_v31 = vcombine.high %v299_v25, %v303_v26  ;;  %v4244_v37 = vcombine.low %v299_v25, %v303_v26  ;;  %v360_v25 = vld [vmem:[%s6158_s0 + $0x6a8] sm:$0xff] }
  0x99   :  { %2316 = vmatmul.mubr.bf16.gmra.mxu0 %v4180_v33  ;;  %v307_v33 = vld [vmem:[%s6158_s0 + $0x500] sm:$0xff] }
  0x9a   :  { %2605 = vmatmul.mubr.bf16.gmra.mxu1 %v4182_v34  ;;  %2323 = vmatprep.mubr.bf16.mxu0 %v4189_v35  ;;  %v311_v34 = vld [vmem:[%s6158_s0 + $0x520] sm:$0xff]  ;;  %v308_v35 = vld [vmem:[%s6158_s0 + $0x508] sm:$0xff] }
  0x9b   :  { %2612 = vmatprep.mubr.bf16.mxu1 %v4191_v36  ;;  %v312_v36 = vld [vmem:[%s6158_s0 + $0x528] sm:$0xff]  ;;  %v4253_v39 = vcombine.high %v307_v33, %v311_v34  ;;  %v4252_v45 = vcombine.low %v307_v33, %v311_v34 }
  0x9c   :  { %v4255_v40 = vcombine.high %v308_v35, %v312_v36  ;;  %v4254_v46 = vcombine.low %v308_v35, %v312_v36 }
  0xa1   :  { %2324 = vmatmul.mubr.bf16.gmra.mxu0 %v4188_v41  ;;  %v315_v41 = vld [vmem:[%s6158_s0 + $0x540] sm:$0xff] }
  0xa2   :  { %2613 = vmatmul.mubr.bf16.gmra.mxu1 %v4190_v42  ;;  %2331 = vmatprep.mubr.bf16.mxu0 %v4197_v43  ;;  %v319_v42 = vld [vmem:[%s6158_s0 + $0x560] sm:$0xff]  ;;  %v316_v43 = vld [vmem:[%s6158_s0 + $0x548] sm:$0xff] }
  0xa3   :  { %2620 = vmatprep.mubr.bf16.mxu1 %v4199_v44  ;;  %v320_v44 = vld [vmem:[%s6158_s0 + $0x568] sm:$0xff]  ;;  %v4261_v47 = vcombine.high %v315_v41, %v319_v42 }
  0xa4   :  { %v4263_v48 = vcombine.high %v316_v43, %v320_v44 }
  0xa9   :  { %2332 = vmatmul.mubr.bf16.gmra.mxu0 %v4196_v51  ;;  %v324_v51 = vld [vmem:[%s6158_s0 + $0x588] sm:$0xff] }
  0xaa   :  { %2621 = vmatmul.mubr.bf16.gmra.mxu1 %v4198_v52  ;;  %2339 = vmatprep.mubr.bf16.mxu0 %v4205_v53  ;;  %v328_v52 = vld [vmem:[%s6158_s0 + $0x5a8] sm:$0xff]  ;;  %v4260_v53 = vcombine.low %v315_v41, %v319_v42 }
  0xab   :  { %2628 = vmatprep.mubr.bf16.mxu1 %v4207_v54  ;;  %v4262_v54 = vcombine.low %v316_v43, %v320_v44  ;;  %v4271_v56 = vcombine.high %v324_v51, %v328_v52  ;;  %v364_v42 = vld [vmem:[%s6158_s0 + $0x6c8] sm:$0xff] }
  0xac   :  { %v368_v43 = vld [vmem:[%s6158_s0 + $0x6e8] sm:$0xff] }
  0xb1   :  { %2340 = vmatmul.mubr.bf16.gmra.mxu0 %v4204_v58  ;;  %v332_v58 = vld [vmem:[%s6158_s0 + $0x5c8] sm:$0xff] }
  0xb2   :  { %2629 = vmatmul.mubr.bf16.gmra.mxu1 %v4206_v59  ;;  %2347 = vmatprep.mubr.bf16.mxu0 %v4213_v60  ;;  %v336_v59 = vld [vmem:[%s6158_s0 + $0x5e8] sm:$0xff]  ;;  %v4268_v60 = vcombine.low %v323_v49, %v327_v50 }
  0xb3   :  { %2636 = vmatprep.mubr.bf16.mxu1 %v4215_v61  ;;  %v4270_v61 = vcombine.low %v324_v51, %v328_v52  ;;  %v4279_v63 = vcombine.high %v332_v58, %v336_v59  ;;  %v4311_v51 = vcombine.high %v364_v42, %v368_v43 }
  0xb9   :  { %2348 = vmatmul.mubr.bf16.gmra.mxu0 %v4212_v5  ;;  %v4276_v5 = vcombine.low %v331_v57, %v335_v0  ;;  %v371_v57 = vld [vmem:[%s6158_s0 + $0x700] sm:$0xff] }
  0xba   :  { %2637 = vmatmul.mubr.bf16.gmra.mxu1 %v4214_v6  ;;  %2355 = vmatprep.mubr.bf16.mxu0 %v4221_v7  ;;  %v4278_v6 = vcombine.low %v332_v58, %v336_v59  ;;  %v4285_v7 = vcombine.high %v339_v1, %v343_v2  ;;  %v375_v0 = vld [vmem:[%s6158_s0 + $0x720] sm:$0xff]  ;;  %v372_v59 = vld [vmem:[%s6158_s0 + $0x708] sm:$0xff] }
  0xbb   :  { %2644 = vmatprep.mubr.bf16.mxu1 %v4223_v8  ;;  %v4287_v8 = vcombine.high %v340_v3, %v344_v4 }
  0xc1   :  { %2356 = vmatmul.mubr.bf16.gmra.mxu0 %v4220_v13  ;;  %v4284_v13 = vcombine.low %v339_v1, %v343_v2  ;;  %v4310_v1 = vcombine.low %v364_v42, %v368_v43  ;;  %v4317_v2 = vcombine.high %v371_v57, %v375_v0 }
  0xc2   :  { %2645 = vmatmul.mubr.bf16.gmra.mxu1 %v4222_v14  ;;  %2363 = vmatprep.mubr.bf16.mxu0 %v4229_v15  ;;  %v4286_v14 = vcombine.low %v340_v3, %v344_v4  ;;  %v4293_v15 = vcombine.high %v347_v9, %v351_v10 }
  0xc3   :  { %2652 = vmatprep.mubr.bf16.mxu1 %v4231_v16  ;;  %v4295_v16 = vcombine.high %v348_v11, %v352_v12 }
  0xc9   :  { %2364 = vmatmul.mubr.bf16.gmra.mxu0 %v4228_v21  ;;  %v355_v21 = vld [vmem:[%s6158_s0 + $0x680] sm:$0xff] }
  0xca   :  { %2653 = vmatmul.mubr.bf16.gmra.mxu1 %v4230_v22  ;;  %2371 = vmatprep.mubr.bf16.mxu0 %v4237_v23  ;;  %v359_v22 = vld [vmem:[%s6158_s0 + $0x6a0] sm:$0xff] }
  0xcb   :  { %2660 = vmatprep.mubr.bf16.mxu1 %v4239_v24  ;;  %v356_v24 = vld [vmem:[%s6158_s0 + $0x688] sm:$0xff] }
  0xcc   :  { %v4303_v33 = vcombine.high %v356_v24, %v360_v25 }
  0xd1   :  { %2372 = vmatmul.mubr.bf16.gmra.mxu0 %v4236_v29  ;;  %v4294_v29 = vcombine.low %v348_v11, %v352_v12  ;;  %v379_v11 = vld [vmem:[%s6158_s0 + $0x740] sm:$0xff] }
  0xd2   :  { %2661 = vmatmul.mubr.bf16.gmra.mxu1 %v4238_v30  ;;  %2379 = vmatprep.mubr.bf16.mxu0 %v4245_v31  ;;  %v4301_v30 = vcombine.high %v355_v21, %v359_v22  ;;  %v383_v12 = vld [vmem:[%s6158_s0 + $0x760] sm:$0xff] }
  0xd3   :  { %2668 = vmatprep.mubr.bf16.mxu1 %v4247_v32 }
  0xd9   :  { %2380 = vmatmul.mubr.bf16.gmra.mxu0 %v4244_v37 }
  0xda   :  { %2669 = vmatmul.mubr.bf16.gmra.mxu1 %v4246_v38  ;;  %2387 = vmatprep.mubr.bf16.mxu0 %v4253_v39  ;;  %v363_v39 = vld [vmem:[%s6158_s0 + $0x6c0] sm:$0xff] }
  0xdb   :  { %2676 = vmatprep.mubr.bf16.mxu1 %v4255_v40  ;;  %v367_v40 = vld [vmem:[%s6158_s0 + $0x6e0] sm:$0xff] }
  0xe1   :  { %2388 = vmatmul.mubr.bf16.gmra.mxu0 %v4252_v45  ;;  %v4300_v45 = vcombine.low %v355_v21, %v359_v22  ;;  %v4325_v21 = vcombine.high %v379_v11, %v383_v12 }
  0xe2   :  { %2677 = vmatmul.mubr.bf16.gmra.mxu1 %v4254_v46  ;;  %2395 = vmatprep.mubr.bf16.mxu0 %v4261_v47  ;;  %v4302_v47 = vcombine.low %v356_v24, %v360_v25 }
  0xe3   :  { %2684 = vmatprep.mubr.bf16.mxu1 %v4263_v48  ;;  %v4309_v48 = vcombine.high %v363_v39, %v367_v40 }
  0xe9   :  { %2396 = vmatmul.mubr.bf16.gmra.mxu0 %v4260_v53 }
  0xea   :  { %2685 = vmatmul.mubr.bf16.gmra.mxu1 %v4262_v54  ;;  %2403 = vmatprep.mubr.bf16.mxu0 %v4269_v55 }
  0xeb   :  { %2692 = vmatprep.mubr.bf16.mxu1 %v4271_v56 }
  0xf1   :  { %2404 = vmatmul.mubr.bf16.gmra.mxu0 %v4268_v60  ;;  %v376_v60 = vld [vmem:[%s6158_s0 + $0x728] sm:$0xff] }
  0xf2   :  { %2693 = vmatmul.mubr.bf16.gmra.mxu1 %v4270_v61  ;;  %2411 = vmatprep.mubr.bf16.mxu0 %v4277_v62  ;;  %v4308_v62 = vcombine.low %v363_v39, %v367_v40 }
  0xf3   :  { %2700 = vmatprep.mubr.bf16.mxu1 %v4279_v63 }
  0xf9   :  { %2412 = vmatmul.mubr.bf16.gmra.mxu0 %v4276_v5  ;;  %v4319_v5 = vcombine.high %v372_v59, %v376_v60 }
  0xfa   :  { %2701 = vmatmul.mubr.bf16.gmra.mxu1 %v4278_v6  ;;  %2419 = vmatprep.mubr.bf16.mxu0 %v4285_v7 }
  0xfb   :  { %2708 = vmatprep.mubr.bf16.mxu1 %v4287_v8 }
 0x101   :  { %v2229_v17 = vpop.f32.mrf.mxu0  ;;  %2420 = vmatmul.mubr.bf16.gmra.mxu0 %v4284_v13 }
 0x102   :  { %v2518_v18 = vpop.f32.mrf.mxu1  ;;  %2709 = vmatmul.mubr.bf16.gmra.mxu1 %v4286_v14  ;;  %2427 = vmatprep.mubr.bf16.mxu0 %v4293_v15  ;;  %v380_v14 = vld [vmem:[%s6158_s0 + $0x748] sm:$0xff] }
 0x103   :  { %v5407_v19 = vadd.f32 %v2518_v18, %v2229_v17  ;;  %v2231_v20 = vpop.f32.mrf.mxu0  ;;  %2716 = vmatprep.mubr.bf16.mxu1 %v4295_v16  ;;  %v384_v15 = vld [vmem:[%s6158_s0 + $0x768] sm:$0xff]  ;;  %v4316_v17 = vcombine.low %v371_v57, %v375_v0 }
 0x104   :  { %v2520_v23 = vpop.f32.mrf.mxu1  ;;  %v4318_v20 = vcombine.low %v372_v59, %v376_v60  ;;  %v4327_v24 = vcombine.high %v380_v14, %v384_v15  ;;  %v4326_v40 = vcombine.low %v380_v14, %v384_v15 }
 0x105   :  { %v2232_v26 = vpop.f32.mrf.mxu0 }
 0x106   :  { %v2521_v28 = vpop.f32.mrf.mxu1 }
 0x107   :  { %v5421_v31 = vadd.f32 %v2521_v28, %v2232_v26  ;;  %v2234_v32 = vpop.f32.mrf.mxu0 }
 0x108   :  { %v2523_v34 = vpop.f32.mrf.mxu1  ;;  %v391_v32 = vld [vmem:[%s6158_s0 + $0x7a0] sm:$0xff] }
 0x109   :  { %v2237_v35 = vpop.f32.mrf.mxu0  ;;  %2428 = vmatmul.mubr.bf16.gmra.mxu0 %v4292_v27  ;;  %v388_v34 = vld [vmem:[%s6158_s0 + $0x788] sm:$0xff] }
 0x10a   :  { %v2526_v36 = vpop.f32.mrf.mxu1  ;;  %2717 = vmatmul.mubr.bf16.gmra.mxu1 %v4294_v29  ;;  %2435 = vmatprep.mubr.bf16.mxu0 %v4301_v30  ;;  %v387_v30 = vld [vmem:[%s6158_s0 + $0x780] sm:$0xff] }
 0x10b   :  { %v5423_v37 = vadd.f32 %v2526_v36, %v2237_v35  ;;  %v2239_v38 = vpop.f32.mrf.mxu0  ;;  %2724 = vmatprep.mubr.bf16.mxu1 %v4303_v33  ;;  %v392_v35 = vld [vmem:[%s6158_s0 + $0x7a8] sm:$0xff]  ;;  %v4332_v0 = vcombine.low %v387_v30, %v391_v32 }
 0x10c   :  { %v2528_v41 = vpop.f32.mrf.mxu1  ;;  %v4324_v38 = vcombine.low %v379_v11, %v383_v12  ;;  %v4334_v59 = vcombine.low %v388_v34, %v392_v35  ;;  %v150_v11 = vld [vmem:[%s6158_s0 + $0x18] sm:$0xff] }
 0x10d   :  { %v2240_v44 = vpop.f32.mrf.mxu0  ;;  %v4333_v41 = vcombine.high %v387_v30, %v391_v32  ;;  %v154_v12 = vld [vmem:[%s6158_s0 + $0x38] sm:$0xff]  ;;  %v161_v30 = vld [vmem:[%s6158_s0 + $0x70] sm:$0xff] }
 0x10e   :  { %v2529_v46 = vpop.f32.mrf.mxu1 }
 0x10f   :  { %v5437_v49 = vadd.f32 %v2529_v46, %v2240_v44  ;;  %v2242_v50 = vpop.f32.mrf.mxu0  ;;  %v4335_v44 = vcombine.high %v388_v34, %v392_v35  ;;  %v162_v34 = vld [vmem:[%s6158_s0 + $0x78] sm:$0xff] }
 0x110   :  { %v2531_v52 = vpop.f32.mrf.mxu1 }
 0x111   :  { %v2245_v53 = vpop.f32.mrf.mxu0  ;;  %2436 = vmatmul.mubr.bf16.gmra.mxu0 %v4300_v45  ;;  %v399_v52 = vld [vmem:[%s6158_s0 + $0x7e0] sm:$0xff] }
 0x112   :  { %v2534_v54 = vpop.f32.mrf.mxu1  ;;  %2725 = vmatmul.mubr.bf16.gmra.mxu1 %v4302_v47  ;;  %2443 = vmatprep.mubr.bf16.mxu0 %v4309_v48 }
 0x113   :  { %v5439_v55 = vadd.f32 %v2534_v54, %v2245_v53  ;;  %v2247_v56 = vpop.f32.mrf.mxu0  ;;  %2732 = vmatprep.mubr.bf16.mxu1 %v4311_v51  ;;  %v395_v51 = vld [vmem:[%s6158_s0 + $0x7c0] sm:$0xff]  ;;  %v396_v54 = vld [vmem:[%s6158_s0 + $0x7c8] sm:$0xff] }
 0x114   :  { %v2536_v58 = vpop.f32.mrf.mxu1  ;;  %v400_v56 = vld [vmem:[%s6158_s0 + $0x7e8] sm:$0xff]  ;;  %v4341_v60 = vcombine.high %v395_v51, %v399_v52  ;;  %v4340_v14 = vcombine.low %v395_v51, %v399_v52  ;;  %v165_v52 = vld [vmem:[%s6158_s0 + $0x90] sm:$0xff] }
 0x115   :  { %v2248_v61 = vpop.f32.mrf.mxu0 }
 0x116   :  { %v2537_v63 = vpop.f32.mrf.mxu1 }
 0x117   :  { %v5453_v3 = vadd.f32 %v2537_v63, %v2248_v61  ;;  %v2250_v4 = vpop.f32.mrf.mxu0  ;;  %v4343_v63 = vcombine.high %v396_v54, %v400_v56 }
 0x118   :  { %v2539_v6 = vpop.f32.mrf.mxu1 }
 0x119   :  { %v2253_v7 = vpop.f32.mrf.mxu0  ;;  %2444 = vmatmul.mubr.bf16.gmra.mxu0 %v4308_v62 }
 0x11a   :  { %v2542_v8 = vpop.f32.mrf.mxu1  ;;  %2733 = vmatmul.mubr.bf16.gmra.mxu1 %v4310_v1  ;;  %2451 = vmatprep.mubr.bf16.mxu0 %v4317_v2 }
 0x11b   :  { %v5455_v9 = vadd.f32 %v2542_v8, %v2253_v7  ;;  %v2255_v10 = vpop.f32.mrf.mxu0  ;;  %2740 = vmatprep.mubr.bf16.mxu1 %v4319_v5  ;;  %v149_v7 = vld [vmem:[%s6158_s0 + $0x10] sm:$0xff] }
 0x11c   :  { %v2544_v13 = vpop.f32.mrf.mxu1  ;;  %v153_v8 = vld [vmem:[%s6158_s0 + $0x30] sm:$0xff] }
 0x11d   :  { %v2256_v16 = vpop.f32.mrf.mxu0 }
 0x11e   :  { %v2545_v18 = vpop.f32.mrf.mxu1 }
 0x11f   :  { %v5469_v22 = vadd.f32 %v2545_v18, %v2256_v16  ;;  %v2258_v23 = vpop.f32.mrf.mxu0  ;;  %v4342_v16 = vcombine.low %v396_v54, %v400_v56  ;;  %v166_v56 = vld [vmem:[%s6158_s0 + $0x98] sm:$0xff] }
 0x120   :  { %v2547_v25 = vpop.f32.mrf.mxu1 }
 0x121   :  { %v2261_v26 = vpop.f32.mrf.mxu0  ;;  %2452 = vmatmul.mubr.bf16.gmra.mxu0 %v4316_v17  ;;  %v4097_v17 = vcombine.high %v149_v7, %v153_v8 }
 0x122   :  { %v2550_v27 = vpop.f32.mrf.mxu1  ;;  %2741 = vmatmul.mubr.bf16.gmra.mxu1 %v4318_v20  ;;  %2459 = vmatprep.mubr.bf16.mxu0 %v4325_v21  ;;  %v4099_v21 = vcombine.high %v150_v11, %v154_v12 }
 0x123   :  { %v5471_v28 = vadd.f32 %v2550_v27, %v2261_v26  ;;  %v2263_v29 = vpop.f32.mrf.mxu0  ;;  %2748 = vmatprep.mubr.bf16.mxu1 %v4327_v24 }
 0x124   :  { %v2552_v33 = vpop.f32.mrf.mxu1  ;;  %v157_v29 = vld [vmem:[%s6158_s0 + $0x50] sm:$0xff] }
 0x125   :  { %v2264_v36 = vpop.f32.mrf.mxu0  ;;  %v158_v33 = vld [vmem:[%s6158_s0 + $0x58] sm:$0xff] }
 0x126   :  { %v2553_v39 = vpop.f32.mrf.mxu1 }
 0x127   :  { %v5485_v42 = vadd.f32 %v2553_v39, %v2264_v36  ;;  %v2266_v43 = vpop.f32.mrf.mxu0  ;;  %v4096_v36 = vcombine.low %v149_v7, %v153_v8  ;;  %v4098_v39 = vcombine.low %v150_v11, %v154_v12  ;;  %v173_v11 = vld [vmem:[%s6158_s0 + $0xd0] sm:$0xff] }
 0x128   :  { %v2555_v45 = vpop.f32.mrf.mxu1  ;;  %v177_v12 = vld [vmem:[%s6158_s0 + $0xf0] sm:$0xff] }
 0x129   :  { %v2269_v46 = vpop.f32.mrf.mxu0  ;;  %2460 = vmatmul.mubr.bf16.gmra.mxu0 %v4324_v38 }
 0x12a   :  { %v2558_v47 = vpop.f32.mrf.mxu1  ;;  %2749 = vmatmul.mubr.bf16.gmra.mxu1 %v4326_v40  ;;  %2467 = vmatprep.mubr.bf16.mxu0 %v4333_v41  ;;  %v4105_v40 = vcombine.high %v157_v29, %v161_v30 }
 0x12b   :  { %v5487_v48 = vadd.f32 %v2558_v47, %v2269_v46  ;;  %v2271_v50 = vpop.f32.mrf.mxu0  ;;  %2756 = vmatprep.mubr.bf16.mxu1 %v4335_v44  ;;  %v4107_v44 = vcombine.high %v158_v33, %v162_v34 }
 0x12c   :  { %v2560_v53 = vpop.f32.mrf.mxu1 }
 0x12d   :  { %v2272_v57 = vpop.f32.mrf.mxu0  ;;  %v169_v53 = vld [vmem:[%s6158_s0 + $0xb0] sm:$0xff] }
 0x12e   :  { %v2561_v58 = vpop.f32.mrf.mxu1 }
 0x12f   :  { %v5501_v61 = vadd.f32 %v2561_v58, %v2272_v57  ;;  %v2274_v62 = vpop.f32.mrf.mxu0  ;;  %v170_v57 = vld [vmem:[%s6158_s0 + $0xb8] sm:$0xff]  ;;  %v4104_v58 = vcombine.low %v157_v29, %v161_v30 }
 0x130   :  { %v2563_v1 = vpop.f32.mrf.mxu1  ;;  %v4113_v62 = vcombine.high %v165_v52, %v169_v53 }
 0x131   :  { %v2277_v2 = vpop.f32.mrf.mxu0  ;;  %2468 = vmatmul.mubr.bf16.gmra.mxu0 %v4332_v0 }
 0x132   :  { %v2566_v4 = vpop.f32.mrf.mxu1  ;;  %2757 = vmatmul.mubr.bf16.gmra.mxu1 %v4334_v59  ;;  %2475 = vmatprep.mubr.bf16.mxu0 %v4341_v60  ;;  %v4106_v60 = vcombine.low %v158_v33, %v162_v34 }
 0x133   :  { %v5503_v5 = vadd.f32 %v2566_v4, %v2277_v2  ;;  %v2279_v6 = vpop.f32.mrf.mxu0  ;;  %2764 = vmatprep.mubr.bf16.mxu1 %v4343_v63  ;;  %v4115_v2 = vcombine.high %v166_v56, %v170_v57 }
 0x134   :  { %v2568_v10 = vpop.f32.mrf.mxu1 }
 0x135   :  { %v2280_v13 = vpop.f32.mrf.mxu0 }
 0x136   :  { %v2569_v15 = vpop.f32.mrf.mxu1 }
 0x137   :  { %v5517_v18 = vadd.f32 %v2569_v15, %v2280_v13  ;;  %v2282_v20 = vpop.f32.mrf.mxu0  ;;  %v178_v15 = vld [vmem:[%s6158_s0 + $0xf8] sm:$0xff] }
 0x138   :  { %v2571_v23 = vpop.f32.mrf.mxu1 }
 0x139   :  { %v2285_v24 = vpop.f32.mrf.mxu0  ;;  %2476 = vmatmul.mubr.bf16.gmra.mxu0 %v4340_v14  ;;  %v174_v14 = vld [vmem:[%s6158_s0 + $0xd8] sm:$0xff]  ;;  %v4121_v23 = vcombine.high %v173_v11, %v177_v12 }
 0x13a   :  { %v2574_v25 = vpop.f32.mrf.mxu1  ;;  %2765 = vmatmul.mubr.bf16.gmra.mxu1 %v4342_v16  ;;  %2805 = vmatprep.mubr.bf16.mxu0 %v4097_v17  ;;  %v4112_v17 = vcombine.low %v165_v52, %v169_v53 }
 0x13b   :  { %v5519_v26 = vadd.f32 %v2574_v25, %v2285_v24  ;;  %v2287_v27 = vpop.f32.mrf.mxu0  ;;  %3094 = vmatprep.mubr.bf16.mxu1 %v4099_v21  ;;  %v4114_v21 = vcombine.low %v166_v56, %v170_v57 }
 0x13c   :  { %v2576_v32 = vpop.f32.mrf.mxu1  ;;  %v4123_v27 = vcombine.high %v174_v14, %v178_v15 }
 0x13d   :  { %v2288_v35 = vpop.f32.mrf.mxu0 }
 0x13e   :  { %v2577_v38 = vpop.f32.mrf.mxu1 }
 0x13f   :  { %v5533_v41 = vadd.f32 %v2577_v38, %v2288_v35  ;;  %v2290_v43 = vpop.f32.mrf.mxu0  ;;  %v181_v35 = vld [vmem:[%s6158_s0 + $0x110] sm:$0xff] }
 0x140   :  { %v2579_v45 = vpop.f32.mrf.mxu1 }
 0x141   :  { %v2293_v46 = vpop.f32.mrf.mxu0  ;;  %2806 = vmatmul.mubr.bf16.vlgmr.msra.gmra.mxu0 %v4096_v36  ;;  %v185_v36 = vld [vmem:[%s6158_s0 + $0x130] sm:$0xff] }
 0x142   :  { %v2582_v47 = vpop.f32.mrf.mxu1  ;;  %3095 = vmatmul.mubr.bf16.vlgmr.msra.gmra.mxu1 %v4098_v39  ;;  %2813 = vmatprep.mubr.bf16.mxu0 %v4105_v40  ;;  %v182_v39 = vld [vmem:[%s6158_s0 + $0x118] sm:$0xff] }
 0x143   :  { %v5535_v50 = vadd.f32 %v2582_v47, %v2293_v46  ;;  %v2295_v51 = vpop.f32.mrf.mxu0  ;;  %3102 = vmatprep.mubr.bf16.mxu1 %v4107_v44  ;;  %v186_v40 = vld [vmem:[%s6158_s0 + $0x138] sm:$0xff]  ;;  %v4120_v44 = vcombine.low %v173_v11, %v177_v12  ;;  %v4122_v46 = vcombine.low %v174_v14, %v178_v15  ;;  %v4129_v47 = vcombine.high %v181_v35, %v185_v36 }
 0x144   :  { %v2584_v54 = vpop.f32.mrf.mxu1  ;;  %v4131_v53 = vcombine.high %v182_v39, %v186_v40 }
 0x145   :  { %v2296_v0 = vpop.f32.mrf.mxu0 }
 0x146   :  { %v2585_v59 = vpop.f32.mrf.mxu1 }
 0x147   :  { %v5549_v63 = vadd.f32 %v2585_v59, %v2296_v0  ;;  %v2298_v1 = vpop.f32.mrf.mxu0  ;;  %v189_v59 = vld [vmem:[%s6158_s0 + $0x150] sm:$0xff] }
 0x148   :  { %v2587_v4 = vpop.f32.mrf.mxu1  ;;  %v190_v1 = vld [vmem:[%s6158_s0 + $0x158] sm:$0xff] }
 0x149   :  { %v2301_v6 = vpop.f32.mrf.mxu0  ;;  %2814 = vmatmul.mubr.bf16.gmra.mxu0 %v4104_v58 }
 0x14a   :  { %v2590_v7 = vpop.f32.mrf.mxu1  ;;  %3103 = vmatmul.mubr.bf16.gmra.mxu1 %v4106_v60  ;;  %2821 = vmatprep.mubr.bf16.mxu0 %v4113_v62  ;;  %v193_v60 = vld [vmem:[%s6158_s0 + $0x170] sm:$0xff] }
 0x14b   :  { %v5551_v8 = vadd.f32 %v2590_v7, %v2301_v6  ;;  %v2303_v10 = vpop.f32.mrf.mxu0  ;;  %3110 = vmatprep.mubr.bf16.mxu1 %v4115_v2  ;;  %v194_v2 = vld [vmem:[%s6158_s0 + $0x178] sm:$0xff]  ;;  %v4128_v6 = vcombine.low %v181_v35, %v185_v36  ;;  %v4137_v11 = vcombine.high %v189_v59, %v193_v60 }
 0x14c   :  { %v2592_v13 = vpop.f32.mrf.mxu1  ;;  %v4130_v10 = vcombine.low %v182_v39, %v186_v40  ;;  %v4139_v14 = vcombine.high %v190_v1, %v194_v2  ;;  %v4138_v36 = vcombine.low %v190_v1, %v194_v2 }
 0x14d   :  { %v2304_v16 = vpop.f32.mrf.mxu0 }
 0x14e   :  { %v2593_v20 = vpop.f32.mrf.mxu1 }
 0x14f   :  { %v5565_v24 = vadd.f32 %v2593_v20, %v2304_v16  ;;  %v2306_v25 = vpop.f32.mrf.mxu0 }
 0x150   :  { %v2595_v29 = vpop.f32.mrf.mxu1  ;;  %v201_v25 = vld [vmem:[%s6158_s0 + $0x1b0] sm:$0xff] }
 0x151   :  { %v2309_v30 = vpop.f32.mrf.mxu0  ;;  %2822 = vmatmul.mubr.bf16.gmra.mxu0 %v4112_v17  ;;  %v198_v29 = vld [vmem:[%s6158_s0 + $0x198] sm:$0xff] }
 0x152   :  { %v2598_v32 = vpop.f32.mrf.mxu1  ;;  %3111 = vmatmul.mubr.bf16.gmra.mxu1 %v4114_v21  ;;  %2829 = vmatprep.mubr.bf16.mxu0 %v4121_v23  ;;  %v197_v23 = vld [vmem:[%s6158_s0 + $0x190] sm:$0xff] }
 0x153   :  { %v5567_v33 = vadd.f32 %v2598_v32, %v2309_v30  ;;  %v2311_v34 = vpop.f32.mrf.mxu0  ;;  %3118 = vmatprep.mubr.bf16.mxu1 %v4123_v27  ;;  %v202_v30 = vld [vmem:[%s6158_s0 + $0x1b8] sm:$0xff] }
 0x154   :  { %v2600_v38 = vpop.f32.mrf.mxu1  ;;  %v4136_v34 = vcombine.low %v189_v59, %v193_v60  ;;  %v4144_v60 = vcombine.low %v197_v23, %v201_v25  ;;  %v4146_v1 = vcombine.low %v198_v29, %v202_v30 }
 0x155   :  { %v2312_v43 = vpop.f32.mrf.mxu0  ;;  %v4145_v38 = vcombine.high %v197_v23, %v201_v25  ;;  %v214_v23 = vld [vmem:[%s6158_s0 + $0x218] sm:$0xff] }
 0x156   :  { %v2601_v45 = vpop.f32.mrf.mxu1  ;;  %v218_v25 = vld [vmem:[%s6158_s0 + $0x238] sm:$0xff] }
 0x157   :  { %v5581_v51 = vadd.f32 %v2601_v45, %v2312_v43  ;;  %v2314_v52 = vpop.f32.mrf.mxu0  ;;  %v4147_v43 = vcombine.high %v198_v29, %v202_v30 }
 0x158   :  { %v2603_v54 = vpop.f32.mrf.mxu1 }
 0x159   :  { %v2317_v56 = vpop.f32.mrf.mxu0  ;;  %2830 = vmatmul.mubr.bf16.gmra.mxu0 %v4120_v44  ;;  %v209_v54 = vld [vmem:[%s6158_s0 + $0x1f0] sm:$0xff] }
 0x15a   :  { %v2606_v57 = vpop.f32.mrf.mxu1  ;;  %3119 = vmatmul.mubr.bf16.gmra.mxu1 %v4122_v46  ;;  %2837 = vmatprep.mubr.bf16.mxu0 %v4129_v47 }
 0x15b   :  { %v5583_v0 = vadd.f32 %v2606_v57, %v2317_v56  ;;  %v2319_v58 = vpop.f32.mrf.mxu0  ;;  %3126 = vmatprep.mubr.bf16.mxu1 %v4131_v53  ;;  %v205_v53 = vld [vmem:[%s6158_s0 + $0x1d0] sm:$0xff]  ;;  %v206_v57 = vld [vmem:[%s6158_s0 + $0x1d8] sm:$0xff] }
 0x15c   :  { %v2608_v62 = vpop.f32.mrf.mxu1  ;;  %v210_v58 = vld [vmem:[%s6158_s0 + $0x1f8] sm:$0xff]  ;;  %v4153_v2 = vcombine.high %v205_v53, %v209_v54  ;;  %v4152_v29 = vcombine.low %v205_v53, %v209_v54  ;;  %v225_v53 = vld [vmem:[%s6158_s0 + $0x270] sm:$0xff] }
 0x15d   :  { %v2320_v4 = vpop.f32.mrf.mxu0 }
 0x15e   :  { %v2609_v7 = vpop.f32.mrf.mxu1 }
 0x15f   :  { %v5597_v12 = vadd.f32 %v2609_v7, %v2320_v4  ;;  %v2322_v13 = vpop.f32.mrf.mxu0  ;;  %v4155_v7 = vcombine.high %v206_v57, %v210_v58 }
 0x160   :  { %v2611_v15 = vpop.f32.mrf.mxu1 }
 0x161   :  { %v2325_v16 = vpop.f32.mrf.mxu0  ;;  %2838 = vmatmul.mubr.bf16.gmra.mxu0 %v4128_v6 }
 0x162   :  { %v2614_v17 = vpop.f32.mrf.mxu1  ;;  %3127 = vmatmul.mubr.bf16.gmra.mxu1 %v4130_v10  ;;  %2845 = vmatprep.mubr.bf16.mxu0 %v4137_v11 }
 0x163   :  { %v5599_v20 = vadd.f32 %v2614_v17, %v2325_v16  ;;  %v2327_v21 = vpop.f32.mrf.mxu0  ;;  %3134 = vmatprep.mubr.bf16.mxu1 %v4139_v14  ;;  %v213_v16 = vld [vmem:[%s6158_s0 + $0x210] sm:$0xff] }
 0x164   :  { %v2616_v27 = vpop.f32.mrf.mxu1  ;;  %v217_v17 = vld [vmem:[%s6158_s0 + $0x230] sm:$0xff] }
 0x165   :  { %v2328_v32 = vpop.f32.mrf.mxu0 }
 0x166   :  { %v2617_v35 = vpop.f32.mrf.mxu1 }
 0x167   :  { %v5613_v39 = vadd.f32 %v2617_v35, %v2328_v32  ;;  %v2330_v40 = vpop.f32.mrf.mxu0  ;;  %v4154_v32 = vcombine.low %v206_v57, %v210_v58  ;;  %v226_v57 = vld [vmem:[%s6158_s0 + $0x278] sm:$0xff] }
 0x168   :  { %v2619_v44 = vpop.f32.mrf.mxu1 }
 0x169   :  { %v2333_v45 = vpop.f32.mrf.mxu0  ;;  %2846 = vmatmul.mubr.bf16.gmra.mxu0 %v4136_v34  ;;  %v4161_v34 = vcombine.high %v213_v16, %v217_v17 }
 0x16a   :  { %v2622_v46 = vpop.f32.mrf.mxu1  ;;  %3135 = vmatmul.mubr.bf16.gmra.mxu1 %v4138_v36  ;;  %2853 = vmatprep.mubr.bf16.mxu0 %v4145_v38  ;;  %v4163_v38 = vcombine.high %v214_v23, %v218_v25 }
 0x16b   :  { %v5615_v47 = vadd.f32 %v2622_v46, %v2333_v45  ;;  %v2335_v52 = vpop.f32.mrf.mxu0  ;;  %3142 = vmatprep.mubr.bf16.mxu1 %v4147_v43 }
 0x16c   :  { %v2624_v56 = vpop.f32.mrf.mxu1  ;;  %v221_v52 = vld [vmem:[%s6158_s0 + $0x250] sm:$0xff] }
 0x16d   :  { %v2336_v59 = vpop.f32.mrf.mxu0  ;;  %v222_v56 = vld [vmem:[%s6158_s0 + $0x258] sm:$0xff] }
 0x16e   :  { %v2625_v62 = vpop.f32.mrf.mxu1 }
 0x16f   :  { %v5629_v4 = vadd.f32 %v2625_v62, %v2336_v59  ;;  %v2338_v6 = vpop.f32.mrf.mxu0  ;;  %v4160_v59 = vcombine.low %v213_v16, %v217_v17  ;;  %v4162_v62 = vcombine.low %v214_v23, %v218_v25  ;;  %v229_v16 = vld [vmem:[%s6158_s0 + $0x290] sm:$0xff]  ;;  %v230_v25 = vld [vmem:[%s6158_s0 + $0x298] sm:$0xff] }
 0x170   :  { %v2627_v10 = vpop.f32.mrf.mxu1  ;;  %v233_v17 = vld [vmem:[%s6158_s0 + $0x2b0] sm:$0xff] }
 0x171   :  { %v2341_v11 = vpop.f32.mrf.mxu0  ;;  %2854 = vmatmul.mubr.bf16.gmra.mxu0 %v4144_v60 }
 0x172   :  { %v2630_v13 = vpop.f32.mrf.mxu1  ;;  %3143 = vmatmul.mubr.bf16.gmra.mxu1 %v4146_v1  ;;  %2861 = vmatprep.mubr.bf16.mxu0 %v4153_v2  ;;  %v4169_v1 = vcombine.high %v221_v52, %v225_v53 }
 0x173   :  { %v5631_v14 = vadd.f32 %v2630_v13, %v2341_v11  ;;  %v2343_v15 = vpop.f32.mrf.mxu0  ;;  %3150 = vmatprep.mubr.bf16.mxu1 %v4155_v7  ;;  %v4171_v7 = vcombine.high %v222_v56, %v226_v57 }
 0x174   :  { %v2632_v21 = vpop.f32.mrf.mxu1 }
 0x175   :  { %v2344_v27 = vpop.f32.mrf.mxu0 }
 0x176   :  { %v2633_v30 = vpop.f32.mrf.mxu1 }
 0x177   :  { %v5645_v35 = vadd.f32 %v2633_v30, %v2344_v27  ;;  %v2346_v36 = vpop.f32.mrf.mxu0  ;;  %v234_v27 = vld [vmem:[%s6158_s0 + $0x2b8] sm:$0xff]  ;;  %v4168_v30 = vcombine.low %v221_v52, %v225_v53  ;;  %v237_v52 = vld [vmem:[%s6158_s0 + $0x2d0] sm:$0xff] }
 0x178   :  { %v2635_v40 = vpop.f32.mrf.mxu1  ;;  %v4177_v36 = vcombine.high %v229_v16, %v233_v17  ;;  %v241_v53 = vld [vmem:[%s6158_s0 + $0x2f0] sm:$0xff] }
 0x179   :  { %v2349_v43 = vpop.f32.mrf.mxu0  ;;  %2862 = vmatmul.mubr.bf16.gmra.mxu0 %v4152_v29 }
 0x17a   :  { %v2638_v44 = vpop.f32.mrf.mxu1  ;;  %3151 = vmatmul.mubr.bf16.gmra.mxu1 %v4154_v32  ;;  %2869 = vmatprep.mubr.bf16.mxu0 %v4161_v34  ;;  %v4170_v34 = vcombine.low %v222_v56, %v226_v57  ;;  %v238_v57 = vld [vmem:[%s6158_s0 + $0x2d8] sm:$0xff] }
 0x17b   :  { %v5647_v45 = vadd.f32 %v2638_v44, %v2349_v43  ;;  %v2351_v46 = vpop.f32.mrf.mxu0  ;;  %3158 = vmatprep.mubr.bf16.mxu1 %v4163_v38  ;;  %v4179_v43 = vcombine.high %v230_v25, %v234_v27 }
 0x17c   :  { %v2640_v54 = vpop.f32.mrf.mxu1 }
 0x17d   :  { %v2352_v58 = vpop.f32.mrf.mxu0 }
 0x17e   :  { %v2641_v60 = vpop.f32.mrf.mxu1 }
 0x17f   :  { %v5661_v2 = vadd.f32 %v2641_v60, %v2352_v58  ;;  %v2354_v6 = vpop.f32.mrf.mxu0  ;;  %v242_v60 = vld [vmem:[%s6158_s0 + $0x2f8] sm:$0xff] }
 0x180   :  { %v2643_v10 = vpop.f32.mrf.mxu1 }
 0x181   :  { %v2357_v11 = vpop.f32.mrf.mxu0  ;;  %2870 = vmatmul.mubr.bf16.gmra.mxu0 %v4160_v59  ;;  %v4185_v10 = vcombine.high %v237_v52, %v241_v53 }
 0x182   :  { %v2646_v13 = vpop.f32.mrf.mxu1  ;;  %3159 = vmatmul.mubr.bf16.gmra.mxu1 %v4162_v62  ;;  %2877 = vmatprep.mubr.bf16.mxu0 %v4169_v1  ;;  %v4176_v1 = vcombine.low %v229_v16, %v233_v17  ;;  %v245_v16 = vld [vmem:[%s6158_s0 + $0x310] sm:$0xff] }
 0x183   :  { %v5663_v15 = vadd.f32 %v2646_v13, %v2357_v11  ;;  %v2359_v21 = vpop.f32.mrf.mxu0  ;;  %3166 = vmatprep.mubr.bf16.mxu1 %v4171_v7  ;;  %v4178_v7 = vcombine.low %v230_v25, %v234_v27  ;;  %v249_v17 = vld [vmem:[%s6158_s0 + $0x330] sm:$0xff]  ;;  %v246_v27 = vld [vmem:[%s6158_s0 + $0x318] sm:$0xff] }
 0x184   :  { %v2648_v23 = vpop.f32.mrf.mxu1  ;;  %v4187_v21 = vcombine.high %v238_v57, %v242_v60 }
 0x185   :  { %v2360_v29 = vpop.f32.mrf.mxu0 }
 0x186   :  { %v2649_v32 = vpop.f32.mrf.mxu1 }
 0x187   :  { %v5677_v38 = vadd.f32 %v2649_v32, %v2360_v29  ;;  %v2362_v40 = vpop.f32.mrf.mxu0 }
 0x188   :  { %v2651_v44 = vpop.f32.mrf.mxu1 }
 0x189   :  { %v2365_v46 = vpop.f32.mrf.mxu0  ;;  %2878 = vmatmul.mubr.bf16.gmra.mxu0 %v4168_v30 }
 0x18a   :  { %v2654_v54 = vpop.f32.mrf.mxu1  ;;  %3167 = vmatmul.mubr.bf16.gmra.mxu1 %v4170_v34  ;;  %2885 = vmatprep.mubr.bf16.mxu0 %v4177_v36  ;;  %v250_v36 = vld [vmem:[%s6158_s0 + $0x338] sm:$0xff] }
 0x18b   :  { %v5679_v58 = vadd.f32 %v2654_v54, %v2365_v46  ;;  %v2367_v59 = vpop.f32.mrf.mxu0  ;;  %3174 = vmatprep.mubr.bf16.mxu1 %v4179_v43  ;;  %v4184_v43 = vcombine.low %v237_v52, %v241_v53  ;;  %v4186_v46 = vcombine.low %v238_v57, %v242_v60  ;;  %v4193_v54 = vcombine.high %v245_v16, %v249_v17  ;;  %v253_v52 = vld [vmem:[%s6158_s0 + $0x350] sm:$0xff]  ;;  %v254_v60 = vld [vmem:[%s6158_s0 + $0x358] sm:$0xff] }
 0x18c   :  { %v2656_v56 = vpop.f32.mrf.mxu1  ;;  %v257_v53 = vld [vmem:[%s6158_s0 + $0x370] sm:$0xff] }
 0x18d   :  { %v2368_v62 = vpop.f32.mrf.mxu0 }
 0x18e   :  { %v2657_v6 = vpop.f32.mrf.mxu1 }
 0x18f   :  { %v5693_v11 = vadd.f32 %v2657_v6, %v2368_v62  ;;  %v2370_v13 = vpop.f32.mrf.mxu0  ;;  %v4195_v62 = vcombine.high %v246_v27, %v250_v36 }
 0x190   :  { %v2659_v23 = vpop.f32.mrf.mxu1 }
 0x191   :  { %v2373_v29 = vpop.f32.mrf.mxu0  ;;  %2886 = vmatmul.mubr.bf16.gmra.mxu0 %v4176_v1 }
 0x192   :  { %v2662_v30 = vpop.f32.mrf.mxu1  ;;  %3175 = vmatmul.mubr.bf16.gmra.mxu1 %v4178_v7  ;;  %2893 = vmatprep.mubr.bf16.mxu0 %v4185_v10 }
 0x193   :  { %v5695_v32 = vadd.f32 %v2662_v30, %v2373_v29  ;;  %v2375_v34 = vpop.f32.mrf.mxu0  ;;  %3182 = vmatprep.mubr.bf16.mxu1 %v4187_v21  ;;  %v258_v21 = vld [vmem:[%s6158_s0 + $0x378] sm:$0xff]  ;;  %v4192_v29 = vcombine.low %v245_v16, %v249_v17  ;;  %v261_v16 = vld [vmem:[%s6158_s0 + $0x390] sm:$0xff] }
 0x194   :  { %v2664_v25 = vpop.f32.mrf.mxu1  ;;  %v4194_v34 = vcombine.low %v246_v27, %v250_v36  ;;  %v265_v17 = vld [vmem:[%s6158_s0 + $0x3b0] sm:$0xff]  ;;  %v262_v36 = vld [vmem:[%s6158_s0 + $0x398] sm:$0xff] }
 0x195   :  { %v2376_v40 = vpop.f32.mrf.mxu0  ;;  %v4201_v25 = vcombine.high %v253_v52, %v257_v53 }
 0x196   :  { %v2665_v44 = vpop.f32.mrf.mxu1 }
 0x197   :  { %v5709_v59 = vadd.f32 %v2665_v44, %v2376_v40  ;;  %v2378_v56 = vpop.f32.mrf.mxu0  ;;  %v4203_v44 = vcombine.high %v254_v60, %v258_v21 }
 0x198   :  { %v2667_v1 = vpop.f32.mrf.mxu1 }
 0x199   :  { %v2381_v6 = vpop.f32.mrf.mxu0  ;;  %2894 = vmatmul.mubr.bf16.gmra.mxu0 %v4184_v43 }
 0x19a   :  { %v2670_v7 = vpop.f32.mrf.mxu1  ;;  %3183 = vmatmul.mubr.bf16.gmra.mxu1 %v4186_v46  ;;  %2901 = vmatprep.mubr.bf16.mxu0 %v4193_v54 }
 0x19b   :  { %v5711_v10 = vadd.f32 %v2670_v7, %v2381_v6  ;;  %v2383_v13 = vpop.f32.mrf.mxu0  ;;  %3190 = vmatprep.mubr.bf16.mxu1 %v4195_v62  ;;  %v266_v6 = vld [vmem:[%s6158_s0 + $0x3b8] sm:$0xff] }
 0x19c   :  { %v2672_v57 = vpop.f32.mrf.mxu1  ;;  %v4200_v13 = vcombine.low %v253_v52, %v257_v53  ;;  %v269_v52 = vld [vmem:[%s6158_s0 + $0x3d0] sm:$0xff] }
 0x19d   :  { %6162 = vst [vmem:[#allocation3_spill] sm:$0xff] %v5711_v10  ;;  %v2384_v23 = vpop.f32.mrf.mxu0  ;;  %v273_v53 = vld [vmem:[%s6158_s0 + $0x3f0] sm:$0xff] }
 0x19e   :  { %v2673_v30 = vpop.f32.mrf.mxu1 }
 0x19f   :  { %v5725_v40 = vadd.f32 %v2673_v30, %v2384_v23  ;;  %v2386_v43 = vpop.f32.mrf.mxu0  ;;  %v4202_v23 = vcombine.low %v254_v60, %v258_v21  ;;  %v270_v21 = vld [vmem:[%s6158_s0 + $0x3d8] sm:$0xff] }
 0x1a0   :  { %v2675_v46 = vpop.f32.mrf.mxu1 }
 0x1a1   :  { %6163 = vst [vmem:[#allocation4_spill] sm:$0xff] %v5725_v40  ;;  %v2389_v54 = vpop.f32.mrf.mxu0  ;;  %2902 = vmatmul.mubr.bf16.gmra.mxu0 %v4192_v29  ;;  %v4209_v29 = vcombine.high %v261_v16, %v265_v17 }
 0x1a2   :  { %v2678_v56 = vpop.f32.mrf.mxu1  ;;  %3191 = vmatmul.mubr.bf16.gmra.mxu1 %v4194_v34  ;;  %2909 = vmatprep.mubr.bf16.mxu0 %v4201_v25  ;;  %v4211_v25 = vcombine.high %v262_v36, %v266_v6 }
 0x1a3   :  { %v5727_v62 = vadd.f32 %v2678_v56, %v2389_v54  ;;  %v2391_v1 = vpop.f32.mrf.mxu0  ;;  %3198 = vmatprep.mubr.bf16.mxu1 %v4203_v44 }
 0x1a4   :  { %v2680_v27 = vpop.f32.mrf.mxu1  ;;  %v274_v1 = vld [vmem:[%s6158_s0 + $0x3f8] sm:$0xff] }
 0x1a5   :  { %6164 = vst [vmem:[#allocation5_spill] sm:$0xff] %v5727_v62  ;;  %v2392_v7 = vpop.f32.mrf.mxu0 }
 0x1a6   :  { %v2681_v57 = vpop.f32.mrf.mxu1 }
 0x1a7   :  { %v5741_v30 = vadd.f32 %v2681_v57, %v2392_v7  ;;  %v2394_v34 = vpop.f32.mrf.mxu0  ;;  %v4208_v7 = vcombine.low %v261_v16, %v265_v17  ;;  %v4210_v57 = vcombine.low %v262_v36, %v266_v6  ;;  %v277_v16 = vld [vmem:[%s6158_s0 + $0x410] sm:$0xff]  ;;  %v278_v6 = vld [vmem:[%s6158_s0 + $0x418] sm:$0xff] }
 0x1a8   :  { %v2683_v43 = vpop.f32.mrf.mxu1  ;;  %v281_v17 = vld [vmem:[%s6158_s0 + $0x430] sm:$0xff] }
 0x1a9   :  { %6165 = vst [vmem:[#allocation6_spill] sm:$0xff] %v5741_v30  ;;  %v2397_v44 = vpop.f32.mrf.mxu0  ;;  %2910 = vmatmul.mubr.bf16.gmra.mxu0 %v4200_v13 }
 0x1aa   :  { %v2686_v46 = vpop.f32.mrf.mxu1  ;;  %3199 = vmatmul.mubr.bf16.gmra.mxu1 %v4202_v23  ;;  %2917 = vmatprep.mubr.bf16.mxu0 %v4209_v29  ;;  %v4217_v23 = vcombine.high %v269_v52, %v273_v53 }
 0x1ab   :  { %v5743_v54 = vadd.f32 %v2686_v46, %v2397_v44  ;;  %v2399_v56 = vpop.f32.mrf.mxu0  ;;  %3206 = vmatprep.mubr.bf16.mxu1 %v4211_v25  ;;  %v4219_v25 = vcombine.high %v270_v21, %v274_v1 }
 0x1ac   :  { %v2688_v60 = vpop.f32.mrf.mxu1 }
 0x1ad   :  { %6166 = vst [vmem:[#allocation7_spill] sm:$0xff] %v5743_v54  ;;  %v2400_v27 = vpop.f32.mrf.mxu0 }
 0x1ae   :  { %v2689_v13 = vpop.f32.mrf.mxu1 }
 0x1af   :  { %v5757_v29 = vadd.f32 %v2689_v13, %v2400_v27  ;;  %v2402_v34 = vpop.f32.mrf.mxu0  ;;  %v282_v27 = vld [vmem:[%s6158_s0 + $0x438] sm:$0xff]  ;;  %v4216_v13 = vcombine.low %v269_v52, %v273_v53  ;;  %v285_v52 = vld [vmem:[%s6158_s0 + $0x450] sm:$0xff] }
 0x1b0   :  { %v2691_v43 = vpop.f32.mrf.mxu1  ;;  %v4225_v34 = vcombine.high %v277_v16, %v281_v17  ;;  %v289_v53 = vld [vmem:[%s6158_s0 + $0x470] sm:$0xff] }
 0x1b1   :  { %6167 = vst [vmem:[#allocation8_spill] sm:$0xff] %v5757_v29  ;;  %v2405_v44 = vpop.f32.mrf.mxu0  ;;  %2918 = vmatmul.mubr.bf16.gmra.mxu0 %v4208_v7 }
 0x1b2   :  { %v2694_v46 = vpop.f32.mrf.mxu1  ;;  %3207 = vmatmul.mubr.bf16.gmra.mxu1 %v4210_v57  ;;  %2925 = vmatprep.mubr.bf16.mxu0 %v4217_v23  ;;  %v4218_v23 = vcombine.low %v270_v21, %v274_v1  ;;  %v286_v1 = vld [vmem:[%s6158_s0 + $0x458] sm:$0xff] }
 0x1b3   :  { %v5759_v56 = vadd.f32 %v2694_v46, %v2405_v44  ;;  %v2407_v60 = vpop.f32.mrf.mxu0  ;;  %3214 = vmatprep.mubr.bf16.mxu1 %v4219_v25  ;;  %v4227_v44 = vcombine.high %v278_v6, %v282_v27 }
 0x1b4   :  { %v2696_v36 = vpop.f32.mrf.mxu1 }
 0x1b5   :  { %6168 = vst [vmem:[#allocation9_spill] sm:$0xff] %v5759_v56  ;;  %v2408_v7 = vpop.f32.mrf.mxu0 }
 0x1b6   :  { %v2697_v57 = vpop.f32.mrf.mxu1 }
 0x1b7   :  { %v5773_v25 = vadd.f32 %v2697_v57, %v2408_v7  ;;  %v2410_v43 = vpop.f32.mrf.mxu0  ;;  %v290_v7 = vld [vmem:[%s6158_s0 + $0x478] sm:$0xff] }
 0x1b8   :  { %v2699_v46 = vpop.f32.mrf.mxu1 }
 0x1b9   :  { %6169 = vst [vmem:[#allocation10_spill] sm:$0xff] %v5773_v25  ;;  %v2413_v60 = vpop.f32.mrf.mxu0  ;;  %2926 = vmatmul.mubr.bf16.gmra.mxu0 %v4216_v13  ;;  %v4235_v46 = vcombine.high %v286_v1, %v290_v7 }
 0x1ba   :  { %v2702_v36 = vpop.f32.mrf.mxu1  ;;  %3215 = vmatmul.mubr.bf16.gmra.mxu1 %v4218_v23  ;;  %2933 = vmatprep.mubr.bf16.mxu0 %v4225_v34  ;;  %v4226_v23 = vcombine.low %v278_v6, %v282_v27  ;;  %v4233_v34 = vcombine.high %v285_v52, %v289_v53  ;;  %v294_v27 = vld [vmem:[%s6158_s0 + $0x498] sm:$0xff] }
 0x1bb   :  { %v5775_v56 = vadd.f32 %v2702_v36, %v2413_v60  ;;  %v2415_v29 = vpop.f32.mrf.mxu0  ;;  %3222 = vmatprep.mubr.bf16.mxu1 %v4227_v44 }
 0x1bc   :  { %v2704_v21 = vpop.f32.mrf.mxu1  ;;  %v4224_v29 = vcombine.low %v277_v16, %v281_v17  ;;  %v293_v16 = vld [vmem:[%s6158_s0 + $0x490] sm:$0xff] }
 0x1bd   :  { %6170 = vst [vmem:[#allocation11_spill] sm:$0xff] %v5775_v56  ;;  %v2416_v13 = vpop.f32.mrf.mxu0  ;;  %v297_v17 = vld [vmem:[%s6158_s0 + $0x4b0] sm:$0xff] }
 0x1be   :  { %v2705_v57 = vpop.f32.mrf.mxu1 }
 0x1bf   :  { %v5789_v43 = vadd.f32 %v2705_v57, %v2416_v13  ;;  %v2418_v44 = vpop.f32.mrf.mxu0  ;;  %v298_v13 = vld [vmem:[%s6158_s0 + $0x4b8] sm:$0xff] }
 0x1c0   :  { %v2707_v60 = vpop.f32.mrf.mxu1 }
 0x1c1   :  { %6171 = vst [vmem:[#allocation12_spill] sm:$0xff] %v5789_v43  ;;  %v2421_v36 = vpop.f32.mrf.mxu0  ;;  %2934 = vmatmul.mubr.bf16.gmra.mxu0 %v4224_v29  ;;  %v4243_v60 = vcombine.high %v294_v27, %v298_v13 }
 0x1c2   :  { %v2710_v21 = vpop.f32.mrf.mxu1  ;;  %3223 = vmatmul.mubr.bf16.gmra.mxu1 %v4226_v23  ;;  %2941 = vmatprep.mubr.bf16.mxu0 %v4233_v34  ;;  %v4234_v23 = vcombine.low %v286_v1, %v290_v7  ;;  %v4241_v34 = vcombine.high %v293_v16, %v297_v17  ;;  %v302_v7 = vld [vmem:[%s6158_s0 + $0x4d8] sm:$0xff] }
 0x1c3   :  { %v5791_v56 = vadd.f32 %v2710_v21, %v2421_v36  ;;  %v2423_v25 = vpop.f32.mrf.mxu0  ;;  %3230 = vmatprep.mubr.bf16.mxu1 %v4235_v46 }
 0x1c4   :  { %v2712_v6 = vpop.f32.mrf.mxu1  ;;  %v4232_v25 = vcombine.low %v285_v52, %v289_v53  ;;  %v301_v52 = vld [vmem:[%s6158_s0 + $0x4d0] sm:$0xff] }
 0x1c5   :  { %6172 = vst [vmem:[#allocation13_spill] sm:$0xff] %v5791_v56  ;;  %v2424_v29 = vpop.f32.mrf.mxu0  ;;  %v305_v53 = vld [vmem:[%s6158_s0 + $0x4f0] sm:$0xff] }
 0x1c6   :  { %v2713_v57 = vpop.f32.mrf.mxu1 }
 0x1c7   :  { %v5805_v44 = vadd.f32 %v2713_v57, %v2424_v29  ;;  %v2426_v46 = vpop.f32.mrf.mxu0  ;;  %v306_v29 = vld [vmem:[%s6158_s0 + $0x4f8] sm:$0xff] }
 0x1c8   :  { %v2715_v36 = vpop.f32.mrf.mxu1 }
 0x1c9   :  { %6173 = vst [vmem:[#allocation14_spill] sm:$0xff] %v5805_v44  ;;  %v2429_v21 = vpop.f32.mrf.mxu0  ;;  %2942 = vmatmul.mubr.bf16.gmra.mxu0 %v4232_v25  ;;  %v4251_v36 = vcombine.high %v302_v7, %v306_v29 }
 0x1ca   :  { %v2718_v6 = vpop.f32.mrf.mxu1  ;;  %3231 = vmatmul.mubr.bf16.gmra.mxu1 %v4234_v23  ;;  %2949 = vmatprep.mubr.bf16.mxu0 %v4241_v34  ;;  %v4242_v23 = vcombine.low %v294_v27, %v298_v13  ;;  %v4249_v34 = vcombine.high %v301_v52, %v305_v53  ;;  %v310_v13 = vld [vmem:[%s6158_s0 + $0x518] sm:$0xff] }
 0x1cb   :  { %v5807_v56 = vadd.f32 %v2718_v6, %v2429_v21  ;;  %v2431_v43 = vpop.f32.mrf.mxu0  ;;  %3238 = vmatprep.mubr.bf16.mxu1 %v4243_v60 }
 0x1cc   :  { %v2720_v1 = vpop.f32.mrf.mxu1  ;;  %v4240_v43 = vcombine.low %v293_v16, %v297_v17  ;;  %v309_v16 = vld [vmem:[%s6158_s0 + $0x510] sm:$0xff] }
 0x1cd   :  { %6174 = vst [vmem:[#allocation15_spill] sm:$0xff] %v5807_v56  ;;  %v2432_v25 = vpop.f32.mrf.mxu0  ;;  %v313_v17 = vld [vmem:[%s6158_s0 + $0x530] sm:$0xff] }
 0x1ce   :  { %v2721_v57 = vpop.f32.mrf.mxu1 }
 0x1cf   :  { %v5821_v46 = vadd.f32 %v2721_v57, %v2432_v25  ;;  %v2434_v60 = vpop.f32.mrf.mxu0  ;;  %v314_v25 = vld [vmem:[%s6158_s0 + $0x538] sm:$0xff] }
 0x1d0   :  { %v2723_v21 = vpop.f32.mrf.mxu1 }
 0x1d1   :  { %6175 = vst [vmem:[#allocation16_spill] sm:$0xff] %v5821_v46  ;;  %v2437_v6 = vpop.f32.mrf.mxu0  ;;  %2950 = vmatmul.mubr.bf16.gmra.mxu0 %v4240_v43  ;;  %v4259_v21 = vcombine.high %v310_v13, %v314_v25 }
 0x1d2   :  { %v2726_v1 = vpop.f32.mrf.mxu1  ;;  %3239 = vmatmul.mubr.bf16.gmra.mxu1 %v4242_v23  ;;  %2957 = vmatprep.mubr.bf16.mxu0 %v4249_v34  ;;  %v4250_v23 = vcombine.low %v302_v7, %v306_v29  ;;  %v4257_v34 = vcombine.high %v309_v16, %v313_v17  ;;  %v318_v29 = vld [vmem:[%s6158_s0 + $0x558] sm:$0xff] }
 0x1d3   :  { %v5823_v56 = vadd.f32 %v2726_v1, %v2437_v6  ;;  %v2439_v44 = vpop.f32.mrf.mxu0  ;;  %3246 = vmatprep.mubr.bf16.mxu1 %v4251_v36 }
 0x1d4   :  { %v2728_v27 = vpop.f32.mrf.mxu1  ;;  %v4248_v44 = vcombine.low %v301_v52, %v305_v53  ;;  %v317_v52 = vld [vmem:[%s6158_s0 + $0x550] sm:$0xff] }
 0x1d5   :  { %6176 = vst [vmem:[#allocation17_spill] sm:$0xff] %v5823_v56  ;;  %v2440_v43 = vpop.f32.mrf.mxu0  ;;  %v321_v53 = vld [vmem:[%s6158_s0 + $0x570] sm:$0xff] }
 0x1d6   :  { %v2729_v57 = vpop.f32.mrf.mxu1 }
 0x1d7   :  { %v5837_v60 = vadd.f32 %v2729_v57, %v2440_v43  ;;  %v2442_v36 = vpop.f32.mrf.mxu0  ;;  %v322_v43 = vld [vmem:[%s6158_s0 + $0x578] sm:$0xff] }
 0x1d8   :  { %v2731_v6 = vpop.f32.mrf.mxu1 }
 0x1d9   :  { %6177 = vst [vmem:[#allocation18_spill] sm:$0xff] %v5837_v60  ;;  %v2445_v1 = vpop.f32.mrf.mxu0  ;;  %2958 = vmatmul.mubr.bf16.gmra.mxu0 %v4248_v44  ;;  %v4267_v6 = vcombine.high %v318_v29, %v322_v43 }
 0x1da   :  { %v2734_v27 = vpop.f32.mrf.mxu1  ;;  %3247 = vmatmul.mubr.bf16.gmra.mxu1 %v4250_v23  ;;  %2965 = vmatprep.mubr.bf16.mxu0 %v4257_v34  ;;  %v4258_v23 = vcombine.low %v310_v13, %v314_v25  ;;  %v4265_v34 = vcombine.high %v317_v52, %v321_v53  ;;  %v326_v25 = vld [vmem:[%s6158_s0 + $0x598] sm:$0xff] }
 0x1db   :  { %v5839_v56 = vadd.f32 %v2734_v27, %v2445_v1  ;;  %v2447_v46 = vpop.f32.mrf.mxu0  ;;  %3254 = vmatprep.mubr.bf16.mxu1 %v4259_v21 }
 0x1dc   :  { %v2736_v7 = vpop.f32.mrf.mxu1  ;;  %v4256_v46 = vcombine.low %v309_v16, %v313_v17  ;;  %v325_v16 = vld [vmem:[%s6158_s0 + $0x590] sm:$0xff] }
 0x1dd   :  { %6178 = vst [vmem:[#allocation19_spill] sm:$0xff] %v5839_v56  ;;  %v2448_v44 = vpop.f32.mrf.mxu0  ;;  %v329_v17 = vld [vmem:[%s6158_s0 + $0x5b0] sm:$0xff] }
 0x1de   :  { %v2737_v57 = vpop.f32.mrf.mxu1 }
 0x1df   :  { %v5853_v36 = vadd.f32 %v2737_v57, %v2448_v44  ;;  %v2450_v21 = vpop.f32.mrf.mxu0  ;;  %v330_v44 = vld [vmem:[%s6158_s0 + $0x5b8] sm:$0xff] }
 0x1e0   :  { %v2739_v1 = vpop.f32.mrf.mxu1 }
 0x1e1   :  { %6179 = vst [vmem:[#allocation20_spill] sm:$0xff] %v5853_v36  ;;  %v2453_v27 = vpop.f32.mrf.mxu0  ;;  %2966 = vmatmul.mubr.bf16.gmra.mxu0 %v4256_v46  ;;  %v4275_v1 = vcombine.high %v326_v25, %v330_v44 }
 0x1e2   :  { %v2742_v7 = vpop.f32.mrf.mxu1  ;;  %3255 = vmatmul.mubr.bf16.gmra.mxu1 %v4258_v23  ;;  %2973 = vmatprep.mubr.bf16.mxu0 %v4265_v34  ;;  %v4266_v23 = vcombine.low %v318_v29, %v322_v43  ;;  %v4273_v34 = vcombine.high %v325_v16, %v329_v17  ;;  %v334_v43 = vld [vmem:[%s6158_s0 + $0x5d8] sm:$0xff] }
 0x1e3   :  { %v5855_v56 = vadd.f32 %v2742_v7, %v2453_v27  ;;  %v2455_v60 = vpop.f32.mrf.mxu0  ;;  %3262 = vmatprep.mubr.bf16.mxu1 %v4267_v6 }
 0x1e4   :  { %v2744_v13 = vpop.f32.mrf.mxu1  ;;  %v4264_v60 = vcombine.low %v317_v52, %v321_v53  ;;  %v333_v52 = vld [vmem:[%s6158_s0 + $0x5d0] sm:$0xff] }
 0x1e5   :  { %6180 = vst [vmem:[#allocation21_spill] sm:$0xff] %v5855_v56  ;;  %v2456_v46 = vpop.f32.mrf.mxu0  ;;  %v337_v53 = vld [vmem:[%s6158_s0 + $0x5f0] sm:$0xff] }
 0x1e6   :  { %v2745_v57 = vpop.f32.mrf.mxu1 }
 0x1e7   :  { %v5869_v21 = vadd.f32 %v2745_v57, %v2456_v46  ;;  %v2458_v6 = vpop.f32.mrf.mxu0  ;;  %v338_v46 = vld [vmem:[%s6158_s0 + $0x5f8] sm:$0xff] }
 0x1e8   :  { %v2747_v27 = vpop.f32.mrf.mxu1 }
 0x1e9   :  { %6181 = vst [vmem:[#allocation22_spill] sm:$0xff] %v5869_v21  ;;  %v2461_v7 = vpop.f32.mrf.mxu0  ;;  %2974 = vmatmul.mubr.bf16.gmra.mxu0 %v4264_v60  ;;  %v4283_v27 = vcombine.high %v334_v43, %v338_v46 }
 0x1ea   :  { %v2750_v13 = vpop.f32.mrf.mxu1  ;;  %3263 = vmatmul.mubr.bf16.gmra.mxu1 %v4266_v23  ;;  %2981 = vmatprep.mubr.bf16.mxu0 %v4273_v34  ;;  %v4274_v23 = vcombine.low %v326_v25, %v330_v44  ;;  %v4281_v34 = vcombine.high %v333_v52, %v337_v53  ;;  %v342_v44 = vld [vmem:[%s6158_s0 + $0x618] sm:$0xff] }
 0x1eb   :  { %v5871_v56 = vadd.f32 %v2750_v13, %v2461_v7  ;;  %v2463_v36 = vpop.f32.mrf.mxu0  ;;  %3270 = vmatprep.mubr.bf16.mxu1 %v4275_v1 }
 0x1ec   :  { %v2752_v29 = vpop.f32.mrf.mxu1  ;;  %v4272_v36 = vcombine.low %v325_v16, %v329_v17  ;;  %v341_v16 = vld [vmem:[%s6158_s0 + $0x610] sm:$0xff] }
 0x1ed   :  { %6182 = vst [vmem:[#allocation23_spill] sm:$0xff] %v5871_v56  ;;  %v2464_v60 = vpop.f32.mrf.mxu0  ;;  %v345_v17 = vld [vmem:[%s6158_s0 + $0x630] sm:$0xff] }
 0x1ee   :  { %v2753_v57 = vpop.f32.mrf.mxu1 }
 0x1ef   :  { %v5885_v6 = vadd.f32 %v2753_v57, %v2464_v60  ;;  %v2466_v1 = vpop.f32.mrf.mxu0  ;;  %v346_v60 = vld [vmem:[%s6158_s0 + $0x638] sm:$0xff] }
 0x1f0   :  { %v2755_v7 = vpop.f32.mrf.mxu1 }
 0x1f1   :  { %6183 = vst [vmem:[#allocation24_spill] sm:$0xff] %v5885_v6  ;;  %v2469_v13 = vpop.f32.mrf.mxu0  ;;  %2982 = vmatmul.mubr.bf16.gmra.mxu0 %v4272_v36  ;;  %v4291_v7 = vcombine.high %v342_v44, %v346_v60 }
 0x1f2   :  { %v2758_v29 = vpop.f32.mrf.mxu1  ;;  %3271 = vmatmul.mubr.bf16.gmra.mxu1 %v4274_v23  ;;  %2989 = vmatprep.mubr.bf16.mxu0 %v4281_v34  ;;  %v4282_v23 = vcombine.low %v334_v43, %v338_v46  ;;  %v4289_v34 = vcombine.high %v341_v16, %v345_v17  ;;  %v350_v46 = vld [vmem:[%s6158_s0 + $0x658] sm:$0xff] }
 0x1f3   :  { %v5887_v56 = vadd.f32 %v2758_v29, %v2469_v13  ;;  %v2471_v21 = vpop.f32.mrf.mxu0  ;;  %3278 = vmatprep.mubr.bf16.mxu1 %v4283_v27 }
 0x1f4   :  { %v2760_v25 = vpop.f32.mrf.mxu1  ;;  %v4280_v21 = vcombine.low %v333_v52, %v337_v53  ;;  %v349_v52 = vld [vmem:[%s6158_s0 + $0x650] sm:$0xff] }
 0x1f5   :  { %6184 = vst [vmem:[#allocation25_spill] sm:$0xff] %v5887_v56  ;;  %v2472_v36 = vpop.f32.mrf.mxu0  ;;  %v353_v53 = vld [vmem:[%s6158_s0 + $0x670] sm:$0xff] }
 0x1f6   :  { %v2761_v57 = vpop.f32.mrf.mxu1 }
 0x1f7   :  { %v5901_v1 = vadd.f32 %v2761_v57, %v2472_v36  ;;  %v2474_v27 = vpop.f32.mrf.mxu0  ;;  %v354_v36 = vld [vmem:[%s6158_s0 + $0x678] sm:$0xff] }
 0x1f8   :  { %v2763_v13 = vpop.f32.mrf.mxu1 }
 0x1f9   :  { %6185 = vst [vmem:[#allocation26_spill] sm:$0xff] %v5901_v1  ;;  %v2477_v29 = vpop.f32.mrf.mxu0  ;;  %2990 = vmatmul.mubr.bf16.gmra.mxu0 %v4280_v21  ;;  %v4299_v13 = vcombine.high %v350_v46, %v354_v36 }
 0x1fa   :  { %v2766_v25 = vpop.f32.mrf.mxu1  ;;  %3279 = vmatmul.mubr.bf16.gmra.mxu1 %v4282_v23  ;;  %2997 = vmatprep.mubr.bf16.mxu0 %v4289_v34  ;;  %v4290_v23 = vcombine.low %v342_v44, %v346_v60  ;;  %v4297_v34 = vcombine.high %v349_v52, %v353_v53  ;;  %v361_v44 = vld [vmem:[%s6158_s0 + $0x6b0] sm:$0xff]  ;;  %v358_v60 = vld [vmem:[%s6158_s0 + $0x698] sm:$0xff] }
 0x1fb   :  { %v5903_v56 = vadd.f32 %v2766_v25, %v2477_v29  ;;  %v2479_v6 = vpop.f32.mrf.mxu0  ;;  %3286 = vmatprep.mubr.bf16.mxu1 %v4291_v7 }
 0x1fc   :  { %v2768_v43 = vpop.f32.mrf.mxu1  ;;  %v4288_v6 = vcombine.low %v341_v16, %v345_v17  ;;  %v357_v16 = vld [vmem:[%s6158_s0 + $0x690] sm:$0xff] }
 0x1fd   :  { %6186 = vst [vmem:[#allocation27_spill] sm:$0xff] %v5903_v56  ;;  %v2480_v21 = vpop.f32.mrf.mxu0 }
 0x1fe   :  { %v2769_v57 = vpop.f32.mrf.mxu1 }
 0x1ff   :  { %v5917_v27 = vadd.f32 %v2769_v57, %v2480_v21  ;;  %v2482_v7 = vpop.f32.mrf.mxu0 }
 0x200   :  { %v2771_v29 = vpop.f32.mrf.mxu1 }
 0x201   :  { %6187 = vst [vmem:[#allocation28_spill] sm:$0xff] %v5917_v27  ;;  %v2807_v25 = vpop.f32.mrf.mxu0  ;;  %2998 = vmatmul.mubr.bf16.gmra.mxu0 %v4288_v6  ;;  %v4296_v6 = vcombine.low %v349_v52, %v353_v53 }
 0x202   :  { %v2808_v43 = vadd.f32 %v2807_v25, %v5407_v19  ;;  %v3096_v56 = vpop.f32.mrf.mxu1  ;;  %3287 = vmatmul.mubr.bf16.gmra.mxu1 %v4290_v23  ;;  %3005 = vmatprep.mubr.bf16.mxu0 %v4297_v34  ;;  %v362_v19 = vld [vmem:[%s6158_s0 + $0x6b8] sm:$0xff]  ;;  %v4298_v34 = vcombine.low %v350_v46, %v354_v36 }
 0x203   :  { %v2809_v1 = vpop.f32.mrf.mxu0  ;;  %3294 = vmatprep.mubr.bf16.mxu1 %v4299_v13  ;;  %v4305_v13 = vcombine.high %v357_v16, %v361_v44  ;;  %v4307_v29 = vcombine.high %v358_v60, %v362_v19 }
 0x204   :  { %v3098_v17 = vpop.f32.mrf.mxu1  ;;  %v3097_v21 = vadd.f32 %v3096_v56, %v2808_v43  ;;  %v370_v43 = vld [vmem:[%s6158_s0 + $0x6f8] sm:$0xff] }
 0x205   :  { %v2810_v1 = vpop.f32.mrf.mxu0 }
 0x206   :  { %v2811_v57 = vadd.f32 %v2810_v1, %v5421_v31  ;;  %v3099_v23 = vpop.f32.mrf.mxu1  ;;  %v3625_v27 = vmul.f32 %v3097_v21, %v3097_v21  ;;  %v365_v31 = vld [vmem:[%s6158_s0 + $0x6d0] sm:$0xff] }
 0x207   :  { %v2812_v7 = vpop.f32.mrf.mxu0 }
 0x208   :  { %v3100_v25 = vadd.f32 %v3099_v23, %v2811_v57  ;;  %v3101_v17 = vpop.f32.mrf.mxu1 }
 0x209   :  { %v2815_v54 = vpop.f32.mrf.mxu0  ;;  %3006 = vmatmul.mubr.bf16.gmra.mxu0 %v4296_v6  ;;  %v4306_v6 = vcombine.low %v358_v60, %v362_v19 }
 0x20a   :  { %v3553_v30 = vadd.f32 %v3100_v25, %v3097_v21  ;;  %v3626_v62 = vmul.f32 %v3100_v25, %v3100_v25  ;;  %v4543_v40 = vpack.c.bf16 %v3100_v25, %v3097_v21  ;;  %v2816_v10 = vadd.f32 %v2815_v54, %v5423_v37  ;;  %v3104_v56 = vpop.f32.mrf.mxu1  ;;  %3295 = vmatmul.mubr.bf16.gmra.mxu1 %v4298_v34  ;;  %v369_v37 = vld [vmem:[%s6158_s0 + $0x6f0] sm:$0xff]  ;;  %v366_v54 = vld [vmem:[%s6158_s0 + $0x6d8] sm:$0xff] }
 0x20b   :  { %v2817_v52 = vpop.f32.mrf.mxu0  ;;  %3013 = vmatprep.mubr.bf16.mxu0 %v4305_v13  ;;  %3302 = vmatprep.mubr.bf16.mxu1 %v4307_v29  ;;  %v4313_v23 = vcombine.high %v365_v31, %v369_v37  ;;  %v4315_v34 = vcombine.high %v366_v54, %v370_v43 }
 0x20c   :  { %v3689_v53 = vadd.f32 %v3626_v62, %v3625_v27  ;;  %4544 = vst [vmem:[%s6159_s2] sm:$0xff] %v4543_v40   ;;  %v3105_v46 = vadd.f32 %v3104_v56, %v2816_v10  ;;  %v3106_v36 = vpop.f32.mrf.mxu1  ;;  %v4304_v62 = vcombine.low %v357_v16, %v361_v44 }
 0x20d   :  { %v2818_v21 = vpop.f32.mrf.mxu0 }
 0x20e   :  { %v3554_v27 = vadd.f32 %v3553_v30, %v3105_v46  ;;  %v3627_v1 = vmul.f32 %v3105_v46, %v3105_v46  ;;  %v2819_v40 = vadd.f32 %v2818_v21, %v5437_v49  ;;  %v3107_v10 = vpop.f32.mrf.mxu1  ;;  %v373_v49 = vld [vmem:[%s6158_s0 + $0x710] sm:$0xff] }
 0x20f   :  { %v2820_v57 = vpop.f32.mrf.mxu0 }
 0x210   :  { %v3690_v7 = vadd.f32 %v3689_v53, %v3627_v1  ;;  %v3108_v13 = vadd.f32 %v3107_v10, %v2819_v40  ;;  %v3109_v29 = vpop.f32.mrf.mxu1  ;;  %v374_v53 = vld [vmem:[%s6158_s0 + $0x718] sm:$0xff] }
 0x211   :  { %v2823_v25 = vpop.f32.mrf.mxu0  ;;  %3014 = vmatmul.mubr.bf16.gmra.mxu0 %v4304_v62  ;;  %v4312_v62 = vcombine.low %v365_v31, %v369_v37 }
 0x212   :  { %v3555_v17 = vadd.f32 %v3554_v27, %v3108_v13  ;;  %v3628_v56 = vmul.f32 %v3108_v13, %v3108_v13  ;;  %v4548_v52 = vpack.c.bf16 %v3108_v13, %v3105_v46  ;;  %v2824_v36 = vadd.f32 %v2823_v25, %v5439_v55  ;;  %v3112_v16 = vpop.f32.mrf.mxu1  ;;  %3303 = vmatmul.mubr.bf16.gmra.mxu1 %v4306_v6  ;;  %v377_v55 = vld [vmem:[%s6158_s0 + $0x730] sm:$0xff]  ;;  %v378_v46 = vld [vmem:[%s6158_s0 + $0x738] sm:$0xff] }
 0x213   :  { %v2825_v30 = vpop.f32.mrf.mxu0  ;;  %3021 = vmatprep.mubr.bf16.mxu0 %v4313_v23  ;;  %3310 = vmatprep.mubr.bf16.mxu1 %v4315_v34  ;;  %v4314_v6 = vcombine.low %v366_v54, %v370_v43  ;;  %v4321_v23 = vcombine.high %v373_v49, %v377_v55  ;;  %v4323_v34 = vcombine.high %v374_v53, %v378_v46 }
 0x214   :  { %v3691_v44 = vadd.f32 %v3690_v7, %v3628_v56  ;;  %4700 = vst [vmem:[%s6159_s2 + $0x8] sm:$0xff] %v4548_v52   ;;  %v3113_v60 = vadd.f32 %v3112_v16, %v2824_v36  ;;  %v3114_v19 = vpop.f32.mrf.mxu1  ;;  %v382_v30 = vld [vmem:[%s6158_s0 + $0x758] sm:$0xff] }
 0x215   :  { %v2826_v21 = vpop.f32.mrf.mxu0  ;;  %v4320_v19 = vcombine.low %v373_v49, %v377_v55 }
 0x216   :  { %v3556_v27 = vadd.f32 %v3555_v17, %v3113_v60  ;;  %v3629_v1 = vmul.f32 %v3113_v60, %v3113_v60  ;;  %v2827_v40 = vadd.f32 %v2826_v21, %v5453_v3  ;;  %v3115_v10 = vpop.f32.mrf.mxu1  ;;  %v381_v3 = vld [vmem:[%s6158_s0 + $0x750] sm:$0xff] }
 0x217   :  { %v2828_v57 = vpop.f32.mrf.mxu0 }
 0x218   :  { %v3692_v7 = vadd.f32 %v3691_v44, %v3629_v1  ;;  %v3116_v13 = vadd.f32 %v3115_v10, %v2827_v40  ;;  %v3117_v29 = vpop.f32.mrf.mxu1  ;;  %v386_v44 = vld [vmem:[%s6158_s0 + $0x778] sm:$0xff]  ;;  %v4322_v40 = vcombine.low %v374_v53, %v378_v46 }
 0x219   :  { %v2831_v25 = vpop.f32.mrf.mxu0  ;;  %3022 = vmatmul.mubr.bf16.gmra.mxu0 %v4312_v62  ;;  %v4331_v57 = vcombine.high %v382_v30, %v386_v44 }
 0x21a   :  { %v3557_v56 = vadd.f32 %v3556_v27, %v3116_v13  ;;  %v3630_v52 = vmul.f32 %v3116_v13, %v3116_v13  ;;  %v4553_v36 = vpack.c.bf16 %v3116_v13, %v3113_v60  ;;  %v2832_v16 = vadd.f32 %v2831_v25, %v5455_v9  ;;  %v3120_v31 = vpop.f32.mrf.mxu1  ;;  %3311 = vmatmul.mubr.bf16.gmra.mxu1 %v4314_v6  ;;  %v385_v9 = vld [vmem:[%s6158_s0 + $0x770] sm:$0xff] }
 0x21b   :  { %v2833_v37 = vpop.f32.mrf.mxu0  ;;  %3029 = vmatprep.mubr.bf16.mxu0 %v4321_v23  ;;  %3318 = vmatprep.mubr.bf16.mxu1 %v4323_v34  ;;  %v4329_v6 = vcombine.high %v381_v3, %v385_v9 }
 0x21c   :  { %v3693_v54 = vadd.f32 %v3692_v7, %v3630_v52  ;;  %4701 = vst [vmem:[%s6159_s2 + $0x10] sm:$0xff] %v4553_v36   ;;  %v3121_v43 = vadd.f32 %v3120_v31, %v2832_v16  ;;  %v3122_v17 = vpop.f32.mrf.mxu1  ;;  %v390_v16 = vld [vmem:[%s6158_s0 + $0x798] sm:$0xff] }
 0x21d   :  { %v2834_v60 = vpop.f32.mrf.mxu0  ;;  %v394_v31 = vld [vmem:[%s6158_s0 + $0x7b8] sm:$0xff] }
 0x21e   :  { %v3558_v21 = vadd.f32 %v3557_v56, %v3121_v43  ;;  %v3631_v62 = vmul.f32 %v3121_v43, %v3121_v43  ;;  %v2835_v27 = vadd.f32 %v2834_v60, %v5469_v22  ;;  %v3123_v1 = vpop.f32.mrf.mxu1  ;;  %v389_v22 = vld [vmem:[%s6158_s0 + $0x790] sm:$0xff] }
 0x21f   :  { %v2836_v10 = vpop.f32.mrf.mxu0 }
 0x220   :  { %v3694_v23 = vadd.f32 %v3693_v54, %v3631_v62  ;;  %v3124_v34 = vadd.f32 %v3123_v1, %v2835_v27  ;;  %v3125_v7 = vpop.f32.mrf.mxu1  ;;  %v4328_v54 = vcombine.low %v381_v3, %v385_v9  ;;  %v4339_v1 = vcombine.high %v390_v16, %v394_v31 }
 0x221   :  { %v2839_v13 = vpop.f32.mrf.mxu0  ;;  %3030 = vmatmul.mubr.bf16.gmra.mxu0 %v4320_v19 }
 0x222   :  { %v3559_v29 = vadd.f32 %v3558_v21, %v3124_v34  ;;  %v3632_v25 = vmul.f32 %v3124_v34, %v3124_v34  ;;  %v4558_v52 = vpack.c.bf16 %v3124_v34, %v3121_v43  ;;  %v2840_v36 = vadd.f32 %v2839_v13, %v5471_v28  ;;  %v3128_v49 = vpop.f32.mrf.mxu1  ;;  %3319 = vmatmul.mubr.bf16.gmra.mxu1 %v4322_v40  ;;  %v393_v28 = vld [vmem:[%s6158_s0 + $0x7b0] sm:$0xff] }
 0x223   :  { %v2841_v55 = vpop.f32.mrf.mxu0  ;;  %3037 = vmatprep.mubr.bf16.mxu0 %v4329_v6  ;;  %3326 = vmatprep.mubr.bf16.mxu1 %v4331_v57  ;;  %v4330_v21 = vcombine.low %v382_v30, %v386_v44  ;;  %v4337_v27 = vcombine.high %v389_v22, %v393_v28 }
 0x224   :  { %v3695_v53 = vadd.f32 %v3694_v23, %v3632_v25  ;;  %4702 = vst [vmem:[%s6159_s2 + $0x18] sm:$0xff] %v4558_v52   ;;  %v3129_v46 = vadd.f32 %v3128_v49, %v2840_v36  ;;  %v3130_v56 = vpop.f32.mrf.mxu1  ;;  %v398_v25 = vld [vmem:[%s6158_s0 + $0x7d8] sm:$0xff]  ;;  %v4336_v49 = vcombine.low %v389_v22, %v393_v28 }
 0x225   :  { %v2842_v37 = vpop.f32.mrf.mxu0  ;;  %v402_v52 = vld [vmem:[%s6158_s0 + $0x7f8] sm:$0xff] }
 0x226   :  { %v3560_v43 = vadd.f32 %v3559_v29, %v3129_v46  ;;  %v3633_v17 = vmul.f32 %v3129_v46, %v3129_v46  ;;  %v2843_v60 = vadd.f32 %v2842_v37, %v5485_v42  ;;  %v3131_v19 = vpop.f32.mrf.mxu1  ;;  %v397_v42 = vld [vmem:[%s6158_s0 + $0x7d0] sm:$0xff]  ;;  %v4338_v37 = vcombine.low %v390_v16, %v394_v31 }
 0x227   :  { %v2844_v62 = vpop.f32.mrf.mxu0 }
 0x228   :  { %v3696_v40 = vadd.f32 %v3695_v53, %v3633_v17  ;;  %v3132_v10 = vadd.f32 %v3131_v19, %v2843_v60  ;;  %v3133_v6 = vpop.f32.mrf.mxu1  ;;  %v4347_v17 = vcombine.high %v398_v25, %v402_v52 }
 0x229   :  { %v2847_v57 = vpop.f32.mrf.mxu0  ;;  %3038 = vmatmul.mubr.bf16.gmra.mxu0 %v4328_v54 }
 0x22a   :  { %v3561_v23 = vadd.f32 %v3560_v43, %v3132_v10  ;;  %v3634_v34 = vmul.f32 %v3132_v10, %v3132_v10  ;;  %v4563_v7 = vpack.c.bf16 %v3132_v10, %v3129_v46  ;;  %v2848_v13 = vadd.f32 %v2847_v57, %v5487_v48  ;;  %v3136_v3 = vpop.f32.mrf.mxu1  ;;  %3327 = vmatmul.mubr.bf16.gmra.mxu1 %v4330_v21  ;;  %v401_v48 = vld [vmem:[%s6158_s0 + $0x7f0] sm:$0xff] }
 0x22b   :  { %v2849_v9 = vpop.f32.mrf.mxu0  ;;  %3045 = vmatprep.mubr.bf16.mxu0 %v4337_v27  ;;  %3334 = vmatprep.mubr.bf16.mxu1 %v4339_v1  ;;  %v4345_v43 = vcombine.high %v397_v42, %v401_v48  ;;  %v4344_v57 = vcombine.low %v397_v42, %v401_v48 }
 0x22c   :  { %v3697_v30 = vadd.f32 %v3696_v40, %v3634_v34  ;;  %4703 = vst [vmem:[%s6159_s2 + $0x20] sm:$0xff] %v4563_v7   ;;  %v3137_v44 = vadd.f32 %v3136_v3, %v2848_v13  ;;  %v3138_v29 = vpop.f32.mrf.mxu1 }
 0x22d   :  { %v2850_v36 = vpop.f32.mrf.mxu0 }
 0x22e   :  { %v3562_v55 = vadd.f32 %v3561_v23, %v3137_v44  ;;  %v3635_v53 = vmul.f32 %v3137_v44, %v3137_v44  ;;  %v2851_v46 = vadd.f32 %v2850_v36, %v5501_v61  ;;  %v3139_v56 = vpop.f32.mrf.mxu1 }
 0x22f   :  { %v2852_v54 = vpop.f32.mrf.mxu0 }
 0x230   :  { %v3698_v60 = vadd.f32 %v3697_v30, %v3635_v53  ;;  %v3140_v19 = vadd.f32 %v3139_v56, %v2851_v46  ;;  %v3141_v21 = vpop.f32.mrf.mxu1 }
 0x231   :  { %v2855_v62 = vpop.f32.mrf.mxu0  ;;  %3046 = vmatmul.mubr.bf16.gmra.mxu0 %v4336_v49 }
 0x232   :  { %v3563_v27 = vadd.f32 %v3562_v55, %v3140_v19  ;;  %v3636_v1 = vmul.f32 %v3140_v19, %v3140_v19  ;;  %v4568_v40 = vpack.c.bf16 %v3140_v19, %v3137_v44  ;;  %v2856_v10 = vadd.f32 %v2855_v62, %v5503_v5  ;;  %v3144_v22 = vpop.f32.mrf.mxu1  ;;  %3335 = vmatmul.mubr.bf16.gmra.mxu1 %v4338_v37 }
 0x233   :  { %v2857_v28 = vpop.f32.mrf.mxu0  ;;  %3053 = vmatprep.mubr.bf16.mxu0 %v4345_v43  ;;  %3342 = vmatprep.mubr.bf16.mxu1 %v4347_v17  ;;  %v4346_v5 = vcombine.low %v398_v25, %v402_v52 }
 0x234   :  { %v3699_v61 = vadd.f32 %v3698_v60, %v3636_v1  ;;  %4704 = vst [vmem:[%s6159_s2 + $0x28] sm:$0xff] %v4568_v40   ;;  %v3145_v16 = vadd.f32 %v3144_v22, %v2856_v10  ;;  %v3146_v31 = vpop.f32.mrf.mxu1 }
 0x235   :  { %v2858_v6 = vpop.f32.mrf.mxu0 }
 0x236   :  { %v3564_v23 = vadd.f32 %v3563_v27, %v3145_v16  ;;  %v3637_v34 = vmul.f32 %v3145_v16, %v3145_v16  ;;  %v2859_v7 = vadd.f32 %v2858_v6, %v5517_v18  ;;  %v3147_v13 = vpop.f32.mrf.mxu1 }
 0x237   :  { %v2860_v3 = vpop.f32.mrf.mxu0 }
 0x238   :  { %v3700_v9 = vadd.f32 %v3699_v61, %v3637_v34  ;;  %v3148_v30 = vadd.f32 %v3147_v13, %v2859_v7  ;;  %v3149_v44 = vpop.f32.mrf.mxu1 }
 0x239   :  { %v2863_v29 = vpop.f32.mrf.mxu0  ;;  %3054 = vmatmul.mubr.bf16.gmra.mxu0 %v4344_v57 }
 0x23a   :  { %v3565_v36 = vadd.f32 %v3564_v23, %v3148_v30  ;;  %v3638_v49 = vmul.f32 %v3148_v30, %v3148_v30  ;;  %v4573_v55 = vpack.c.bf16 %v3148_v30, %v3145_v16  ;;  %v2864_v53 = vadd.f32 %v2863_v29, %v5519_v26  ;;  %v3152_v46 = vpop.f32.mrf.mxu1  ;;  %3343 = vmatmul.mubr.bf16.gmra.mxu1 %v4346_v5 }
 0x23b   :  { %v2865_v42 = vpop.f32.mrf.mxu0 }
 0x23c   :  { %v3701_v48 = vadd.f32 %v3700_v9, %v3638_v49  ;;  %4705 = vst [vmem:[%s6159_s2 + $0x30] sm:$0xff] %v4573_v55   ;;  %v3153_v18 = vadd.f32 %v3152_v46, %v2864_v53  ;;  %v3154_v25 = vpop.f32.mrf.mxu1 }
 0x23d   :  { %v2866_v52 = vpop.f32.mrf.mxu0 }
 0x23e   :  { %v3566_v56 = vadd.f32 %v3565_v36, %v3153_v18  ;;  %v3639_v37 = vmul.f32 %v3153_v18, %v3153_v18  ;;  %v2867_v54 = vadd.f32 %v2866_v52, %v5533_v41  ;;  %v3155_v43 = vpop.f32.mrf.mxu1 }
 0x23f   :  { %v2868_v17 = vpop.f32.mrf.mxu0 }
 0x240   :  { %v3702_v60 = vadd.f32 %v3701_v48, %v3639_v37  ;;  %v3156_v19 = vadd.f32 %v3155_v43, %v2867_v54  ;;  %v3157_v26 = vpop.f32.mrf.mxu1 }
 0x241   :  { %v2871_v21 = vpop.f32.mrf.mxu0 }
 0x242   :  { %v3567_v62 = vadd.f32 %v3566_v56, %v3156_v19  ;;  %v3640_v27 = vmul.f32 %v3156_v19, %v3156_v19  ;;  %v4578_v1 = vpack.c.bf16 %v3156_v19, %v3153_v18  ;;  %v2872_v40 = vadd.f32 %v2871_v21, %v5535_v50  ;;  %v3160_v10 = vpop.f32.mrf.mxu1 }
 0x243   :  { %v2873_v22 = vpop.f32.mrf.mxu0 }
 0x244   :  { %v3703_v28 = vadd.f32 %v3702_v60, %v3640_v27  ;;  %4706 = vst [vmem:[%s6159_s2 + $0x38] sm:$0xff] %v4578_v1   ;;  %v3161_v61 = vadd.f32 %v3160_v10, %v2872_v40  ;;  %v3162_v41 = vpop.f32.mrf.mxu1 }
 0x245   :  { %v2874_v16 = vpop.f32.mrf.mxu0 }
 0x246   :  { %v3568_v31 = vadd.f32 %v3567_v62, %v3161_v61  ;;  %v3641_v6 = vmul.f32 %v3161_v61, %v3161_v61  ;;  %v2875_v57 = vadd.f32 %v2874_v16, %v5549_v63  ;;  %v3163_v23 = vpop.f32.mrf.mxu1 }
 0x247   :  { %v2876_v34 = vpop.f32.mrf.mxu0 }
 0x248   :  { %v3704_v7 = vadd.f32 %v3703_v28, %v3641_v6  ;;  %v3164_v13 = vadd.f32 %v3163_v23, %v2875_v57  ;;  %v3165_v5 = vpop.f32.mrf.mxu1 }
 0x249   :  { %v2879_v50 = vpop.f32.mrf.mxu0 }
 0x24a   :  { %v3569_v3 = vadd.f32 %v3568_v31, %v3164_v13  ;;  %v3642_v9 = vmul.f32 %v3164_v13, %v3164_v13  ;;  %v4583_v30 = vpack.c.bf16 %v3164_v13, %v3161_v61  ;;  %v2880_v44 = vadd.f32 %v2879_v50, %v5551_v8  ;;  %v3168_v29 = vpop.f32.mrf.mxu1 }
 0x24b   :  { %v2881_v36 = vpop.f32.mrf.mxu0 }
 0x24c   :  { %v3705_v49 = vadd.f32 %v3704_v7, %v3642_v9  ;;  %4707 = vst [vmem:[%s6159_s2 + $0x40] sm:$0xff] %v4583_v30   ;;  %v3169_v55 = vadd.f32 %v3168_v29, %v2880_v44  ;;  %v3170_v63 = vpop.f32.mrf.mxu1 }
 0x24d   :  { %v2882_v53 = vpop.f32.mrf.mxu0 }
 0x24e   :  { %v3570_v46 = vadd.f32 %v3569_v3, %v3169_v55  ;;  %v3643_v42 = vmul.f32 %v3169_v55, %v3169_v55  ;;  %v2883_v48 = vadd.f32 %v2882_v53, %v5565_v24  ;;  %v3171_v18 = vpop.f32.mrf.mxu1 }
 0x24f   :  { %v2884_v25 = vpop.f32.mrf.mxu0 }
 0x250   :  { %v3706_v52 = vadd.f32 %v3705_v49, %v3643_v42  ;;  %v3172_v56 = vadd.f32 %v3171_v18, %v2883_v48  ;;  %v3173_v37 = vpop.f32.mrf.mxu1 }
 0x251   :  { %v2887_v8 = vpop.f32.mrf.mxu0 }
 0x252   :  { %v3571_v54 = vadd.f32 %v3570_v46, %v3172_v56  ;;  %v3644_v43 = vmul.f32 %v3172_v56, %v3172_v56  ;;  %v4588_v17 = vpack.c.bf16 %v3172_v56, %v3169_v55  ;;  %v2888_v60 = vadd.f32 %v2887_v8, %v5567_v33  ;;  %v3176_v19 = vpop.f32.mrf.mxu1 }
 0x253   :  { %v2889_v26 = vpop.f32.mrf.mxu0 }
 0x254   :  { %v3707_v21 = vadd.f32 %v3706_v52, %v3644_v43  ;;  %4708 = vst [vmem:[%s6159_s2 + $0x48] sm:$0xff] %v4588_v17   ;;  %v3177_v62 = vadd.f32 %v3176_v19, %v2888_v60  ;;  %v3178_v24 = vpop.f32.mrf.mxu1 }
 0x255   :  { %v2890_v27 = vpop.f32.mrf.mxu0 }
 0x256   :  { %v3572_v1 = vadd.f32 %v3571_v54, %v3177_v62  ;;  %v3645_v40 = vmul.f32 %v3177_v62, %v3177_v62  ;;  %v2891_v10 = vadd.f32 %v2890_v27, %v5581_v51  ;;  %v3179_v22 = vpop.f32.mrf.mxu1 }
 0x257   :  { %v2892_v28 = vpop.f32.mrf.mxu0 }
 0x258   :  { %v3708_v61 = vadd.f32 %v3707_v21, %v3645_v40  ;;  %v3180_v41 = vadd.f32 %v3179_v22, %v2891_v10  ;;  %v3181_v16 = vpop.f32.mrf.mxu1 }
 0x259   :  { %v2895_v33 = vpop.f32.mrf.mxu0 }
 0x25a   :  { %v3573_v31 = vadd.f32 %v3572_v1, %v3180_v41  ;;  %v3646_v6 = vmul.f32 %v3180_v41, %v3180_v41  ;;  %v4593_v57 = vpack.c.bf16 %v3180_v41, %v3177_v62  ;;  %v2896_v23 = vadd.f32 %v2895_v33, %v5583_v0  ;;  %v3184_v34 = vpop.f32.mrf.mxu1 }
 0x25b   :  { %v2897_v7 = vpop.f32.mrf.mxu0 }
 0x25c   :  { %v3709_v13 = vadd.f32 %v3708_v61, %v3646_v6  ;;  %4709 = vst [vmem:[%s6159_s2 + $0x50] sm:$0xff] %v4593_v57   ;;  %v3185_v5 = vadd.f32 %v3184_v34, %v2896_v23  ;;  %v3186_v51 = vpop.f32.mrf.mxu1 }
 0x25d   :  { %v2898_v50 = vpop.f32.mrf.mxu0 }
 0x25e   :  { %v3574_v3 = vadd.f32 %v3573_v31, %v3185_v5  ;;  %v3647_v9 = vmul.f32 %v3185_v5, %v3185_v5  ;;  %v2899_v30 = vadd.f32 %v2898_v50, %v5597_v12  ;;  %v3187_v44 = vpop.f32.mrf.mxu1 }
 0x25f   :  { %v2900_v29 = vpop.f32.mrf.mxu0 }
 0x260   :  { %v3710_v36 = vadd.f32 %v3709_v13, %v3647_v9  ;;  %v3188_v49 = vadd.f32 %v3187_v44, %v2899_v30  ;;  %v3189_v55 = vpop.f32.mrf.mxu1 }
 0x261   :  { %v2903_v0 = vpop.f32.mrf.mxu0 }
 0x262   :  { %v3575_v63 = vadd.f32 %v3574_v3, %v3188_v49  ;;  %v3648_v53 = vmul.f32 %v3188_v49, %v3188_v49  ;;  %v4598_v46 = vpack.c.bf16 %v3188_v49, %v3185_v5  ;;  %v2904_v42 = vadd.f32 %v2903_v0, %v5599_v20  ;;  %v3192_v48 = vpop.f32.mrf.mxu1 }
 0x263   :  { %v2905_v18 = vpop.f32.mrf.mxu0 }
 0x264   :  { %v3711_v25 = vadd.f32 %v3710_v36, %v3648_v53  ;;  %4710 = vst [vmem:[%s6159_s2 + $0x58] sm:$0xff] %v4598_v46   ;;  %v3193_v52 = vadd.f32 %v3192_v48, %v2904_v42  ;;  %v3194_v12 = vpop.f32.mrf.mxu1 }
 0x265   :  { %v2906_v56 = vpop.f32.mrf.mxu0 }
 0x266   :  { %v3576_v37 = vadd.f32 %v3575_v63, %v3193_v52  ;;  %v3649_v8 = vmul.f32 %v3193_v52, %v3193_v52  ;;  %v2907_v54 = vadd.f32 %v2906_v56, %v5613_v39  ;;  %v3195_v43 = vpop.f32.mrf.mxu1 }
 0x267   :  { %v2908_v17 = vpop.f32.mrf.mxu0 }
 0x268   :  { %v3712_v60 = vadd.f32 %v3711_v25, %v3649_v8  ;;  %v3196_v19 = vadd.f32 %v3195_v43, %v2907_v54  ;;  %v3197_v26 = vpop.f32.mrf.mxu1 }
 0x269   :  { %v2911_v20 = vpop.f32.mrf.mxu0 }
 0x26a   :  { %v3577_v21 = vadd.f32 %v3576_v37, %v3196_v19  ;;  %v3650_v62 = vmul.f32 %v3196_v19, %v3196_v19  ;;  %v4603_v24 = vpack.c.bf16 %v3196_v19, %v3193_v52  ;;  %v2912_v27 = vadd.f32 %v2911_v20, %v5615_v47  ;;  %v3200_v1 = vpop.f32.mrf.mxu1 }
 0x26b   :  { %v2913_v40 = vpop.f32.mrf.mxu0 }
 0x26c   :  { %v3713_v10 = vadd.f32 %v3712_v60, %v3650_v62  ;;  %4711 = vst [vmem:[%s6159_s2 + $0x60] sm:$0xff] %v4603_v24   ;;  %v3201_v22 = vadd.f32 %v3200_v1, %v2912_v27  ;;  %v3202_v39 = vpop.f32.mrf.mxu1 }
 0x26d   :  { %v2914_v28 = vpop.f32.mrf.mxu0 }
 0x26e   :  { %v3578_v61 = vadd.f32 %v3577_v21, %v3201_v22  ;;  %v3651_v41 = vmul.f32 %v3201_v22, %v3201_v22  ;;  %v2915_v16 = vadd.f32 %v2914_v28, %v5629_v4  ;;  %v3203_v33 = vpop.f32.mrf.mxu1 }
 0x26f   :  { %v2916_v31 = vpop.f32.mrf.mxu0 }
 0x270   :  { %v3714_v6 = vadd.f32 %v3713_v10, %v3651_v41  ;;  %v3204_v57 = vadd.f32 %v3203_v33, %v2915_v16  ;;  %v3205_v23 = vpop.f32.mrf.mxu1 }
 0x271   :  { %v2919_v47 = vpop.f32.mrf.mxu0 }
 0x272   :  { %v3579_v34 = vadd.f32 %v3578_v61, %v3204_v57  ;;  %v3652_v7 = vmul.f32 %v3204_v57, %v3204_v57  ;;  %v4608_v13 = vpack.c.bf16 %v3204_v57, %v3201_v22  ;;  %v2920_v5 = vadd.f32 %v2919_v47, %v5631_v14  ;;  %v3208_v51 = vpop.f32.mrf.mxu1 }
 0x273   :  { %v2921_v50 = vpop.f32.mrf.mxu0 }
 0x274   :  { %v3715_v3 = vadd.f32 %v3714_v6, %v3652_v7  ;;  %4712 = vst [vmem:[%s6159_s2 + $0x68] sm:$0xff] %v4608_v13   ;;  %v3209_v9 = vadd.f32 %v3208_v51, %v2920_v5  ;;  %v3210_v4 = vpop.f32.mrf.mxu1 }
 0x275   :  { %v2922_v30 = vpop.f32.mrf.mxu0 }
 0x276   :  { %v3580_v44 = vadd.f32 %v3579_v34, %v3209_v9  ;;  %v3653_v29 = vmul.f32 %v3209_v9, %v3209_v9  ;;  %v2923_v36 = vadd.f32 %v2922_v30, %v5645_v35  ;;  %v3211_v49 = vpop.f32.mrf.mxu1 }
 0x277   :  { %v2924_v55 = vpop.f32.mrf.mxu0 }
 0x278   :  { %v3716_v0 = vadd.f32 %v3715_v3, %v3653_v29  ;;  %v3212_v63 = vadd.f32 %v3211_v49, %v2923_v36  ;;  %v3213_v53 = vpop.f32.mrf.mxu1 }
 0x279   :  { %v2927_v14 = vpop.f32.mrf.mxu0 }
 0x27a   :  { %v3581_v46 = vadd.f32 %v3580_v44, %v3212_v63  ;;  %v3654_v42 = vmul.f32 %v3212_v63, %v3212_v63  ;;  %v4613_v48 = vpack.c.bf16 %v3212_v63, %v3209_v9  ;;  %v2928_v18 = vadd.f32 %v2927_v14, %v5647_v45  ;;  %v3216_v25 = vpop.f32.mrf.mxu1 }
 0x27b   :  { %v2929_v52 = vpop.f32.mrf.mxu0 }
 0x27c   :  { %v3717_v12 = vadd.f32 %v3716_v0, %v3654_v42  ;;  %4713 = vst [vmem:[%s6159_s2 + $0x70] sm:$0xff] %v4613_v48   ;;  %v3217_v56 = vadd.f32 %v3216_v25, %v2928_v18  ;;  %v3218_v35 = vpop.f32.mrf.mxu1 }
 0x27d   :  { %v2930_v37 = vpop.f32.mrf.mxu0 }
 0x27e   :  { %v3582_v8 = vadd.f32 %v3581_v46, %v3217_v56  ;;  %v3655_v54 = vmul.f32 %v3217_v56, %v3217_v56  ;;  %v2931_v43 = vadd.f32 %v2930_v37, %v5661_v2  ;;  %v3219_v17 = vpop.f32.mrf.mxu1 }
 0x27f   :  { %v2932_v60 = vpop.f32.mrf.mxu0 }
 0x280   :  { %v3718_v19 = vadd.f32 %v3717_v12, %v3655_v54  ;;  %v3220_v26 = vadd.f32 %v3219_v17, %v2931_v43  ;;  %v3221_v20 = vpop.f32.mrf.mxu1 }
 0x281   :  { %v2935_v45 = vpop.f32.mrf.mxu0 }
 0x282   :  { %v3583_v21 = vadd.f32 %v3582_v8, %v3220_v26  ;;  %v3656_v62 = vmul.f32 %v3220_v26, %v3220_v26  ;;  %v4618_v24 = vpack.c.bf16 %v3220_v26, %v3217_v56  ;;  %v2936_v27 = vadd.f32 %v2935_v45, %v5663_v15  ;;  %v3224_v1 = vpop.f32.mrf.mxu1  ;;  %v6188_v26 = vld [vmem:[#allocation3_spill] sm:$0xff] }
 0x283   :  { %v2937_v40 = vpop.f32.mrf.mxu0 }
 0x284   :  { %v3719_v10 = vadd.f32 %v3718_v19, %v3656_v62  ;;  %4714 = vst [vmem:[%s6159_s2 + $0x78] sm:$0xff] %v4618_v24   ;;  %v3225_v22 = vadd.f32 %v3224_v1, %v2936_v27  ;;  %v3226_v2 = vpop.f32.mrf.mxu1 }
 0x285   :  { %v2938_v39 = vpop.f32.mrf.mxu0 }
 0x286   :  { %v3584_v28 = vadd.f32 %v3583_v21, %v3225_v22  ;;  %v3657_v61 = vmul.f32 %v3225_v22, %v3225_v22  ;;  %v2939_v41 = vadd.f32 %v2938_v39, %v5677_v38  ;;  %v3227_v16 = vpop.f32.mrf.mxu1 }
 0x287   :  { %v2940_v33 = vpop.f32.mrf.mxu0 }
 0x288   :  { %v3720_v31 = vadd.f32 %v3719_v10, %v3657_v61  ;;  %v3228_v6 = vadd.f32 %v3227_v16, %v2939_v41  ;;  %v3229_v57 = vpop.f32.mrf.mxu1  ;;  %v6189_v10 = vld [vmem:[#allocation4_spill] sm:$0xff] }
 0x289   :  { %v2943_v15 = vpop.f32.mrf.mxu0  ;;  %v6190_v57 = vld [vmem:[#allocation5_spill] sm:$0xff] }
 0x28a   :  { %v3585_v23 = vadd.f32 %v3584_v28, %v3228_v6  ;;  %v3658_v47 = vmul.f32 %v3228_v6, %v3228_v6  ;;  %v4623_v34 = vpack.c.bf16 %v3228_v6, %v3225_v22  ;;  %v2944_v7 = vadd.f32 %v2943_v15, %v5679_v58  ;;  %v3232_v13 = vpop.f32.mrf.mxu1 }
 0x28b   :  { %v2945_v5 = vpop.f32.mrf.mxu0 }
 0x28c   :  { %v3721_v51 = vadd.f32 %v3720_v31, %v3658_v47  ;;  %4715 = vst [vmem:[%s6159_s2 + $0x80] sm:$0xff] %v4623_v34   ;;  %v3233_v50 = vadd.f32 %v3232_v13, %v2944_v7  ;;  %v3234_v38 = vpop.f32.mrf.mxu1 }
 0x28d   :  { %v2946_v3 = vpop.f32.mrf.mxu0  ;;  %v6191_v38 = vld [vmem:[#allocation6_spill] sm:$0xff] }
 0x28e   :  { %v3586_v9 = vadd.f32 %v3585_v23, %v3233_v50  ;;  %v3659_v4 = vmul.f32 %v3233_v50, %v3233_v50  ;;  %v2947_v30 = vadd.f32 %v2946_v3, %v5693_v11  ;;  %v3235_v44 = vpop.f32.mrf.mxu1 }
 0x28f   :  { %v2948_v29 = vpop.f32.mrf.mxu0 }
 0x290   :  { %v3722_v36 = vadd.f32 %v3721_v51, %v3659_v4  ;;  %v3236_v49 = vadd.f32 %v3235_v44, %v2947_v30  ;;  %v3237_v55 = vpop.f32.mrf.mxu1 }
 0x291   :  { %v2951_v58 = vpop.f32.mrf.mxu0 }
 0x292   :  { %v3587_v0 = vadd.f32 %v3586_v9, %v3236_v49  ;;  %v3660_v63 = vmul.f32 %v3236_v49, %v3236_v49  ;;  %v4628_v53 = vpack.c.bf16 %v3236_v49, %v3233_v50  ;;  %v2952_v14 = vadd.f32 %v2951_v58, %v5695_v32  ;;  %v3240_v46 = vpop.f32.mrf.mxu1 }
 0x293   :  { %v2953_v42 = vpop.f32.mrf.mxu0 }
 0x294   :  { %v3723_v48 = vadd.f32 %v3722_v36, %v3660_v63  ;;  %4716 = vst [vmem:[%s6159_s2 + $0x88] sm:$0xff] %v4628_v53   ;;  %v3241_v18 = vadd.f32 %v3240_v46, %v2952_v14  ;;  %v3242_v11 = vpop.f32.mrf.mxu1 }
 0x295   :  { %v2954_v25 = vpop.f32.mrf.mxu0 }
 0x296   :  { %v3588_v52 = vadd.f32 %v3587_v0, %v3241_v18  ;;  %v3661_v12 = vmul.f32 %v3241_v18, %v3241_v18  ;;  %v2955_v56 = vadd.f32 %v2954_v25, %v5709_v59  ;;  %v3243_v35 = vpop.f32.mrf.mxu1  ;;  %v6192_v0 = vld [vmem:[#allocation7_spill] sm:$0xff] }
 0x297   :  { %v2956_v37 = vpop.f32.mrf.mxu0 }
 0x298   :  { %v3724_v8 = vadd.f32 %v3723_v48, %v3661_v12  ;;  %v3244_v54 = vadd.f32 %v3243_v35, %v2955_v56  ;;  %v3245_v43 = vpop.f32.mrf.mxu1 }
 0x299   :  { %v2959_v32 = vpop.f32.mrf.mxu0 }
 0x29a   :  { %v3589_v17 = vadd.f32 %v3588_v52, %v3244_v54  ;;  %v3662_v60 = vmul.f32 %v3244_v54, %v3244_v54  ;;  %v4633_v19 = vpack.c.bf16 %v3244_v54, %v3241_v18  ;;  %v2960_v20 = vadd.f32 %v2959_v32, %v6188_v26  ;;  %v3248_v45 = vpop.f32.mrf.mxu1  ;;  %v6193_v52 = vld [vmem:[#allocation8_spill] sm:$0xff] }
 0x29b   :  { %v2961_v21 = vpop.f32.mrf.mxu0 }
 0x29c   :  { %v3725_v62 = vadd.f32 %v3724_v8, %v3662_v60  ;;  %4717 = vst [vmem:[%s6159_s2 + $0x90] sm:$0xff] %v4633_v19   ;;  %v3249_v24 = vadd.f32 %v3248_v45, %v2960_v20  ;;  %v3250_v59 = vpop.f32.mrf.mxu1  ;;  %v6194_v19 = vld [vmem:[#allocation9_spill] sm:$0xff] }
 0x29d   :  { %v2962_v27 = vpop.f32.mrf.mxu0 }
 0x29e   :  { %v3590_v1 = vadd.f32 %v3589_v17, %v3249_v24  ;;  %v3663_v40 = vmul.f32 %v3249_v24, %v3249_v24  ;;  %v2963_v22 = vadd.f32 %v2962_v27, %v6189_v10  ;;  %v3251_v2 = vpop.f32.mrf.mxu1 }
 0x29f   :  { %v2964_v39 = vpop.f32.mrf.mxu0 }
 0x2a0   :  { %v3726_v28 = vadd.f32 %v3725_v62, %v3663_v40  ;;  %v3252_v61 = vadd.f32 %v3251_v2, %v2963_v22  ;;  %v3253_v41 = vpop.f32.mrf.mxu1  ;;  %v6195_v40 = vld [vmem:[#allocation10_spill] sm:$0xff] }
 0x2a1   :  { %v2967_v16 = vpop.f32.mrf.mxu0 }
 0x2a2   :  { %v3591_v33 = vadd.f32 %v3590_v1, %v3252_v61  ;;  %v3664_v31 = vmul.f32 %v3252_v61, %v3252_v61  ;;  %v4638_v6 = vpack.c.bf16 %v3252_v61, %v3249_v24  ;;  %v2968_v15 = vadd.f32 %v2967_v16, %v6190_v57  ;;  %v3256_v23 = vpop.f32.mrf.mxu1 }
 0x2a3   :  { %v2969_v47 = vpop.f32.mrf.mxu0 }
 0x2a4   :  { %v3727_v34 = vadd.f32 %v3726_v28, %v3664_v31  ;;  %4718 = vst [vmem:[%s6159_s2 + $0x98] sm:$0xff] %v4638_v6   ;;  %v3257_v7 = vadd.f32 %v3256_v23, %v2968_v15  ;;  %v3258_v13 = vpop.f32.mrf.mxu1  ;;  %v6196_v6 = vld [vmem:[#allocation11_spill] sm:$0xff] }
 0x2a5   :  { %v2970_v5 = vpop.f32.mrf.mxu0 }
 0x2a6   :  { %v3592_v51 = vadd.f32 %v3591_v33, %v3257_v7  ;;  %v3665_v50 = vmul.f32 %v3257_v7, %v3257_v7  ;;  %v2971_v3 = vadd.f32 %v2970_v5, %v6191_v38  ;;  %v3259_v9 = vpop.f32.mrf.mxu1 }
 0x2a7   :  { %v2972_v4 = vpop.f32.mrf.mxu0 }
 0x2a8   :  { %v3728_v30 = vadd.f32 %v3727_v34, %v3665_v50  ;;  %v3260_v44 = vadd.f32 %v3259_v9, %v2971_v3  ;;  %v3261_v29 = vpop.f32.mrf.mxu1  ;;  %v6197_v50 = vld [vmem:[#allocation12_spill] sm:$0xff] }
 0x2a9   :  { %v2975_v36 = vpop.f32.mrf.mxu0 }
 0x2aa   :  { %v3593_v49 = vadd.f32 %v3592_v51, %v3260_v44  ;;  %v3666_v55 = vmul.f32 %v3260_v44, %v3260_v44  ;;  %v4643_v58 = vpack.c.bf16 %v3260_v44, %v3257_v7  ;;  %v2976_v63 = vadd.f32 %v2975_v36, %v6192_v0  ;;  %v3264_v53 = vpop.f32.mrf.mxu1 }
 0x2ab   :  { %v2977_v14 = vpop.f32.mrf.mxu0 }
 0x2ac   :  { %v3729_v46 = vadd.f32 %v3728_v30, %v3666_v55  ;;  %4719 = vst [vmem:[%s6159_s2 + $0xa0] sm:$0xff] %v4643_v58   ;;  %v3265_v42 = vadd.f32 %v3264_v53, %v2976_v63  ;;  %v3266_v48 = vpop.f32.mrf.mxu1  ;;  %v6198_v58 = vld [vmem:[#allocation13_spill] sm:$0xff] }
 0x2ad   :  { %v2978_v18 = vpop.f32.mrf.mxu0 }
 0x2ae   :  { %v3594_v11 = vadd.f32 %v3593_v49, %v3265_v42  ;;  %v3667_v25 = vmul.f32 %v3265_v42, %v3265_v42  ;;  %v2979_v12 = vadd.f32 %v2978_v18, %v6193_v52  ;;  %v3267_v56 = vpop.f32.mrf.mxu1 }
 0x2af   :  { %v2980_v35 = vpop.f32.mrf.mxu0 }
 0x2b0   :  { %v3730_v37 = vadd.f32 %v3729_v46, %v3667_v25  ;;  %v3268_v8 = vadd.f32 %v3267_v56, %v2979_v12  ;;  %v3269_v54 = vpop.f32.mrf.mxu1  ;;  %v6199_v25 = vld [vmem:[#allocation14_spill] sm:$0xff] }
 0x2b1   :  { %v2983_v43 = vpop.f32.mrf.mxu0 }
 0x2b2   :  { %v3595_v32 = vadd.f32 %v3594_v11, %v3268_v8  ;;  %v3668_v17 = vmul.f32 %v3268_v8, %v3268_v8  ;;  %v4648_v60 = vpack.c.bf16 %v3268_v8, %v3265_v42  ;;  %v2984_v26 = vadd.f32 %v2983_v43, %v6194_v19  ;;  %v3272_v20 = vpop.f32.mrf.mxu1 }
 0x2b3   :  { %v2985_v45 = vpop.f32.mrf.mxu0 }
 0x2b4   :  { %v3731_v21 = vadd.f32 %v3730_v37, %v3668_v17  ;;  %4720 = vst [vmem:[%s6159_s2 + $0xa8] sm:$0xff] %v4648_v60   ;;  %v3273_v62 = vadd.f32 %v3272_v20, %v2984_v26  ;;  %v3274_v24 = vpop.f32.mrf.mxu1  ;;  %v6200_v60 = vld [vmem:[#allocation15_spill] sm:$0xff] }
 0x2b5   :  { %v2986_v59 = vpop.f32.mrf.mxu0 }
 0x2b6   :  { %v3596_v27 = vadd.f32 %v3595_v32, %v3273_v62  ;;  %v3669_v1 = vmul.f32 %v3273_v62, %v3273_v62  ;;  %v2987_v10 = vadd.f32 %v2986_v59, %v6195_v40  ;;  %v3275_v22 = vpop.f32.mrf.mxu1 }
 0x2b7   :  { %v2988_v2 = vpop.f32.mrf.mxu0 }
 0x2b8   :  { %v3732_v39 = vadd.f32 %v3731_v21, %v3669_v1  ;;  %v3276_v28 = vadd.f32 %v3275_v22, %v2987_v10  ;;  %v3277_v61 = vpop.f32.mrf.mxu1  ;;  %v6201_v1 = vld [vmem:[#allocation16_spill] sm:$0xff] }
 0x2b9   :  { %v2991_v41 = vpop.f32.mrf.mxu0 }
 0x2ba   :  { %v3597_v16 = vadd.f32 %v3596_v27, %v3276_v28  ;;  %v3670_v33 = vmul.f32 %v3276_v28, %v3276_v28  ;;  %v4653_v31 = vpack.c.bf16 %v3276_v28, %v3273_v62  ;;  %v2992_v57 = vadd.f32 %v2991_v41, %v6196_v6  ;;  %v3280_v15 = vpop.f32.mrf.mxu1 }
 0x2bb   :  { %v2993_v23 = vpop.f32.mrf.mxu0 }
 0x2bc   :  { %v3733_v47 = vadd.f32 %v3732_v39, %v3670_v33  ;;  %4721 = vst [vmem:[%s6159_s2 + $0xb0] sm:$0xff] %v4653_v31   ;;  %v3281_v34 = vadd.f32 %v3280_v15, %v2992_v57  ;;  %v3282_v7 = vpop.f32.mrf.mxu1  ;;  %v6202_v31 = vld [vmem:[#allocation17_spill] sm:$0xff] }
 0x2bd   :  { %v2994_v13 = vpop.f32.mrf.mxu0 }
 0x2be   :  { %v3598_v5 = vadd.f32 %v3597_v16, %v3281_v34  ;;  %v3671_v51 = vmul.f32 %v3281_v34, %v3281_v34  ;;  %v2995_v38 = vadd.f32 %v2994_v13, %v6197_v50  ;;  %v3283_v3 = vpop.f32.mrf.mxu1 }
 0x2bf   :  { %v2996_v9 = vpop.f32.mrf.mxu0 }
 0x2c0   :  { %v3734_v4 = vadd.f32 %v3733_v47, %v3671_v51  ;;  %v3284_v30 = vadd.f32 %v3283_v3, %v2995_v38  ;;  %v3285_v44 = vpop.f32.mrf.mxu1  ;;  %v6203_v51 = vld [vmem:[#allocation18_spill] sm:$0xff] }
 0x2c1   :  { %v2999_v29 = vpop.f32.mrf.mxu0 }
 0x2c2   :  { %v3599_v36 = vadd.f32 %v3598_v5, %v3284_v30  ;;  %v3672_v49 = vmul.f32 %v3284_v30, %v3284_v30  ;;  %v4658_v55 = vpack.c.bf16 %v3284_v30, %v3281_v34  ;;  %v3000_v0 = vadd.f32 %v2999_v29, %v6198_v58  ;;  %v3288_v63 = vpop.f32.mrf.mxu1 }
 0x2c3   :  { %v3001_v53 = vpop.f32.mrf.mxu0 }
 0x2c4   :  { %v3735_v14 = vadd.f32 %v3734_v4, %v3672_v49  ;;  %4722 = vst [vmem:[%s6159_s2 + $0xb8] sm:$0xff] %v4658_v55   ;;  %v3289_v46 = vadd.f32 %v3288_v63, %v3000_v0  ;;  %v3290_v42 = vpop.f32.mrf.mxu1  ;;  %v6204_v55 = vld [vmem:[#allocation19_spill] sm:$0xff] }
 0x2c5   :  { %v3002_v48 = vpop.f32.mrf.mxu0 }
 0x2c6   :  { %v3600_v18 = vadd.f32 %v3599_v36, %v3289_v46  ;;  %v3673_v11 = vmul.f32 %v3289_v46, %v3289_v46  ;;  %v3003_v52 = vadd.f32 %v3002_v48, %v6199_v25  ;;  %v3291_v12 = vpop.f32.mrf.mxu1 }
 0x2c7   :  { %v3004_v56 = vpop.f32.mrf.mxu0 }
 0x2c8   :  { %v3736_v35 = vadd.f32 %v3735_v14, %v3673_v11  ;;  %v3292_v37 = vadd.f32 %v3291_v12, %v3003_v52  ;;  %v3293_v8 = vpop.f32.mrf.mxu1  ;;  %v6205_v11 = vld [vmem:[#allocation20_spill] sm:$0xff] }
 0x2c9   :  { %v3007_v54 = vpop.f32.mrf.mxu0 }
 0x2ca   :  { %v3601_v43 = vadd.f32 %v3600_v18, %v3292_v37  ;;  %v3674_v32 = vmul.f32 %v3292_v37, %v3292_v37  ;;  %v4663_v17 = vpack.c.bf16 %v3292_v37, %v3289_v46  ;;  %v3008_v19 = vadd.f32 %v3007_v54, %v6200_v60  ;;  %v3296_v26 = vpop.f32.mrf.mxu1 }
 0x2cb   :  { %v3009_v20 = vpop.f32.mrf.mxu0 }
 0x2cc   :  { %v3737_v45 = vadd.f32 %v3736_v35, %v3674_v32  ;;  %4723 = vst [vmem:[%s6159_s2 + $0xc0] sm:$0xff] %v4663_v17   ;;  %v3297_v21 = vadd.f32 %v3296_v26, %v3008_v19  ;;  %v3298_v62 = vpop.f32.mrf.mxu1  ;;  %v6206_v17 = vld [vmem:[#allocation21_spill] sm:$0xff] }
 0x2cd   :  { %v3010_v24 = vpop.f32.mrf.mxu0 }
 0x2ce   :  { %v3602_v59 = vadd.f32 %v3601_v43, %v3297_v21  ;;  %v3675_v27 = vmul.f32 %v3297_v21, %v3297_v21  ;;  %v3011_v40 = vadd.f32 %v3010_v24, %v6201_v1  ;;  %v3299_v10 = vpop.f32.mrf.mxu1 }
 0x2cf   :  { %v3012_v22 = vpop.f32.mrf.mxu0 }
 0x2d0   :  { %v3738_v2 = vadd.f32 %v3737_v45, %v3675_v27  ;;  %v3300_v39 = vadd.f32 %v3299_v10, %v3011_v40  ;;  %v3301_v28 = vpop.f32.mrf.mxu1  ;;  %v6207_v27 = vld [vmem:[#allocation22_spill] sm:$0xff] }
 0x2d1   :  { %v3015_v61 = vpop.f32.mrf.mxu0 }
 0x2d2   :  { %v3603_v41 = vadd.f32 %v3602_v59, %v3300_v39  ;;  %v3676_v16 = vmul.f32 %v3300_v39, %v3300_v39  ;;  %v4668_v33 = vpack.c.bf16 %v3300_v39, %v3297_v21  ;;  %v3016_v6 = vadd.f32 %v3015_v61, %v6202_v31  ;;  %v3304_v57 = vpop.f32.mrf.mxu1 }
 0x2d3   :  { %v3017_v15 = vpop.f32.mrf.mxu0 }
 0x2d4   :  { %v3739_v23 = vadd.f32 %v3738_v2, %v3676_v16  ;;  %4724 = vst [vmem:[%s6159_s2 + $0xc8] sm:$0xff] %v4668_v33   ;;  %v3305_v47 = vadd.f32 %v3304_v57, %v3016_v6  ;;  %v3306_v34 = vpop.f32.mrf.mxu1  ;;  %v6208_v33 = vld [vmem:[#allocation23_spill] sm:$0xff] }
 0x2d5   :  { %v3018_v7 = vpop.f32.mrf.mxu0 }
 0x2d6   :  { %v3604_v13 = vadd.f32 %v3603_v41, %v3305_v47  ;;  %v3677_v5 = vmul.f32 %v3305_v47, %v3305_v47  ;;  %v3019_v50 = vadd.f32 %v3018_v7, %v6203_v51  ;;  %v3307_v38 = vpop.f32.mrf.mxu1 }
 0x2d7   :  { %v3020_v3 = vpop.f32.mrf.mxu0 }
 0x2d8   :  { %v3740_v9 = vadd.f32 %v3739_v23, %v3677_v5  ;;  %v3308_v4 = vadd.f32 %v3307_v38, %v3019_v50  ;;  %v3309_v30 = vpop.f32.mrf.mxu1  ;;  %v6209_v5 = vld [vmem:[#allocation24_spill] sm:$0xff] }
 0x2d9   :  { %v3023_v44 = vpop.f32.mrf.mxu0 }
 0x2da   :  { %v3605_v29 = vadd.f32 %v3604_v13, %v3308_v4  ;;  %v3678_v36 = vmul.f32 %v3308_v4, %v3308_v4  ;;  %v4673_v49 = vpack.c.bf16 %v3308_v4, %v3305_v47  ;;  %v3024_v58 = vadd.f32 %v3023_v44, %v6204_v55  ;;  %v3312_v0 = vpop.f32.mrf.mxu1 }
 0x2db   :  { %v3025_v63 = vpop.f32.mrf.mxu0 }
 0x2dc   :  { %v3741_v53 = vadd.f32 %v3740_v9, %v3678_v36  ;;  %4725 = vst [vmem:[%s6159_s2 + $0xd0] sm:$0xff] %v4673_v49   ;;  %v3313_v14 = vadd.f32 %v3312_v0, %v3024_v58  ;;  %v3314_v46 = vpop.f32.mrf.mxu1  ;;  %v6210_v49 = vld [vmem:[#allocation25_spill] sm:$0xff] }
 0x2dd   :  { %v3026_v42 = vpop.f32.mrf.mxu0 }
 0x2de   :  { %v3606_v48 = vadd.f32 %v3605_v29, %v3313_v14  ;;  %v3679_v18 = vmul.f32 %v3313_v14, %v3313_v14  ;;  %v3027_v25 = vadd.f32 %v3026_v42, %v6205_v11  ;;  %v3315_v52 = vpop.f32.mrf.mxu1 }
 0x2df   :  { %v3028_v12 = vpop.f32.mrf.mxu0 }
 0x2e0   :  { %v3742_v56 = vadd.f32 %v3741_v53, %v3679_v18  ;;  %v3316_v35 = vadd.f32 %v3315_v52, %v3027_v25  ;;  %v3317_v37 = vpop.f32.mrf.mxu1  ;;  %v6211_v18 = vld [vmem:[#allocation26_spill] sm:$0xff] }
 0x2e1   :  { %v3031_v8 = vpop.f32.mrf.mxu0 }
 0x2e2   :  { %v3607_v54 = vadd.f32 %v3606_v48, %v3316_v35  ;;  %v3680_v43 = vmul.f32 %v3316_v35, %v3316_v35  ;;  %v4678_v32 = vpack.c.bf16 %v3316_v35, %v3313_v14  ;;  %v3032_v60 = vadd.f32 %v3031_v8, %v6206_v17  ;;  %v3320_v19 = vpop.f32.mrf.mxu1 }
 0x2e3   :  { %v3033_v26 = vpop.f32.mrf.mxu0 }
 0x2e4   :  { %v3743_v20 = vadd.f32 %v3742_v56, %v3680_v43  ;;  %4726 = vst [vmem:[%s6159_s2 + $0xd8] sm:$0xff] %v4678_v32   ;;  %v3321_v45 = vadd.f32 %v3320_v19, %v3032_v60  ;;  %v3322_v21 = vpop.f32.mrf.mxu1  ;;  %v6212_v32 = vld [vmem:[#allocation27_spill] sm:$0xff] }
 0x2e5   :  { %v3034_v62 = vpop.f32.mrf.mxu0 }
 0x2e6   :  { %v3608_v24 = vadd.f32 %v3607_v54, %v3321_v45  ;;  %v3681_v59 = vmul.f32 %v3321_v45, %v3321_v45  ;;  %v3035_v1 = vadd.f32 %v3034_v62, %v6207_v27  ;;  %v3323_v40 = vpop.f32.mrf.mxu1 }
 0x2e7   :  { %v3036_v10 = vpop.f32.mrf.mxu0 }
 0x2e8   :  { %v3744_v22 = vadd.f32 %v3743_v20, %v3681_v59  ;;  %v3324_v2 = vadd.f32 %v3323_v40, %v3035_v1  ;;  %v3325_v39 = vpop.f32.mrf.mxu1  ;;  %v6213_v59 = vld [vmem:[#allocation28_spill] sm:$0xff] }
 0x2e9   :  { %v3039_v28 = vpop.f32.mrf.mxu0 }
 0x2ea   :  { %v3609_v61 = vadd.f32 %v3608_v24, %v3324_v2  ;;  %v3682_v41 = vmul.f32 %v3324_v2, %v3324_v2  ;;  %v4683_v16 = vpack.c.bf16 %v3324_v2, %v3321_v45  ;;  %v3040_v31 = vadd.f32 %v3039_v28, %v6208_v33  ;;  %v3328_v6 = vpop.f32.mrf.mxu1 }
 0x2eb   :  { %v3041_v57 = vpop.f32.mrf.mxu0 }
 0x2ec   :  { %v3745_v15 = vadd.f32 %v3744_v22, %v3682_v41  ;;  %4727 = vst [vmem:[%s6159_s2 + $0xe0] sm:$0xff] %v4683_v16   ;;  %v3329_v23 = vadd.f32 %v3328_v6, %v3040_v31  ;;  %v3330_v47 = vpop.f32.mrf.mxu1 }
 0x2ed   :  { %v3042_v34 = vpop.f32.mrf.mxu0 }
 0x2ee   :  { %v3610_v7 = vadd.f32 %v3609_v61, %v3329_v23  ;;  %v3683_v13 = vmul.f32 %v3329_v23, %v3329_v23  ;;  %v3043_v51 = vadd.f32 %v3042_v34, %v6209_v5  ;;  %v3331_v50 = vpop.f32.mrf.mxu1 }
 0x2ef   :  { %v3044_v38 = vpop.f32.mrf.mxu0 }
 0x2f0   :  { %v3746_v3 = vadd.f32 %v3745_v15, %v3683_v13  ;;  %v3332_v9 = vadd.f32 %v3331_v50, %v3043_v51  ;;  %v3333_v4 = vpop.f32.mrf.mxu1 }
 0x2f1   :  { %v3047_v30 = vpop.f32.mrf.mxu0 }
 0x2f2   :  { %v3611_v44 = vadd.f32 %v3610_v7, %v3332_v9  ;;  %v3684_v29 = vmul.f32 %v3332_v9, %v3332_v9  ;;  %v4688_v36 = vpack.c.bf16 %v3332_v9, %v3329_v23  ;;  %v3048_v55 = vadd.f32 %v3047_v30, %v6210_v49  ;;  %v3336_v58 = vpop.f32.mrf.mxu1 }
 0x2f3   :  { %v3049_v0 = vpop.f32.mrf.mxu0 }
 0x2f4   :  { %v3747_v63 = vadd.f32 %v3746_v3, %v3684_v29  ;;  %4728 = vst [vmem:[%s6159_s2 + $0xe8] sm:$0xff] %v4688_v36   ;;  %v3337_v53 = vadd.f32 %v3336_v58, %v3048_v55  ;;  %v3338_v14 = vpop.f32.mrf.mxu1 }
 0x2f5   :  { %v3050_v46 = vpop.f32.mrf.mxu0 }
 0x2f6   :  { %v3612_v42 = vadd.f32 %v3611_v44, %v3337_v53  ;;  %v3685_v48 = vmul.f32 %v3337_v53, %v3337_v53  ;;  %v3051_v11 = vadd.f32 %v3050_v46, %v6211_v18  ;;  %v3339_v25 = vpop.f32.mrf.mxu1 }
 0x2f7   :  { %v3052_v52 = vpop.f32.mrf.mxu0 }
 0x2f8   :  { %v3748_v12 = vadd.f32 %v3747_v63, %v3685_v48  ;;  %v3340_v56 = vadd.f32 %v3339_v25, %v3051_v11  ;;  %v3341_v35 = vpop.f32.mrf.mxu1 }
 0x2f9   :  { %v3055_v37 = vpop.f32.mrf.mxu0 }
 0x2fa   :  { %v3613_v8 = vadd.f32 %v3612_v42, %v3340_v56  ;;  %v3686_v54 = vmul.f32 %v3340_v56, %v3340_v56  ;;  %v4693_v43 = vpack.c.bf16 %v3340_v56, %v3337_v53  ;;  %v3056_v17 = vadd.f32 %v3055_v37, %v6212_v32  ;;  %v3344_v60 = vpop.f32.mrf.mxu1 }
 0x2fb   :  { %v3057_v19 = vpop.f32.mrf.mxu0 }
 0x2fc   :  { %v3749_v26 = vadd.f32 %v3748_v12, %v3686_v54  ;;  %4729 = vst [vmem:[%s6159_s2 + $0xf0] sm:$0xff] %v4693_v43   ;;  %v3345_v20 = vadd.f32 %v3344_v60, %v3056_v17  ;;  %v3346_v45 = vpop.f32.mrf.mxu1 }
 0x2fd   :  { %v3058_v21 = vpop.f32.mrf.mxu0 }
 0x2fe   :  { %v3614_v62 = vadd.f32 %v3613_v8, %v3345_v20  ;;  %v3687_v24 = vmul.f32 %v3345_v20, %v3345_v20  ;;  %v3059_v27 = vadd.f32 %v3058_v21, %v6213_v59  ;;  %v3347_v1 = vpop.f32.mrf.mxu1 }
 0x2ff   :  { %v3060_v40 = vpop.f32.mrf.mxu0 }
 0x300   :  { %v3750_v10 = vadd.f32 %v3749_v26, %v3687_v24  ;;  %v3348_v22 = vadd.f32 %v3347_v1, %v3059_v27  ;;  %v3349_v2 = vpop.f32.mrf.mxu1 }
 0x302   :  { %v3615_v39 = vadd.f32 %v3614_v62, %v3348_v22  ;;  %v3688_v28 = vmul.f32 %v3348_v22, %v3348_v22  ;;  %v4698_v61 = vpack.c.bf16 %v3348_v22, %v3345_v20 }
 0x304   :  { %v3616_v41 = vrot.slane %v3615_v39, 4  ;;  %v3751_v16 = vadd.f32 %v3750_v10, %v3688_v28  ;;  %4730 = vst [vmem:[%s6159_s2 + $0xf8] sm:$0xff] %v4698_v61  }
 0x306   :  { %v3617_v33 = vadd.f32 %v3616_v41, %v3615_v39  ;;  %v3752_v31 = vrot.slane %v3751_v16, 4 }
 0x308   :  { %v3618_v6 = vrot.slane %v3617_v33, 2  ;;  %v3753_v57 = vadd.f32 %v3752_v31, %v3751_v16 }
 0x30a   :  { %v3619_v15 = vadd.f32 %v3618_v6, %v3617_v33  ;;  %v3754_v23 = vrot.slane %v3753_v57, 2 }
 0x30c   :  { %v3620_v47 = vrot.slane %v3619_v15, 1  ;;  %v3755_v34 = vadd.f32 %v3754_v23, %v3753_v57 }
 0x30e   :  { %v3621_v7 = vadd.f32 %v3620_v47, %v3619_v15  ;;  %v3756_v13 = vrot.slane %v3755_v34, 1 }
 0x310   :  { %v3757_v5 = vadd.f32 %v3756_v13, %v3755_v34  ;;  %3623 = vst [vmem:[%s6160_s3] sm:$0xff] %v3621_v7 }
 0x312   :  { %3759 = vst [vmem:[%s6161_s4] sm:$0xff] %v3757_v5 }

// kernel: discriminator_forward.12
= control target key start
LH: loop header
LB: loop body
LE: loop exit
PB: predicated region body
PF: predicated region fallthrough
CT: control target
= control target key end

     0   :  { %s1092_s18 = smov 0   ;;  %s1094_s19 = smov 0   ;;  %s1276_s0 = inlined_call_operand.vmem [shape: bf16[128,256], index: 0, kind: input, shape index: {}]   ;;  %s1277_s1 = inlined_call_operand.vmem [shape: f32[8,256], index: 1, kind: input, shape index: {}]   ;;  %s1278_s2 = inlined_call_operand.vmem [shape: f32[8,256], index: 2, kind: input, shape index: {}]   ;;  %s1279_s3 = inlined_call_operand.vmem [shape: f32[1,256], index: 3, kind: input, shape index: {}]   ;;  %s1280_s4 = inlined_call_operand.vmem [shape: f32[1,256], index: 4, kind: input, shape index: {}]   ;;  %s1281_s5 = inlined_call_operand.vmem [shape: bf16[128,256], index: 5, kind: output, shape index: {}]  }
   0x1   :  { %s1096_s20 = smov 0   ;;  %s1098_s21 = smov 0  }
   0x2   :  { %s1100_s22 = smov 0  }
   0x3 LB: > { %s24_s23 = sadd.s32 1, %s1056_s21  ;;  %s847_s24 = sadd.s32 4294967295, %s1060_s22   ;;  %s1060_s22 = sphi %s1100_s22, %s15_s22   ;;  %s1056_s21 = sphi %s1098_s21, %s1286_s21   ;;  %s1052_s20 = sphi %s1096_s20, %s1285_s20   ;;  %s1048_s19 = sphi %s1094_s19, %s1284_s19   ;;  %s1044_s18 = sphi %s1092_s18, %s1283_s18  }
   0x4   : > { %p25_p0 = scmp.ge.s32.totalorder %s24_s23, 2  ;;  %p43_p1 = scmp.ne.s32.totalorder %s1048_s19, %s1044_s18 }
   0x5   : > { %p44_p2 = scmp.eq.s32.totalorder %s1060_s22, 0  ;;  %p179_p4 = scmp.eq.s32.totalorder %s847_s24, 1 }
   0x6   : > { %s1288_s23 = smov (%p25_p0, %s24_s23), 0  ;;  %s36_s26 = sadd.s32 1, %s1048_s19 }
   0x7   : > { %p45_p3 = por %p44_p2, %p43_p1  ;;  %s32_s25 = ssub.s32 %s1056_s21, %s1288_s23 }
   0x8   : > { %p34_p5 = scmp.eq.s32.totalorder %s32_s25, 0  ;;  %p1127_p6 = por %p179_p4, %p43_p1 }
   0x9   : > { %p850_p7 = scmp.ge.s32.totalorder %s1060_s22, 2 }
   0xa   : > { %s1132_s28 = scalar_select %p34_p5, %s1048_s19, %s36_s26  }
   0xb   : > { %201 = sbr.rel (%p850_p7) target bundleno = 30 (0x1e), region = 16 }
  0x10   : > { %204 = sbr.rel (!%p45_p3) target bundleno = 30 (0x1e), region = 20  ;;  %s206_s29 = sand.u32 (%p45_p3), 1, %s1048_s19  }
  0x11   : > { %s852_s30 = sshll.u32 (%p45_p3), %s1056_s21, 2  ;;  %s851_s6 = sshll.u32 (%p45_p3), %s206_s29, 6 }
  0x12   : > { %s1140_s9 = scalar_lea.vmem (%p45_p3), %s1276_s0, %s852_s30  ;;  %s208_s10 = scalar_lea.vmem (%p45_p3), [#allocation2], %s851_s6 }
  0x13   : > { %v230_v0 = vld [vmem:[%s1140_s9] sm:$0xf] (%p45_p3)  ;;  %v232_v1 = vld [vmem:[%s1140_s9 + $0x8] sm:$0xf] (%p45_p3)  ;;  %v234_v2 = vld [vmem:[%s1140_s9 + $0x10] sm:$0xf] (%p45_p3) }
  0x14   : > { %231 = vst [vmem:[%s208_s10] sm:$0xf] (%p45_p3), %v230_v0  ;;  %233 = vst [vmem:[%s208_s10 + $0x4] sm:$0xf] (%p45_p3), %v232_v1  ;;  %v236_v3 = vld [vmem:[%s1140_s9 + $0x18] sm:$0xf] (%p45_p3) }
  0x15   : > { %v238_v4 = vld [vmem:[%s1140_s9 + $0x20] sm:$0xf]  ;;  %235 = vst [vmem:[%s208_s10 + $0x8] sm:$0xf] %v234_v2  ;;  %237 = vst [vmem:[%s208_s10 + $0xc] sm:$0xf] %v236_v3 }
  0x16   : > { %239 = vst [vmem:[%s208_s10 + $0x10] sm:$0xf] %v238_v4  ;;  %v240_v5 = vld [vmem:[%s1140_s9 + $0x28] sm:$0xf]  ;;  %v242_v6 = vld [vmem:[%s1140_s9 + $0x30] sm:$0xf] }
  0x17   : > { %v244_v7 = vld [vmem:[%s1140_s9 + $0x38] sm:$0xf]  ;;  %241 = vst [vmem:[%s208_s10 + $0x14] sm:$0xf] %v240_v5  ;;  %243 = vst [vmem:[%s208_s10 + $0x18] sm:$0xf] %v242_v6 }
  0x18   : > { %245 = vst [vmem:[%s208_s10 + $0x1c] sm:$0xf] %v244_v7  ;;  %v246_v8 = vld [vmem:[%s1140_s9 + $0x40] sm:$0xf]  ;;  %v248_v9 = vld [vmem:[%s1140_s9 + $0x48] sm:$0xf] }
  0x19   : > { %v250_v10 = vld [vmem:[%s1140_s9 + $0x50] sm:$0xf]  ;;  %247 = vst [vmem:[%s208_s10 + $0x20] sm:$0xf] %v246_v8  ;;  %249 = vst [vmem:[%s208_s10 + $0x24] sm:$0xf] %v248_v9 }
  0x1a   : > { %251 = vst [vmem:[%s208_s10 + $0x28] sm:$0xf] %v250_v10  ;;  %v252_v11 = vld [vmem:[%s1140_s9 + $0x58] sm:$0xf]  ;;  %v254_v12 = vld [vmem:[%s1140_s9 + $0x60] sm:$0xf] }
  0x1b   : > { %v256_v13 = vld [vmem:[%s1140_s9 + $0x68] sm:$0xf]  ;;  %253 = vst [vmem:[%s208_s10 + $0x2c] sm:$0xf] %v252_v11  ;;  %255 = vst [vmem:[%s208_s10 + $0x30] sm:$0xf] %v254_v12 }
  0x1c   : > { %257 = vst [vmem:[%s208_s10 + $0x34] sm:$0xf] %v256_v13  ;;  %v258_v14 = vld [vmem:[%s1140_s9 + $0x70] sm:$0xf]  ;;  %v260_v15 = vld [vmem:[%s1140_s9 + $0x78] sm:$0xf] }
  0x1d   : > { %259 = vst [vmem:[%s208_s10 + $0x38] sm:$0xf] %v258_v14  ;;  %261 = vst [vmem:[%s208_s10 + $0x3c] sm:$0xf] %v260_v15 }
  0x1e PF: > { %p853_p8 = scmp.ge.s32.totalorder %s1060_s22, 1  ;;  %p342_p9 = scmp.lt.s32.totalorder %s1060_s22, 3 }
  0x20   : > { %p343_p10 = pnand %p853_p8, %p342_p9 }
  0x21   : > { %p390_p11 = scmp.lt.s32.totalorder (!%p343_p10), %s1052_s20, 1  ;;  %s349_s25 = sand.u32 (!%p343_p10), 1, %s1044_s18  }
  0x22   : > { %346 = sbr.rel (%p343_p10) target bundleno = 109 (0x6d), region = 77  ;;  %s1172_s26 = sshll.u32 (!%p343_p10), %s349_s25, 6 }
  0x23   : > { %s351_s7 = scalar_lea.vmem (!%p343_p10), [#allocation2], %s1172_s26  ;;  %s1214_s18 = scalar_lea.vmem (!%p343_p10), [#allocation3], %s1172_s26 }
  0x27   : > { %s1162_s11 = scalar_select %p390_p11, %s1052_s20, 1  ;;  %v452_v24 = vlaneseq  ;;  %v895_v26 = vld [vmem:[%s351_s7] sm:$0xff]   ;;  %v966_v27 = vld [vmem:[%s351_s7 + $0x8] sm:$0xff]   ;;  %v967_v29 = vld [vmem:[%s351_s7 + $0x10] sm:$0xff]  }
  0x28   : > { %v968_v31 = vld [vmem:[%s351_s7 + $0x18] sm:$0xff]   ;;  %v969_v32 = vld [vmem:[%s351_s7 + $0x20] sm:$0xff]   ;;  %v896_v34 = vunpack.c.l.bf16 %v895_v26  ;;  %v897_v35 = vunpack.c.h.bf16 %v895_v26  ;;  %v900_v36 = vunpack.c.l.bf16 %v966_v27  ;;  %v970_v37 = vld [vmem:[%s351_s7 + $0x28] sm:$0xff]   ;;  %v901_v39 = vunpack.c.h.bf16 %v966_v27 }
  0x29   : > { %s856_s12 = sshll.u32 %s1162_s11, 3  ;;  %s400_s6 = scalar_lea.vmem %s1279_s3, %s1162_s11  ;;  %v453_v25 = vshrl.u32 %v452_v24, 7  ;;  %v904_v40 = vunpack.c.l.bf16 %v967_v29  ;;  %v905_v41 = vunpack.c.h.bf16 %v967_v29  ;;  %v971_v42 = vld [vmem:[%s351_s7 + $0x30] sm:$0xff]   ;;  %v1183_v43 = vld [vmem:[%s351_s7 + $0x38] sm:$0xff]   ;;  %v908_v45 = vunpack.c.l.bf16 %v968_v31 }
  0x2a   : > { %s393_s15 = scalar_lea.vmem %s1277_s1, %s856_s12  ;;  %s397_s24 = scalar_lea.vmem %s1278_s2, %s856_s12  ;;  %v412_v28 = vld [vmem:[%s400_s6] sm:$0x1]  ;;  %v909_v46 = vunpack.c.h.bf16 %v968_v31  ;;  %v912_v47 = vunpack.c.l.bf16 %v969_v32  ;;  %v913_v48 = vunpack.c.h.bf16 %v969_v32  ;;  %v916_v51 = vunpack.c.l.bf16 %v970_v37 }
  0x2b   : > { %v405_v16 = vld [vmem:[%s393_s15] sm:$0xff]  ;;  %s403_s10 = scalar_lea.vmem %s1280_s4, %s1162_s11  ;;  %v454_v30 = vsub.s32 0, %v453_v25  ;;  %v917_v52 = vunpack.c.h.bf16 %v970_v37  ;;  %v920_v53 = vunpack.c.l.bf16 %v971_v42  ;;  %v921_v54 = vunpack.c.h.bf16 %v971_v42  ;;  %s875_s11 = sshll.u32 (%p1127_p6), %s1052_s20, 2 }
  0x2c   : > { %v406_v17 = vld [vmem:[%s397_s24] sm:$0xff]  ;;  %v407_v18 = vmul.f32 0.0078125, %v405_v16  ;;  %v924_v55 = vunpack.c.l.bf16 %v1183_v43  ;;  %v925_v56 = vunpack.c.h.bf16 %v1183_v43  ;;  %s634_s14 = scalar_lea.vmem (%p1127_p6), %s1281_s5, %s875_s11 }
  0x2d   : > { %v408_v19 = vmul.f32 0.0078125, %v406_v17  ;;  %v416_v44 = vld [vmem:[%s403_s10] sm:$0x1] }
  0x2e   : > { %v409_v20 = vmul.f32 %v407_v18, %v407_v18 }
  0x30   : > { %v410_v21 = vsub.f32 %v408_v19, %v409_v20 }
  0x32   : > { %v411_v22 = vmax.f32 %v410_v21, 0.0 }
  0x34   : > { %v413_v23 = vadd.f32 1e-05, %v411_v22 }
  0x36   : > { %1020 = vrsqrt.f32 %v413_v23 }
  0x43   : > { %v1021_v33 = vpop.eup %1020 }
  0x44   : > { %v415_v38 = vmul.f32 %v1021_v33, %v412_v28 }
  0x46   : > { %v417_v49 = vmul.f32 %v415_v38, %v407_v18  ;;  %v1185_v50 = vrot.slane %v415_v38, %v454_v30 }
  0x48   : > { %v418_v57 = vsub.f32 %v416_v44, %v417_v49  ;;  %v457_v58 = vmul.f32 %v896_v34, %v1185_v50  ;;  %v458_v59 = vmul.f32 %v897_v35, %v1185_v50  ;;  %v459_v60 = vmul.f32 %v900_v36, %v1185_v50 }
  0x49   : > { %v460_v61 = vmul.f32 %v901_v39, %v1185_v50  ;;  %v461_v62 = vmul.f32 %v904_v40, %v1185_v50  ;;  %v462_v63 = vmul.f32 %v905_v41, %v1185_v50  ;;  %v463_v0 = vmul.f32 %v908_v45, %v1185_v50 }
  0x4a   : > { %v1196_v1 = vrot.slane %v418_v57, %v454_v30  ;;  %v464_v2 = vmul.f32 %v909_v46, %v1185_v50  ;;  %v465_v3 = vmul.f32 %v912_v47, %v1185_v50  ;;  %v466_v4 = vmul.f32 %v913_v48, %v1185_v50 }
  0x4b   : > { %v467_v5 = vmul.f32 %v916_v51, %v1185_v50  ;;  %v468_v6 = vmul.f32 %v917_v52, %v1185_v50  ;;  %v469_v7 = vmul.f32 %v920_v53, %v1185_v50  ;;  %v470_v8 = vmul.f32 %v921_v54, %v1185_v50 }
  0x4c   : > { %v479_v9 = vadd.f32 %v1196_v1, %v457_v58  ;;  %v480_v10 = vadd.f32 %v1196_v1, %v458_v59  ;;  %v481_v11 = vadd.f32 %v1196_v1, %v459_v60  ;;  %v482_v12 = vadd.f32 %v1196_v1, %v460_v61 }
  0x4d   : > { %v483_v13 = vadd.f32 %v1196_v1, %v461_v62  ;;  %v484_v14 = vadd.f32 %v1196_v1, %v462_v63  ;;  %v485_v15 = vadd.f32 %v1196_v1, %v463_v0  ;;  %v486_v16 = vadd.f32 %v1196_v1, %v464_v2 }
  0x4e   : > { %vm495_vm0 = vcmp.ge.f32.partialorder %v479_v9, 0.0  ;;  %vm496_vm1 = vcmp.ge.f32.partialorder %v480_v10, 0.0  ;;  %v511_v17 = vmul.f32 0.2, %v479_v9  ;;  %v512_v18 = vmul.f32 0.2, %v480_v10 }
  0x4f   : > { %vm497_vm2 = vcmp.ge.f32.partialorder %v481_v11, 0.0  ;;  %vm498_vm3 = vcmp.ge.f32.partialorder %v482_v12, 0.0  ;;  %v513_v19 = vmul.f32 0.2, %v481_v11  ;;  %v514_v20 = vmul.f32 0.2, %v482_v12 }
  0x50   : > { %v527_v21 = vsel %vm495_vm0, %v479_v9, %v511_v17  ;;  %v528_v22 = vsel %vm496_vm1, %v480_v10, %v512_v18  ;;  %vm499_vm4 = vcmp.ge.f32.partialorder %v483_v13, 0.0  ;;  %vm500_vm5 = vcmp.ge.f32.partialorder %v484_v14, 0.0 }
  0x51   : > { %v929_v23 = vpack.c.bf16 %v528_v22, %v527_v21  ;;  %v529_v24 = vsel %vm497_vm2, %v481_v11, %v513_v19  ;;  %v530_v25 = vsel %vm498_vm3, %v482_v12, %v514_v20  ;;  %v515_v26 = vmul.f32 0.2, %v483_v13 }
  0x52   : > { %v934_v27 = vpack.c.bf16 %v530_v25, %v529_v24  ;;  %v516_v28 = vmul.f32 0.2, %v484_v14  ;;  %vm501_vm6 = vcmp.ge.f32.partialorder %v485_v15, 0.0  ;;  %vm502_vm7 = vcmp.ge.f32.partialorder %v486_v16, 0.0 }
  0x53   : > { %930 = vst [vmem:[%s1214_s18] sm:$0xff] %v929_v23   ;;  %v531_v29 = vsel %vm499_vm4, %v483_v13, %v515_v26  ;;  %v517_v30 = vmul.f32 0.2, %v485_v15  ;;  %v518_v31 = vmul.f32 0.2, %v486_v16  ;;  %v487_v32 = vadd.f32 %v1196_v1, %v465_v3 }
  0x54   : > { %973 = vst [vmem:[%s1214_s18 + $0x8] sm:$0xff] %v934_v27   ;;  %v532_v33 = vsel %vm500_vm5, %v484_v14, %v516_v28  ;;  %v488_v34 = vadd.f32 %v1196_v1, %v466_v4  ;;  %v489_v35 = vadd.f32 %v1196_v1, %v467_v5  ;;  %v490_v36 = vadd.f32 %v1196_v1, %v468_v6 }
  0x55   : > { %v939_v37 = vpack.c.bf16 %v532_v33, %v531_v29  ;;  %v533_v38 = vsel %vm501_vm6, %v485_v15, %v517_v30  ;;  %v534_v39 = vsel %vm502_vm7, %v486_v16, %v518_v31  ;;  %vm503_vm8 = vcmp.ge.f32.partialorder %v487_v32, 0.0 }
  0x56   : > { %v944_v40 = vpack.c.bf16 %v534_v39, %v533_v38  ;;  %vm504_vm9 = vcmp.ge.f32.partialorder %v488_v34, 0.0  ;;  %v519_v41 = vmul.f32 0.2, %v487_v32  ;;  %v520_v42 = vmul.f32 0.2, %v488_v34 }
  0x57   : > { %974 = vst [vmem:[%s1214_s18 + $0x10] sm:$0xff] %v939_v37   ;;  %vm505_vm10 = vcmp.ge.f32.partialorder %v489_v35, 0.0  ;;  %vm506_vm11 = vcmp.ge.f32.partialorder %v490_v36, 0.0  ;;  %v521_v44 = vmul.f32 0.2, %v489_v35  ;;  %v491_v48 = vadd.f32 %v1196_v1, %v469_v7 }
  0x58   : > { %v522_v45 = vmul.f32 0.2, %v490_v36  ;;  %975 = vst [vmem:[%s1214_s18 + $0x18] sm:$0xff] %v944_v40   ;;  %v535_v46 = vsel %vm503_vm8, %v487_v32, %v519_v41  ;;  %v536_v47 = vsel %vm504_vm9, %v488_v34, %v520_v42  ;;  %v492_v49 = vadd.f32 %v1196_v1, %v470_v8 }
  0x59   : > { %v949_v51 = vpack.c.bf16 %v536_v47, %v535_v46  ;;  %v537_v52 = vsel %vm505_vm10, %v489_v35, %v521_v44  ;;  %v471_v54 = vmul.f32 %v924_v55, %v1185_v50  ;;  %vm507_vm12 = vcmp.ge.f32.partialorder %v491_v48, 0.0 }
  0x5a   : > { %v538_v53 = vsel %vm506_vm11, %v490_v36, %v522_v45  ;;  %vm508_vm13 = vcmp.ge.f32.partialorder %v492_v49, 0.0  ;;  %v523_v58 = vmul.f32 0.2, %v491_v48  ;;  %v524_v59 = vmul.f32 0.2, %v492_v49 }
  0x5b   : > { %v954_v57 = vpack.c.bf16 %v538_v53, %v537_v52  ;;  %976 = vst [vmem:[%s1214_s18 + $0x20] sm:$0xff] %v949_v51   ;;  %v472_v60 = vmul.f32 %v925_v56, %v1185_v50  ;;  %v493_v61 = vadd.f32 %v1196_v1, %v471_v54  ;;  %v651_v43 = vld [vmem:[%s1214_s18] sm:$0xf] (%p1127_p6)  ;;  %v653_v50 = vld [vmem:[%s1214_s18 + $0x4] sm:$0xf] (%p1127_p6) }
  0x5c   : > { %v539_v62 = vsel %vm507_vm12, %v491_v48, %v523_v58  ;;  %v540_v63 = vsel %vm508_vm13, %v492_v49, %v524_v59  ;;  %v655_v56 = vld [vmem:[%s1214_s18 + $0x8] sm:$0xf] (%p1127_p6)  ;;  %652 = vst [vmem:[%s634_s14] sm:$0xf] (%p1127_p6), %v651_v43  ;;  %654 = vst [vmem:[%s634_s14 + $0x8] sm:$0xf] (%p1127_p6), %v653_v50 }
  0x5d   : > { %977 = vst [vmem:[%s1214_s18 + $0x28] sm:$0xff] %v954_v57   ;;  %v494_v0 = vadd.f32 %v1196_v1, %v472_v60  ;;  %vm509_vm14 = vcmp.ge.f32.partialorder %v493_v61, 0.0  ;;  %v525_v55 = vmul.f32 0.2, %v493_v61  ;;  %v959_v2 = vpack.c.bf16 %v540_v63, %v539_v62  ;;  %v657_v1 = vld [vmem:[%s1214_s18 + $0xc] sm:$0xf] (%p1127_p6) }
  0x5e   : > { %v659_v7 = vld [vmem:[%s1214_s18 + $0x10] sm:$0xf] (%p1127_p6)  ;;  %656 = vst [vmem:[%s634_s14 + $0x10] sm:$0xf] (%p1127_p6), %v655_v56  ;;  %658 = vst [vmem:[%s634_s14 + $0x18] sm:$0xf] (%p1127_p6), %v657_v1 }
  0x5f   : > { %vm510_vm15 = vcmp.ge.f32.partialorder %v494_v0, 0.0  ;;  %v526_v3 = vmul.f32 0.2, %v494_v0  ;;  %v541_v4 = vsel %vm509_vm14, %v493_v61, %v525_v55  ;;  %978 = vst [vmem:[%s1214_s18 + $0x30] sm:$0xff] %v959_v2   ;;  %660 = vst [vmem:[%s634_s14 + $0x20] sm:$0xf] (%p1127_p6), %v659_v7 }
  0x60   : > { %629 = sbr.rel (!%p1127_p6) target bundleno = 109 (0x6d), region = 85  ;;  %v661_v8 = vld [vmem:[%s1214_s18 + $0x14] sm:$0xf] (%p1127_p6)  ;;  %v663_v9 = vld [vmem:[%s1214_s18 + $0x18] sm:$0xf] (%p1127_p6) }
  0x61   : > { %v542_v5 = vsel %vm510_vm15, %v494_v0, %v526_v3  ;;  %v665_v10 = vld [vmem:[%s1214_s18 + $0x1c] sm:$0xf] (%p1127_p6)  ;;  %662 = vst [vmem:[%s634_s14 + $0x28] sm:$0xf] (%p1127_p6), %v661_v8  ;;  %664 = vst [vmem:[%s634_s14 + $0x30] sm:$0xf] (%p1127_p6), %v663_v9 }
  0x62   : > { %v964_v6 = vpack.c.bf16 %v542_v5, %v541_v4  ;;  %666 = vst [vmem:[%s634_s14 + $0x38] sm:$0xf] (%p1127_p6), %v665_v10  ;;  %v667_v11 = vld [vmem:[%s1214_s18 + $0x20] sm:$0xf] (%p1127_p6)  ;;  %v669_v12 = vld [vmem:[%s1214_s18 + $0x24] sm:$0xf] (%p1127_p6) }
  0x63   : > { %668 = vst [vmem:[%s634_s14 + $0x40] sm:$0xf] (%p1127_p6), %v667_v11  ;;  %670 = vst [vmem:[%s634_s14 + $0x48] sm:$0xf] (%p1127_p6), %v669_v12 }
  0x64   : > { %979 = vst [vmem:[%s1214_s18 + $0x38] sm:$0xff] %v964_v6   ;;  %v671_v13 = vld [vmem:[%s1214_s18 + $0x28] sm:$0xf] (%p1127_p6)  ;;  %v673_v14 = vld [vmem:[%s1214_s18 + $0x2c] sm:$0xf] (%p1127_p6) }
  0x65   : > { %672 = vst [vmem:[%s634_s14 + $0x50] sm:$0xf] %v671_v13  ;;  %674 = vst [vmem:[%s634_s14 + $0x58] sm:$0xf] %v673_v14 }
  0x66   : > { %v675_v15 = vld [vmem:[%s1214_s18 + $0x30] sm:$0xf]  ;;  %v677_v16 = vld [vmem:[%s1214_s18 + $0x34] sm:$0xf] }
  0x67   : > { %676 = vst [vmem:[%s634_s14 + $0x60] sm:$0xf] %v675_v15  ;;  %678 = vst [vmem:[%s634_s14 + $0x68] sm:$0xf] %v677_v16 }
  0x6b   : > { %v679_v17 = vld [vmem:[%s1214_s18 + $0x38] sm:$0xf]  ;;  %v681_v18 = vld [vmem:[%s1214_s18 + $0x3c] sm:$0xf] }
  0x6c   : > { %680 = vst [vmem:[%s634_s14 + $0x70] sm:$0xf] %v679_v17  ;;  %682 = vst [vmem:[%s634_s14 + $0x78] sm:$0xf] %v681_v18 }
  0x6d PF: > { %s15_s22 = sadd.s32 1, %s1060_s22   ;;  %s1283_s18 = smov %s1048_s19 }
  0x6e   : > { %p12_p12 = scmp.ge.s32.totalorder %s15_s22, 4   ;;  %s1284_s19 = smov %s1132_s28 }
  0x6f   : > { %s1285_s20 = smov %s1056_s21  ;;  %s1286_s21 = smov %s1288_s23 }
  0x70   :  { %14 = sbr.rel (!%p12_p12) target bundleno = 3 (0x3), region = 169 }

// kernel: discriminator_forward.11
= control target key start
LH: loop header
LB: loop body
LE: loop exit
PB: predicated region body
PF: predicated region fallthrough
CT: control target
= control target key end

     0   :  { %s3192_s15 = smov 0   ;;  %s3194_s16 = smov 0   ;;  %s3923_s0 = inlined_call_operand.vmem [shape: bf16[128,2048], index: 0, kind: input, shape index: {}]   ;;  %s3924_s1 = inlined_call_operand.vmem [shape: bf16[2048,256], index: 1, kind: input, shape index: {}]   ;;  %s3925_s2 = inlined_call_operand.vmem [shape: bf16[128,256], index: 2, kind: output, shape index: {0}]   ;;  %s3926_s3 = inlined_call_operand.vmem [shape: f32[8,256], index: 3, kind: output, shape index: {1}]   ;;  %s3927_s4 = inlined_call_operand.vmem [shape: f32[8,256], index: 4, kind: output, shape index: {2}]  }
   0x1   :  { %s3196_s17 = smov 0   ;;  %s3198_s18 = smov 0  }
   0x2   :  { %s3200_s19 = smov 0  }
   0x3 LB: > { %s27_s20 = sadd.s32 1, %s3160_s18  ;;  %p50_p1 = scmp.ne.s32.totalorder %s3152_s16, %s3148_s15  ;;  %s3164_s19 = sphi %s3200_s19, %s15_s19   ;;  %s3160_s18 = sphi %s3198_s18, %s3965_s18   ;;  %s3156_s17 = sphi %s3196_s17, %s3964_s17   ;;  %s3152_s16 = sphi %s3194_s16, %s3963_s16   ;;  %s3148_s15 = sphi %s3192_s15, %s3962_s15  }
   0x4   : > { %p28_p0 = scmp.ge.s32.totalorder %s27_s20, 2  ;;  %p51_p2 = scmp.eq.s32.totalorder %s3164_s19, 0 }
   0x5   : > { %s43_s22 = sadd.s32 1, %s3152_s16  ;;  %p2647_p5 = scmp.ge.s32.totalorder %s3164_s19, 2 }
   0x6   : > { %s3967_s20 = smov (%p28_p0, %s27_s20), 0  ;;  %p52_p3 = por %p51_p2, %p50_p1 }
   0x7   : > { %s39_s21 = ssub.s32 %s3160_s18, %s3967_s20  ;;  %184 = sbr.rel (%p2647_p5) target bundleno = 48 (0x30), region = 16 }
   0x8   : > { %p41_p4 = scmp.eq.s32.totalorder %s39_s21, 0 }
   0xa   : > { %s3227_s23 = scalar_select %p41_p4, %s3152_s16, %s43_s22  }
   0xc   : > { %187 = sbr.rel (!%p52_p3) target bundleno = 48 (0x30), region = 20  ;;  %s189_s24 = sand.u32 (%p52_p3), 1, %s3152_s16  }
   0xd   : > { %s2874_s25 = sshll.u32 (%p52_p3), %s3160_s18, 5  ;;  %s2648_s26 = sshll.u32 (%p52_p3), %s189_s24, 9 }
   0xe   : > { %s3235_s29 = scalar_lea.vmem (%p52_p3), %s3923_s0, %s2874_s25  ;;  %s3240_s30 = scalar_lea.vmem (%p52_p3), [#allocation3], %s2648_s26 }
   0xf   : > { %v210_v0 = vld [vmem:[%s3235_s29] sm:$0xff] (%p52_p3)  ;;  %v212_v1 = vld [vmem:[%s3235_s29 + $0x8] sm:$0xff] (%p52_p3)  ;;  %v214_v2 = vld [vmem:[%s3235_s29 + $0x10] sm:$0xff] (%p52_p3) }
  0x10   : > { %211 = vst [vmem:[%s3240_s30] sm:$0xff] (%p52_p3), %v210_v0  ;;  %213 = vst [vmem:[%s3240_s30 + $0x8] sm:$0xff] (%p52_p3), %v212_v1  ;;  %v216_v3 = vld [vmem:[%s3235_s29 + $0x18] sm:$0xff] (%p52_p3)  ;;  %v218_v4 = vld [vmem:[%s3235_s29 + $0x40] sm:$0xff] (%p52_p3) }
  0x11   : > { %215 = vst [vmem:[%s3240_s30 + $0x10] sm:$0xff] %v214_v2  ;;  %v220_v5 = vld [vmem:[%s3235_s29 + $0x48] sm:$0xff]  ;;  %217 = vst [vmem:[%s3240_s30 + $0x18] sm:$0xff] %v216_v3  ;;  %v222_v6 = vld [vmem:[%s3235_s29 + $0x50] sm:$0xff] }
  0x12   : > { %219 = vst [vmem:[%s3240_s30 + $0x20] sm:$0xff] %v218_v4  ;;  %221 = vst [vmem:[%s3240_s30 + $0x28] sm:$0xff] %v220_v5  ;;  %v224_v7 = vld [vmem:[%s3235_s29 + $0x58] sm:$0xff]  ;;  %v226_v8 = vld [vmem:[%s3235_s29 + $0x80] sm:$0xff] }
  0x13   : > { %223 = vst [vmem:[%s3240_s30 + $0x30] sm:$0xff] %v222_v6  ;;  %225 = vst [vmem:[%s3240_s30 + $0x38] sm:$0xff] %v224_v7  ;;  %v228_v9 = vld [vmem:[%s3235_s29 + $0x88] sm:$0xff]  ;;  %v230_v10 = vld [vmem:[%s3235_s29 + $0x90] sm:$0xff] }
  0x14   : > { %227 = vst [vmem:[%s3240_s30 + $0x40] sm:$0xff] %v226_v8  ;;  %v232_v11 = vld [vmem:[%s3235_s29 + $0x98] sm:$0xff]  ;;  %229 = vst [vmem:[%s3240_s30 + $0x48] sm:$0xff] %v228_v9  ;;  %v234_v12 = vld [vmem:[%s3235_s29 + $0xc0] sm:$0xff] }
  0x15   : > { %231 = vst [vmem:[%s3240_s30 + $0x50] sm:$0xff] %v230_v10  ;;  %233 = vst [vmem:[%s3240_s30 + $0x58] sm:$0xff] %v232_v11  ;;  %v236_v13 = vld [vmem:[%s3235_s29 + $0xc8] sm:$0xff]  ;;  %v238_v14 = vld [vmem:[%s3235_s29 + $0xd0] sm:$0xff] }
  0x16   : > { %235 = vst [vmem:[%s3240_s30 + $0x60] sm:$0xff] %v234_v12  ;;  %237 = vst [vmem:[%s3240_s30 + $0x68] sm:$0xff] %v236_v13  ;;  %v240_v15 = vld [vmem:[%s3235_s29 + $0xd8] sm:$0xff]  ;;  %v242_v16 = vld [vmem:[%s3235_s29 + $0x100] sm:$0xff] }
  0x17   : > { %239 = vst [vmem:[%s3240_s30 + $0x70] sm:$0xff] %v238_v14  ;;  %v244_v17 = vld [vmem:[%s3235_s29 + $0x108] sm:$0xff]  ;;  %241 = vst [vmem:[%s3240_s30 + $0x78] sm:$0xff] %v240_v15  ;;  %v246_v18 = vld [vmem:[%s3235_s29 + $0x110] sm:$0xff] }
  0x18   : > { %243 = vst [vmem:[%s3240_s30 + $0x80] sm:$0xff] %v242_v16  ;;  %245 = vst [vmem:[%s3240_s30 + $0x88] sm:$0xff] %v244_v17  ;;  %v248_v19 = vld [vmem:[%s3235_s29 + $0x118] sm:$0xff]  ;;  %v250_v20 = vld [vmem:[%s3235_s29 + $0x140] sm:$0xff] }
  0x19   : > { %247 = vst [vmem:[%s3240_s30 + $0x90] sm:$0xff] %v246_v18  ;;  %249 = vst [vmem:[%s3240_s30 + $0x98] sm:$0xff] %v248_v19  ;;  %v252_v21 = vld [vmem:[%s3235_s29 + $0x148] sm:$0xff]  ;;  %v254_v22 = vld [vmem:[%s3235_s29 + $0x150] sm:$0xff] }
  0x1a   : > { %251 = vst [vmem:[%s3240_s30 + $0xa0] sm:$0xff] %v250_v20  ;;  %v256_v23 = vld [vmem:[%s3235_s29 + $0x158] sm:$0xff]  ;;  %253 = vst [vmem:[%s3240_s30 + $0xa8] sm:$0xff] %v252_v21  ;;  %v258_v24 = vld [vmem:[%s3235_s29 + $0x180] sm:$0xff] }
  0x1b   : > { %255 = vst [vmem:[%s3240_s30 + $0xb0] sm:$0xff] %v254_v22  ;;  %257 = vst [vmem:[%s3240_s30 + $0xb8] sm:$0xff] %v256_v23  ;;  %v260_v25 = vld [vmem:[%s3235_s29 + $0x188] sm:$0xff]  ;;  %v262_v26 = vld [vmem:[%s3235_s29 + $0x190] sm:$0xff] }
  0x1c   : > { %259 = vst [vmem:[%s3240_s30 + $0xc0] sm:$0xff] %v258_v24  ;;  %261 = vst [vmem:[%s3240_s30 + $0xc8] sm:$0xff] %v260_v25  ;;  %v264_v27 = vld [vmem:[%s3235_s29 + $0x198] sm:$0xff]  ;;  %v266_v28 = vld [vmem:[%s3235_s29 + $0x1c0] sm:$0xff] }
  0x1d   : > { %263 = vst [vmem:[%s3240_s30 + $0xd0] sm:$0xff] %v262_v26  ;;  %v268_v29 = vld [vmem:[%s3235_s29 + $0x1c8] sm:$0xff]  ;;  %265 = vst [vmem:[%s3240_s30 + $0xd8] sm:$0xff] %v264_v27  ;;  %v270_v30 = vld [vmem:[%s3235_s29 + $0x1d0] sm:$0xff] }
  0x1e   : > { %267 = vst [vmem:[%s3240_s30 + $0xe0] sm:$0xff] %v266_v28  ;;  %269 = vst [vmem:[%s3240_s30 + $0xe8] sm:$0xff] %v268_v29  ;;  %v272_v31 = vld [vmem:[%s3235_s29 + $0x1d8] sm:$0xff]  ;;  %v274_v32 = vld [vmem:[%s3235_s29 + $0x200] sm:$0xff] }
  0x1f   : > { %271 = vst [vmem:[%s3240_s30 + $0xf0] sm:$0xff] %v270_v30  ;;  %273 = vst [vmem:[%s3240_s30 + $0xf8] sm:$0xff] %v272_v31  ;;  %v276_v33 = vld [vmem:[%s3235_s29 + $0x208] sm:$0xff]  ;;  %v278_v34 = vld [vmem:[%s3235_s29 + $0x210] sm:$0xff] }
  0x20   : > { %275 = vst [vmem:[%s3240_s30 + $0x100] sm:$0xff] %v274_v32  ;;  %v280_v35 = vld [vmem:[%s3235_s29 + $0x218] sm:$0xff]  ;;  %277 = vst [vmem:[%s3240_s30 + $0x108] sm:$0xff] %v276_v33  ;;  %v282_v36 = vld [vmem:[%s3235_s29 + $0x240] sm:$0xff] }
  0x21   : > { %279 = vst [vmem:[%s3240_s30 + $0x110] sm:$0xff] %v278_v34  ;;  %281 = vst [vmem:[%s3240_s30 + $0x118] sm:$0xff] %v280_v35  ;;  %v284_v37 = vld [vmem:[%s3235_s29 + $0x248] sm:$0xff]  ;;  %v286_v38 = vld [vmem:[%s3235_s29 + $0x250] sm:$0xff] }
  0x22   : > { %283 = vst [vmem:[%s3240_s30 + $0x120] sm:$0xff] %v282_v36  ;;  %285 = vst [vmem:[%s3240_s30 + $0x128] sm:$0xff] %v284_v37  ;;  %v288_v39 = vld [vmem:[%s3235_s29 + $0x258] sm:$0xff]  ;;  %v290_v40 = vld [vmem:[%s3235_s29 + $0x280] sm:$0xff] }
  0x23   : > { %287 = vst [vmem:[%s3240_s30 + $0x130] sm:$0xff] %v286_v38  ;;  %v292_v41 = vld [vmem:[%s3235_s29 + $0x288] sm:$0xff]  ;;  %289 = vst [vmem:[%s3240_s30 + $0x138] sm:$0xff] %v288_v39  ;;  %v294_v42 = vld [vmem:[%s3235_s29 + $0x290] sm:$0xff] }
  0x24   : > { %291 = vst [vmem:[%s3240_s30 + $0x140] sm:$0xff] %v290_v40  ;;  %293 = vst [vmem:[%s3240_s30 + $0x148] sm:$0xff] %v292_v41  ;;  %v296_v43 = vld [vmem:[%s3235_s29 + $0x298] sm:$0xff]  ;;  %v298_v44 = vld [vmem:[%s3235_s29 + $0x2c0] sm:$0xff] }
  0x25   : > { %295 = vst [vmem:[%s3240_s30 + $0x150] sm:$0xff] %v294_v42  ;;  %297 = vst [vmem:[%s3240_s30 + $0x158] sm:$0xff] %v296_v43  ;;  %v300_v45 = vld [vmem:[%s3235_s29 + $0x2c8] sm:$0xff]  ;;  %v302_v46 = vld [vmem:[%s3235_s29 + $0x2d0] sm:$0xff] }
  0x26   : > { %299 = vst [vmem:[%s3240_s30 + $0x160] sm:$0xff] %v298_v44  ;;  %v304_v47 = vld [vmem:[%s3235_s29 + $0x2d8] sm:$0xff]  ;;  %301 = vst [vmem:[%s3240_s30 + $0x168] sm:$0xff] %v300_v45  ;;  %v306_v48 = vld [vmem:[%s3235_s29 + $0x300] sm:$0xff] }
  0x27   : > { %303 = vst [vmem:[%s3240_s30 + $0x170] sm:$0xff] %v302_v46  ;;  %305 = vst [vmem:[%s3240_s30 + $0x178] sm:$0xff] %v304_v47  ;;  %v308_v49 = vld [vmem:[%s3235_s29 + $0x308] sm:$0xff]  ;;  %v310_v50 = vld [vmem:[%s3235_s29 + $0x310] sm:$0xff] }
  0x28   : > { %307 = vst [vmem:[%s3240_s30 + $0x180] sm:$0xff] %v306_v48  ;;  %309 = vst [vmem:[%s3240_s30 + $0x188] sm:$0xff] %v308_v49  ;;  %v312_v51 = vld [vmem:[%s3235_s29 + $0x318] sm:$0xff]  ;;  %v314_v52 = vld [vmem:[%s3235_s29 + $0x340] sm:$0xff] }
  0x29   : > { %311 = vst [vmem:[%s3240_s30 + $0x190] sm:$0xff] %v310_v50  ;;  %v316_v53 = vld [vmem:[%s3235_s29 + $0x348] sm:$0xff]  ;;  %313 = vst [vmem:[%s3240_s30 + $0x198] sm:$0xff] %v312_v51  ;;  %v318_v54 = vld [vmem:[%s3235_s29 + $0x350] sm:$0xff] }
  0x2a   : > { %315 = vst [vmem:[%s3240_s30 + $0x1a0] sm:$0xff] %v314_v52  ;;  %317 = vst [vmem:[%s3240_s30 + $0x1a8] sm:$0xff] %v316_v53  ;;  %v320_v55 = vld [vmem:[%s3235_s29 + $0x358] sm:$0xff]  ;;  %v322_v56 = vld [vmem:[%s3235_s29 + $0x380] sm:$0xff] }
  0x2b   : > { %319 = vst [vmem:[%s3240_s30 + $0x1b0] sm:$0xff] %v318_v54  ;;  %321 = vst [vmem:[%s3240_s30 + $0x1b8] sm:$0xff] %v320_v55  ;;  %v324_v57 = vld [vmem:[%s3235_s29 + $0x388] sm:$0xff]  ;;  %v326_v58 = vld [vmem:[%s3235_s29 + $0x390] sm:$0xff] }
  0x2c   : > { %323 = vst [vmem:[%s3240_s30 + $0x1c0] sm:$0xff] %v322_v56  ;;  %v328_v59 = vld [vmem:[%s3235_s29 + $0x398] sm:$0xff]  ;;  %325 = vst [vmem:[%s3240_s30 + $0x1c8] sm:$0xff] %v324_v57  ;;  %v330_v60 = vld [vmem:[%s3235_s29 + $0x3c0] sm:$0xff] }
  0x2d   : > { %327 = vst [vmem:[%s3240_s30 + $0x1d0] sm:$0xff] %v326_v58  ;;  %329 = vst [vmem:[%s3240_s30 + $0x1d8] sm:$0xff] %v328_v59  ;;  %v332_v61 = vld [vmem:[%s3235_s29 + $0x3c8] sm:$0xff]  ;;  %v334_v62 = vld [vmem:[%s3235_s29 + $0x3d0] sm:$0xff] }
  0x2e   : > { %331 = vst [vmem:[%s3240_s30 + $0x1e0] sm:$0xff] %v330_v60  ;;  %333 = vst [vmem:[%s3240_s30 + $0x1e8] sm:$0xff] %v332_v61  ;;  %v336_v63 = vld [vmem:[%s3235_s29 + $0x3d8] sm:$0xff] }
  0x2f   : > { %335 = vst [vmem:[%s3240_s30 + $0x1f0] sm:$0xff] %v334_v62  ;;  %337 = vst [vmem:[%s3240_s30 + $0x1f8] sm:$0xff] %v336_v63 }
  0x30 PF: > { %p2651_p6 = scmp.ge.s32.totalorder %s3164_s19, 1  ;;  %p357_p7 = scmp.lt.s32.totalorder %s3164_s19, 3 }
  0x32   : > { %p358_p8 = pnand %p2651_p6, %p357_p7 }
  0x34   : > { %361 = sbr.rel (%p358_p8) target bundleno = 527 (0x20f), region = 47 }
  0x39   : > { %s364_s5 = sand.u32 1, %s3148_s15   ;;  %s2653_s6 = sshll.u32 %s3156_s17, 7 }
  0x3a   : > { %s2652_s7 = sshll.u32 %s364_s5, 9  ;;  %p418_p9 = scmp.lt.s32.totalorder %s2653_s6, 255 }
  0x3b   : > { %s3376_s12 = scalar_lea.vmem [#allocation3], %s2652_s7  ;;  %p2656_p10 = scmp.ne.s32.totalorder %s3156_s17, 0 }
  0x3c   : > { %s3969_s6 = smov (!%p418_p9, %s2653_s6), 255 }
  0x3d   : > { %s2875_s8 = sshll.u32 %s3969_s6, 3  ;;  %455 = sbr.rel (%p2656_p10) target bundleno = 83 (0x53), region = 55 }
  0x3e   : > { %s3374_s11 = scalar_lea.vmem %s3924_s1, %s2875_s8 }
  0x42   : > { %v3166_v0 = vmov 0.0  }
  0x43   : > { %456 = vst [vmem:[#allocation2 + $0xb0] sm:$0xff] %v3166_v0  ;;  %457 = vst [vmem:[#allocation2] sm:$0xff] %v3166_v0 }
  0x44   : > { %458 = vst [vmem:[#allocation2 + $0xd8] sm:$0xff] %v3166_v0  ;;  %459 = vst [vmem:[#allocation2 + $0x18] sm:$0xff] %v3166_v0 }
  0x45   : > { %460 = vst [vmem:[#allocation2 + $0x50] sm:$0xff] %v3166_v0  ;;  %461 = vst [vmem:[#allocation2 + $0x68] sm:$0xff] %v3166_v0 }
  0x46   : > { %462 = vst [vmem:[#allocation2 + $0x30] sm:$0xff] %v3166_v0  ;;  %463 = vst [vmem:[#allocation2 + $0x48] sm:$0xff] %v3166_v0 }
  0x47   : > { %464 = vst [vmem:[#allocation2 + $0x80] sm:$0xff] %v3166_v0  ;;  %465 = vst [vmem:[#allocation2 + $0x88] sm:$0xff] %v3166_v0 }
  0x48   : > { %466 = vst [vmem:[#allocation2 + $0xe8] sm:$0xff] %v3166_v0  ;;  %467 = vst [vmem:[#allocation2 + $0xb8] sm:$0xff] %v3166_v0 }
  0x49   : > { %468 = vst [vmem:[#allocation2 + $0x60] sm:$0xff] %v3166_v0  ;;  %469 = vst [vmem:[#allocation2 + $0xf0] sm:$0xff] %v3166_v0 }
  0x4a   : > { %470 = vst [vmem:[#allocation2 + $0x8] sm:$0xff] %v3166_v0  ;;  %471 = vst [vmem:[#allocation2 + $0x78] sm:$0xff] %v3166_v0 }
  0x4b   : > { %472 = vst [vmem:[#allocation2 + $0x38] sm:$0xff] %v3166_v0  ;;  %473 = vst [vmem:[#allocation2 + $0x58] sm:$0xff] %v3166_v0 }
  0x4c   : > { %474 = vst [vmem:[#allocation2 + $0x40] sm:$0xff] %v3166_v0  ;;  %475 = vst [vmem:[#allocation2 + $0xc8] sm:$0xff] %v3166_v0 }
  0x4d   : > { %476 = vst [vmem:[#allocation2 + $0xe0] sm:$0xff] %v3166_v0  ;;  %477 = vst [vmem:[#allocation2 + $0x90] sm:$0xff] %v3166_v0 }
  0x4e   : > { %478 = vst [vmem:[#allocation2 + $0x70] sm:$0xff] %v3166_v0  ;;  %479 = vst [vmem:[#allocation2 + $0xc0] sm:$0xff] %v3166_v0 }
  0x4f   : > { %480 = vst [vmem:[#allocation2 + $0xa8] sm:$0xff] %v3166_v0  ;;  %481 = vst [vmem:[#allocation2 + $0xd0] sm:$0xff] %v3166_v0 }
  0x50   : > { %482 = vst [vmem:[#allocation2 + $0x10] sm:$0xff] %v3166_v0  ;;  %483 = vst [vmem:[#allocation2 + $0x28] sm:$0xff] %v3166_v0 }
  0x51   : > { %484 = vst [vmem:[#allocation2 + $0xa0] sm:$0xff] %v3166_v0  ;;  %485 = vst [vmem:[#allocation2 + $0xf8] sm:$0xff] %v3166_v0 }
  0x52   : > { %486 = vst [vmem:[#allocation2 + $0x20] sm:$0xff] %v3166_v0  ;;  %487 = vst [vmem:[#allocation2 + $0x98] sm:$0xff] %v3166_v0 }
  0x53 PF: > { %v2934_v1 = vld [vmem:[%s3374_s11 + $0x74] ss:$8 sps:$4 sm:$0xff]   ;;  %v2938_v3 = vld [vmem:[%s3374_s11 + $0x70] ss:$8 sps:$4 sm:$0xff]   ;;  %v2940_v5 = vld [vmem:[%s3374_s11 + $0x64] ss:$8 sps:$4 sm:$0xff]  }
  0x54   : > { %v2936_v2 = vld [vmem:[%s3374_s11 + $0x174] ss:$8 sps:$4 sm:$0xff]   ;;  %1672 = vmatprep.subr.bf16.mxu0 %v2934_v1  ;;  %v2939_v4 = vld [vmem:[%s3374_s11 + $0x170] ss:$8 sps:$4 sm:$0xff]   ;;  %v2942_v6 = vld [vmem:[%s3374_s11 + $0x164] ss:$8 sps:$4 sm:$0xff]  }
  0x55   : > { %1785 = vmatprep.subr.bf16.mxu1 %v2936_v2  ;;  %1673 = vmatpush1.bf16.msra.mxu0 %v2938_v3  ;;  %v2944_v7 = vld [vmem:[%s3374_s11 + $0x60] ss:$8 sps:$4 sm:$0xff]   ;;  %v2946_v9 = vld [vmem:[%s3374_s11 + $0x54] ss:$8 sps:$4 sm:$0xff]   ;;  %v2950_v11 = vld [vmem:[%s3374_s11 + $0x50] ss:$8 sps:$4 sm:$0xff]  }
  0x56   : > { %1786 = vmatpush1.bf16.msra.mxu1 %v2939_v4  ;;  %1674 = vmatprep.subr.bf16.mxu0 %v2940_v5  ;;  %v2945_v8 = vld [vmem:[%s3374_s11 + $0x160] ss:$8 sps:$4 sm:$0xff]   ;;  %v2948_v10 = vld [vmem:[%s3374_s11 + $0x154] ss:$8 sps:$4 sm:$0xff]   ;;  %v2951_v12 = vld [vmem:[%s3374_s11 + $0x150] ss:$8 sps:$4 sm:$0xff]  }
  0x57   : > { %1787 = vmatprep.subr.bf16.mxu1 %v2942_v6  ;;  %v2952_v13 = vld [vmem:[%s3374_s11 + $0x44] ss:$8 sps:$4 sm:$0xff]   ;;  %v2956_v15 = vld [vmem:[%s3374_s11 + $0x40] ss:$8 sps:$4 sm:$0xff]   ;;  %v2958_v17 = vld [vmem:[%s3374_s11 + $0x34] ss:$8 sps:$4 sm:$0xff]  }
  0x58   : > { %v2954_v14 = vld [vmem:[%s3374_s11 + $0x144] ss:$8 sps:$4 sm:$0xff]   ;;  %v2957_v16 = vld [vmem:[%s3374_s11 + $0x140] ss:$8 sps:$4 sm:$0xff]   ;;  %v2960_v18 = vld [vmem:[%s3374_s11 + $0x134] ss:$8 sps:$4 sm:$0xff]  }
  0x59   : > { %1675 = vmatpush1.bf16.msra.mxu0 %v2944_v7  ;;  %v2962_v19 = vld [vmem:[%s3374_s11 + $0x30] ss:$8 sps:$4 sm:$0xff]   ;;  %v2964_v21 = vld [vmem:[%s3374_s11 + $0x24] ss:$8 sps:$4 sm:$0xff]   ;;  %v2968_v23 = vld [vmem:[%s3374_s11 + $0x20] ss:$8 sps:$4 sm:$0xff]  }
  0x5a   : > { %1788 = vmatpush1.bf16.msra.mxu1 %v2945_v8  ;;  %1676 = vmatprep.subr.bf16.mxu0 %v2946_v9  ;;  %v2963_v20 = vld [vmem:[%s3374_s11 + $0x130] ss:$8 sps:$4 sm:$0xff]   ;;  %v2966_v22 = vld [vmem:[%s3374_s11 + $0x124] ss:$8 sps:$4 sm:$0xff]   ;;  %v2969_v24 = vld [vmem:[%s3374_s11 + $0x120] ss:$8 sps:$4 sm:$0xff]  }
  0x5b   : > { %1789 = vmatprep.subr.bf16.mxu1 %v2948_v10  ;;  %v2970_v25 = vld [vmem:[%s3374_s11 + $0x14] ss:$8 sps:$4 sm:$0xff]   ;;  %v2974_v27 = vld [vmem:[%s3374_s11 + $0x10] ss:$8 sps:$4 sm:$0xff]   ;;  %v2976_v29 = vld [vmem:[%s3374_s11 + $0x4] ss:$8 sps:$4 sm:$0xff]  }
  0x5c   : > { %v2972_v26 = vld [vmem:[%s3374_s11 + $0x114] ss:$8 sps:$4 sm:$0xff]   ;;  %v2975_v28 = vld [vmem:[%s3374_s11 + $0x110] ss:$8 sps:$4 sm:$0xff]   ;;  %v2978_v30 = vld [vmem:[%s3374_s11 + $0x104] ss:$8 sps:$4 sm:$0xff]  }
  0x5d   : > { %1677 = vmatpush1.bf16.msra.mxu0 %v2950_v11  ;;  %v2980_v31 = vld [vmem:[%s3374_s11] ss:$8 sps:$4 sm:$0xff]   ;;  %v2982_v33 = vld [vmem:[%s3374_s11 + $0xf4] ss:$8 sps:$4 sm:$0xff]   ;;  %v2986_v35 = vld [vmem:[%s3374_s11 + $0xf0] ss:$8 sps:$4 sm:$0xff]  }
  0x5e   : > { %1790 = vmatpush1.bf16.msra.mxu1 %v2951_v12  ;;  %1678 = vmatprep.subr.bf16.mxu0 %v2952_v13  ;;  %v2981_v32 = vld [vmem:[%s3374_s11 + $0x100] ss:$8 sps:$4 sm:$0xff]   ;;  %v2984_v34 = vld [vmem:[%s3374_s11 + $0x1f4] ss:$8 sps:$4 sm:$0xff]   ;;  %v2987_v36 = vld [vmem:[%s3374_s11 + $0x1f0] ss:$8 sps:$4 sm:$0xff]  }
  0x5f   : > { %1791 = vmatprep.subr.bf16.mxu1 %v2954_v14  ;;  %v2988_v37 = vld [vmem:[%s3374_s11 + $0xe4] ss:$8 sps:$4 sm:$0xff]   ;;  %v2992_v39 = vld [vmem:[%s3374_s11 + $0xe0] ss:$8 sps:$4 sm:$0xff]   ;;  %v2994_v41 = vld [vmem:[%s3374_s11 + $0xd4] ss:$8 sps:$4 sm:$0xff]  }
  0x60   : > { %v2990_v38 = vld [vmem:[%s3374_s11 + $0x1e4] ss:$8 sps:$4 sm:$0xff]   ;;  %v2993_v40 = vld [vmem:[%s3374_s11 + $0x1e0] ss:$8 sps:$4 sm:$0xff]   ;;  %v2996_v42 = vld [vmem:[%s3374_s11 + $0x1d4] ss:$8 sps:$4 sm:$0xff]  }
  0x61   : > { %1679 = vmatpush1.bf16.msra.mxu0 %v2956_v15  ;;  %v2998_v43 = vld [vmem:[%s3374_s11 + $0xd0] ss:$8 sps:$4 sm:$0xff]   ;;  %v3000_v45 = vld [vmem:[%s3374_s11 + $0xc4] ss:$8 sps:$4 sm:$0xff]   ;;  %v3004_v47 = vld [vmem:[%s3374_s11 + $0xc0] ss:$8 sps:$4 sm:$0xff]  }
  0x62   : > { %1792 = vmatpush1.bf16.msra.mxu1 %v2957_v16  ;;  %1680 = vmatprep.subr.bf16.mxu0 %v2958_v17  ;;  %v2999_v44 = vld [vmem:[%s3374_s11 + $0x1d0] ss:$8 sps:$4 sm:$0xff]   ;;  %v3002_v46 = vld [vmem:[%s3374_s11 + $0x1c4] ss:$8 sps:$4 sm:$0xff]   ;;  %v3005_v48 = vld [vmem:[%s3374_s11 + $0x1c0] ss:$8 sps:$4 sm:$0xff]  }
  0x63   : > { %1793 = vmatprep.subr.bf16.mxu1 %v2960_v18  ;;  %v520_v49 = vld [vmem:[%s3376_s12] sm:$0xff]  ;;  %v521_v51 = vld [vmem:[%s3376_s12 + $0x8] sm:$0xff]  ;;  %v3006_v53 = vld [vmem:[%s3374_s11 + $0xb4] ss:$8 sps:$4 sm:$0xff]   ;;  %p2849_p11 = scmp.ne.s32.totalorder %s3156_s17, 1 }
  0x64   : > { %v524_v50 = vld [vmem:[%s3376_s12 + $0x20] sm:$0xff]  ;;  %v525_v52 = vld [vmem:[%s3376_s12 + $0x28] sm:$0xff]  ;;  %v3008_v55 = vld [vmem:[%s3374_s11 + $0x1b4] ss:$8 sps:$4 sm:$0xff]  }
  0x65   : > { %1681 = vmatpush1.bf16.msra.mxu0 %v2962_v19  ;;  %v2658_v54 = vcombine.high %v520_v49, %v524_v50  ;;  %v2660_v56 = vcombine.high %v521_v51, %v525_v52  ;;  %v3010_v57 = vld [vmem:[%s3374_s11 + $0xb0] ss:$8 sps:$4 sm:$0xff]   ;;  %v3012_v59 = vld [vmem:[%s3374_s11 + $0xa4] ss:$8 sps:$4 sm:$0xff]   ;;  %v3016_v61 = vld [vmem:[%s3374_s11 + $0xa0] ss:$8 sps:$4 sm:$0xff]   ;;  %v2657_v12 = vcombine.low %v520_v49, %v524_v50  ;;  %v2659_v13 = vcombine.low %v521_v51, %v525_v52 }
  0x66   : > { %1794 = vmatpush1.bf16.msra.mxu1 %v2963_v20  ;;  %1682 = vmatprep.subr.bf16.mxu0 %v2964_v21  ;;  %v3011_v58 = vld [vmem:[%s3374_s11 + $0x1b0] ss:$8 sps:$4 sm:$0xff]   ;;  %v3014_v60 = vld [vmem:[%s3374_s11 + $0x1a4] ss:$8 sps:$4 sm:$0xff]   ;;  %v3017_v62 = vld [vmem:[%s3374_s11 + $0x1a0] ss:$8 sps:$4 sm:$0xff]  }
  0x67   : > { %1795 = vmatprep.subr.bf16.mxu1 %v2966_v22  ;;  %1704 = vmatprep.mubr.bf16.mxu0 %v2658_v54  ;;  %v3018_v63 = vld [vmem:[%s3374_s11 + $0x94] ss:$8 sps:$4 sm:$0xff]   ;;  %v3022_v1 = vld [vmem:[%s3374_s11 + $0x90] ss:$8 sps:$4 sm:$0xff]   ;;  %v3024_v3 = vld [vmem:[%s3374_s11 + $0x84] ss:$8 sps:$4 sm:$0xff]  }
  0x68   : > { %1817 = vmatprep.mubr.bf16.mxu1 %v2660_v56  ;;  %v3020_v0 = vld [vmem:[%s3374_s11 + $0x194] ss:$8 sps:$4 sm:$0xff]   ;;  %v3023_v2 = vld [vmem:[%s3374_s11 + $0x190] ss:$8 sps:$4 sm:$0xff]   ;;  %v3026_v4 = vld [vmem:[%s3374_s11 + $0x184] ss:$8 sps:$4 sm:$0xff]  }
  0x69   : > { %1683 = vmatpush1.bf16.msra.mxu0 %v2968_v23  ;;  %v3028_v5 = vld [vmem:[%s3374_s11 + $0x80] ss:$8 sps:$4 sm:$0xff]   ;;  %v3032_v7 = vld [vmem:[%s3374_s11 + $0x274] ss:$8 sps:$4 sm:$0xff]   ;;  %v3030_v9 = vld [vmem:[%s3374_s11 + $0x270] ss:$8 sps:$4 sm:$0xff]  }
  0x6a   : > { %1796 = vmatpush1.bf16.msra.mxu1 %v2969_v24  ;;  %1684 = vmatprep.subr.bf16.mxu0 %v2970_v25  ;;  %v3029_v6 = vld [vmem:[%s3374_s11 + $0x180] ss:$8 sps:$4 sm:$0xff]   ;;  %v3035_v8 = vld [vmem:[%s3374_s11 + $0x374] ss:$8 sps:$4 sm:$0xff]   ;;  %v3033_v10 = vld [vmem:[%s3374_s11 + $0x370] ss:$8 sps:$4 sm:$0xff]  }
  0x6b   : > { %1797 = vmatprep.subr.bf16.mxu1 %v2972_v26  ;;  %v528_v11 = vld [vmem:[%s3376_s12 + $0x40] sm:$0xff]  ;;  %v529_v15 = vld [vmem:[%s3376_s12 + $0x48] sm:$0xff]  ;;  %v3044_v23 = vld [vmem:[%s3374_s11 + $0x254] ss:$8 sps:$4 sm:$0xff]  }
  0x6c   : > { %v532_v14 = vld [vmem:[%s3376_s12 + $0x60] sm:$0xff]  ;;  %v533_v16 = vld [vmem:[%s3376_s12 + $0x68] sm:$0xff]  ;;  %v3047_v24 = vld [vmem:[%s3374_s11 + $0x354] ss:$8 sps:$4 sm:$0xff]  }
  0x6d   : > { %1685 = vmatpush1.bf16.msra.mxu0 %v2974_v27  ;;  %v3038_v17 = vld [vmem:[%s3374_s11 + $0x264] ss:$8 sps:$4 sm:$0xff]   ;;  %v2666_v19 = vcombine.high %v528_v11, %v532_v14  ;;  %v2668_v20 = vcombine.high %v529_v15, %v533_v16  ;;  %v3036_v21 = vld [vmem:[%s3374_s11 + $0x260] ss:$8 sps:$4 sm:$0xff]   ;;  %v3042_v25 = vld [vmem:[%s3374_s11 + $0x250] ss:$8 sps:$4 sm:$0xff]  }
  0x6e   : > { %1798 = vmatpush1.bf16.msra.mxu1 %v2975_v28  ;;  %1686 = vmatprep.subr.bf16.mxu0 %v2976_v29  ;;  %v3041_v18 = vld [vmem:[%s3374_s11 + $0x364] ss:$8 sps:$4 sm:$0xff]   ;;  %v3039_v22 = vld [vmem:[%s3374_s11 + $0x360] ss:$8 sps:$4 sm:$0xff]   ;;  %v3045_v26 = vld [vmem:[%s3374_s11 + $0x350] ss:$8 sps:$4 sm:$0xff]   ;;  %v2665_v29 = vcombine.low %v528_v11, %v532_v14 }
  0x6f   : > { %1799 = vmatprep.subr.bf16.mxu1 %v2978_v30  ;;  %v536_v27 = vld [vmem:[%s3376_s12 + $0x80] sm:$0xff]  ;;  %v2667_v30 = vcombine.low %v529_v15, %v533_v16  ;;  %v3071_v56 = vld [vmem:[%s3374_s11 + $0x314] ss:$8 sps:$4 sm:$0xff]   ;;  %v565_v14 = vld [vmem:[%s3376_s12 + $0x168] sm:$0xff] }
  0x70   : > { %v540_v28 = vld [vmem:[%s3376_s12 + $0xa0] sm:$0xff]  ;;  %v3078_v15 = vld [vmem:[%s3374_s11 + $0x2f0] ss:$8 sps:$4 sm:$0xff]  }
  0x71   : > { %1687 = vmatpush1.bf16.msra.mxu0 %v2980_v31  ;;  %v537_v31 = vld [vmem:[%s3376_s12 + $0x88] sm:$0xff]  ;;  %v3081_v16 = vld [vmem:[%s3374_s11 + $0x3f0] ss:$8 sps:$4 sm:$0xff]  }
  0x72   : > { %1800 = vmatpush1.bf16.msra.mxu1 %v2981_v32  ;;  %1688 = vmatprep.subr.bf16.mxu0 %v2982_v33  ;;  %v541_v32 = vld [vmem:[%s3376_s12 + $0xa8] sm:$0xff] }
  0x73   : > { %1801 = vmatprep.subr.bf16.mxu1 %v2984_v34  ;;  %v3050_v33 = vld [vmem:[%s3374_s11 + $0x244] ss:$8 sps:$4 sm:$0xff]   ;;  %v3063_v54 = vld [vmem:[%s3374_s11 + $0x320] ss:$8 sps:$4 sm:$0xff]  }
  0x74   : > { %v3053_v34 = vld [vmem:[%s3374_s11 + $0x344] ss:$8 sps:$4 sm:$0xff]  }
  0x75   : > { %1689 = vmatpush2.bf16.msra.mxu0 %v2986_v35  ;;  %v2674_v35 = vcombine.high %v536_v27, %v540_v28  ;;  %v3062_v49 = vld [vmem:[%s3374_s11 + $0x224] ss:$8 sps:$4 sm:$0xff]  }
  0x76   : > { %1802 = vmatpush2.bf16.msra.mxu1 %v2987_v36  ;;  %1690 = vmatprep.subr.bf16.mxu0 %v2988_v37  ;;  %v2676_v36 = vcombine.high %v537_v31, %v541_v32  ;;  %v3048_v37 = vld [vmem:[%s3374_s11 + $0x240] ss:$8 sps:$4 sm:$0xff]   ;;  %v3065_v50 = vld [vmem:[%s3374_s11 + $0x324] ss:$8 sps:$4 sm:$0xff]  }
  0x77   : > { %1803 = vmatprep.subr.bf16.mxu1 %v2990_v38  ;;  %v3051_v38 = vld [vmem:[%s3374_s11 + $0x340] ss:$8 sps:$4 sm:$0xff]  }
  0x79   : > { %1691 = vmatpush2.bf16.msra.mxu0 %v2992_v39  ;;  %v3056_v39 = vld [vmem:[%s3374_s11 + $0x234] ss:$8 sps:$4 sm:$0xff]  }
  0x7a   : > { %1804 = vmatpush2.bf16.msra.mxu1 %v2993_v40  ;;  %1692 = vmatprep.subr.bf16.mxu0 %v2994_v41  ;;  %v3059_v40 = vld [vmem:[%s3374_s11 + $0x334] ss:$8 sps:$4 sm:$0xff]   ;;  %v3054_v41 = vld [vmem:[%s3374_s11 + $0x230] ss:$8 sps:$4 sm:$0xff]  }
  0x7b   : > { %1805 = vmatprep.subr.bf16.mxu1 %v2996_v42  ;;  %v3057_v42 = vld [vmem:[%s3374_s11 + $0x330] ss:$8 sps:$4 sm:$0xff]  }
  0x7d   : > { %1693 = vmatpush2.bf16.msra.mxu0 %v2998_v43  ;;  %v544_v43 = vld [vmem:[%s3376_s12 + $0xc0] sm:$0xff] }
  0x7e   : > { %1806 = vmatpush2.bf16.msra.mxu1 %v2999_v44  ;;  %1694 = vmatprep.subr.bf16.mxu0 %v3000_v45  ;;  %v548_v44 = vld [vmem:[%s3376_s12 + $0xe0] sm:$0xff]  ;;  %v2673_v45 = vcombine.low %v536_v27, %v540_v28 }
  0x7f   : > { %1807 = vmatprep.subr.bf16.mxu1 %v3002_v46  ;;  %v2675_v46 = vcombine.low %v537_v31, %v541_v32  ;;  %v2682_v51 = vcombine.high %v544_v43, %v548_v44  ;;  %v572_v28 = vld [vmem:[%s3376_s12 + $0x1a0] sm:$0xff]  ;;  %v3090_v31 = vld [vmem:[%s3374_s11 + $0x2d0] ss:$8 sps:$4 sm:$0xff]  }
  0x80   : > { %v3093_v32 = vld [vmem:[%s3374_s11 + $0x3d0] ss:$8 sps:$4 sm:$0xff]  }
  0x81   : > { %1695 = vmatpush2.bf16.msra.mxu0 %v3004_v47  ;;  %v545_v47 = vld [vmem:[%s3376_s12 + $0xc8] sm:$0xff] }
  0x82   : > { %1808 = vmatpush2.bf16.msra.mxu1 %v3005_v48  ;;  %1696 = vmatprep.subr.bf16.mxu0 %v3006_v53  ;;  %v549_v48 = vld [vmem:[%s3376_s12 + $0xe8] sm:$0xff] }
  0x83   : > { %1809 = vmatprep.subr.bf16.mxu1 %v3008_v55  ;;  %v2684_v52 = vcombine.high %v545_v47, %v549_v48  ;;  %v3060_v53 = vld [vmem:[%s3374_s11 + $0x220] ss:$8 sps:$4 sm:$0xff]   ;;  %v3068_v55 = vld [vmem:[%s3374_s11 + $0x214] ss:$8 sps:$4 sm:$0xff]  }
  0x85   : > { %1697 = vmatpush2.bf16.msra.mxu0 %v3010_v57  ;;  %v3066_v57 = vld [vmem:[%s3374_s11 + $0x210] ss:$8 sps:$4 sm:$0xff]  }
  0x86   : > { %1810 = vmatpush2.bf16.msra.mxu1 %v3011_v58  ;;  %1698 = vmatprep.subr.bf16.mxu0 %v3012_v59  ;;  %v552_v58 = vld [vmem:[%s3376_s12 + $0x100] sm:$0xff] }
  0x87   : > { %1811 = vmatprep.subr.bf16.mxu1 %v3014_v60  ;;  %v556_v59 = vld [vmem:[%s3376_s12 + $0x120] sm:$0xff]  ;;  %v2681_v60 = vcombine.low %v544_v43, %v548_v44 }
  0x88   : > { %v2689_v11 = vcombine.low %v552_v58, %v556_v59  ;;  %v580_v44 = vld [vmem:[%s3376_s12 + $0x1e0] sm:$0xff] }
  0x89   : > { %1699 = vmatpush2.bf16.msra.mxu0 %v3016_v61  ;;  %v2683_v61 = vcombine.low %v545_v47, %v549_v48  ;;  %v3102_v47 = vld [vmem:[%s3374_s11 + $0x2b0] ss:$8 sps:$4 sm:$0xff]  }
  0x8a   : > { %1812 = vmatpush2.bf16.msra.mxu1 %v3017_v62  ;;  %1700 = vmatprep.subr.bf16.mxu0 %v3018_v63  ;;  %v553_v62 = vld [vmem:[%s3376_s12 + $0x108] sm:$0xff]  ;;  %v3105_v48 = vld [vmem:[%s3374_s11 + $0x3b0] ss:$8 sps:$4 sm:$0xff]  }
  0x8b   : > { %1813 = vmatprep.subr.bf16.mxu1 %v3020_v0  ;;  %v557_v63 = vld [vmem:[%s3376_s12 + $0x128] sm:$0xff]  ;;  %v3069_v0 = vld [vmem:[%s3374_s11 + $0x310] ss:$8 sps:$4 sm:$0xff]  }
  0x8d   : > { %1701 = vmatpush2.bf16.msra.mxu0 %v3022_v1  ;;  %v3074_v1 = vld [vmem:[%s3374_s11 + $0x204] ss:$8 sps:$4 sm:$0xff]  }
  0x8e   : > { %1814 = vmatpush2.bf16.msra.mxu1 %v3023_v2  ;;  %1702 = vmatprep.subr.bf16.mxu0 %v3024_v3  ;;  %v3077_v2 = vld [vmem:[%s3374_s11 + $0x304] ss:$8 sps:$4 sm:$0xff]   ;;  %v2690_v3 = vcombine.high %v552_v58, %v556_v59 }
  0x8f   : > { %1815 = vmatprep.subr.bf16.mxu1 %v3026_v4  ;;  %v2692_v4 = vcombine.high %v553_v62, %v557_v63 }
  0x91   : > { %1703 = vmatpush2.bf16.msra.mxu0 %v3028_v5  ;;  %v3072_v5 = vld [vmem:[%s3374_s11 + $0x200] ss:$8 sps:$4 sm:$0xff]  }
  0x92   : > { %1816 = vmatpush2.bf16.msra.mxu1 %v3029_v6  ;;  %1898 = vmatprep.subr.bf16.mxu0 %v3032_v7  ;;  %v3075_v6 = vld [vmem:[%s3374_s11 + $0x300] ss:$8 sps:$4 sm:$0xff]   ;;  %v3080_v7 = vld [vmem:[%s3374_s11 + $0x2f4] ss:$8 sps:$4 sm:$0xff]  }
  0x93   : > { %2011 = vmatprep.subr.bf16.mxu1 %v3035_v8  ;;  %v3083_v8 = vld [vmem:[%s3374_s11 + $0x3f4] ss:$8 sps:$4 sm:$0xff]  }
  0x94   : > { %1705 = vmatmul.mubr.bf16.vlgmr.msra.gmra.mxu0 %v2657_v12  ;;  %v2691_v12 = vcombine.low %v553_v62, %v557_v63  ;;  %v527_v62 = vld [vmem:[%s3376_s12 + $0x38] sm:$0xff] }
  0x95   : > { %1818 = vmatmul.mubr.bf16.vlgmr.msra.gmra.mxu1 %v2659_v13  ;;  %1899 = vmatpush1.bf16.msra.mxu0 %v3030_v9  ;;  %v560_v9 = vld [vmem:[%s3376_s12 + $0x140] sm:$0xff]  ;;  %v561_v13 = vld [vmem:[%s3376_s12 + $0x148] sm:$0xff]  ;;  %v3114_v63 = vld [vmem:[%s3374_s11 + $0x290] ss:$8 sps:$4 sm:$0xff]  }
  0x96   : > { %2012 = vmatpush1.bf16.msra.mxu1 %v3033_v10  ;;  %1900 = vmatprep.subr.bf16.mxu0 %v3038_v17  ;;  %v564_v10 = vld [vmem:[%s3376_s12 + $0x160] sm:$0xff]  ;;  %v2699_v27 = vcombine.low %v561_v13, %v565_v14 }
  0x97   : > { %2013 = vmatprep.subr.bf16.mxu1 %v3041_v18  ;;  %1714 = vmatprep.mubr.bf16.mxu0 %v2666_v19  ;;  %v3086_v17 = vld [vmem:[%s3374_s11 + $0x2e4] ss:$8 sps:$4 sm:$0xff]   ;;  %v2698_v19 = vcombine.high %v560_v9, %v564_v10 }
  0x98   : > { %1827 = vmatprep.mubr.bf16.mxu1 %v2668_v20  ;;  %v3089_v18 = vld [vmem:[%s3374_s11 + $0x3e4] ss:$8 sps:$4 sm:$0xff]   ;;  %v2700_v20 = vcombine.high %v561_v13, %v565_v14 }
  0x99   : > { %1901 = vmatpush1.bf16.msra.mxu0 %v3036_v21  ;;  %v3084_v21 = vld [vmem:[%s3374_s11 + $0x2e0] ss:$8 sps:$4 sm:$0xff]  }
  0x9a   : > { %2014 = vmatpush1.bf16.msra.mxu1 %v3039_v22  ;;  %1902 = vmatprep.subr.bf16.mxu0 %v3044_v23  ;;  %v3087_v22 = vld [vmem:[%s3374_s11 + $0x3e0] ss:$8 sps:$4 sm:$0xff]   ;;  %v3092_v23 = vld [vmem:[%s3374_s11 + $0x2d4] ss:$8 sps:$4 sm:$0xff]  }
  0x9b   : > { %2015 = vmatprep.subr.bf16.mxu1 %v3047_v24  ;;  %v3095_v24 = vld [vmem:[%s3374_s11 + $0x3d4] ss:$8 sps:$4 sm:$0xff]  }
  0x9c   : > { %1715 = vmatmul.mubr.bf16.gmra.mxu0 %v2665_v29  ;;  %v569_v29 = vld [vmem:[%s3376_s12 + $0x188] sm:$0xff] }
  0x9d   : > { %1828 = vmatmul.mubr.bf16.gmra.mxu1 %v2667_v30  ;;  %1903 = vmatpush1.bf16.msra.mxu0 %v3042_v25  ;;  %v568_v25 = vld [vmem:[%s3376_s12 + $0x180] sm:$0xff]  ;;  %v573_v30 = vld [vmem:[%s3376_s12 + $0x1a8] sm:$0xff] }
  0x9e   : > { %2016 = vmatpush1.bf16.msra.mxu1 %v3045_v26  ;;  %1904 = vmatprep.subr.bf16.mxu0 %v3050_v33  ;;  %v2697_v26 = vcombine.low %v560_v9, %v564_v10  ;;  %v3098_v33 = vld [vmem:[%s3374_s11 + $0x2c4] ss:$8 sps:$4 sm:$0xff]   ;;  %v2707_v43 = vcombine.low %v569_v29, %v573_v30  ;;  %v531_v9 = vld [vmem:[%s3376_s12 + $0x58] sm:$0xff] }
  0x9f   : > { %2017 = vmatprep.subr.bf16.mxu1 %v3053_v34  ;;  %1724 = vmatprep.mubr.bf16.mxu0 %v2674_v35  ;;  %v3101_v34 = vld [vmem:[%s3374_s11 + $0x3c4] ss:$8 sps:$4 sm:$0xff]   ;;  %v2706_v35 = vcombine.high %v568_v25, %v572_v28  ;;  %v535_v10 = vld [vmem:[%s3376_s12 + $0x78] sm:$0xff] }
  0xa0   : > { %1837 = vmatprep.mubr.bf16.mxu1 %v2676_v36  ;;  %v2708_v36 = vcombine.high %v569_v29, %v573_v30  ;;  %v2672_v14 = vcombine.high %v531_v9, %v535_v10 }
  0xa1   : > { %1905 = vmatpush1.bf16.msra.mxu0 %v3048_v37  ;;  %v3096_v37 = vld [vmem:[%s3374_s11 + $0x2c0] ss:$8 sps:$4 sm:$0xff]  }
  0xa2   : > { %2018 = vmatpush1.bf16.msra.mxu1 %v3051_v38  ;;  %1906 = vmatprep.subr.bf16.mxu0 %v3056_v39  ;;  %v3099_v38 = vld [vmem:[%s3374_s11 + $0x3c0] ss:$8 sps:$4 sm:$0xff]   ;;  %v3104_v39 = vld [vmem:[%s3374_s11 + $0x2b4] ss:$8 sps:$4 sm:$0xff]  }
  0xa3   : > { %2019 = vmatprep.subr.bf16.mxu1 %v3059_v40  ;;  %v3107_v40 = vld [vmem:[%s3374_s11 + $0x3b4] ss:$8 sps:$4 sm:$0xff]  }
  0xa4   : > { %1725 = vmatmul.mubr.bf16.gmra.mxu0 %v2673_v45  ;;  %v577_v45 = vld [vmem:[%s3376_s12 + $0x1c8] sm:$0xff] }
  0xa5   : > { %1838 = vmatmul.mubr.bf16.gmra.mxu1 %v2675_v46  ;;  %1907 = vmatpush1.bf16.msra.mxu0 %v3054_v41  ;;  %v576_v41 = vld [vmem:[%s3376_s12 + $0x1c0] sm:$0xff]  ;;  %v581_v46 = vld [vmem:[%s3376_s12 + $0x1e8] sm:$0xff] }
  0xa6   : > { %2020 = vmatpush1.bf16.msra.mxu1 %v3057_v42  ;;  %1908 = vmatprep.subr.bf16.mxu0 %v3062_v49  ;;  %v2705_v42 = vcombine.low %v568_v25, %v572_v28  ;;  %v3110_v49 = vld [vmem:[%s3374_s11 + $0x2a4] ss:$8 sps:$4 sm:$0xff]   ;;  %v2713_v58 = vcombine.low %v576_v41, %v580_v44  ;;  %v2715_v59 = vcombine.low %v577_v45, %v581_v46  ;;  %v547_v25 = vld [vmem:[%s3376_s12 + $0xd8] sm:$0xff] }
  0xa7   : > { %2021 = vmatprep.subr.bf16.mxu1 %v3065_v50  ;;  %1734 = vmatprep.mubr.bf16.mxu0 %v2682_v51  ;;  %v3113_v50 = vld [vmem:[%s3374_s11 + $0x3a4] ss:$8 sps:$4 sm:$0xff]   ;;  %v2714_v51 = vcombine.high %v576_v41, %v580_v44  ;;  %v563_v41 = vld [vmem:[%s3376_s12 + $0x158] sm:$0xff] }
  0xa8   : > { %1847 = vmatprep.mubr.bf16.mxu1 %v2684_v52  ;;  %v2716_v52 = vcombine.high %v577_v45, %v581_v46 }
  0xa9   : > { %1909 = vmatpush1.bf16.msra.mxu0 %v3060_v53  ;;  %v3108_v53 = vld [vmem:[%s3374_s11 + $0x2a0] ss:$8 sps:$4 sm:$0xff]  }
  0xaa   : > { %2022 = vmatpush1.bf16.msra.mxu1 %v3063_v54  ;;  %1910 = vmatprep.subr.bf16.mxu0 %v3068_v55  ;;  %v3111_v54 = vld [vmem:[%s3374_s11 + $0x3a0] ss:$8 sps:$4 sm:$0xff]   ;;  %v3116_v55 = vld [vmem:[%s3374_s11 + $0x294] ss:$8 sps:$4 sm:$0xff]  }
  0xab   : > { %2023 = vmatprep.subr.bf16.mxu1 %v3071_v56  ;;  %v3119_v56 = vld [vmem:[%s3374_s11 + $0x394] ss:$8 sps:$4 sm:$0xff]  }
  0xac   : > { %1735 = vmatmul.mubr.bf16.gmra.mxu0 %v2681_v60  ;;  %v526_v60 = vld [vmem:[%s3376_s12 + $0x30] sm:$0xff] }
  0xad   : > { %1848 = vmatmul.mubr.bf16.gmra.mxu1 %v2683_v61  ;;  %1911 = vmatpush1.bf16.msra.mxu0 %v3066_v57  ;;  %v522_v57 = vld [vmem:[%s3376_s12 + $0x10] sm:$0xff]  ;;  %v523_v61 = vld [vmem:[%s3376_s12 + $0x18] sm:$0xff] }
  0xae   : > { %2024 = vmatpush1.bf16.msra.mxu1 %v3069_v0  ;;  %1912 = vmatprep.subr.bf16.mxu0 %v3074_v1  ;;  %v3117_v0 = vld [vmem:[%s3374_s11 + $0x390] ss:$8 sps:$4 sm:$0xff]   ;;  %v3122_v1 = vld [vmem:[%s3374_s11 + $0x284] ss:$8 sps:$4 sm:$0xff]  }
  0xaf   : > { %2025 = vmatprep.subr.bf16.mxu1 %v3077_v2  ;;  %1744 = vmatprep.mubr.bf16.mxu0 %v2690_v3  ;;  %v3125_v2 = vld [vmem:[%s3374_s11 + $0x384] ss:$8 sps:$4 sm:$0xff]   ;;  %v2662_v3 = vcombine.high %v522_v57, %v526_v60 }
  0xb0   : > { %1857 = vmatprep.mubr.bf16.mxu1 %v2692_v4  ;;  %v2664_v4 = vcombine.high %v523_v61, %v527_v62 }
  0xb1   : > { %1913 = vmatpush1.bf16.msra.mxu0 %v3072_v5  ;;  %v3120_v5 = vld [vmem:[%s3374_s11 + $0x280] ss:$8 sps:$4 sm:$0xff]  }
  0xb2   : > { %2026 = vmatpush1.bf16.msra.mxu1 %v3075_v6  ;;  %1914 = vmatprep.subr.bf16.mxu0 %v3080_v7  ;;  %v3123_v6 = vld [vmem:[%s3374_s11 + $0x380] ss:$8 sps:$4 sm:$0xff]   ;;  %v530_v7 = vld [vmem:[%s3376_s12 + $0x50] sm:$0xff] }
  0xb3   : > { %2027 = vmatprep.subr.bf16.mxu1 %v3083_v8  ;;  %v534_v8 = vld [vmem:[%s3376_s12 + $0x70] sm:$0xff] }
  0xb4   : > { %1745 = vmatmul.mubr.bf16.gmra.mxu0 %v2689_v11  ;;  %v2661_v11 = vcombine.low %v522_v57, %v526_v60  ;;  %v2670_v13 = vcombine.high %v530_v7, %v534_v8  ;;  %v579_v57 = vld [vmem:[%s3376_s12 + $0x1d8] sm:$0xff] }
  0xb5   : > { %1858 = vmatmul.mubr.bf16.gmra.mxu1 %v2691_v12  ;;  %1915 = vmatpush2.bf16.msra.mxu0 %v3078_v15  ;;  %v2663_v12 = vcombine.low %v523_v61, %v527_v62  ;;  %v538_v15 = vld [vmem:[%s3376_s12 + $0x90] sm:$0xff] }
  0xb6   : > { %2028 = vmatpush2.bf16.msra.mxu1 %v3081_v16  ;;  %1916 = vmatprep.subr.bf16.mxu0 %v3086_v17  ;;  %v542_v16 = vld [vmem:[%s3376_s12 + $0xb0] sm:$0xff]  ;;  %v539_v17 = vld [vmem:[%s3376_s12 + $0x98] sm:$0xff] }
  0xb7   : > { %2029 = vmatprep.subr.bf16.mxu1 %v3089_v18  ;;  %1754 = vmatprep.mubr.bf16.mxu0 %v2698_v19  ;;  %v543_v18 = vld [vmem:[%s3376_s12 + $0xb8] sm:$0xff]  ;;  %v2669_v19 = vcombine.low %v530_v7, %v534_v8 }
  0xb8   : > { %1867 = vmatprep.mubr.bf16.mxu1 %v2700_v20  ;;  %v2671_v20 = vcombine.low %v531_v9, %v535_v10  ;;  %v2679_v28 = vcombine.low %v539_v17, %v543_v18 }
  0xb9   : > { %1917 = vmatpush2.bf16.msra.mxu0 %v3084_v21  ;;  %v2678_v21 = vcombine.high %v538_v15, %v542_v16 }
  0xba   : > { %2030 = vmatpush2.bf16.msra.mxu1 %v3087_v22  ;;  %1918 = vmatprep.subr.bf16.mxu0 %v3092_v23  ;;  %v2680_v22 = vcombine.high %v539_v17, %v543_v18  ;;  %v546_v23 = vld [vmem:[%s3376_s12 + $0xd0] sm:$0xff] }
  0xbb   : > { %2031 = vmatprep.subr.bf16.mxu1 %v3095_v24  ;;  %v550_v24 = vld [vmem:[%s3376_s12 + $0xf0] sm:$0xff] }
  0xbc   : > { %1755 = vmatmul.mubr.bf16.gmra.mxu0 %v2697_v26  ;;  %v551_v26 = vld [vmem:[%s3376_s12 + $0xf8] sm:$0xff]  ;;  %v2686_v29 = vcombine.high %v546_v23, %v550_v24 }
  0xbd   : > { %1868 = vmatmul.mubr.bf16.gmra.mxu1 %v2699_v27  ;;  %1919 = vmatpush2.bf16.msra.mxu0 %v3090_v31  ;;  %v2677_v27 = vcombine.low %v538_v15, %v542_v16  ;;  %v2688_v30 = vcombine.high %v547_v25, %v551_v26  ;;  %v554_v31 = vld [vmem:[%s3376_s12 + $0x110] sm:$0xff] }
  0xbe   : > { %2032 = vmatpush2.bf16.msra.mxu1 %v3093_v32  ;;  %1920 = vmatprep.subr.bf16.mxu0 %v3098_v33  ;;  %v558_v32 = vld [vmem:[%s3376_s12 + $0x130] sm:$0xff]  ;;  %v555_v33 = vld [vmem:[%s3376_s12 + $0x118] sm:$0xff] }
  0xbf   : > { %2033 = vmatprep.subr.bf16.mxu1 %v3101_v34  ;;  %1764 = vmatprep.mubr.bf16.mxu0 %v2706_v35  ;;  %v559_v34 = vld [vmem:[%s3376_s12 + $0x138] sm:$0xff]  ;;  %v2685_v35 = vcombine.low %v546_v23, %v550_v24 }
  0xc0   : > { %1877 = vmatprep.mubr.bf16.mxu1 %v2708_v36  ;;  %v2687_v36 = vcombine.low %v547_v25, %v551_v26  ;;  %v2695_v44 = vcombine.low %v555_v33, %v559_v34 }
  0xc1   : > { %1921 = vmatpush2.bf16.msra.mxu0 %v3096_v37  ;;  %v2694_v37 = vcombine.high %v554_v31, %v558_v32 }
  0xc2   : > { %2034 = vmatpush2.bf16.msra.mxu1 %v3099_v38  ;;  %1922 = vmatprep.subr.bf16.mxu0 %v3104_v39  ;;  %v2696_v38 = vcombine.high %v555_v33, %v559_v34  ;;  %v562_v39 = vld [vmem:[%s3376_s12 + $0x150] sm:$0xff] }
  0xc3   : > { %2035 = vmatprep.subr.bf16.mxu1 %v3107_v40  ;;  %v566_v40 = vld [vmem:[%s3376_s12 + $0x170] sm:$0xff] }
  0xc4   : > { %1765 = vmatmul.mubr.bf16.gmra.mxu0 %v2705_v42  ;;  %v567_v42 = vld [vmem:[%s3376_s12 + $0x178] sm:$0xff]  ;;  %v2702_v45 = vcombine.high %v562_v39, %v566_v40 }
  0xc5   : > { %1878 = vmatmul.mubr.bf16.gmra.mxu1 %v2707_v43  ;;  %1923 = vmatpush2.bf16.msra.mxu0 %v3102_v47  ;;  %v2693_v43 = vcombine.low %v554_v31, %v558_v32  ;;  %v2704_v46 = vcombine.high %v563_v41, %v567_v42  ;;  %v570_v47 = vld [vmem:[%s3376_s12 + $0x190] sm:$0xff] }
  0xc6   : > { %2036 = vmatpush2.bf16.msra.mxu1 %v3105_v48  ;;  %1924 = vmatprep.subr.bf16.mxu0 %v3110_v49  ;;  %v574_v48 = vld [vmem:[%s3376_s12 + $0x1b0] sm:$0xff]  ;;  %v571_v49 = vld [vmem:[%s3376_s12 + $0x198] sm:$0xff] }
  0xc7   : > { %2037 = vmatprep.subr.bf16.mxu1 %v3113_v50  ;;  %1774 = vmatprep.mubr.bf16.mxu0 %v2714_v51  ;;  %v575_v50 = vld [vmem:[%s3376_s12 + $0x1b8] sm:$0xff]  ;;  %v2701_v51 = vcombine.low %v562_v39, %v566_v40 }
  0xc8   : > { %1887 = vmatprep.mubr.bf16.mxu1 %v2716_v52  ;;  %v2703_v52 = vcombine.low %v563_v41, %v567_v42  ;;  %v2711_v60 = vcombine.low %v571_v49, %v575_v50 }
  0xc9   : > { %1925 = vmatpush2.bf16.msra.mxu0 %v3108_v53  ;;  %v2710_v53 = vcombine.high %v570_v47, %v574_v48 }
  0xca   : > { %2038 = vmatpush2.bf16.msra.mxu1 %v3111_v54  ;;  %1926 = vmatprep.subr.bf16.mxu0 %v3116_v55  ;;  %v2712_v54 = vcombine.high %v571_v49, %v575_v50  ;;  %v578_v55 = vld [vmem:[%s3376_s12 + $0x1d0] sm:$0xff] }
  0xcb   : > { %2039 = vmatprep.subr.bf16.mxu1 %v3119_v56  ;;  %v582_v56 = vld [vmem:[%s3376_s12 + $0x1f0] sm:$0xff] }
  0xcc   : > { %1775 = vmatmul.mubr.bf16.gmra.mxu0 %v2713_v58  ;;  %v583_v58 = vld [vmem:[%s3376_s12 + $0x1f8] sm:$0xff]  ;;  %v2718_v61 = vcombine.high %v578_v55, %v582_v56 }
  0xcd   : > { %1888 = vmatmul.mubr.bf16.gmra.mxu1 %v2715_v59  ;;  %1927 = vmatpush2.bf16.msra.mxu0 %v3114_v63  ;;  %v2709_v59 = vcombine.low %v570_v47, %v574_v48  ;;  %v2720_v62 = vcombine.high %v579_v57, %v583_v58  ;;  %v2717_v63 = vcombine.low %v578_v55, %v582_v56 }
  0xce   : > { %2040 = vmatpush2.bf16.msra.mxu1 %v3117_v0  ;;  %1928 = vmatprep.subr.bf16.mxu0 %v3122_v1  ;;  %v2719_v0 = vcombine.low %v579_v57, %v583_v58 }
  0xcf   : > { %2041 = vmatprep.subr.bf16.mxu1 %v3125_v2  ;;  %1930 = vmatprep.mubr.bf16.mxu0 %v2662_v3 }
  0xd0   : > { %2043 = vmatprep.mubr.bf16.mxu1 %v2664_v4 }
  0xd1   : > { %1929 = vmatpush2.bf16.msra.mxu0 %v3120_v5 }
  0xd2   : > { %2042 = vmatpush2.bf16.msra.mxu1 %v3123_v6 }
  0xd4   : > { %1931 = vmatmul.mubr.bf16.vlgmr.msra.gmra.mxu0 %v2661_v11 }
  0xd5   : > { %2044 = vmatmul.mubr.bf16.vlgmr.msra.gmra.mxu1 %v2663_v12  ;;  %1940 = vmatprep.mubr.bf16.mxu0 %v2670_v13 }
  0xd6   : > { %2053 = vmatprep.mubr.bf16.mxu1 %v2672_v14 }
  0xdc   : > { %1941 = vmatmul.mubr.bf16.gmra.mxu0 %v2669_v19 }
  0xdd   : > { %2054 = vmatmul.mubr.bf16.gmra.mxu1 %v2671_v20  ;;  %1950 = vmatprep.mubr.bf16.mxu0 %v2678_v21 }
  0xde   : > { %2063 = vmatprep.mubr.bf16.mxu1 %v2680_v22 }
  0xe4   : > { %1951 = vmatmul.mubr.bf16.gmra.mxu0 %v2677_v27 }
  0xe5   : > { %2064 = vmatmul.mubr.bf16.gmra.mxu1 %v2679_v28  ;;  %1960 = vmatprep.mubr.bf16.mxu0 %v2686_v29 }
  0xe6   : > { %2073 = vmatprep.mubr.bf16.mxu1 %v2688_v30 }
  0xec   : > { %1961 = vmatmul.mubr.bf16.gmra.mxu0 %v2685_v35 }
  0xed   : > { %2074 = vmatmul.mubr.bf16.gmra.mxu1 %v2687_v36  ;;  %1970 = vmatprep.mubr.bf16.mxu0 %v2694_v37 }
  0xee   : > { %2083 = vmatprep.mubr.bf16.mxu1 %v2696_v38 }
  0xf4   : > { %1971 = vmatmul.mubr.bf16.gmra.mxu0 %v2693_v43 }
  0xf5   : > { %2084 = vmatmul.mubr.bf16.gmra.mxu1 %v2695_v44  ;;  %1980 = vmatprep.mubr.bf16.mxu0 %v2702_v45 }
  0xf6   : > { %2093 = vmatprep.mubr.bf16.mxu1 %v2704_v46 }
  0xfc   : > { %1981 = vmatmul.mubr.bf16.gmra.mxu0 %v2701_v51 }
  0xfd   : > { %2094 = vmatmul.mubr.bf16.gmra.mxu1 %v2703_v52  ;;  %1990 = vmatprep.mubr.bf16.mxu0 %v2710_v53 }
  0xfe   : > { %2103 = vmatprep.mubr.bf16.mxu1 %v2712_v54 }
 0x104   : > { %1991 = vmatmul.mubr.bf16.gmra.mxu0 %v2709_v59 }
 0x105   : > { %2104 = vmatmul.mubr.bf16.gmra.mxu1 %v2711_v60  ;;  %2000 = vmatprep.mubr.bf16.mxu0 %v2718_v61 }
 0x106   : > { %2113 = vmatprep.mubr.bf16.mxu1 %v2720_v62 }
 0x10c   : > { %2001 = vmatmul.mubr.bf16.gmra.mxu0 %v2717_v63 }
 0x10d   : > { %2114 = vmatmul.mubr.bf16.gmra.mxu1 %v2719_v0 }
 0x154   : > { %v3571_v1 = vpop.f32.mrf.mxu0 }
 0x155   : > { %v3573_v2 = vpop.f32.mrf.mxu1 }
 0x156   : > { %v3575_v3 = vpop.f32.mrf.mxu0 }
 0x157   : > { %v3577_v4 = vpop.f32.mrf.mxu1 }
 0x158   : > { %v3579_v5 = vpop.f32.mrf.mxu0 }
 0x159   : > { %v3581_v6 = vpop.f32.mrf.mxu1 }
 0x15a   : > { %v3583_v7 = vpop.f32.mrf.mxu0 }
 0x15b   : > { %v3585_v8 = vpop.f32.mrf.mxu1 }
 0x15c   : > { %v3587_v9 = vpop.f32.mrf.mxu0 }
 0x15d   : > { %v3589_v10 = vpop.f32.mrf.mxu1 }
 0x15e   : > { %v3591_v11 = vpop.f32.mrf.mxu0 }
 0x15f   : > { %v3593_v12 = vpop.f32.mrf.mxu1 }
 0x160   : > { %v3595_v13 = vpop.f32.mrf.mxu0 }
 0x161   : > { %v3597_v14 = vpop.f32.mrf.mxu1 }
 0x162   : > { %v3599_v15 = vpop.f32.mrf.mxu0 }
 0x163   : > { %v3601_v16 = vpop.f32.mrf.mxu1 }
 0x164   : > { %v3603_v17 = vpop.f32.mrf.mxu0 }
 0x165   : > { %v3605_v18 = vpop.f32.mrf.mxu1 }
 0x166   : > { %v3607_v19 = vpop.f32.mrf.mxu0 }
 0x167   : > { %v3609_v20 = vpop.f32.mrf.mxu1 }
 0x168   : > { %v3611_v21 = vpop.f32.mrf.mxu0 }
 0x169   : > { %v3613_v22 = vpop.f32.mrf.mxu1 }
 0x16a   : > { %v3615_v23 = vpop.f32.mrf.mxu0 }
 0x16b   : > { %v3617_v24 = vpop.f32.mrf.mxu1 }
 0x16c   : > { %v3619_v25 = vpop.f32.mrf.mxu0 }
 0x16d   : > { %v3621_v26 = vpop.f32.mrf.mxu1 }
 0x16e   : > { %v3623_v27 = vpop.f32.mrf.mxu0 }
 0x16f   : > { %v3625_v28 = vpop.f32.mrf.mxu1 }
 0x170   : > { %v3627_v29 = vpop.f32.mrf.mxu0 }
 0x171   : > { %v3629_v30 = vpop.f32.mrf.mxu1 }
 0x172   : > { %v3631_v31 = vpop.f32.mrf.mxu0 }
 0x173   : > { %v3633_v32 = vpop.f32.mrf.mxu1 }
 0x174   : > { %v3635_v33 = vpop.f32.mrf.mxu0 }
 0x175   : > { %v3637_v34 = vpop.f32.mrf.mxu1 }
 0x176   : > { %v3639_v35 = vpop.f32.mrf.mxu0 }
 0x177   : > { %v3641_v36 = vpop.f32.mrf.mxu1 }
 0x178   : > { %v3643_v37 = vpop.f32.mrf.mxu0 }
 0x179   : > { %v3645_v38 = vpop.f32.mrf.mxu1 }
 0x17a   : > { %v3647_v39 = vpop.f32.mrf.mxu0 }
 0x17b   : > { %v3649_v40 = vpop.f32.mrf.mxu1 }
 0x17c   : > { %v3651_v41 = vpop.f32.mrf.mxu0 }
 0x17d   : > { %v3653_v42 = vpop.f32.mrf.mxu1 }
 0x17e   : > { %v3655_v43 = vpop.f32.mrf.mxu0 }
 0x17f   : > { %v3657_v44 = vpop.f32.mrf.mxu1 }
 0x180   : > { %v3659_v45 = vpop.f32.mrf.mxu0 }
 0x181   : > { %v3661_v46 = vpop.f32.mrf.mxu1 }
 0x182   : > { %v3663_v47 = vpop.f32.mrf.mxu0 }
 0x183   : > { %v3665_v48 = vpop.f32.mrf.mxu1 }
 0x184   : > { %3928 = vst [vmem:[#allocation4_spill] sm:$0xff] %v3665_v48  ;;  %v3667_v49 = vpop.f32.mrf.mxu0  ;;  %v490_v48 = vld [vmem:[#allocation2 + $0xd8] sm:$0xff] }
 0x185   : > { %3929 = vst [vmem:[#allocation5_spill] sm:$0xff] %v3667_v49  ;;  %v3669_v50 = vpop.f32.mrf.mxu1 }
 0x186   : > { %3930 = vst [vmem:[#allocation6_spill] sm:$0xff] %v3669_v50  ;;  %v3671_v51 = vpop.f32.mrf.mxu0 }
 0x187   : > { %3931 = vst [vmem:[#allocation7_spill] sm:$0xff] %v3671_v51  ;;  %v3673_v52 = vpop.f32.mrf.mxu1 }
 0x188   : > { %3932 = vst [vmem:[#allocation8_spill] sm:$0xff] %v3673_v52  ;;  %v3675_v53 = vpop.f32.mrf.mxu0 }
 0x189   : > { %3933 = vst [vmem:[#allocation9_spill] sm:$0xff] %v3675_v53  ;;  %v3677_v54 = vpop.f32.mrf.mxu1 }
 0x18a   : > { %3934 = vst [vmem:[#allocation10_spill] sm:$0xff] %v3677_v54  ;;  %v3679_v55 = vpop.f32.mrf.mxu0 }
 0x18b   : > { %3935 = vst [vmem:[#allocation11_spill] sm:$0xff] %v3679_v55  ;;  %v3681_v56 = vpop.f32.mrf.mxu1  ;;  %v1820_v55 = vadd.f32 %v3573_v2, %v3571_v1  ;;  %v1826_v1 = vadd.f32 %v3585_v8, %v3583_v7 }
 0x18c   : > { %3936 = vst [vmem:[#allocation12_spill] sm:$0xff] %v3681_v56  ;;  %v3683_v57 = vpop.f32.mrf.mxu0 }
 0x18d   : > { %3937 = vst [vmem:[#allocation13_spill] sm:$0xff] %v3683_v57  ;;  %v3685_v58 = vpop.f32.mrf.mxu1 }
 0x18e   : > { %3938 = vst [vmem:[#allocation14_spill] sm:$0xff] %v3685_v58  ;;  %v3687_v59 = vpop.f32.mrf.mxu0  ;;  %v1822_v58 = vadd.f32 %v3577_v4, %v3575_v3 }
 0x18f   : > { %3939 = vst [vmem:[#allocation15_spill] sm:$0xff] %v3687_v59  ;;  %v3689_v60 = vpop.f32.mrf.mxu1  ;;  %v488_v59 = vld [vmem:[#allocation2 + $0xb0] sm:$0xff] }
 0x190   : > { %3940 = vst [vmem:[#allocation16_spill] sm:$0xff] %v3689_v60  ;;  %v3691_v61 = vpop.f32.mrf.mxu0 }
 0x191   : > { %3941 = vst [vmem:[#allocation17_spill] sm:$0xff] %v3691_v61  ;;  %v3693_v62 = vpop.f32.mrf.mxu1  ;;  %v1824_v61 = vadd.f32 %v3581_v6, %v3579_v5 }
 0x192   : > { %3942 = vst [vmem:[#allocation18_spill] sm:$0xff] %v3693_v62  ;;  %v3695_v63 = vpop.f32.mrf.mxu0 }
 0x193   : > { %3943 = vst [vmem:[#allocation19_spill] sm:$0xff] %v3695_v63  ;;  %v3697_v0 = vpop.f32.mrf.mxu1  ;;  %v489_v63 = vld [vmem:[#allocation2] sm:$0xff] }
 0x194   : > { %3944 = vst [vmem:[#allocation20_spill] sm:$0xff] %v3697_v0  ;;  %v1932_v56 = vpop.f32.mrf.mxu0 }
 0x195   : > { %v2045_v54 = vpop.f32.mrf.mxu1  ;;  %v1933_v57 = vadd.f32 %v1932_v56, %v1820_v55  ;;  %v1830_v55 = vadd.f32 %v3589_v10, %v3587_v9  ;;  %v1834_v9 = vadd.f32 %v3597_v14, %v3595_v13  ;;  %v1840_v13 = vadd.f32 %v3605_v18, %v3603_v17 }
 0x196   : > { %v1934_v53 = vpop.f32.mrf.mxu0  ;;  %v1844_v17 = vadd.f32 %v3613_v22, %v3611_v21  ;;  %v1850_v21 = vadd.f32 %v3621_v26, %v3619_v25  ;;  %v1854_v25 = vadd.f32 %v3629_v30, %v3627_v29  ;;  %v1860_v29 = vadd.f32 %v3637_v34, %v3635_v33 }
 0x197   : > { %v2047_v60 = vpop.f32.mrf.mxu1  ;;  %v2046_v62 = vadd.f32 %v2045_v54, %v1933_v57  ;;  %v1935_v52 = vadd.f32 %v1934_v53, %v1822_v58  ;;  %v491_v53 = vld [vmem:[#allocation2 + $0x18] sm:$0xff]  ;;  %v1832_v58 = vadd.f32 %v3593_v12, %v3591_v11  ;;  %v1836_v11 = vadd.f32 %v3601_v16, %v3599_v15 }
 0x198   : > { %v1936_v51 = vpop.f32.mrf.mxu0  ;;  %v1842_v15 = vadd.f32 %v3609_v20, %v3607_v19  ;;  %v1846_v19 = vadd.f32 %v3617_v24, %v3615_v23  ;;  %v1852_v23 = vadd.f32 %v3625_v28, %v3623_v27  ;;  %v1856_v27 = vadd.f32 %v3633_v32, %v3631_v31 }
 0x199   : > { %v2049_v0 = vpop.f32.mrf.mxu1  ;;  %v2124_v2 = vadd.f32 %v2046_v62, %v488_v59  ;;  %v2048_v50 = vadd.f32 %v2047_v60, %v1935_v52  ;;  %v1937_v49 = vadd.f32 %v1936_v51, %v1824_v61  ;;  %v492_v52 = vld [vmem:[#allocation2 + $0x50] sm:$0xff]  ;;  %v493_v61 = vld [vmem:[#allocation2 + $0x68] sm:$0xff]  ;;  %v1862_v31 = vadd.f32 %v3641_v36, %v3639_v35 }
 0x19a   : > { %v1938_v3 = vpop.f32.mrf.mxu0  ;;  %v1864_v33 = vadd.f32 %v3645_v38, %v3643_v37  ;;  %v1866_v35 = vadd.f32 %v3649_v40, %v3647_v39  ;;  %v1870_v37 = vadd.f32 %v3653_v42, %v3651_v41  ;;  %v1872_v39 = vadd.f32 %v3657_v44, %v3655_v43 }
 0x19b   : > { %v2051_v4 = vpop.f32.mrf.mxu1  ;;  %2156 = vst [vmem:[#allocation2 + $0xb0] sm:$0xff] %v2124_v2  ;;  %v2125_v56 = vadd.f32 %v2048_v50, %v489_v63  ;;  %v2050_v5 = vadd.f32 %v2049_v0, %v1937_v49  ;;  %v1939_v6 = vadd.f32 %v1938_v3, %v1826_v1  ;;  %v494_v1 = vld [vmem:[#allocation2 + $0x30] sm:$0xff]  ;;  %v1874_v41 = vadd.f32 %v3661_v46, %v3659_v45 }
 0x19c   : > { %v1942_v54 = vpop.f32.mrf.mxu0 }
 0x19d   : > { %v2055_v57 = vpop.f32.mrf.mxu1  ;;  %2157 = vst [vmem:[#allocation2] sm:$0xff] %v2125_v56  ;;  %v2126_v7 = vadd.f32 %v2050_v5, %v490_v48  ;;  %v2052_v8 = vadd.f32 %v2051_v4, %v1939_v6  ;;  %v1943_v51 = vadd.f32 %v1942_v54, %v1830_v55  ;;  %v495_v56 = vld [vmem:[#allocation2 + $0x48] sm:$0xff] }
 0x19e   : > { %v1944_v59 = vpop.f32.mrf.mxu0 }
 0x19f   : > { %v2057_v60 = vpop.f32.mrf.mxu1  ;;  %2158 = vst [vmem:[#allocation2 + $0xd8] sm:$0xff] %v2126_v7  ;;  %v2127_v10 = vadd.f32 %v2052_v8, %v491_v53  ;;  %v2056_v49 = vadd.f32 %v2055_v57, %v1943_v51  ;;  %v1945_v50 = vadd.f32 %v1944_v59, %v1832_v58  ;;  %v496_v57 = vld [vmem:[#allocation2 + $0x80] sm:$0xff] }
 0x1a0   : > { %v1946_v62 = vpop.f32.mrf.mxu0 }
 0x1a1   : > { %v2059_v63 = vpop.f32.mrf.mxu1  ;;  %2159 = vst [vmem:[#allocation2 + $0x18] sm:$0xff] %v2127_v10  ;;  %v2128_v12 = vadd.f32 %v2056_v49, %v492_v52  ;;  %v2058_v48 = vadd.f32 %v2057_v60, %v1945_v50  ;;  %v1947_v0 = vadd.f32 %v1946_v62, %v1834_v9  ;;  %v497_v52 = vld [vmem:[#allocation2 + $0x88] sm:$0xff] }
 0x1a2   : > { %v1948_v2 = vpop.f32.mrf.mxu0  ;;  %v498_v49 = vld [vmem:[#allocation2 + $0xe8] sm:$0xff] }
 0x1a3   : > { %v2061_v3 = vpop.f32.mrf.mxu1  ;;  %2160 = vst [vmem:[#allocation2 + $0x50] sm:$0xff] %v2128_v12  ;;  %v2129_v14 = vadd.f32 %v2058_v48, %v493_v61  ;;  %v2060_v4 = vadd.f32 %v2059_v63, %v1947_v0  ;;  %v1949_v55 = vadd.f32 %v1948_v2, %v1836_v11  ;;  %v499_v11 = vld [vmem:[#allocation2 + $0xb8] sm:$0xff]  ;;  %v500_v2 = vld [vmem:[#allocation2 + $0x60] sm:$0xff] }
 0x1a4   : > { %v1952_v5 = vpop.f32.mrf.mxu0 }
 0x1a5   : > { %v2065_v6 = vpop.f32.mrf.mxu1  ;;  %2161 = vst [vmem:[#allocation2 + $0x68] sm:$0xff] %v2129_v14  ;;  %v2130_v16 = vadd.f32 %v2060_v4, %v494_v1  ;;  %v2062_v53 = vadd.f32 %v2061_v3, %v1949_v55  ;;  %v1953_v54 = vadd.f32 %v1952_v5, %v1840_v13  ;;  %v501_v55 = vld [vmem:[#allocation2 + $0xf0] sm:$0xff] }
 0x1a6   : > { %v1954_v58 = vpop.f32.mrf.mxu0 }
 0x1a7   : > { %v2067_v7 = vpop.f32.mrf.mxu1  ;;  %2162 = vst [vmem:[#allocation2 + $0x30] sm:$0xff] %v2130_v16  ;;  %v2131_v18 = vadd.f32 %v2062_v53, %v495_v56  ;;  %v2066_v8 = vadd.f32 %v2065_v6, %v1953_v54  ;;  %v1955_v51 = vadd.f32 %v1954_v58, %v1842_v15  ;;  %v502_v16 = vld [vmem:[#allocation2 + $0x8] sm:$0xff] }
 0x1a8   : > { %v1956_v59 = vpop.f32.mrf.mxu0 }
 0x1a9   : > { %v2069_v60 = vpop.f32.mrf.mxu1  ;;  %2163 = vst [vmem:[#allocation2 + $0x48] sm:$0xff] %v2131_v18  ;;  %v2132_v20 = vadd.f32 %v2066_v8, %v496_v57  ;;  %v2068_v9 = vadd.f32 %v2067_v7, %v1955_v51  ;;  %v1957_v10 = vadd.f32 %v1956_v59, %v1844_v17  ;;  %v503_v7 = vld [vmem:[#allocation2 + $0x78] sm:$0xff] }
 0x1aa   : > { %v1958_v50 = vpop.f32.mrf.mxu0 }
 0x1ab   : > { %v2071_v61 = vpop.f32.mrf.mxu1  ;;  %2164 = vst [vmem:[#allocation2 + $0x80] sm:$0xff] %v2132_v20  ;;  %v2133_v22 = vadd.f32 %v2068_v9, %v497_v52  ;;  %v2070_v62 = vadd.f32 %v2069_v60, %v1957_v10  ;;  %v1959_v63 = vadd.f32 %v1958_v50, %v1846_v19  ;;  %v504_v52 = vld [vmem:[#allocation2 + $0x38] sm:$0xff] }
 0x1ac   : > { %v1962_v12 = vpop.f32.mrf.mxu0  ;;  %v505_v9 = vld [vmem:[#allocation2 + $0x58] sm:$0xff] }
 0x1ad   : > { %v2075_v48 = vpop.f32.mrf.mxu1  ;;  %2165 = vst [vmem:[#allocation2 + $0x88] sm:$0xff] %v2133_v22  ;;  %v2134_v24 = vadd.f32 %v2070_v62, %v498_v49  ;;  %v2072_v0 = vadd.f32 %v2071_v61, %v1959_v63  ;;  %v1963_v1 = vadd.f32 %v1962_v12, %v1850_v21  ;;  %v506_v21 = vld [vmem:[#allocation2 + $0x40] sm:$0xff]  ;;  %v507_v12 = vld [vmem:[#allocation2 + $0xc8] sm:$0xff] }
 0x1ae   : > { %v1964_v3 = vpop.f32.mrf.mxu0 }
 0x1af   : > { %v2077_v13 = vpop.f32.mrf.mxu1  ;;  %2166 = vst [vmem:[#allocation2 + $0xe8] sm:$0xff] %v2134_v24  ;;  %v2135_v26 = vadd.f32 %v2072_v0, %v499_v11  ;;  %v2076_v14 = vadd.f32 %v2075_v48, %v1963_v1  ;;  %v1965_v4 = vadd.f32 %v1964_v3, %v1852_v23  ;;  %v508_v1 = vld [vmem:[#allocation2 + $0xe0] sm:$0xff] }
 0x1b0   : > { %v1966_v56 = vpop.f32.mrf.mxu0 }
 0x1b1   : > { %v2079_v5 = vpop.f32.mrf.mxu1  ;;  %2167 = vst [vmem:[#allocation2 + $0xb8] sm:$0xff] %v2135_v26  ;;  %v2136_v28 = vadd.f32 %v2076_v14, %v500_v2  ;;  %v2078_v6 = vadd.f32 %v2077_v13, %v1965_v4  ;;  %v1967_v15 = vadd.f32 %v1966_v56, %v1854_v25  ;;  %v509_v26 = vld [vmem:[#allocation2 + $0x90] sm:$0xff] }
 0x1b2   : > { %v1968_v53 = vpop.f32.mrf.mxu0 }
 0x1b3   : > { %v2081_v54 = vpop.f32.mrf.mxu1  ;;  %2168 = vst [vmem:[#allocation2 + $0x60] sm:$0xff] %v2136_v28  ;;  %v2137_v30 = vadd.f32 %v2078_v6, %v501_v55  ;;  %v2080_v57 = vadd.f32 %v2079_v5, %v1967_v15  ;;  %v1969_v58 = vadd.f32 %v1968_v53, %v1856_v27  ;;  %v3945_v55 = vld [vmem:[#allocation4_spill] sm:$0xff]  ;;  %v510_v27 = vld [vmem:[#allocation2 + $0x70] sm:$0xff]  ;;  %v3946_v15 = vld [vmem:[#allocation5_spill] sm:$0xff] }
 0x1b4   : > { %v1972_v17 = vpop.f32.mrf.mxu0  ;;  %v1876_v43 = vadd.f32 %v3945_v55, %v3663_v47 }
 0x1b5   : > { %v2085_v18 = vpop.f32.mrf.mxu1  ;;  %2169 = vst [vmem:[#allocation2 + $0xf0] sm:$0xff] %v2137_v30  ;;  %v2138_v32 = vadd.f32 %v2080_v57, %v502_v16  ;;  %v2082_v8 = vadd.f32 %v2081_v54, %v1969_v58  ;;  %v1973_v51 = vadd.f32 %v1972_v17, %v1860_v29  ;;  %v3947_v16 = vld [vmem:[#allocation6_spill] sm:$0xff]  ;;  %v511_v29 = vld [vmem:[#allocation2 + $0xc0] sm:$0xff]  ;;  %v3948_v58 = vld [vmem:[#allocation7_spill] sm:$0xff] }
 0x1b6   : > { %v1974_v59 = vpop.f32.mrf.mxu0  ;;  %v1880_v45 = vadd.f32 %v3947_v16, %v3946_v15  ;;  %v3961_v15 = vld [vmem:[#allocation20_spill] sm:$0xff] }
 0x1b7   : > { %v2087_v60 = vpop.f32.mrf.mxu1  ;;  %2170 = vst [vmem:[#allocation2 + $0x8] sm:$0xff] %v2138_v32  ;;  %v2139_v34 = vadd.f32 %v2082_v8, %v503_v7  ;;  %v2086_v19 = vadd.f32 %v2085_v18, %v1973_v51  ;;  %v1975_v20 = vadd.f32 %v1974_v59, %v1862_v31  ;;  %v3949_v7 = vld [vmem:[#allocation8_spill] sm:$0xff]  ;;  %v512_v32 = vld [vmem:[#allocation2 + $0xa8] sm:$0xff]  ;;  %v3951_v59 = vld [vmem:[#allocation10_spill] sm:$0xff] }
 0x1b8   : > { %v1976_v10 = vpop.f32.mrf.mxu0  ;;  %v1882_v47 = vadd.f32 %v3949_v7, %v3948_v58  ;;  %v519_v7 = vld [vmem:[#allocation2 + $0x98] sm:$0xff] }
 0x1b9   : > { %v2089_v49 = vpop.f32.mrf.mxu1  ;;  %2171 = vst [vmem:[#allocation2 + $0x78] sm:$0xff] %v2139_v34  ;;  %v2140_v36 = vadd.f32 %v2086_v19, %v504_v52  ;;  %v2088_v50 = vadd.f32 %v2087_v60, %v1975_v20  ;;  %v1977_v61 = vadd.f32 %v1976_v10, %v1864_v33  ;;  %v3950_v52 = vld [vmem:[#allocation9_spill] sm:$0xff]  ;;  %v513_v20 = vld [vmem:[#allocation2 + $0xd0] sm:$0xff] }
 0x1ba   : > { %v1978_v22 = vpop.f32.mrf.mxu0  ;;  %v1884_v60 = vadd.f32 %v3951_v59, %v3950_v52 }
 0x1bb   : > { %v2091_v62 = vpop.f32.mrf.mxu1  ;;  %2172 = vst [vmem:[#allocation2 + $0x38] sm:$0xff] %v2140_v36  ;;  %v2141_v38 = vadd.f32 %v2088_v50, %v505_v9  ;;  %v2090_v63 = vadd.f32 %v2089_v49, %v1977_v61  ;;  %v1979_v11 = vadd.f32 %v1978_v22, %v1866_v35  ;;  %v3952_v49 = vld [vmem:[#allocation11_spill] sm:$0xff]  ;;  %v3953_v35 = vld [vmem:[#allocation12_spill] sm:$0xff]  ;;  %v514_v22 = vld [vmem:[#allocation2 + $0x10] sm:$0xff] }
 0x1bc   : > { %v1982_v48 = vpop.f32.mrf.mxu0  ;;  %v1886_v36 = vadd.f32 %v3953_v35, %v3952_v49 }
 0x1bd   : > { %v2095_v23 = vpop.f32.mrf.mxu1  ;;  %2173 = vst [vmem:[#allocation2 + $0x58] sm:$0xff] %v2141_v38  ;;  %v2142_v40 = vadd.f32 %v2090_v63, %v506_v21  ;;  %v2092_v24 = vadd.f32 %v2091_v62, %v1979_v11  ;;  %v1983_v0 = vadd.f32 %v1982_v48, %v1870_v37  ;;  %v3954_v38 = vld [vmem:[#allocation13_spill] sm:$0xff]  ;;  %v3955_v63 = vld [vmem:[#allocation14_spill] sm:$0xff] }
 0x1be   : > { %v1984_v2 = vpop.f32.mrf.mxu0  ;;  %v1890_v11 = vadd.f32 %v3955_v63, %v3954_v38 }
 0x1bf   : > { %v2097_v3 = vpop.f32.mrf.mxu1  ;;  %2174 = vst [vmem:[#allocation2 + $0x40] sm:$0xff] %v2142_v40  ;;  %v2143_v42 = vadd.f32 %v2092_v24, %v507_v12  ;;  %v2096_v13 = vadd.f32 %v2095_v23, %v1983_v0  ;;  %v1985_v25 = vadd.f32 %v1984_v2, %v1872_v39  ;;  %v515_v39 = vld [vmem:[#allocation2 + $0x28] sm:$0xff]  ;;  %v3956_v0 = vld [vmem:[#allocation15_spill] sm:$0xff] }
 0x1c0   : > { %v1986_v14 = vpop.f32.mrf.mxu0 }
 0x1c1   : > { %v2099_v4 = vpop.f32.mrf.mxu1  ;;  %2175 = vst [vmem:[#allocation2 + $0xc8] sm:$0xff] %v2143_v42  ;;  %v2144_v44 = vadd.f32 %v2096_v13, %v508_v1  ;;  %v2098_v56 = vadd.f32 %v2097_v3, %v1985_v25  ;;  %v1987_v5 = vadd.f32 %v1986_v14, %v1874_v41  ;;  %v3957_v1 = vld [vmem:[#allocation16_spill] sm:$0xff]  ;;  %v3958_v14 = vld [vmem:[#allocation17_spill] sm:$0xff] }
 0x1c2   : > { %v1988_v28 = vpop.f32.mrf.mxu0  ;;  %v1892_v2 = vadd.f32 %v3957_v1, %v3956_v0  ;;  %v516_v13 = vld [vmem:[#allocation2 + $0xa0] sm:$0xff] }
 0x1c3   : > { %v2101_v6 = vpop.f32.mrf.mxu1  ;;  %2176 = vst [vmem:[#allocation2 + $0xe0] sm:$0xff] %v2144_v44  ;;  %v2145_v46 = vadd.f32 %v2098_v56, %v509_v26  ;;  %v2100_v53 = vadd.f32 %v2099_v4, %v1987_v5  ;;  %v1989_v54 = vadd.f32 %v1988_v28, %v1876_v43  ;;  %v3959_v4 = vld [vmem:[#allocation18_spill] sm:$0xff]  ;;  %v517_v5 = vld [vmem:[#allocation2 + $0xf8] sm:$0xff] }
 0x1c4   : > { %v1992_v30 = vpop.f32.mrf.mxu0  ;;  %v1894_v55 = vadd.f32 %v3959_v4, %v3958_v14 }
 0x1c5   : > { %v2105_v57 = vpop.f32.mrf.mxu1  ;;  %2177 = vst [vmem:[#allocation2 + $0x90] sm:$0xff] %v2145_v46  ;;  %v2146_v17 = vadd.f32 %v2100_v53, %v510_v27  ;;  %v2102_v18 = vadd.f32 %v2101_v6, %v1989_v54  ;;  %v1993_v31 = vadd.f32 %v1992_v30, %v1880_v45  ;;  %v3960_v6 = vld [vmem:[#allocation19_spill] sm:$0xff]  ;;  %v518_v54 = vld [vmem:[#allocation2 + $0x20] sm:$0xff] }
 0x1c6   : > { %v1994_v8 = vpop.f32.mrf.mxu0  ;;  %v1896_v16 = vadd.f32 %v3961_v15, %v3960_v6 }
 0x1c7   : > { %v2107_v51 = vpop.f32.mrf.mxu1  ;;  %2178 = vst [vmem:[#allocation2 + $0x70] sm:$0xff] %v2146_v17  ;;  %v2147_v33 = vadd.f32 %v2102_v18, %v511_v29  ;;  %v2106_v34 = vadd.f32 %v2105_v57, %v1993_v31  ;;  %v1995_v19 = vadd.f32 %v1994_v8, %v1882_v47 }
 0x1c8   : > { %v1996_v9 = vpop.f32.mrf.mxu0 }
 0x1c9   : > { %v2109_v10 = vpop.f32.mrf.mxu1  ;;  %2179 = vst [vmem:[#allocation2 + $0xc0] sm:$0xff] %v2147_v33  ;;  %v2148_v50 = vadd.f32 %v2106_v34, %v512_v32  ;;  %v2108_v61 = vadd.f32 %v2107_v51, %v1995_v19  ;;  %v1997_v21 = vadd.f32 %v1996_v9, %v1884_v60 }
 0x1ca   : > { %v1998_v62 = vpop.f32.mrf.mxu0 }
 0x1cb   : > { %v2111_v37 = vpop.f32.mrf.mxu1  ;;  %2180 = vst [vmem:[#allocation2 + $0xa8] sm:$0xff] %v2148_v50  ;;  %v2149_v12 = vadd.f32 %v2108_v61, %v513_v20  ;;  %v2110_v48 = vadd.f32 %v2109_v10, %v1997_v21  ;;  %v1999_v23 = vadd.f32 %v1998_v62, %v1886_v36 }
 0x1cc   : > { %v2002_v40 = vpop.f32.mrf.mxu0 }
 0x1cd   : > { %v2115_v24 = vpop.f32.mrf.mxu1  ;;  %2181 = vst [vmem:[#allocation2 + $0xd0] sm:$0xff] %v2149_v12  ;;  %v2150_v3 = vadd.f32 %v2110_v48, %v514_v22  ;;  %v2112_v41 = vadd.f32 %v2111_v37, %v1999_v23  ;;  %v2003_v42 = vadd.f32 %v2002_v40, %v1890_v11 }
 0x1ce   : > { %v2004_v25 = vpop.f32.mrf.mxu0 }
 0x1cf   : > { %v2117_v26 = vpop.f32.mrf.mxu1  ;;  %2182 = vst [vmem:[#allocation2 + $0x10] sm:$0xff] %v2150_v3  ;;  %v2151_v43 = vadd.f32 %v2112_v41, %v515_v39  ;;  %v2116_v44 = vadd.f32 %v2115_v24, %v2003_v42  ;;  %v2005_v56 = vadd.f32 %v2004_v25, %v1892_v2 }
 0x1d0   : > { %v2006_v27 = vpop.f32.mrf.mxu0 }
 0x1d1   : > { %v2119_v28 = vpop.f32.mrf.mxu1  ;;  %2183 = vst [vmem:[#allocation2 + $0x28] sm:$0xff] %v2151_v43  ;;  %v2152_v45 = vadd.f32 %v2116_v44, %v516_v13  ;;  %v2118_v46 = vadd.f32 %v2117_v26, %v2005_v56  ;;  %v2007_v53 = vadd.f32 %v2006_v27, %v1894_v55 }
 0x1d2   : > { %v2008_v29 = vpop.f32.mrf.mxu0 }
 0x1d3   : > { %2184 = vst [vmem:[#allocation2 + $0xa0] sm:$0xff] %v2152_v45  ;;  %v2153_v30 = vadd.f32 %v2118_v46, %v517_v5  ;;  %v2120_v57 = vadd.f32 %v2119_v28, %v2007_v53  ;;  %v2009_v58 = vadd.f32 %v2008_v29, %v1896_v16  ;;  %v2121_v47 = vpop.f32.mrf.mxu1 }
 0x1d5   : > { %2185 = vst [vmem:[#allocation2 + $0xf8] sm:$0xff] %v2153_v30  ;;  %v2154_v17 = vadd.f32 %v2120_v57, %v518_v54  ;;  %v2122_v18 = vadd.f32 %v2121_v47, %v2009_v58  ;;  %2191 = sbr.rel (%p2849_p11) target bundleno = 527 (0x20f), region = 59 }
 0x1d7   : > { %2186 = vst [vmem:[#allocation2 + $0x20] sm:$0xff] %v2154_v17  ;;  %v2155_v31 = vadd.f32 %v2122_v18, %v519_v7 }
 0x1d9   : > { %2187 = vst [vmem:[#allocation2 + $0x98] sm:$0xff] %v2155_v31 }
 0x1da   : > { %v3764_v32 = vld [vmem:[#allocation2 + $0xb0] sm:$0xff]  ;;  %v3766_v8 = vld [vmem:[#allocation2 + $0xd8] sm:$0xff]  ;;  %v3780_v19 = vld [vmem:[#allocation2 + $0x80] sm:$0xff] }
 0x1db   : > { %v3768_v51 = vld [vmem:[#allocation2 + $0x50] sm:$0xff]  ;;  %v2234_v59 = vadd.f32 %v3766_v8, %v3764_v32  ;;  %v2282_v60 = vmul.f32 %v3764_v32, %v3764_v32  ;;  %v2284_v33 = vmul.f32 %v3766_v8, %v3766_v8  ;;  %v3783_v9 = vld [vmem:[#allocation2 + $0xe8] sm:$0xff]  ;;  %v3785_v10 = vld [vmem:[#allocation2 + $0x60] sm:$0xff]  ;;  %v2290_v38 = vmul.f32 %v3780_v19, %v3780_v19 }
 0x1dc   : > { %v3770_v52 = vld [vmem:[#allocation2 + $0x30] sm:$0xff]  ;;  %v2286_v34 = vmul.f32 %v3768_v51, %v3768_v51  ;;  %v3787_v49 = vld [vmem:[#allocation2 + $0x8] sm:$0xff]  ;;  %v3791_v50 = vld [vmem:[#allocation2 + $0x38] sm:$0xff]  ;;  %v2292_v39 = vmul.f32 %v3783_v9, %v3783_v9  ;;  %v2294_v40 = vmul.f32 %v3785_v10, %v3785_v10 }
 0x1dd   : > { %v2235_v20 = vadd.f32 %v2234_v59, %v3768_v51  ;;  %v2288_v35 = vmul.f32 %v3770_v52, %v3770_v52  ;;  %v2314_v36 = vadd.f32 %v2284_v33, %v2282_v60  ;;  %v2193_v21 = vld [vmem:[#allocation2] sm:$0xff]  ;;  %v2195_v22 = vld [vmem:[#allocation2 + $0x18] sm:$0xff]  ;;  %v3800_v12 = vld [vmem:[#allocation2 + $0x70] sm:$0xff]  ;;  %v2296_v2 = vmul.f32 %v3787_v49, %v3787_v49 }
 0x1de   : > { %v3794_v62 = vld [vmem:[#allocation2 + $0x40] sm:$0xff]  ;;  %v2255_v37 = vadd.f32 %v2195_v22, %v2193_v21  ;;  %v2197_v23 = vld [vmem:[#allocation2 + $0x68] sm:$0xff]  ;;  %v2298_v3 = vmul.f32 %v3791_v50, %v3791_v50  ;;  %v2203_v13 = vld [vmem:[#allocation2 + $0xb8] sm:$0xff]  ;;  %v2283_v14 = vmul.f32 %v2193_v21, %v2193_v21  ;;  %v2285_v4 = vmul.f32 %v2195_v22, %v2195_v22 }
 0x1df   : > { %v2236_v61 = vadd.f32 %v2235_v20, %v3770_v52  ;;  %v2315_v63 = vadd.f32 %v2314_v36, %v2286_v34  ;;  %v3798_v11 = vld [vmem:[#allocation2 + $0xe0] sm:$0xff]  ;;  %v2199_v24 = vld [vmem:[#allocation2 + $0x48] sm:$0xff]  ;;  %v2205_v25 = vld [vmem:[#allocation2 + $0xf0] sm:$0xff]  ;;  %v3814_v26 = vmul.f32 %v3794_v62, %v3794_v62  ;;  %v3822_v44 = vmul.f32 %v3800_v12, %v3800_v12 }
 0x1e0   : > { %v2201_v0 = vld [vmem:[#allocation2 + $0x88] sm:$0xff]  ;;  %v2256_v1 = vadd.f32 %v2255_v37, %v2197_v23  ;;  %v3818_v43 = vmul.f32 %v3798_v11, %v3798_v11  ;;  %v2287_v27 = vmul.f32 %v2197_v23, %v2197_v23  ;;  %v2289_v28 = vmul.f32 %v2199_v24, %v2199_v24  ;;  %v2207_v18 = vld [vmem:[#allocation2 + $0x78] sm:$0xff]  ;;  %v2215_v36 = vld [vmem:[#allocation2 + $0xc0] sm:$0xff] }
 0x1e1   : > { %v2237_v48 = vadd.f32 %v2236_v61, %v3780_v19  ;;  %v2316_v41 = vadd.f32 %v2315_v63, %v2288_v35  ;;  %v2291_v6 = vmul.f32 %v2201_v0, %v2201_v0  ;;  %v2293_v45 = vmul.f32 %v2203_v13, %v2203_v13  ;;  %v2216_v59 = vld [vmem:[#allocation2 + $0xa8] sm:$0xff]  ;;  %v2213_v35 = vld [vmem:[#allocation2 + $0x90] sm:$0xff] }
 0x1e2   : > { %v2257_v55 = vadd.f32 %v2256_v1, %v2199_v24  ;;  %v3825_v46 = vmul.f32 %v2205_v25, %v2205_v25  ;;  %v2335_v54 = vadd.f32 %v2285_v4, %v2283_v14  ;;  %v2876_v29 = vpack.c.bf16 %v2193_v21, %v3764_v32  ;;  %v2211_v60 = vld [vmem:[#allocation2 + $0xc8] sm:$0xff] }
 0x1e3   : > { %v2238_v42 = vadd.f32 %v2237_v48, %v3783_v9  ;;  %v2317_v56 = vadd.f32 %v2316_v41, %v2290_v38  ;;  %v2877_v30 = vpack.c.bf16 %v2195_v22, %v3766_v8  ;;  %v2878_v7 = vpack.c.bf16 %v2197_v23, %v3768_v51  ;;  %v2209_v51 = vld [vmem:[#allocation2 + $0x58] sm:$0xff]  ;;  %v2220_v22 = vld [vmem:[#allocation2 + $0xa0] sm:$0xff]  ;;  %v2219_v37 = vld [vmem:[#allocation2 + $0x28] sm:$0xff] }
 0x1e4   : > { %v2258_v15 = vadd.f32 %v2257_v55, %v2201_v0  ;;  %v2879_v47 = vpack.c.bf16 %v2199_v24, %v3770_v52  ;;  %v2336_v31 = vadd.f32 %v2335_v54, %v2287_v27  ;;  %2456 = vst [vmem:[%s3925_s2] sm:$0xff] %v2876_v29  ;;  %v2880_v32 = vpack.c.bf16 %v2201_v0, %v3780_v19  ;;  %v2218_v19 = vld [vmem:[#allocation2 + $0x10] sm:$0xff] }
 0x1e5   : > { %v2239_v5 = vadd.f32 %v2238_v42, %v3785_v10  ;;  %v2318_v16 = vadd.f32 %v2317_v56, %v2292_v39  ;;  %2457 = vst [vmem:[%s3925_s2 + $0x8] sm:$0xff] %v2877_v30  ;;  %v2881_v8 = vpack.c.bf16 %v2203_v13, %v3783_v9  ;;  %2458 = vst [vmem:[%s3925_s2 + $0x10] sm:$0xff] %v2878_v7  ;;  %v2221_v39 = vld [vmem:[#allocation2 + $0xf8] sm:$0xff] }
 0x1e6   : > { %v2259_v57 = vadd.f32 %v2258_v15, %v2203_v13  ;;  %2459 = vst [vmem:[%s3925_s2 + $0x18] sm:$0xff] %v2879_v47  ;;  %v2882_v34 = vpack.c.bf16 %v2205_v25, %v3785_v10  ;;  %v2883_v20 = vpack.c.bf16 %v2207_v18, %v3787_v49  ;;  %v2337_v61 = vadd.f32 %v2336_v31, %v2289_v28 }
 0x1e7   : > { %v2240_v53 = vadd.f32 %v2239_v5, %v3787_v49  ;;  %v2319_v58 = vadd.f32 %v2318_v16, %v2294_v40  ;;  %2460 = vst [vmem:[%s3925_s2 + $0x20] sm:$0xff] %v2880_v32  ;;  %2461 = vst [vmem:[%s3925_s2 + $0x28] sm:$0xff] %v2881_v8  ;;  %v2884_v21 = vpack.c.bf16 %v2209_v51, %v3791_v50  ;;  %v2217_v49 = vld [vmem:[#allocation2 + $0xd0] sm:$0xff]  ;;  %v2223_v40 = vld [vmem:[#allocation2 + $0x98] sm:$0xff] }
 0x1e8   : > { %v2260_v52 = vadd.f32 %v2259_v57, %v2205_v25  ;;  %v2885_v10 = vpack.c.bf16 %v2211_v60, %v3794_v62  ;;  %2462 = vst [vmem:[%s3925_s2 + $0x30] sm:$0xff] %v2882_v34  ;;  %2463 = vst [vmem:[%s3925_s2 + $0x38] sm:$0xff] %v2883_v20  ;;  %v2886_v48 = vpack.c.bf16 %v2213_v35, %v3798_v11 }
 0x1e9   : > { %v2241_v17 = vadd.f32 %v2240_v53, %v3791_v50  ;;  %v2320_v33 = vadd.f32 %v2319_v58, %v2296_v2  ;;  %v2887_v23 = vpack.c.bf16 %v2215_v36, %v3800_v12  ;;  %v2222_v50 = vld [vmem:[#allocation2 + $0x20] sm:$0xff]  ;;  %v2338_v24 = vadd.f32 %v2337_v61, %v2291_v6  ;;  %2464 = vst [vmem:[%s3925_s2 + $0x40] sm:$0xff] %v2884_v21 }
 0x1ea   : > { %v2261_v38 = vadd.f32 %v2260_v52, %v2207_v18  ;;  %2465 = vst [vmem:[%s3925_s2 + $0x48] sm:$0xff] %v2885_v10  ;;  %v2888_v0 = vpack.c.bf16 %v2217_v49, %v2216_v59  ;;  %v2889_v1 = vpack.c.bf16 %v2219_v37, %v2218_v19  ;;  %2466 = vst [vmem:[%s3925_s2 + $0x50] sm:$0xff] %v2886_v48 }
 0x1eb   : > { %v2242_v9 = vadd.f32 %v2241_v17, %v3794_v62  ;;  %v2321_v63 = vadd.f32 %v2320_v33, %v2298_v3  ;;  %2467 = vst [vmem:[%s3925_s2 + $0x58] sm:$0xff] %v2887_v23  ;;  %v2891_v41 = vpack.c.bf16 %v2223_v40, %v2222_v50  ;;  %v2297_v13 = vmul.f32 %v2207_v18, %v2207_v18 }
 0x1ec   : > { %v2262_v2 = vadd.f32 %v2261_v38, %v2209_v51  ;;  %v2339_v25 = vadd.f32 %v2338_v24, %v2293_v45  ;;  %2468 = vst [vmem:[%s3925_s2 + $0x60] sm:$0xff] %v2888_v0  ;;  %2469 = vst [vmem:[%s3925_s2 + $0x68] sm:$0xff] %v2889_v1  ;;  %v2306_v14 = vmul.f32 %v2216_v59, %v2216_v59 }
 0x1ed   : > { %v2243_v62 = vadd.f32 %v2242_v9, %v3798_v11  ;;  %v2322_v3 = vadd.f32 %v2321_v63, %v3814_v26  ;;  %v2890_v11 = vpack.c.bf16 %v2221_v39, %v2220_v22  ;;  %2471 = vst [vmem:[%s3925_s2 + $0x78] sm:$0xff] %v2891_v41  ;;  %v2299_v55 = vmul.f32 %v2209_v51, %v2209_v51 }
 0x1ee   : > { %v2263_v26 = vadd.f32 %v2262_v2, %v2211_v60  ;;  %v2340_v56 = vadd.f32 %v2339_v25, %v3825_v46  ;;  %v2308_v27 = vmul.f32 %v2218_v19, %v2218_v19  ;;  %v2301_v15 = vmul.f32 %v2211_v60, %v2211_v60 }
 0x1ef   : > { %v2244_v42 = vadd.f32 %v2243_v62, %v3800_v12  ;;  %v2323_v4 = vadd.f32 %v2322_v3, %v3818_v43  ;;  %2470 = vst [vmem:[%s3925_s2 + $0x70] sm:$0xff] %v2890_v11  ;;  %v2310_v45 = vmul.f32 %v2220_v22, %v2220_v22  ;;  %v2303_v29 = vmul.f32 %v2213_v35, %v2213_v35 }
 0x1f0   : > { %v2264_v5 = vadd.f32 %v2263_v26, %v2213_v35  ;;  %v2341_v16 = vadd.f32 %v2340_v56, %v2297_v13  ;;  %v2312_v58 = vmul.f32 %v2222_v50, %v2222_v50  ;;  %v2305_v17 = vmul.f32 %v2215_v36, %v2215_v36 }
 0x1f1   : > { %v2245_v12 = vadd.f32 %v2244_v42, %v2216_v59  ;;  %v2324_v28 = vadd.f32 %v2323_v4, %v3822_v44  ;;  %v2307_v8 = vmul.f32 %v2217_v49, %v2217_v49  ;;  %v2309_v52 = vmul.f32 %v2219_v37, %v2219_v37 }
 0x1f2   : > { %v2265_v43 = vadd.f32 %v2264_v5, %v2215_v36  ;;  %v2342_v30 = vadd.f32 %v2341_v16, %v2299_v55  ;;  %v2311_v9 = vmul.f32 %v2221_v39, %v2221_v39  ;;  %v2313_v36 = vmul.f32 %v2223_v40, %v2223_v40 }
 0x1f3   : > { %v2246_v6 = vadd.f32 %v2245_v12, %v2218_v19  ;;  %v2325_v53 = vadd.f32 %v2324_v28, %v2306_v14 }
 0x1f4   : > { %v2266_v57 = vadd.f32 %v2265_v43, %v2217_v49  ;;  %v2343_v18 = vadd.f32 %v2342_v30, %v2301_v15 }
 0x1f5   : > { %v2247_v54 = vadd.f32 %v2246_v6, %v2220_v22  ;;  %v2326_v7 = vadd.f32 %v2325_v53, %v2308_v27 }
 0x1f6   : > { %v2267_v46 = vadd.f32 %v2266_v57, %v2219_v37  ;;  %v2344_v44 = vadd.f32 %v2343_v18, %v2303_v29 }
 0x1f7   : > { %v2248_v47 = vadd.f32 %v2247_v54, %v2222_v50  ;;  %v2327_v31 = vadd.f32 %v2326_v7, %v2310_v45 }
 0x1f8   : > { %v2268_v59 = vadd.f32 %v2267_v46, %v2221_v39  ;;  %v2345_v33 = vadd.f32 %v2344_v44, %v2305_v17 }
 0x1f9   : > { %v2249_v32 = vrot.slane %v2248_v47, 4  ;;  %v2328_v51 = vadd.f32 %v2327_v31, %v2312_v58 }
 0x1fa   : > { %v2269_v34 = vadd.f32 %v2268_v59, %v2223_v40  ;;  %v2346_v35 = vadd.f32 %v2345_v33, %v2307_v8 }
 0x1fb   : > { %v2250_v60 = vadd.f32 %v2249_v32, %v2248_v47  ;;  %v2329_v20 = vrot.slane %v2328_v51, 4 }
 0x1fc   : > { %v2270_v61 = vrot.slane %v2269_v34, 4  ;;  %v2347_v22 = vadd.f32 %v2346_v35, %v2309_v52 }
 0x1fd   : > { %v2251_v19 = vrot.slane %v2250_v60, 2  ;;  %v2330_v21 = vadd.f32 %v2329_v20, %v2328_v51 }
 0x1fe   : > { %v2271_v38 = vadd.f32 %v2270_v61, %v2269_v34  ;;  %v2348_v49 = vadd.f32 %v2347_v22, %v2311_v9 }
 0x1ff   : > { %v2252_v10 = vadd.f32 %v2251_v19, %v2250_v60  ;;  %v2331_v63 = vrot.slane %v2330_v21, 2 }
 0x200   : > { %v2272_v23 = vrot.slane %v2271_v38, 2  ;;  %v2349_v24 = vadd.f32 %v2348_v49, %v2313_v36 }
 0x201   : > { %v2253_v48 = vrot.slane %v2252_v10, 1  ;;  %v2332_v50 = vadd.f32 %v2331_v63, %v2330_v21 }
 0x202   : > { %v2273_v37 = vadd.f32 %v2272_v23, %v2271_v38  ;;  %v2350_v1 = vrot.slane %v2349_v24, 4 }
 0x203   : > { %v2254_v62 = vadd.f32 %v2253_v48, %v2252_v10  ;;  %v2333_v0 = vrot.slane %v2332_v50, 1 }
 0x204   : > { %v2274_v2 = vrot.slane %v2273_v37, 1  ;;  %v2351_v39 = vadd.f32 %v2350_v1, %v2349_v24 }
 0x205   : > { %v2334_v3 = vadd.f32 %v2333_v0, %v2332_v50  ;;  %2278 = vst [vmem:[%s3926_s3] sm:$0xff] %v2254_v62 }
 0x206   : > { %v2275_v40 = vadd.f32 %v2274_v2, %v2273_v37  ;;  %v2352_v11 = vrot.slane %v2351_v39, 2 }
 0x207   : > { %2358 = vst [vmem:[%s3927_s4] sm:$0xff] %v2334_v3 }
 0x208   : > { %v2353_v41 = vadd.f32 %v2352_v11, %v2351_v39  ;;  %2279 = vst [vmem:[%s3926_s3 + $0x8] sm:$0xff] %v2275_v40 }
 0x20a   : > { %v2354_v42 = vrot.slane %v2353_v41, 1 }
 0x20c   : > { %v2355_v13 = vadd.f32 %v2354_v42, %v2353_v41 }
 0x20e   : > { %2359 = vst [vmem:[%s3927_s4 + $0x8] sm:$0xff] %v2355_v13 }
 0x20f PF: > { %s15_s19 = sadd.s32 1, %s3164_s19   ;;  %s3962_s15 = smov %s3152_s16 }
 0x210   : > { %p12_p12 = scmp.ge.s32.totalorder %s15_s19, 4   ;;  %s3963_s16 = smov %s3227_s23 }
 0x211   : > { %s3964_s17 = smov %s3160_s18  ;;  %s3965_s18 = smov %s3967_s20 }
 0x212   :  { %14 = sbr.rel (!%p12_p12) target bundleno = 3 (0x3), region = 125 }

// kernel: discriminator_forward.14
= control target key start
LH: loop header
LB: loop body
LE: loop exit
PB: predicated region body
PF: predicated region fallthrough
CT: control target
= control target key end

     0   :  { %s762_s18 = smov 0   ;;  %s764_s19 = smov 0   ;;  %s857_s0 = inlined_call_operand.vmem [shape: bf16[32,512], index: 0, kind: input, shape index: {}]   ;;  %s858_s1 = inlined_call_operand.vmem [shape: f32[8,512], index: 1, kind: input, shape index: {}]   ;;  %s859_s2 = inlined_call_operand.vmem [shape: f32[8,512], index: 2, kind: input, shape index: {}]   ;;  %s860_s3 = inlined_call_operand.vmem [shape: f32[1,512], index: 3, kind: input, shape index: {}]   ;;  %s861_s4 = inlined_call_operand.vmem [shape: f32[1,512], index: 4, kind: input, shape index: {}]   ;;  %s862_s5 = inlined_call_operand.vmem [shape: bf16[32,512], index: 5, kind: output, shape index: {}]  }
   0x1   :  { %s766_s20 = smov 0   ;;  %s768_s21 = smov 0  }
   0x2   :  { %s770_s22 = smov 0  }
   0x3 LB: > { %s24_s23 = sadd.s32 1, %s726_s21  ;;  %s607_s24 = sadd.s32 4294967295, %s730_s22   ;;  %s730_s22 = sphi %s770_s22, %s15_s22   ;;  %s726_s21 = sphi %s768_s21, %s867_s21   ;;  %s722_s20 = sphi %s766_s20, %s866_s20   ;;  %s718_s19 = sphi %s764_s19, %s865_s19   ;;  %s714_s18 = sphi %s762_s18, %s864_s18  }
   0x4   : > { %p25_p0 = scmp.ge.s32.totalorder %s24_s23, 4  ;;  %p43_p1 = scmp.ne.s32.totalorder %s718_s19, %s714_s18 }
   0x5   : > { %p44_p2 = scmp.eq.s32.totalorder %s730_s22, 0  ;;  %p179_p4 = scmp.eq.s32.totalorder %s607_s24, 3 }
   0x6   : > { %s869_s23 = smov (%p25_p0, %s24_s23), 0  ;;  %s36_s26 = sadd.s32 1, %s718_s19 }
   0x7   : > { %p45_p3 = por %p44_p2, %p43_p1  ;;  %s32_s25 = ssub.s32 %s726_s21, %s869_s23 }
   0x8   : > { %p34_p5 = scmp.eq.s32.totalorder %s32_s25, 0  ;;  %p797_p6 = por %p179_p4, %p43_p1 }
   0x9   : > { %p610_p7 = scmp.ge.s32.totalorder %s730_s22, 4 }
   0xa   : > { %s802_s28 = scalar_select %p34_p5, %s718_s19, %s36_s26  }
   0xb   : > { %201 = sbr.rel (%p610_p7) target bundleno = 23 (0x17), region = 16 }
  0x10   : > { %204 = sbr.rel (!%p45_p3) target bundleno = 23 (0x17), region = 20  ;;  %s206_s29 = sand.u32 (%p45_p3), 1, %s718_s19  }
  0x11   : > { %s612_s30 = sshll.u32 (%p45_p3), %s726_s21, 2  ;;  %s611_s6 = sshll.u32 (%p45_p3), %s206_s29, 4 }
  0x12   : > { %s213_s9 = scalar_lea.vmem (%p45_p3), %s857_s0, %s612_s30  ;;  %s208_s10 = scalar_lea.vmem (%p45_p3), [#allocation2], %s611_s6 }
  0x13   : > { %v230_v0 = vld [vmem:[%s213_s9] sm:$0xf] (%p45_p3)  ;;  %v232_v1 = vld [vmem:[%s213_s9 + $0x10] sm:$0xf] (%p45_p3) }
  0x14   : > { %231 = vst [vmem:[%s208_s10] sm:$0xf] (%p45_p3), %v230_v0  ;;  %233 = vst [vmem:[%s208_s10 + $0x4] sm:$0xf] (%p45_p3), %v232_v1  ;;  %v234_v2 = vld [vmem:[%s213_s9 + $0x20] sm:$0xf] (%p45_p3) }
  0x15   : > { %v236_v3 = vld [vmem:[%s213_s9 + $0x30] sm:$0xf]  ;;  %235 = vst [vmem:[%s208_s10 + $0x8] sm:$0xf] %v234_v2 }
  0x16   : > { %237 = vst [vmem:[%s208_s10 + $0xc] sm:$0xf] %v236_v3 }
  0x17 PF: > { %p613_p8 = scmp.ge.s32.totalorder %s730_s22, 1  ;;  %p294_p9 = scmp.lt.s32.totalorder %s730_s22, 5 }
  0x19   : > { %p295_p10 = pnand %p613_p8, %p294_p9 }
  0x1a   : > { %p342_p11 = scmp.lt.s32.totalorder (!%p295_p10), %s722_s20, 3  ;;  %s301_s25 = sand.u32 (!%p295_p10), 1, %s714_s18  }
  0x1b   : > { %298 = sbr.rel (%p295_p10) target bundleno = 87 (0x57), region = 77  ;;  %s824_s26 = sshll.u32 (!%p295_p10), %s301_s25, 4 }
  0x1c   : > { %s303_s7 = scalar_lea.vmem (!%p295_p10), [#allocation2], %s824_s26  ;;  %s340_s18 = scalar_lea.vmem (!%p295_p10), [#allocation3], %s824_s26 }
  0x20   : > { %s814_s11 = scalar_select %p342_p11, %s722_s20, 3  ;;  %v380_v12 = vlaneseq  ;;  %v631_v15 = vld [vmem:[%s303_s7] sm:$0xff]   ;;  %v648_v16 = vld [vmem:[%s303_s7 + $0x8] sm:$0xff]  }
  0x21   : > { %v632_v20 = vunpack.c.l.bf16 %v631_v15  ;;  %v633_v21 = vunpack.c.h.bf16 %v631_v15  ;;  %v636_v22 = vunpack.c.l.bf16 %v648_v16  ;;  %v637_v24 = vunpack.c.h.bf16 %v648_v16 }
  0x22   : > { %s616_s12 = sshll.u32 %s814_s11, 3  ;;  %s352_s6 = scalar_lea.vmem %s860_s3, %s814_s11  ;;  %v381_v13 = vshrl.u32 %v380_v12, 7 }
  0x23   : > { %s345_s15 = scalar_lea.vmem %s858_s1, %s616_s12  ;;  %s349_s24 = scalar_lea.vmem %s859_s2, %s616_s12  ;;  %v364_v14 = vld [vmem:[%s352_s6] sm:$0x1] }
  0x24   : > { %v357_v4 = vld [vmem:[%s345_s15] sm:$0xff]  ;;  %s355_s10 = scalar_lea.vmem %s861_s4, %s814_s11  ;;  %v382_v17 = vsub.s32 0, %v381_v13  ;;  %s623_s11 = sshll.u32 (%p797_p6), %s722_s20, 2 }
  0x25   : > { %v358_v5 = vld [vmem:[%s349_s24] sm:$0xff]  ;;  %v359_v6 = vmul.f32 0.03125, %v357_v4  ;;  %s442_s14 = scalar_lea.vmem (%p797_p6), %s862_s5, %s623_s11 }
  0x26   : > { %v360_v7 = vmul.f32 0.03125, %v358_v5  ;;  %v368_v23 = vld [vmem:[%s355_s10] sm:$0x1] }
  0x27   : > { %v361_v8 = vmul.f32 %v359_v6, %v359_v6 }
  0x29   : > { %v362_v9 = vsub.f32 %v360_v7, %v361_v8 }
  0x2b   : > { %v363_v10 = vmax.f32 %v362_v9, 0.0 }
  0x2d   : > { %v365_v11 = vadd.f32 1e-05, %v363_v10 }
  0x2f   : > { %690 = vrsqrt.f32 %v365_v11 }
  0x3c   : > { %v691_v18 = vpop.eup %690 }
  0x3d   : > { %v367_v19 = vmul.f32 %v691_v18, %v364_v14 }
  0x3f   : > { %v369_v25 = vmul.f32 %v367_v19, %v359_v6  ;;  %v383_v26 = vrot.slane %v367_v19, %v382_v17 }
  0x41   : > { %v370_v27 = vsub.f32 %v368_v23, %v369_v25  ;;  %v385_v28 = vmul.f32 %v632_v20, %v383_v26  ;;  %v386_v29 = vmul.f32 %v633_v21, %v383_v26  ;;  %v387_v30 = vmul.f32 %v636_v22, %v383_v26 }
  0x42   : > { %v388_v31 = vmul.f32 %v637_v24, %v383_v26 }
  0x43   : > { %v393_v32 = vrot.slane %v370_v27, %v382_v17 }
  0x45   : > { %v395_v33 = vadd.f32 %v393_v32, %v385_v28  ;;  %v396_v34 = vadd.f32 %v393_v32, %v386_v29  ;;  %v397_v35 = vadd.f32 %v393_v32, %v387_v30  ;;  %v398_v36 = vadd.f32 %v393_v32, %v388_v31 }
  0x47   : > { %vm399_vm0 = vcmp.ge.f32.partialorder %v395_v33, 0.0  ;;  %vm400_vm1 = vcmp.ge.f32.partialorder %v396_v34, 0.0  ;;  %v403_v37 = vmul.f32 0.2, %v395_v33  ;;  %v404_v38 = vmul.f32 0.2, %v396_v34 }
  0x48   : > { %vm401_vm2 = vcmp.ge.f32.partialorder %v397_v35, 0.0  ;;  %vm402_vm3 = vcmp.ge.f32.partialorder %v398_v36, 0.0  ;;  %v405_v39 = vmul.f32 0.2, %v397_v35  ;;  %v406_v40 = vmul.f32 0.2, %v398_v36 }
  0x49   : > { %v407_v41 = vsel %vm399_vm0, %v395_v33, %v403_v37  ;;  %v408_v42 = vsel %vm400_vm1, %v396_v34, %v404_v38  ;;  %437 = sbr.rel (!%p797_p6) target bundleno = 87 (0x57), region = 85 }
  0x4a   : > { %v641_v43 = vpack.c.bf16 %v408_v42, %v407_v41  ;;  %v409_v44 = vsel %vm401_vm2, %v397_v35, %v405_v39  ;;  %v410_v45 = vsel %vm402_vm3, %v398_v36, %v406_v40 }
  0x4b   : > { %v646_v46 = vpack.c.bf16 %v410_v45, %v409_v44 }
  0x4c   : > { %642 = vst [vmem:[%s340_s18] sm:$0xff] %v641_v43  }
  0x4d   : > { %649 = vst [vmem:[%s340_s18 + $0x8] sm:$0xff] %v646_v46  }
  0x53   : > { %v459_v47 = vld [vmem:[%s340_s18] sm:$0xf]  ;;  %v461_v48 = vld [vmem:[%s340_s18 + $0x4] sm:$0xf] }
  0x54   : > { %v463_v49 = vld [vmem:[%s340_s18 + $0x8] sm:$0xf]  ;;  %v465_v50 = vld [vmem:[%s340_s18 + $0xc] sm:$0xf]  ;;  %460 = vst [vmem:[%s442_s14] sm:$0xf] %v459_v47 }
  0x55   : > { %462 = vst [vmem:[%s442_s14 + $0x10] sm:$0xf] %v461_v48  ;;  %464 = vst [vmem:[%s442_s14 + $0x20] sm:$0xf] %v463_v49 }
  0x56   : > { %466 = vst [vmem:[%s442_s14 + $0x30] sm:$0xf] %v465_v50 }
  0x57 PF: > { %s15_s22 = sadd.s32 1, %s730_s22   ;;  %s864_s18 = smov %s718_s19 }
  0x58   : > { %p12_p12 = scmp.ge.s32.totalorder %s15_s22, 6   ;;  %s865_s19 = smov %s802_s28 }
  0x59   : > { %s866_s20 = smov %s726_s21  ;;  %s867_s21 = smov %s869_s23 }
  0x5a   :  { %14 = sbr.rel (!%p12_p12) target bundleno = 3 (0x3), region = 169 }

// kernel: discriminator_forward.13
= control target key start
LH: loop header
LB: loop body
LE: loop exit
PB: predicated region body
PF: predicated region fallthrough
CT: control target
= control target key end

     0   :  { %s3522_s0 = inlined_call_operand.vmem [shape: bf16[32,4096], index: 0, kind: input, shape index: {}]   ;;  %s3523_s1 = inlined_call_operand.vmem [shape: bf16[4096,512], index: 1, kind: input, shape index: {}]   ;;  %s3524_s2 = inlined_call_operand.vmem [shape: bf16[32,512], index: 2, kind: output, shape index: {0}]   ;;  %s3525_s3 = inlined_call_operand.vmem [shape: f32[8,512], index: 3, kind: output, shape index: {1}]   ;;  %s3526_s4 = inlined_call_operand.vmem [shape: f32[8,512], index: 4, kind: output, shape index: {2}]  }
   0x1   :  { %3530 = sst [smem:[#allocation9_spill]] %s3522_s0 }
   0x2   :  { %3531 = sst [smem:[#allocation10_spill]] %s3523_s1 }
   0x3   :  { %s2889_s15 = smov 0   ;;  %s2891_s16 = smov 0  }
   0x4   :  { %s2893_s17 = smov 0   ;;  %s2895_s18 = smov 0  }
   0x5   :  { %s2897_s19 = smov 0   ;;  %s2899_s20 = smov 0  }
   0x6   :  { %s2901_s21 = smov 0   ;;  %s2903_s22 = smov 0  }
   0x7   :  { %s2905_s23 = smov 0   ;;  %s2907_s24 = smov 0  }
   0x8   :  { %s2909_s25 = smov 0  }
   0x9 LB: > { %3532 = sst [smem:[#allocation6_spill]] %s2856_s24  ;;  %s2310_s26 = sadd.s32 4294967295, %s2860_s25   ;;  %s2860_s25 = sphi %s2909_s25, %s15_s25   ;;  %s2856_s24 = sphi %s2907_s24, %s3551_s24   ;;  %s2852_s23 = sphi %s2905_s23, %s3550_s23   ;;  %s2848_s22 = sphi %s2903_s22, %s3540_s22   ;;  %s2844_s21 = sphi %s2901_s21, %s3549_s21   ;;  %s2840_s20 = sphi %s2899_s20, %s3548_s20   ;;  %s2836_s19 = sphi %s2897_s19, %s3547_s19   ;;  %s2832_s18 = sphi %s2895_s18, %s3546_s18   ;;  %s2828_s17 = sphi %s2893_s17, %s3545_s17   ;;  %s2824_s16 = sphi %s2891_s16, %s3544_s16   ;;  %s2820_s15 = sphi %s2889_s15, %s3543_s15  }
   0xa   : > { %s27_s27 = sadd.s32 1, %s2852_s23  ;;  %s34_s28 = sadd.s32 1, %s2856_s24 }
   0xb   : > { %p28_p0 = scmp.ge.s32.totalorder %s27_s27, 4  ;;  %s43_s29 = sadd.s32 1, %s2840_s20 }
   0xc   : > { %p50_p1 = scmp.ne.s32.totalorder %s2840_s20, %s2836_s19  ;;  %p51_p2 = scmp.eq.s32.totalorder %s2860_s25, 0 }
   0xd   : > { %s3553_s27 = smov (%p28_p0, %s27_s27), 0  ;;  %s3555_s28 = smov (!%p28_p0, %s34_s28), %s2856_s24 }
   0xe   : > { %3533 = sst [smem:[#allocation7_spill]] %s3553_s27  ;;  %s39_s30 = ssub.s32 %s2852_s23, %s3553_s27 }
   0xf   : > { %p36_p3 = scmp.ge.s32.totalorder %s3555_s28, 2  ;;  %p41_p4 = scmp.eq.s32.totalorder %s39_s30, 0 }
  0x10   : > { %p2956_p5 = por %p51_p2, %p50_p1  ;;  %s71_s6 = sadd.s32 1, %s2832_s18 }
  0x11   : > { %s3557_s28 = smov (%p36_p3, %s3555_s28), 0  ;;  %p78_p6 = scmp.ne.s32.totalorder %s2832_s18, %s2828_s17 }
  0x12   : > { %3535 = sst [smem:[#allocation8_spill]] %s3557_s28  ;;  %s67_s8 = ssub.s32 %s2856_s24, %s3557_s28 }
  0x13   : > { %s2964_s7 = scalar_select %p41_p4, %s2840_s20, %s43_s29  }
  0x14   : > { %s68_s9 = sor.u32 %s67_s8, %s39_s30  ;;  %p97_p7 = scmp.eq.s32.totalorder %s67_s8, 0 }
  0x15   : > { %p69_p8 = scmp.eq.s32.totalorder %s68_s9, 0  ;;  %p2970_p9 = por %p78_p6, %p51_p2 }
  0x16   : > { %s99_s11 = sadd.s32 1, %s2824_s16  ;;  %p109_p10 = scmp.ne.s32.totalorder %s2824_s16, %s2820_s15 }
  0x17   : > { %s2978_s12 = scalar_select %p69_p8, %s2832_s18, %s71_s6  }
  0x18   : > { %s2981_s13 = scalar_select %p97_p7, %s2824_s16, %s99_s11  }
  0x19   : > { %p110_p11 = scmp.eq.s32.totalorder %s2310_s26, 7  ;;  %p2313_p13 = scmp.ge.s32.totalorder %s2860_s25, 8 }
  0x1b   : > { %p2983_p12 = por %p110_p11, %p109_p10  ;;  %184 = sbr.rel (%p2313_p13) target bundleno = 124 (0x7c), region = 16 }
  0x20   : > { %187 = sbr.rel (!%p2956_p5) target bundleno = 50 (0x32), region = 20  ;;  %s189_s29 = sand.u32 (%p2956_p5), 1, %s2840_s20  }
  0x21   : > { %s2485_s30 = sshll.u32 (%p2956_p5), %s2852_s23, 5  ;;  %s2314_s8 = sshll.u32 (%p2956_p5), %s189_s29, 7 }
  0x22   : > { %s3538_s0 = sld [smem:[#allocation9_spill]] (%p2956_p5)  ;;  %s191_s26 = scalar_lea.vmem (%p2956_p5), [#allocation3], %s2314_s8 }
  0x28   : > { %s2995_s11 = scalar_lea.vmem %s3538_s0, %s2485_s30 }
  0x29   : > { %v210_v0 = vld [vmem:[%s2995_s11] sm:$0xff]  ;;  %v212_v1 = vld [vmem:[%s2995_s11 + $0x8] sm:$0xff]  ;;  %v214_v2 = vld [vmem:[%s2995_s11 + $0x10] sm:$0xff] }
  0x2a   : > { %211 = vst [vmem:[%s191_s26] sm:$0xff] %v210_v0  ;;  %213 = vst [vmem:[%s191_s26 + $0x8] sm:$0xff] %v212_v1  ;;  %v216_v3 = vld [vmem:[%s2995_s11 + $0x18] sm:$0xff]  ;;  %v218_v4 = vld [vmem:[%s2995_s11 + $0x80] sm:$0xff] }
  0x2b   : > { %215 = vst [vmem:[%s191_s26 + $0x10] sm:$0xff] %v214_v2  ;;  %v220_v5 = vld [vmem:[%s2995_s11 + $0x88] sm:$0xff]  ;;  %217 = vst [vmem:[%s191_s26 + $0x18] sm:$0xff] %v216_v3  ;;  %v222_v6 = vld [vmem:[%s2995_s11 + $0x90] sm:$0xff] }
  0x2c   : > { %219 = vst [vmem:[%s191_s26 + $0x20] sm:$0xff] %v218_v4  ;;  %221 = vst [vmem:[%s191_s26 + $0x28] sm:$0xff] %v220_v5  ;;  %v224_v7 = vld [vmem:[%s2995_s11 + $0x98] sm:$0xff]  ;;  %v226_v8 = vld [vmem:[%s2995_s11 + $0x100] sm:$0xff] }
  0x2d   : > { %223 = vst [vmem:[%s191_s26 + $0x30] sm:$0xff] %v222_v6  ;;  %225 = vst [vmem:[%s191_s26 + $0x38] sm:$0xff] %v224_v7  ;;  %v228_v9 = vld [vmem:[%s2995_s11 + $0x108] sm:$0xff]  ;;  %v230_v10 = vld [vmem:[%s2995_s11 + $0x110] sm:$0xff] }
  0x2e   : > { %227 = vst [vmem:[%s191_s26 + $0x40] sm:$0xff] %v226_v8  ;;  %v232_v11 = vld [vmem:[%s2995_s11 + $0x118] sm:$0xff]  ;;  %229 = vst [vmem:[%s191_s26 + $0x48] sm:$0xff] %v228_v9  ;;  %v234_v12 = vld [vmem:[%s2995_s11 + $0x180] sm:$0xff] }
  0x2f   : > { %231 = vst [vmem:[%s191_s26 + $0x50] sm:$0xff] %v230_v10  ;;  %233 = vst [vmem:[%s191_s26 + $0x58] sm:$0xff] %v232_v11  ;;  %v236_v13 = vld [vmem:[%s2995_s11 + $0x188] sm:$0xff]  ;;  %v238_v14 = vld [vmem:[%s2995_s11 + $0x190] sm:$0xff] }
  0x30   : > { %235 = vst [vmem:[%s191_s26 + $0x60] sm:$0xff] %v234_v12  ;;  %237 = vst [vmem:[%s191_s26 + $0x68] sm:$0xff] %v236_v13  ;;  %v240_v15 = vld [vmem:[%s2995_s11 + $0x198] sm:$0xff] }
  0x31   : > { %239 = vst [vmem:[%s191_s26 + $0x70] sm:$0xff] %v238_v14  ;;  %241 = vst [vmem:[%s191_s26 + $0x78] sm:$0xff] %v240_v15 }
  0x32 PF: > { %247 = sbr.rel (!%p2970_p9) target bundleno = 124 (0x7c), region = 43  ;;  %s249_s5 = sand.u32 (%p2970_p9), 1, %s2832_s18  }
  0x33   : > { %s2319_s29 = sshll.u32 (%p2970_p9), %s2856_s24, 1  ;;  %s2317_s30 = sshll.u32 (%p2970_p9), %s249_s5, 10 }
  0x34   : > { %s2486_s8 = sshll.u32 (%p2970_p9), %s2852_s23, 9  ;;  %s3539_s1 = sld [smem:[#allocation10_spill]] (%p2970_p9) }
  0x35   : > { %s255_s6 = sadd.s32 (%p2970_p9), %s2486_s8, %s2319_s29  ;;  %s3026_s10 = scalar_lea.vmem (%p2970_p9), [#allocation4], %s2317_s30 }
  0x36   : > { %s2321_s9 = sshll.u32 (%p2970_p9), %s255_s6, 2 }
  0x3a   : > { %s3021_s27 = scalar_lea.vmem %s3539_s1, %s2321_s9 }
  0x3b   : > { %v540_v16 = vld [vmem:[%s3021_s27] sm:$0xff]  ;;  %v542_v17 = vld [vmem:[%s3021_s27 + $0x10] sm:$0xff] }
  0x3c   : > { %v544_v18 = vld [vmem:[%s3021_s27 + $0x20] sm:$0xff]  ;;  %541 = vst [vmem:[%s3026_s10] sm:$0xff] %v540_v16  ;;  %543 = vst [vmem:[%s3026_s10 + $0x8] sm:$0xff] %v542_v17  ;;  %v546_v19 = vld [vmem:[%s3021_s27 + $0x30] sm:$0xff] }
  0x3d   : > { %545 = vst [vmem:[%s3026_s10 + $0x10] sm:$0xff] %v544_v18  ;;  %v548_v20 = vld [vmem:[%s3021_s27 + $0x40] sm:$0xff]  ;;  %v550_v21 = vld [vmem:[%s3021_s27 + $0x50] sm:$0xff]  ;;  %547 = vst [vmem:[%s3026_s10 + $0x18] sm:$0xff] %v546_v19 }
  0x3e   : > { %549 = vst [vmem:[%s3026_s10 + $0x20] sm:$0xff] %v548_v20  ;;  %551 = vst [vmem:[%s3026_s10 + $0x28] sm:$0xff] %v550_v21  ;;  %v552_v22 = vld [vmem:[%s3021_s27 + $0x60] sm:$0xff]  ;;  %v554_v23 = vld [vmem:[%s3021_s27 + $0x70] sm:$0xff] }
  0x3f   : > { %v556_v24 = vld [vmem:[%s3021_s27 + $0x80] sm:$0xff]  ;;  %553 = vst [vmem:[%s3026_s10 + $0x30] sm:$0xff] %v552_v22  ;;  %555 = vst [vmem:[%s3026_s10 + $0x38] sm:$0xff] %v554_v23  ;;  %v558_v25 = vld [vmem:[%s3021_s27 + $0x90] sm:$0xff] }
  0x40   : > { %557 = vst [vmem:[%s3026_s10 + $0x40] sm:$0xff] %v556_v24  ;;  %v560_v26 = vld [vmem:[%s3021_s27 + $0xa0] sm:$0xff]  ;;  %v562_v27 = vld [vmem:[%s3021_s27 + $0xb0] sm:$0xff]  ;;  %559 = vst [vmem:[%s3026_s10 + $0x48] sm:$0xff] %v558_v25 }
  0x41   : > { %561 = vst [vmem:[%s3026_s10 + $0x50] sm:$0xff] %v560_v26  ;;  %563 = vst [vmem:[%s3026_s10 + $0x58] sm:$0xff] %v562_v27  ;;  %v564_v28 = vld [vmem:[%s3021_s27 + $0xc0] sm:$0xff]  ;;  %v566_v29 = vld [vmem:[%s3021_s27 + $0xd0] sm:$0xff] }
  0x42   : > { %v568_v30 = vld [vmem:[%s3021_s27 + $0xe0] sm:$0xff]  ;;  %565 = vst [vmem:[%s3026_s10 + $0x60] sm:$0xff] %v564_v28  ;;  %567 = vst [vmem:[%s3026_s10 + $0x68] sm:$0xff] %v566_v29  ;;  %v570_v31 = vld [vmem:[%s3021_s27 + $0xf0] sm:$0xff] }
  0x43   : > { %569 = vst [vmem:[%s3026_s10 + $0x70] sm:$0xff] %v568_v30  ;;  %v572_v32 = vld [vmem:[%s3021_s27 + $0x100] sm:$0xff]  ;;  %v574_v33 = vld [vmem:[%s3021_s27 + $0x110] sm:$0xff]  ;;  %571 = vst [vmem:[%s3026_s10 + $0x78] sm:$0xff] %v570_v31 }
  0x44   : > { %573 = vst [vmem:[%s3026_s10 + $0x80] sm:$0xff] %v572_v32  ;;  %575 = vst [vmem:[%s3026_s10 + $0x88] sm:$0xff] %v574_v33  ;;  %v576_v34 = vld [vmem:[%s3021_s27 + $0x120] sm:$0xff]  ;;  %v578_v35 = vld [vmem:[%s3021_s27 + $0x130] sm:$0xff] }
  0x45   : > { %v580_v36 = vld [vmem:[%s3021_s27 + $0x140] sm:$0xff]  ;;  %577 = vst [vmem:[%s3026_s10 + $0x90] sm:$0xff] %v576_v34  ;;  %579 = vst [vmem:[%s3026_s10 + $0x98] sm:$0xff] %v578_v35  ;;  %v582_v37 = vld [vmem:[%s3021_s27 + $0x150] sm:$0xff] }
  0x46   : > { %581 = vst [vmem:[%s3026_s10 + $0xa0] sm:$0xff] %v580_v36  ;;  %v584_v38 = vld [vmem:[%s3021_s27 + $0x160] sm:$0xff]  ;;  %v586_v39 = vld [vmem:[%s3021_s27 + $0x170] sm:$0xff]  ;;  %583 = vst [vmem:[%s3026_s10 + $0xa8] sm:$0xff] %v582_v37 }
  0x47   : > { %585 = vst [vmem:[%s3026_s10 + $0xb0] sm:$0xff] %v584_v38  ;;  %587 = vst [vmem:[%s3026_s10 + $0xb8] sm:$0xff] %v586_v39  ;;  %v588_v40 = vld [vmem:[%s3021_s27 + $0x180] sm:$0xff]  ;;  %v590_v41 = vld [vmem:[%s3021_s27 + $0x190] sm:$0xff] }
  0x48   : > { %v592_v42 = vld [vmem:[%s3021_s27 + $0x1a0] sm:$0xff]  ;;  %589 = vst [vmem:[%s3026_s10 + $0xc0] sm:$0xff] %v588_v40  ;;  %591 = vst [vmem:[%s3026_s10 + $0xc8] sm:$0xff] %v590_v41  ;;  %v594_v43 = vld [vmem:[%s3021_s27 + $0x1b0] sm:$0xff] }
  0x49   : > { %593 = vst [vmem:[%s3026_s10 + $0xd0] sm:$0xff] %v592_v42  ;;  %v596_v44 = vld [vmem:[%s3021_s27 + $0x1c0] sm:$0xff]  ;;  %v598_v45 = vld [vmem:[%s3021_s27 + $0x1d0] sm:$0xff]  ;;  %595 = vst [vmem:[%s3026_s10 + $0xd8] sm:$0xff] %v594_v43 }
  0x4a   : > { %597 = vst [vmem:[%s3026_s10 + $0xe0] sm:$0xff] %v596_v44  ;;  %599 = vst [vmem:[%s3026_s10 + $0xe8] sm:$0xff] %v598_v45  ;;  %v600_v46 = vld [vmem:[%s3021_s27 + $0x1e0] sm:$0xff]  ;;  %v602_v47 = vld [vmem:[%s3021_s27 + $0x1f0] sm:$0xff] }
  0x4b   : > { %v604_v48 = vld [vmem:[%s3021_s27 + $0x200] sm:$0xff]  ;;  %601 = vst [vmem:[%s3026_s10 + $0xf0] sm:$0xff] %v600_v46  ;;  %603 = vst [vmem:[%s3026_s10 + $0xf8] sm:$0xff] %v602_v47  ;;  %v606_v49 = vld [vmem:[%s3021_s27 + $0x210] sm:$0xff] }
  0x4c   : > { %605 = vst [vmem:[%s3026_s10 + $0x100] sm:$0xff] %v604_v48  ;;  %v608_v50 = vld [vmem:[%s3021_s27 + $0x220] sm:$0xff]  ;;  %v610_v51 = vld [vmem:[%s3021_s27 + $0x230] sm:$0xff]  ;;  %607 = vst [vmem:[%s3026_s10 + $0x108] sm:$0xff] %v606_v49 }
  0x4d   : > { %609 = vst [vmem:[%s3026_s10 + $0x110] sm:$0xff] %v608_v50  ;;  %611 = vst [vmem:[%s3026_s10 + $0x118] sm:$0xff] %v610_v51  ;;  %v612_v52 = vld [vmem:[%s3021_s27 + $0x240] sm:$0xff]  ;;  %v614_v53 = vld [vmem:[%s3021_s27 + $0x250] sm:$0xff] }
  0x4e   : > { %v616_v54 = vld [vmem:[%s3021_s27 + $0x260] sm:$0xff]  ;;  %613 = vst [vmem:[%s3026_s10 + $0x120] sm:$0xff] %v612_v52  ;;  %615 = vst [vmem:[%s3026_s10 + $0x128] sm:$0xff] %v614_v53  ;;  %v618_v55 = vld [vmem:[%s3021_s27 + $0x270] sm:$0xff] }
  0x4f   : > { %617 = vst [vmem:[%s3026_s10 + $0x130] sm:$0xff] %v616_v54  ;;  %v620_v56 = vld [vmem:[%s3021_s27 + $0x280] sm:$0xff]  ;;  %v622_v57 = vld [vmem:[%s3021_s27 + $0x290] sm:$0xff]  ;;  %619 = vst [vmem:[%s3026_s10 + $0x138] sm:$0xff] %v618_v55 }
  0x50   : > { %621 = vst [vmem:[%s3026_s10 + $0x140] sm:$0xff] %v620_v56  ;;  %623 = vst [vmem:[%s3026_s10 + $0x148] sm:$0xff] %v622_v57  ;;  %v624_v58 = vld [vmem:[%s3021_s27 + $0x2a0] sm:$0xff]  ;;  %v626_v59 = vld [vmem:[%s3021_s27 + $0x2b0] sm:$0xff] }
  0x51   : > { %v628_v60 = vld [vmem:[%s3021_s27 + $0x2c0] sm:$0xff]  ;;  %625 = vst [vmem:[%s3026_s10 + $0x150] sm:$0xff] %v624_v58  ;;  %627 = vst [vmem:[%s3026_s10 + $0x158] sm:$0xff] %v626_v59  ;;  %v630_v61 = vld [vmem:[%s3021_s27 + $0x2d0] sm:$0xff] }
  0x52   : > { %629 = vst [vmem:[%s3026_s10 + $0x160] sm:$0xff] %v628_v60  ;;  %v632_v62 = vld [vmem:[%s3021_s27 + $0x2e0] sm:$0xff]  ;;  %v634_v63 = vld [vmem:[%s3021_s27 + $0x2f0] sm:$0xff]  ;;  %631 = vst [vmem:[%s3026_s10 + $0x168] sm:$0xff] %v630_v61 }
  0x53   : > { %633 = vst [vmem:[%s3026_s10 + $0x170] sm:$0xff] %v632_v62  ;;  %635 = vst [vmem:[%s3026_s10 + $0x178] sm:$0xff] %v634_v63  ;;  %v636_v0 = vld [vmem:[%s3021_s27 + $0x300] sm:$0xff]  ;;  %v638_v1 = vld [vmem:[%s3021_s27 + $0x310] sm:$0xff] }
  0x54   : > { %v640_v2 = vld [vmem:[%s3021_s27 + $0x320] sm:$0xff]  ;;  %637 = vst [vmem:[%s3026_s10 + $0x180] sm:$0xff] %v636_v0  ;;  %639 = vst [vmem:[%s3026_s10 + $0x188] sm:$0xff] %v638_v1  ;;  %v642_v3 = vld [vmem:[%s3021_s27 + $0x330] sm:$0xff] }
  0x55   : > { %641 = vst [vmem:[%s3026_s10 + $0x190] sm:$0xff] %v640_v2  ;;  %v644_v4 = vld [vmem:[%s3021_s27 + $0x340] sm:$0xff]  ;;  %v646_v5 = vld [vmem:[%s3021_s27 + $0x350] sm:$0xff]  ;;  %643 = vst [vmem:[%s3026_s10 + $0x198] sm:$0xff] %v642_v3 }
  0x56   : > { %645 = vst [vmem:[%s3026_s10 + $0x1a0] sm:$0xff] %v644_v4  ;;  %647 = vst [vmem:[%s3026_s10 + $0x1a8] sm:$0xff] %v646_v5  ;;  %v648_v6 = vld [vmem:[%s3021_s27 + $0x360] sm:$0xff]  ;;  %v650_v7 = vld [vmem:[%s3021_s27 + $0x370] sm:$0xff] }
  0x57   : > { %v652_v8 = vld [vmem:[%s3021_s27 + $0x380] sm:$0xff]  ;;  %649 = vst [vmem:[%s3026_s10 + $0x1b0] sm:$0xff] %v648_v6  ;;  %651 = vst [vmem:[%s3026_s10 + $0x1b8] sm:$0xff] %v650_v7  ;;  %v654_v9 = vld [vmem:[%s3021_s27 + $0x390] sm:$0xff] }
  0x58   : > { %653 = vst [vmem:[%s3026_s10 + $0x1c0] sm:$0xff] %v652_v8  ;;  %v656_v10 = vld [vmem:[%s3021_s27 + $0x3a0] sm:$0xff]  ;;  %v658_v11 = vld [vmem:[%s3021_s27 + $0x3b0] sm:$0xff]  ;;  %655 = vst [vmem:[%s3026_s10 + $0x1c8] sm:$0xff] %v654_v9 }
  0x59   : > { %657 = vst [vmem:[%s3026_s10 + $0x1d0] sm:$0xff] %v656_v10  ;;  %659 = vst [vmem:[%s3026_s10 + $0x1d8] sm:$0xff] %v658_v11  ;;  %v660_v12 = vld [vmem:[%s3021_s27 + $0x3c0] sm:$0xff]  ;;  %v662_v13 = vld [vmem:[%s3021_s27 + $0x3d0] sm:$0xff] }
  0x5a   : > { %v664_v14 = vld [vmem:[%s3021_s27 + $0x3e0] sm:$0xff]  ;;  %661 = vst [vmem:[%s3026_s10 + $0x1e0] sm:$0xff] %v660_v12  ;;  %663 = vst [vmem:[%s3026_s10 + $0x1e8] sm:$0xff] %v662_v13  ;;  %v666_v15 = vld [vmem:[%s3021_s27 + $0x3f0] sm:$0xff] }
  0x5b   : > { %665 = vst [vmem:[%s3026_s10 + $0x1f0] sm:$0xff] %v664_v14  ;;  %v668_v16 = vld [vmem:[%s3021_s27 + $0x400] sm:$0xff]  ;;  %v670_v17 = vld [vmem:[%s3021_s27 + $0x410] sm:$0xff]  ;;  %667 = vst [vmem:[%s3026_s10 + $0x1f8] sm:$0xff] %v666_v15 }
  0x5c   : > { %669 = vst [vmem:[%s3026_s10 + $0x200] sm:$0xff] %v668_v16  ;;  %671 = vst [vmem:[%s3026_s10 + $0x208] sm:$0xff] %v670_v17  ;;  %v672_v18 = vld [vmem:[%s3021_s27 + $0x420] sm:$0xff]  ;;  %v674_v19 = vld [vmem:[%s3021_s27 + $0x430] sm:$0xff] }
  0x5d   : > { %v676_v20 = vld [vmem:[%s3021_s27 + $0x440] sm:$0xff]  ;;  %673 = vst [vmem:[%s3026_s10 + $0x210] sm:$0xff] %v672_v18  ;;  %675 = vst [vmem:[%s3026_s10 + $0x218] sm:$0xff] %v674_v19  ;;  %v678_v21 = vld [vmem:[%s3021_s27 + $0x450] sm:$0xff] }
  0x5e   : > { %677 = vst [vmem:[%s3026_s10 + $0x220] sm:$0xff] %v676_v20  ;;  %v680_v22 = vld [vmem:[%s3021_s27 + $0x460] sm:$0xff]  ;;  %v682_v23 = vld [vmem:[%s3021_s27 + $0x470] sm:$0xff]  ;;  %679 = vst [vmem:[%s3026_s10 + $0x228] sm:$0xff] %v678_v21 }
  0x5f   : > { %681 = vst [vmem:[%s3026_s10 + $0x230] sm:$0xff] %v680_v22  ;;  %683 = vst [vmem:[%s3026_s10 + $0x238] sm:$0xff] %v682_v23  ;;  %v684_v24 = vld [vmem:[%s3021_s27 + $0x480] sm:$0xff]  ;;  %v686_v25 = vld [vmem:[%s3021_s27 + $0x490] sm:$0xff] }
  0x60   : > { %v688_v26 = vld [vmem:[%s3021_s27 + $0x4a0] sm:$0xff]  ;;  %685 = vst [vmem:[%s3026_s10 + $0x240] sm:$0xff] %v684_v24  ;;  %687 = vst [vmem:[%s3026_s10 + $0x248] sm:$0xff] %v686_v25  ;;  %v690_v27 = vld [vmem:[%s3021_s27 + $0x4b0] sm:$0xff] }
  0x61   : > { %689 = vst [vmem:[%s3026_s10 + $0x250] sm:$0xff] %v688_v26  ;;  %v692_v28 = vld [vmem:[%s3021_s27 + $0x4c0] sm:$0xff]  ;;  %v694_v29 = vld [vmem:[%s3021_s27 + $0x4d0] sm:$0xff]  ;;  %691 = vst [vmem:[%s3026_s10 + $0x258] sm:$0xff] %v690_v27 }
  0x62   : > { %693 = vst [vmem:[%s3026_s10 + $0x260] sm:$0xff] %v692_v28  ;;  %695 = vst [vmem:[%s3026_s10 + $0x268] sm:$0xff] %v694_v29  ;;  %v696_v30 = vld [vmem:[%s3021_s27 + $0x4e0] sm:$0xff]  ;;  %v698_v31 = vld [vmem:[%s3021_s27 + $0x4f0] sm:$0xff] }
  0x63   : > { %v700_v32 = vld [vmem:[%s3021_s27 + $0x500] sm:$0xff]  ;;  %697 = vst [vmem:[%s3026_s10 + $0x270] sm:$0xff] %v696_v30  ;;  %699 = vst [vmem:[%s3026_s10 + $0x278] sm:$0xff] %v698_v31  ;;  %v702_v33 = vld [vmem:[%s3021_s27 + $0x510] sm:$0xff] }
  0x64   : > { %701 = vst [vmem:[%s3026_s10 + $0x280] sm:$0xff] %v700_v32  ;;  %v704_v34 = vld [vmem:[%s3021_s27 + $0x520] sm:$0xff]  ;;  %v706_v35 = vld [vmem:[%s3021_s27 + $0x530] sm:$0xff]  ;;  %703 = vst [vmem:[%s3026_s10 + $0x288] sm:$0xff] %v702_v33 }
  0x65   : > { %705 = vst [vmem:[%s3026_s10 + $0x290] sm:$0xff] %v704_v34  ;;  %707 = vst [vmem:[%s3026_s10 + $0x298] sm:$0xff] %v706_v35  ;;  %v708_v36 = vld [vmem:[%s3021_s27 + $0x540] sm:$0xff]  ;;  %v710_v37 = vld [vmem:[%s3021_s27 + $0x550] sm:$0xff] }
  0x66   : > { %v712_v38 = vld [vmem:[%s3021_s27 + $0x560] sm:$0xff]  ;;  %709 = vst [vmem:[%s3026_s10 + $0x2a0] sm:$0xff] %v708_v36  ;;  %711 = vst [vmem:[%s3026_s10 + $0x2a8] sm:$0xff] %v710_v37  ;;  %v714_v39 = vld [vmem:[%s3021_s27 + $0x570] sm:$0xff] }
  0x67   : > { %713 = vst [vmem:[%s3026_s10 + $0x2b0] sm:$0xff] %v712_v38  ;;  %v716_v40 = vld [vmem:[%s3021_s27 + $0x580] sm:$0xff]  ;;  %v718_v41 = vld [vmem:[%s3021_s27 + $0x590] sm:$0xff]  ;;  %715 = vst [vmem:[%s3026_s10 + $0x2b8] sm:$0xff] %v714_v39 }
  0x68   : > { %717 = vst [vmem:[%s3026_s10 + $0x2c0] sm:$0xff] %v716_v40  ;;  %719 = vst [vmem:[%s3026_s10 + $0x2c8] sm:$0xff] %v718_v41  ;;  %v720_v42 = vld [vmem:[%s3021_s27 + $0x5a0] sm:$0xff]  ;;  %v722_v43 = vld [vmem:[%s3021_s27 + $0x5b0] sm:$0xff] }
  0x69   : > { %v724_v44 = vld [vmem:[%s3021_s27 + $0x5c0] sm:$0xff]  ;;  %721 = vst [vmem:[%s3026_s10 + $0x2d0] sm:$0xff] %v720_v42  ;;  %723 = vst [vmem:[%s3026_s10 + $0x2d8] sm:$0xff] %v722_v43  ;;  %v726_v45 = vld [vmem:[%s3021_s27 + $0x5d0] sm:$0xff] }
  0x6a   : > { %725 = vst [vmem:[%s3026_s10 + $0x2e0] sm:$0xff] %v724_v44  ;;  %v728_v46 = vld [vmem:[%s3021_s27 + $0x5e0] sm:$0xff]  ;;  %v730_v47 = vld [vmem:[%s3021_s27 + $0x5f0] sm:$0xff]  ;;  %727 = vst [vmem:[%s3026_s10 + $0x2e8] sm:$0xff] %v726_v45 }
  0x6b   : > { %729 = vst [vmem:[%s3026_s10 + $0x2f0] sm:$0xff] %v728_v46  ;;  %731 = vst [vmem:[%s3026_s10 + $0x2f8] sm:$0xff] %v730_v47  ;;  %v732_v48 = vld [vmem:[%s3021_s27 + $0x600] sm:$0xff]  ;;  %v734_v49 = vld [vmem:[%s3021_s27 + $0x610] sm:$0xff] }
  0x6c   : > { %v736_v50 = vld [vmem:[%s3021_s27 + $0x620] sm:$0xff]  ;;  %733 = vst [vmem:[%s3026_s10 + $0x300] sm:$0xff] %v732_v48  ;;  %735 = vst [vmem:[%s3026_s10 + $0x308] sm:$0xff] %v734_v49  ;;  %v738_v51 = vld [vmem:[%s3021_s27 + $0x630] sm:$0xff] }
  0x6d   : > { %737 = vst [vmem:[%s3026_s10 + $0x310] sm:$0xff] %v736_v50  ;;  %v740_v52 = vld [vmem:[%s3021_s27 + $0x640] sm:$0xff]  ;;  %v742_v53 = vld [vmem:[%s3021_s27 + $0x650] sm:$0xff]  ;;  %739 = vst [vmem:[%s3026_s10 + $0x318] sm:$0xff] %v738_v51 }
  0x6e   : > { %741 = vst [vmem:[%s3026_s10 + $0x320] sm:$0xff] %v740_v52  ;;  %743 = vst [vmem:[%s3026_s10 + $0x328] sm:$0xff] %v742_v53  ;;  %v744_v54 = vld [vmem:[%s3021_s27 + $0x660] sm:$0xff]  ;;  %v746_v55 = vld [vmem:[%s3021_s27 + $0x670] sm:$0xff] }
  0x6f   : > { %v748_v56 = vld [vmem:[%s3021_s27 + $0x680] sm:$0xff]  ;;  %745 = vst [vmem:[%s3026_s10 + $0x330] sm:$0xff] %v744_v54  ;;  %747 = vst [vmem:[%s3026_s10 + $0x338] sm:$0xff] %v746_v55  ;;  %v750_v57 = vld [vmem:[%s3021_s27 + $0x690] sm:$0xff] }
  0x70   : > { %749 = vst [vmem:[%s3026_s10 + $0x340] sm:$0xff] %v748_v56  ;;  %v752_v58 = vld [vmem:[%s3021_s27 + $0x6a0] sm:$0xff]  ;;  %v754_v59 = vld [vmem:[%s3021_s27 + $0x6b0] sm:$0xff]  ;;  %751 = vst [vmem:[%s3026_s10 + $0x348] sm:$0xff] %v750_v57 }
  0x71   : > { %753 = vst [vmem:[%s3026_s10 + $0x350] sm:$0xff] %v752_v58  ;;  %755 = vst [vmem:[%s3026_s10 + $0x358] sm:$0xff] %v754_v59  ;;  %v756_v60 = vld [vmem:[%s3021_s27 + $0x6c0] sm:$0xff]  ;;  %v758_v61 = vld [vmem:[%s3021_s27 + $0x6d0] sm:$0xff] }
  0x72   : > { %v760_v62 = vld [vmem:[%s3021_s27 + $0x6e0] sm:$0xff]  ;;  %757 = vst [vmem:[%s3026_s10 + $0x360] sm:$0xff] %v756_v60  ;;  %759 = vst [vmem:[%s3026_s10 + $0x368] sm:$0xff] %v758_v61  ;;  %v762_v63 = vld [vmem:[%s3021_s27 + $0x6f0] sm:$0xff] }
  0x73   : > { %761 = vst [vmem:[%s3026_s10 + $0x370] sm:$0xff] %v760_v62  ;;  %v764_v0 = vld [vmem:[%s3021_s27 + $0x700] sm:$0xff]  ;;  %v766_v1 = vld [vmem:[%s3021_s27 + $0x710] sm:$0xff]  ;;  %763 = vst [vmem:[%s3026_s10 + $0x378] sm:$0xff] %v762_v63 }
  0x74   : > { %765 = vst [vmem:[%s3026_s10 + $0x380] sm:$0xff] %v764_v0  ;;  %767 = vst [vmem:[%s3026_s10 + $0x388] sm:$0xff] %v766_v1  ;;  %v768_v2 = vld [vmem:[%s3021_s27 + $0x720] sm:$0xff]  ;;  %v770_v3 = vld [vmem:[%s3021_s27 + $0x730] sm:$0xff] }
  0x75   : > { %v772_v4 = vld [vmem:[%s3021_s27 + $0x740] sm:$0xff]  ;;  %769 = vst [vmem:[%s3026_s10 + $0x390] sm:$0xff] %v768_v2  ;;  %771 = vst [vmem:[%s3026_s10 + $0x398] sm:$0xff] %v770_v3  ;;  %v774_v5 = vld [vmem:[%s3021_s27 + $0x750] sm:$0xff] }
  0x76   : > { %773 = vst [vmem:[%s3026_s10 + $0x3a0] sm:$0xff] %v772_v4  ;;  %v776_v6 = vld [vmem:[%s3021_s27 + $0x760] sm:$0xff]  ;;  %v778_v7 = vld [vmem:[%s3021_s27 + $0x770] sm:$0xff]  ;;  %775 = vst [vmem:[%s3026_s10 + $0x3a8] sm:$0xff] %v774_v5 }
  0x77   : > { %777 = vst [vmem:[%s3026_s10 + $0x3b0] sm:$0xff] %v776_v6  ;;  %779 = vst [vmem:[%s3026_s10 + $0x3b8] sm:$0xff] %v778_v7  ;;  %v780_v8 = vld [vmem:[%s3021_s27 + $0x780] sm:$0xff]  ;;  %v782_v9 = vld [vmem:[%s3021_s27 + $0x790] sm:$0xff] }
  0x78   : > { %v784_v10 = vld [vmem:[%s3021_s27 + $0x7a0] sm:$0xff]  ;;  %781 = vst [vmem:[%s3026_s10 + $0x3c0] sm:$0xff] %v780_v8  ;;  %783 = vst [vmem:[%s3026_s10 + $0x3c8] sm:$0xff] %v782_v9  ;;  %v786_v11 = vld [vmem:[%s3021_s27 + $0x7b0] sm:$0xff] }
  0x79   : > { %785 = vst [vmem:[%s3026_s10 + $0x3d0] sm:$0xff] %v784_v10  ;;  %v788_v12 = vld [vmem:[%s3021_s27 + $0x7c0] sm:$0xff]  ;;  %v790_v13 = vld [vmem:[%s3021_s27 + $0x7d0] sm:$0xff]  ;;  %787 = vst [vmem:[%s3026_s10 + $0x3d8] sm:$0xff] %v786_v11 }
  0x7a   : > { %789 = vst [vmem:[%s3026_s10 + $0x3e0] sm:$0xff] %v788_v12  ;;  %791 = vst [vmem:[%s3026_s10 + $0x3e8] sm:$0xff] %v790_v13  ;;  %v792_v14 = vld [vmem:[%s3021_s27 + $0x7e0] sm:$0xff]  ;;  %v794_v15 = vld [vmem:[%s3021_s27 + $0x7f0] sm:$0xff] }
  0x7b   : > { %793 = vst [vmem:[%s3026_s10 + $0x3f0] sm:$0xff] %v792_v14  ;;  %795 = vst [vmem:[%s3026_s10 + $0x3f8] sm:$0xff] %v794_v15 }
  0x7c PF: > { %p2322_p0 = scmp.ge.s32.totalorder %s2860_s25, 1  ;;  %p800_p1 = scmp.lt.s32.totalorder %s2860_s25, 9 }
  0x7e   : > { %p801_p2 = pnand %p2322_p0, %p800_p1 }
  0x7f   : > { %s807_s0 = sand.u32 (!%p801_p2), 1, %s2836_s19   ;;  %s814_s28 = sand.u32 (!%p801_p2), 1, %s2828_s17  }
  0x80   : > { %804 = sbr.rel (%p801_p2) target bundleno = 519 (0x207), region = 81  ;;  %s2323_s11 = sshll.u32 (!%p801_p2), %s807_s0, 7 }
  0x81   : > { %s2324_s26 = sshll.u32 (!%p801_p2), %s814_s28, 10  ;;  %s835_s5 = sand.u32 (!%p801_p2), 1, %s2820_s15  }
  0x82   : > { %s2326_s27 = sshll.u32 (!%p801_p2), %s2848_s22, 1  ;;  %s2325_s29 = sshll.u32 (!%p801_p2), %s835_s5, 5 }
  0x83   : > { %p859_p3 = scmp.lt.s32.totalorder (!%p801_p2), %s2326_s27, 3  ;;  %s3297_s19 = scalar_lea.vmem (!%p801_p2), [#allocation3], %s2323_s11 }
  0x84   : > { %s3299_s17 = scalar_lea.vmem (!%p801_p2), [#allocation4], %s2324_s26  ;;  %s3301_s15 = scalar_lea.vmem (!%p801_p2), [#allocation5], %s2325_s29 }
  0x85   : > { %s3559_s27 = smov (!%p859_p3, %s2326_s27), 3  ;;  %p2330_p4 = scmp.ne.s32.totalorder %s2844_s21, 0 }
  0x86   : > { %s2327_s30 = sshll.u32 %s3559_s27, 3 }
  0x87   : > { %s3290_s9 = scalar_lea.vmem %s3525_s3, %s2327_s30  ;;  %s3295_s24 = scalar_lea.vmem %s3526_s4, %s2327_s30 }
  0x88   : > { %873 = sbr.rel (%p2330_p4) target bundleno = 146 (0x92), region = 93 }
  0x8d   : > { %v2862_v16 = vmov 0.0  }
  0x8e   : > { %874 = vst [vmem:[#allocation2 + $0x30] sm:$0xff] %v2862_v16  ;;  %875 = vst [vmem:[#allocation2] sm:$0xff] %v2862_v16 }
  0x8f   : > { %876 = vst [vmem:[#allocation2 + $0x18] sm:$0xff] %v2862_v16  ;;  %877 = vst [vmem:[#allocation2 + $0x10] sm:$0xff] %v2862_v16 }
  0x90   : > { %878 = vst [vmem:[#allocation2 + $0x8] sm:$0xff] %v2862_v16  ;;  %879 = vst [vmem:[#allocation2 + $0x20] sm:$0xff] %v2862_v16 }
  0x91   : > { %880 = vst [vmem:[#allocation2 + $0x28] sm:$0xff] %v2862_v16  ;;  %881 = vst [vmem:[#allocation2 + $0x38] sm:$0xff] %v2862_v16 }
  0x92 PF: > { %v2582_v17 = vld [vmem:[%s3299_s17 + $0x74] ss:$8 sps:$4 sm:$0xff]   ;;  %v2586_v19 = vld [vmem:[%s3299_s17 + $0x70] ss:$8 sps:$4 sm:$0xff]   ;;  %v2588_v21 = vld [vmem:[%s3299_s17 + $0x64] ss:$8 sps:$4 sm:$0xff]  }
  0x93   : > { %v2584_v18 = vld [vmem:[%s3299_s17 + $0x174] ss:$8 sps:$4 sm:$0xff]   ;;  %1754 = vmatprep.subr.bf16.mxu0 %v2582_v17  ;;  %v2587_v20 = vld [vmem:[%s3299_s17 + $0x170] ss:$8 sps:$4 sm:$0xff]   ;;  %v2590_v22 = vld [vmem:[%s3299_s17 + $0x164] ss:$8 sps:$4 sm:$0xff]  }
  0x94   : > { %1807 = vmatprep.subr.bf16.mxu1 %v2584_v18  ;;  %1755 = vmatpush1.bf16.msra.mxu0 %v2586_v19  ;;  %v2592_v23 = vld [vmem:[%s3299_s17 + $0x60] ss:$8 sps:$4 sm:$0xff]   ;;  %v2594_v25 = vld [vmem:[%s3299_s17 + $0x54] ss:$8 sps:$4 sm:$0xff]   ;;  %v2598_v27 = vld [vmem:[%s3299_s17 + $0x50] ss:$8 sps:$4 sm:$0xff]  }
  0x95   : > { %1808 = vmatpush1.bf16.msra.mxu1 %v2587_v20  ;;  %1756 = vmatprep.subr.bf16.mxu0 %v2588_v21  ;;  %v2593_v24 = vld [vmem:[%s3299_s17 + $0x160] ss:$8 sps:$4 sm:$0xff]   ;;  %v2596_v26 = vld [vmem:[%s3299_s17 + $0x154] ss:$8 sps:$4 sm:$0xff]   ;;  %v2599_v28 = vld [vmem:[%s3299_s17 + $0x150] ss:$8 sps:$4 sm:$0xff]  }
  0x96   : > { %1809 = vmatprep.subr.bf16.mxu1 %v2590_v22  ;;  %v2600_v29 = vld [vmem:[%s3299_s17 + $0x44] ss:$8 sps:$4 sm:$0xff]   ;;  %v2604_v31 = vld [vmem:[%s3299_s17 + $0x40] ss:$8 sps:$4 sm:$0xff]   ;;  %v2606_v33 = vld [vmem:[%s3299_s17 + $0x34] ss:$8 sps:$4 sm:$0xff]  }
  0x97   : > { %v2602_v30 = vld [vmem:[%s3299_s17 + $0x144] ss:$8 sps:$4 sm:$0xff]   ;;  %v2605_v32 = vld [vmem:[%s3299_s17 + $0x140] ss:$8 sps:$4 sm:$0xff]   ;;  %v2608_v34 = vld [vmem:[%s3299_s17 + $0x134] ss:$8 sps:$4 sm:$0xff]  }
  0x98   : > { %1757 = vmatpush1.bf16.msra.mxu0 %v2592_v23  ;;  %v2610_v35 = vld [vmem:[%s3299_s17 + $0x30] ss:$8 sps:$4 sm:$0xff]   ;;  %v2612_v37 = vld [vmem:[%s3299_s17 + $0x24] ss:$8 sps:$4 sm:$0xff]   ;;  %v2616_v39 = vld [vmem:[%s3299_s17 + $0x20] ss:$8 sps:$4 sm:$0xff]  }
  0x99   : > { %1810 = vmatpush1.bf16.msra.mxu1 %v2593_v24  ;;  %1758 = vmatprep.subr.bf16.mxu0 %v2594_v25  ;;  %v2611_v36 = vld [vmem:[%s3299_s17 + $0x130] ss:$8 sps:$4 sm:$0xff]   ;;  %v2614_v38 = vld [vmem:[%s3299_s17 + $0x124] ss:$8 sps:$4 sm:$0xff]   ;;  %v2617_v40 = vld [vmem:[%s3299_s17 + $0x120] ss:$8 sps:$4 sm:$0xff]  }
  0x9a   : > { %1811 = vmatprep.subr.bf16.mxu1 %v2596_v26  ;;  %v2618_v41 = vld [vmem:[%s3299_s17 + $0x14] ss:$8 sps:$4 sm:$0xff]   ;;  %v2622_v43 = vld [vmem:[%s3299_s17 + $0x10] ss:$8 sps:$4 sm:$0xff]   ;;  %v2624_v45 = vld [vmem:[%s3299_s17 + $0x4] ss:$8 sps:$4 sm:$0xff]  }
  0x9b   : > { %v2620_v42 = vld [vmem:[%s3299_s17 + $0x114] ss:$8 sps:$4 sm:$0xff]   ;;  %v2623_v44 = vld [vmem:[%s3299_s17 + $0x110] ss:$8 sps:$4 sm:$0xff]   ;;  %v2626_v46 = vld [vmem:[%s3299_s17 + $0x104] ss:$8 sps:$4 sm:$0xff]  }
  0x9c   : > { %1759 = vmatpush1.bf16.msra.mxu0 %v2598_v27  ;;  %v2628_v47 = vld [vmem:[%s3299_s17] ss:$8 sps:$4 sm:$0xff]   ;;  %v2630_v49 = vld [vmem:[%s3299_s17 + $0xf4] ss:$8 sps:$4 sm:$0xff]   ;;  %v2634_v51 = vld [vmem:[%s3299_s17 + $0xf0] ss:$8 sps:$4 sm:$0xff]  }
  0x9d   : > { %1812 = vmatpush1.bf16.msra.mxu1 %v2599_v28  ;;  %1760 = vmatprep.subr.bf16.mxu0 %v2600_v29  ;;  %v2629_v48 = vld [vmem:[%s3299_s17 + $0x100] ss:$8 sps:$4 sm:$0xff]   ;;  %v2632_v50 = vld [vmem:[%s3299_s17 + $0x1f4] ss:$8 sps:$4 sm:$0xff]   ;;  %v2635_v52 = vld [vmem:[%s3299_s17 + $0x1f0] ss:$8 sps:$4 sm:$0xff]  }
  0x9e   : > { %1813 = vmatprep.subr.bf16.mxu1 %v2602_v30  ;;  %v2636_v53 = vld [vmem:[%s3299_s17 + $0xe4] ss:$8 sps:$4 sm:$0xff]   ;;  %v2640_v55 = vld [vmem:[%s3299_s17 + $0xe0] ss:$8 sps:$4 sm:$0xff]   ;;  %v2642_v57 = vld [vmem:[%s3299_s17 + $0xd4] ss:$8 sps:$4 sm:$0xff]  }
  0x9f   : > { %v2638_v54 = vld [vmem:[%s3299_s17 + $0x1e4] ss:$8 sps:$4 sm:$0xff]   ;;  %v2641_v56 = vld [vmem:[%s3299_s17 + $0x1e0] ss:$8 sps:$4 sm:$0xff]   ;;  %v2644_v58 = vld [vmem:[%s3299_s17 + $0x1d4] ss:$8 sps:$4 sm:$0xff]  }
  0xa0   : > { %1761 = vmatpush1.bf16.msra.mxu0 %v2604_v31  ;;  %v2646_v59 = vld [vmem:[%s3299_s17 + $0xd0] ss:$8 sps:$4 sm:$0xff]   ;;  %v2648_v61 = vld [vmem:[%s3299_s17 + $0xc4] ss:$8 sps:$4 sm:$0xff]   ;;  %v2652_v63 = vld [vmem:[%s3299_s17 + $0xc0] ss:$8 sps:$4 sm:$0xff]  }
  0xa1   : > { %1814 = vmatpush1.bf16.msra.mxu1 %v2605_v32  ;;  %1762 = vmatprep.subr.bf16.mxu0 %v2606_v33  ;;  %v2647_v60 = vld [vmem:[%s3299_s17 + $0x1d0] ss:$8 sps:$4 sm:$0xff]   ;;  %v2650_v62 = vld [vmem:[%s3299_s17 + $0x1c4] ss:$8 sps:$4 sm:$0xff]   ;;  %v2653_v0 = vld [vmem:[%s3299_s17 + $0x1c0] ss:$8 sps:$4 sm:$0xff]  }
  0xa2   : > { %1815 = vmatprep.subr.bf16.mxu1 %v2608_v34  ;;  %v890_v1 = vld [vmem:[%s3297_s19] sm:$0xff]  ;;  %v891_v3 = vld [vmem:[%s3297_s19 + $0x8] sm:$0xff]  ;;  %v2654_v5 = vld [vmem:[%s3299_s17 + $0xb4] ss:$8 sps:$4 sm:$0xff]   ;;  %p2475_p5 = scmp.ne.s32.totalorder %s2844_s21, 3 }
  0xa3   : > { %v894_v2 = vld [vmem:[%s3297_s19 + $0x20] sm:$0xff]  ;;  %v895_v4 = vld [vmem:[%s3297_s19 + $0x28] sm:$0xff]  ;;  %v2656_v7 = vld [vmem:[%s3299_s17 + $0x1b4] ss:$8 sps:$4 sm:$0xff]  }
  0xa4   : > { %1763 = vmatpush1.bf16.msra.mxu0 %v2610_v35  ;;  %v2332_v6 = vcombine.high %v890_v1, %v894_v2  ;;  %v2334_v8 = vcombine.high %v891_v3, %v895_v4  ;;  %v2658_v9 = vld [vmem:[%s3299_s17 + $0xb0] ss:$8 sps:$4 sm:$0xff]   ;;  %v2660_v11 = vld [vmem:[%s3299_s17 + $0xa4] ss:$8 sps:$4 sm:$0xff]   ;;  %v2664_v13 = vld [vmem:[%s3299_s17 + $0xa0] ss:$8 sps:$4 sm:$0xff]   ;;  %v2331_v25 = vcombine.low %v890_v1, %v894_v2  ;;  %v2333_v26 = vcombine.low %v891_v3, %v895_v4 }
  0xa5   : > { %1816 = vmatpush1.bf16.msra.mxu1 %v2611_v36  ;;  %1764 = vmatprep.subr.bf16.mxu0 %v2612_v37  ;;  %v2659_v10 = vld [vmem:[%s3299_s17 + $0x1b0] ss:$8 sps:$4 sm:$0xff]   ;;  %v2662_v12 = vld [vmem:[%s3299_s17 + $0x1a4] ss:$8 sps:$4 sm:$0xff]   ;;  %v2665_v14 = vld [vmem:[%s3299_s17 + $0x1a0] ss:$8 sps:$4 sm:$0xff]  }
  0xa6   : > { %1817 = vmatprep.subr.bf16.mxu1 %v2614_v38  ;;  %1786 = vmatprep.mubr.bf16.mxu0 %v2332_v6  ;;  %v2666_v15 = vld [vmem:[%s3299_s17 + $0x94] ss:$8 sps:$4 sm:$0xff]   ;;  %v2670_v17 = vld [vmem:[%s3299_s17 + $0x90] ss:$8 sps:$4 sm:$0xff]   ;;  %v2672_v19 = vld [vmem:[%s3299_s17 + $0x84] ss:$8 sps:$4 sm:$0xff]  }
  0xa7   : > { %1839 = vmatprep.mubr.bf16.mxu1 %v2334_v8  ;;  %v2668_v16 = vld [vmem:[%s3299_s17 + $0x194] ss:$8 sps:$4 sm:$0xff]   ;;  %v2671_v18 = vld [vmem:[%s3299_s17 + $0x190] ss:$8 sps:$4 sm:$0xff]   ;;  %v2674_v20 = vld [vmem:[%s3299_s17 + $0x184] ss:$8 sps:$4 sm:$0xff]  }
  0xa8   : > { %1765 = vmatpush1.bf16.msra.mxu0 %v2616_v39  ;;  %v2676_v21 = vld [vmem:[%s3299_s17 + $0x80] ss:$8 sps:$4 sm:$0xff]   ;;  %v2680_v23 = vld [vmem:[%s3299_s17 + $0x274] ss:$8 sps:$4 sm:$0xff]   ;;  %v2678_v27 = vld [vmem:[%s3299_s17 + $0x270] ss:$8 sps:$4 sm:$0xff]  }
  0xa9   : > { %1818 = vmatpush1.bf16.msra.mxu1 %v2617_v40  ;;  %1766 = vmatprep.subr.bf16.mxu0 %v2618_v41  ;;  %v2677_v22 = vld [vmem:[%s3299_s17 + $0x180] ss:$8 sps:$4 sm:$0xff]   ;;  %v2683_v24 = vld [vmem:[%s3299_s17 + $0x374] ss:$8 sps:$4 sm:$0xff]   ;;  %v2681_v28 = vld [vmem:[%s3299_s17 + $0x370] ss:$8 sps:$4 sm:$0xff]  }
  0xaa   : > { %1819 = vmatprep.subr.bf16.mxu1 %v2620_v42  ;;  %v2686_v29 = vld [vmem:[%s3299_s17 + $0x264] ss:$8 sps:$4 sm:$0xff]   ;;  %v2684_v31 = vld [vmem:[%s3299_s17 + $0x260] ss:$8 sps:$4 sm:$0xff]   ;;  %v2692_v33 = vld [vmem:[%s3299_s17 + $0x254] ss:$8 sps:$4 sm:$0xff]  }
  0xab   : > { %v2689_v30 = vld [vmem:[%s3299_s17 + $0x364] ss:$8 sps:$4 sm:$0xff]   ;;  %v2687_v32 = vld [vmem:[%s3299_s17 + $0x360] ss:$8 sps:$4 sm:$0xff]   ;;  %v2695_v34 = vld [vmem:[%s3299_s17 + $0x354] ss:$8 sps:$4 sm:$0xff]  }
  0xac   : > { %1767 = vmatpush1.bf16.msra.mxu0 %v2622_v43  ;;  %v2690_v35 = vld [vmem:[%s3299_s17 + $0x250] ss:$8 sps:$4 sm:$0xff]   ;;  %v2698_v37 = vld [vmem:[%s3299_s17 + $0x244] ss:$8 sps:$4 sm:$0xff]   ;;  %v2696_v39 = vld [vmem:[%s3299_s17 + $0x240] ss:$8 sps:$4 sm:$0xff]  }
  0xad   : > { %1820 = vmatpush1.bf16.msra.mxu1 %v2623_v44  ;;  %1768 = vmatprep.subr.bf16.mxu0 %v2624_v45  ;;  %v2693_v36 = vld [vmem:[%s3299_s17 + $0x350] ss:$8 sps:$4 sm:$0xff]   ;;  %v2701_v38 = vld [vmem:[%s3299_s17 + $0x344] ss:$8 sps:$4 sm:$0xff]   ;;  %v2699_v40 = vld [vmem:[%s3299_s17 + $0x340] ss:$8 sps:$4 sm:$0xff]  }
  0xae   : > { %1821 = vmatprep.subr.bf16.mxu1 %v2626_v46  ;;  %v2704_v41 = vld [vmem:[%s3299_s17 + $0x234] ss:$8 sps:$4 sm:$0xff]   ;;  %v2702_v43 = vld [vmem:[%s3299_s17 + $0x230] ss:$8 sps:$4 sm:$0xff]   ;;  %v898_v45 = vld [vmem:[%s3297_s19 + $0x40] sm:$0xff] }
  0xaf   : > { %v2707_v42 = vld [vmem:[%s3299_s17 + $0x334] ss:$8 sps:$4 sm:$0xff]   ;;  %v2705_v44 = vld [vmem:[%s3299_s17 + $0x330] ss:$8 sps:$4 sm:$0xff]   ;;  %v902_v46 = vld [vmem:[%s3297_s19 + $0x60] sm:$0xff] }
  0xb0   : > { %1769 = vmatpush1.bf16.msra.mxu0 %v2628_v47  ;;  %v899_v47 = vld [vmem:[%s3297_s19 + $0x48] sm:$0xff]  ;;  %v3418_v3 = vld [vmem:[%s3297_s19 + $0x38] sm:$0xff] }
  0xb1   : > { %1822 = vmatpush1.bf16.msra.mxu1 %v2629_v48  ;;  %1770 = vmatprep.subr.bf16.mxu0 %v2630_v49  ;;  %v903_v48 = vld [vmem:[%s3297_s19 + $0x68] sm:$0xff]  ;;  %v2731_v8 = vld [vmem:[%s3299_s17 + $0x3f4] ss:$8 sps:$4 sm:$0xff]  }
  0xb2   : > { %1823 = vmatprep.subr.bf16.mxu1 %v2632_v50  ;;  %v2710_v49 = vld [vmem:[%s3299_s17 + $0x224] ss:$8 sps:$4 sm:$0xff]   ;;  %v2340_v50 = vcombine.high %v898_v45, %v902_v46  ;;  %v2723_v6 = vld [vmem:[%s3299_s17 + $0x300] ss:$8 sps:$4 sm:$0xff]  }
  0xb3   : > { %v2725_v1 = vld [vmem:[%s3299_s17 + $0x304] ss:$8 sps:$4 sm:$0xff]  }
  0xb4   : > { %1771 = vmatpush2.bf16.msra.mxu0 %v2634_v51  ;;  %v2342_v51 = vcombine.high %v899_v47, %v903_v48 }
  0xb5   : > { %1824 = vmatpush2.bf16.msra.mxu1 %v2635_v52  ;;  %1772 = vmatprep.subr.bf16.mxu0 %v2636_v53  ;;  %v2339_v52 = vcombine.low %v898_v45, %v902_v46  ;;  %v2713_v53 = vld [vmem:[%s3299_s17 + $0x324] ss:$8 sps:$4 sm:$0xff]  }
  0xb6   : > { %1825 = vmatprep.subr.bf16.mxu1 %v2638_v54  ;;  %v2341_v54 = vcombine.low %v899_v47, %v903_v48 }
  0xb8   : > { %1773 = vmatpush2.bf16.msra.mxu0 %v2640_v55  ;;  %v2708_v55 = vld [vmem:[%s3299_s17 + $0x220] ss:$8 sps:$4 sm:$0xff]  }
  0xb9   : > { %1826 = vmatpush2.bf16.msra.mxu1 %v2641_v56  ;;  %1774 = vmatprep.subr.bf16.mxu0 %v2642_v57  ;;  %v2711_v56 = vld [vmem:[%s3299_s17 + $0x320] ss:$8 sps:$4 sm:$0xff]   ;;  %v2716_v57 = vld [vmem:[%s3299_s17 + $0x214] ss:$8 sps:$4 sm:$0xff]  }
  0xba   : > { %1827 = vmatprep.subr.bf16.mxu1 %v2644_v58  ;;  %v2719_v58 = vld [vmem:[%s3299_s17 + $0x314] ss:$8 sps:$4 sm:$0xff]  }
  0xbc   : > { %1775 = vmatpush2.bf16.msra.mxu0 %v2646_v59  ;;  %v2714_v59 = vld [vmem:[%s3299_s17 + $0x210] ss:$8 sps:$4 sm:$0xff]  }
  0xbd   : > { %1828 = vmatpush2.bf16.msra.mxu1 %v2647_v60  ;;  %1776 = vmatprep.subr.bf16.mxu0 %v2648_v61  ;;  %v2717_v60 = vld [vmem:[%s3299_s17 + $0x310] ss:$8 sps:$4 sm:$0xff]  }
  0xbe   : > { %1829 = vmatprep.subr.bf16.mxu1 %v2650_v62  ;;  %v3405_v61 = vld [vmem:[%s3297_s19 + $0x10] sm:$0xff] }
  0xbf   : > { %v3408_v62 = vld [vmem:[%s3297_s19 + $0x30] sm:$0xff] }
  0xc0   : > { %1777 = vmatpush2.bf16.msra.mxu0 %v2652_v63  ;;  %v3411_v63 = vld [vmem:[%s3297_s19 + $0x18] sm:$0xff]  ;;  %v2336_v2 = vcombine.high %v3405_v61, %v3408_v62 }
  0xc1   : > { %1830 = vmatpush2.bf16.msra.mxu1 %v2653_v0  ;;  %1778 = vmatprep.subr.bf16.mxu0 %v2654_v5  ;;  %v2722_v0 = vld [vmem:[%s3299_s17 + $0x204] ss:$8 sps:$4 sm:$0xff]   ;;  %v2338_v4 = vcombine.high %v3411_v63, %v3418_v3  ;;  %v2720_v5 = vld [vmem:[%s3299_s17 + $0x200] ss:$8 sps:$4 sm:$0xff]  }
  0xc2   : > { %1831 = vmatprep.subr.bf16.mxu1 %v2656_v7  ;;  %v2728_v7 = vld [vmem:[%s3299_s17 + $0x2f4] ss:$8 sps:$4 sm:$0xff]  }
  0xc4   : > { %1779 = vmatpush2.bf16.msra.mxu0 %v2658_v9  ;;  %v2726_v9 = vld [vmem:[%s3299_s17 + $0x2f0] ss:$8 sps:$4 sm:$0xff]  }
  0xc5   : > { %1832 = vmatpush2.bf16.msra.mxu1 %v2659_v10  ;;  %1780 = vmatprep.subr.bf16.mxu0 %v2660_v11  ;;  %v2729_v10 = vld [vmem:[%s3299_s17 + $0x3f0] ss:$8 sps:$4 sm:$0xff]   ;;  %v2734_v11 = vld [vmem:[%s3299_s17 + $0x2e4] ss:$8 sps:$4 sm:$0xff]  }
  0xc6   : > { %1833 = vmatprep.subr.bf16.mxu1 %v2662_v12  ;;  %v2737_v12 = vld [vmem:[%s3299_s17 + $0x3e4] ss:$8 sps:$4 sm:$0xff]  }
  0xc8   : > { %1781 = vmatpush2.bf16.msra.mxu0 %v2664_v13  ;;  %v2732_v13 = vld [vmem:[%s3299_s17 + $0x2e0] ss:$8 sps:$4 sm:$0xff]  }
  0xc9   : > { %1834 = vmatpush2.bf16.msra.mxu1 %v2665_v14  ;;  %1782 = vmatprep.subr.bf16.mxu0 %v2666_v15  ;;  %v2735_v14 = vld [vmem:[%s3299_s17 + $0x3e0] ss:$8 sps:$4 sm:$0xff]   ;;  %v2740_v15 = vld [vmem:[%s3299_s17 + $0x2d4] ss:$8 sps:$4 sm:$0xff]  }
  0xca   : > { %1835 = vmatprep.subr.bf16.mxu1 %v2668_v16  ;;  %v2743_v16 = vld [vmem:[%s3299_s17 + $0x3d4] ss:$8 sps:$4 sm:$0xff]  }
  0xcc   : > { %1783 = vmatpush2.bf16.msra.mxu0 %v2670_v17  ;;  %v2738_v17 = vld [vmem:[%s3299_s17 + $0x2d0] ss:$8 sps:$4 sm:$0xff]  }
  0xcd   : > { %1836 = vmatpush2.bf16.msra.mxu1 %v2671_v18  ;;  %1784 = vmatprep.subr.bf16.mxu0 %v2672_v19  ;;  %v2741_v18 = vld [vmem:[%s3299_s17 + $0x3d0] ss:$8 sps:$4 sm:$0xff]   ;;  %v2746_v19 = vld [vmem:[%s3299_s17 + $0x2c4] ss:$8 sps:$4 sm:$0xff]  }
  0xce   : > { %1837 = vmatprep.subr.bf16.mxu1 %v2674_v20  ;;  %v2749_v20 = vld [vmem:[%s3299_s17 + $0x3c4] ss:$8 sps:$4 sm:$0xff]  }
  0xd0   : > { %1785 = vmatpush2.bf16.msra.mxu0 %v2676_v21  ;;  %v2744_v21 = vld [vmem:[%s3299_s17 + $0x2c0] ss:$8 sps:$4 sm:$0xff]  }
  0xd1   : > { %1838 = vmatpush2.bf16.msra.mxu1 %v2677_v22  ;;  %1860 = vmatprep.subr.bf16.mxu0 %v2680_v23  ;;  %v2747_v22 = vld [vmem:[%s3299_s17 + $0x3c0] ss:$8 sps:$4 sm:$0xff]   ;;  %v2752_v23 = vld [vmem:[%s3299_s17 + $0x2b4] ss:$8 sps:$4 sm:$0xff]  }
  0xd2   : > { %1913 = vmatprep.subr.bf16.mxu1 %v2683_v24  ;;  %v2755_v24 = vld [vmem:[%s3299_s17 + $0x3b4] ss:$8 sps:$4 sm:$0xff]  }
  0xd3   : > { %1787 = vmatmul.mubr.bf16.vlgmr.msra.gmra.mxu0 %v2331_v25  ;;  %v2750_v25 = vld [vmem:[%s3299_s17 + $0x2b0] ss:$8 sps:$4 sm:$0xff]  }
  0xd4   : > { %1840 = vmatmul.mubr.bf16.vlgmr.msra.gmra.mxu1 %v2333_v26  ;;  %1861 = vmatpush1.bf16.msra.mxu0 %v2678_v27  ;;  %v2753_v26 = vld [vmem:[%s3299_s17 + $0x3b0] ss:$8 sps:$4 sm:$0xff]   ;;  %v2758_v27 = vld [vmem:[%s3299_s17 + $0x2a4] ss:$8 sps:$4 sm:$0xff]  }
  0xd5   : > { %1914 = vmatpush1.bf16.msra.mxu1 %v2681_v28  ;;  %1862 = vmatprep.subr.bf16.mxu0 %v2686_v29  ;;  %v2761_v28 = vld [vmem:[%s3299_s17 + $0x3a4] ss:$8 sps:$4 sm:$0xff]   ;;  %v2756_v29 = vld [vmem:[%s3299_s17 + $0x2a0] ss:$8 sps:$4 sm:$0xff]  }
  0xd6   : > { %1915 = vmatprep.subr.bf16.mxu1 %v2689_v30  ;;  %1796 = vmatprep.mubr.bf16.mxu0 %v2340_v50  ;;  %v2759_v30 = vld [vmem:[%s3299_s17 + $0x3a0] ss:$8 sps:$4 sm:$0xff]  }
  0xd7   : > { %1849 = vmatprep.mubr.bf16.mxu1 %v2342_v51 }
  0xd8   : > { %1863 = vmatpush1.bf16.msra.mxu0 %v2684_v31  ;;  %v2764_v31 = vld [vmem:[%s3299_s17 + $0x294] ss:$8 sps:$4 sm:$0xff]  }
  0xd9   : > { %1916 = vmatpush1.bf16.msra.mxu1 %v2687_v32  ;;  %1864 = vmatprep.subr.bf16.mxu0 %v2692_v33  ;;  %v2767_v32 = vld [vmem:[%s3299_s17 + $0x394] ss:$8 sps:$4 sm:$0xff]   ;;  %v2762_v33 = vld [vmem:[%s3299_s17 + $0x290] ss:$8 sps:$4 sm:$0xff]  }
  0xda   : > { %1917 = vmatprep.subr.bf16.mxu1 %v2695_v34  ;;  %v2765_v34 = vld [vmem:[%s3299_s17 + $0x390] ss:$8 sps:$4 sm:$0xff]  }
  0xdb   : > { %1797 = vmatmul.mubr.bf16.gmra.mxu0 %v2339_v52 }
  0xdc   : > { %1865 = vmatpush1.bf16.msra.mxu0 %v2690_v35  ;;  %1850 = vmatmul.mubr.bf16.gmra.mxu1 %v2341_v54  ;;  %v2770_v35 = vld [vmem:[%s3299_s17 + $0x284] ss:$8 sps:$4 sm:$0xff]  }
  0xdd   : > { %1918 = vmatpush1.bf16.msra.mxu1 %v2693_v36  ;;  %1866 = vmatprep.subr.bf16.mxu0 %v2698_v37  ;;  %v2773_v36 = vld [vmem:[%s3299_s17 + $0x384] ss:$8 sps:$4 sm:$0xff]   ;;  %v2768_v37 = vld [vmem:[%s3299_s17 + $0x280] ss:$8 sps:$4 sm:$0xff]  }
  0xde   : > { %1919 = vmatprep.subr.bf16.mxu1 %v2701_v38  ;;  %1892 = vmatprep.mubr.bf16.mxu0 %v2336_v2  ;;  %v2771_v38 = vld [vmem:[%s3299_s17 + $0x380] ss:$8 sps:$4 sm:$0xff]  }
  0xdf   : > { %1945 = vmatprep.mubr.bf16.mxu1 %v2338_v4 }
  0xe0   : > { %1867 = vmatpush1.bf16.msra.mxu0 %v2696_v39  ;;  %v900_v39 = vld [vmem:[%s3297_s19 + $0x50] sm:$0xff] }
  0xe1   : > { %1920 = vmatpush1.bf16.msra.mxu1 %v2699_v40  ;;  %1868 = vmatprep.subr.bf16.mxu0 %v2704_v41  ;;  %v904_v40 = vld [vmem:[%s3297_s19 + $0x70] sm:$0xff]  ;;  %v901_v41 = vld [vmem:[%s3297_s19 + $0x58] sm:$0xff] }
  0xe2   : > { %1921 = vmatprep.subr.bf16.mxu1 %v2707_v42  ;;  %v905_v42 = vld [vmem:[%s3297_s19 + $0x78] sm:$0xff]  ;;  %v2344_v45 = vcombine.high %v900_v39, %v904_v40  ;;  %v2343_v47 = vcombine.low %v900_v39, %v904_v40  ;;  %v887_v40 = vld [vmem:[#allocation2 + $0x20] sm:$0xff] }
  0xe3   : > { %v2346_v46 = vcombine.high %v901_v41, %v905_v42  ;;  %v2345_v48 = vcombine.low %v901_v41, %v905_v42 }
  0xe4   : > { %1869 = vmatpush1.bf16.msra.mxu0 %v2702_v43  ;;  %v2335_v43 = vcombine.low %v3405_v61, %v3408_v62 }
  0xe5   : > { %1922 = vmatpush1.bf16.msra.mxu1 %v2705_v44  ;;  %1870 = vmatprep.subr.bf16.mxu0 %v2710_v49  ;;  %v2337_v44 = vcombine.low %v3411_v63, %v3418_v3 }
  0xe6   : > { %1923 = vmatprep.subr.bf16.mxu1 %v2713_v53 }
  0xe8   : > { %1871 = vmatpush1.bf16.msra.mxu0 %v2708_v55 }
  0xe9   : > { %1924 = vmatpush1.bf16.msra.mxu1 %v2711_v56  ;;  %1872 = vmatprep.subr.bf16.mxu0 %v2716_v57 }
  0xea   : > { %1925 = vmatprep.subr.bf16.mxu1 %v2719_v58 }
  0xec   : > { %1873 = vmatpush1.bf16.msra.mxu0 %v2714_v59 }
  0xed   : > { %1926 = vmatpush1.bf16.msra.mxu1 %v2717_v60  ;;  %1874 = vmatprep.subr.bf16.mxu0 %v2722_v0 }
  0xee   : > { %1927 = vmatprep.subr.bf16.mxu1 %v2725_v1 }
  0xf0   : > { %1875 = vmatpush1.bf16.msra.mxu0 %v2720_v5 }
  0xf1   : > { %1928 = vmatpush1.bf16.msra.mxu1 %v2723_v6  ;;  %1876 = vmatprep.subr.bf16.mxu0 %v2728_v7  ;;  %v882_v6 = vld [vmem:[#allocation2 + $0x30] sm:$0xff] }
  0xf2   : > { %1929 = vmatprep.subr.bf16.mxu1 %v2731_v8 }
  0xf4   : > { %1877 = vmatpush2.bf16.msra.mxu0 %v2726_v9 }
  0xf5   : > { %1930 = vmatpush2.bf16.msra.mxu1 %v2729_v10  ;;  %1878 = vmatprep.subr.bf16.mxu0 %v2734_v11 }
  0xf6   : > { %1931 = vmatprep.subr.bf16.mxu1 %v2737_v12  ;;  %v883_v12 = vld [vmem:[#allocation2] sm:$0xff] }
  0xf8   : > { %1879 = vmatpush2.bf16.msra.mxu0 %v2732_v13 }
  0xf9   : > { %1932 = vmatpush2.bf16.msra.mxu1 %v2735_v14  ;;  %1880 = vmatprep.subr.bf16.mxu0 %v2740_v15 }
  0xfa   : > { %1933 = vmatprep.subr.bf16.mxu1 %v2743_v16 }
  0xfc   : > { %1881 = vmatpush2.bf16.msra.mxu0 %v2738_v17 }
  0xfd   : > { %1934 = vmatpush2.bf16.msra.mxu1 %v2741_v18  ;;  %1882 = vmatprep.subr.bf16.mxu0 %v2746_v19  ;;  %v884_v19 = vld [vmem:[#allocation2 + $0x18] sm:$0xff] }
  0xfe   : > { %1935 = vmatprep.subr.bf16.mxu1 %v2749_v20 }
 0x100   : > { %1883 = vmatpush2.bf16.msra.mxu0 %v2744_v21 }
 0x101   : > { %1936 = vmatpush2.bf16.msra.mxu1 %v2747_v22  ;;  %1884 = vmatprep.subr.bf16.mxu0 %v2752_v23 }
 0x102   : > { %1937 = vmatprep.subr.bf16.mxu1 %v2755_v24 }
 0x104   : > { %1885 = vmatpush2.bf16.msra.mxu0 %v2750_v25 }
 0x105   : > { %1938 = vmatpush2.bf16.msra.mxu1 %v2753_v26  ;;  %1886 = vmatprep.subr.bf16.mxu0 %v2758_v27  ;;  %v885_v26 = vld [vmem:[#allocation2 + $0x10] sm:$0xff] }
 0x106   : > { %1939 = vmatprep.subr.bf16.mxu1 %v2761_v28 }
 0x108   : > { %1887 = vmatpush2.bf16.msra.mxu0 %v2756_v29 }
 0x109   : > { %1940 = vmatpush2.bf16.msra.mxu1 %v2759_v30  ;;  %1888 = vmatprep.subr.bf16.mxu0 %v2764_v31 }
 0x10a   : > { %1941 = vmatprep.subr.bf16.mxu1 %v2767_v32 }
 0x10c   : > { %1889 = vmatpush2.bf16.msra.mxu0 %v2762_v33  ;;  %v886_v33 = vld [vmem:[#allocation2 + $0x8] sm:$0xff] }
 0x10d   : > { %1942 = vmatpush2.bf16.msra.mxu1 %v2765_v34  ;;  %1890 = vmatprep.subr.bf16.mxu0 %v2770_v35 }
 0x10e   : > { %1943 = vmatprep.subr.bf16.mxu1 %v2773_v36 }
 0x110   : > { %1891 = vmatpush2.bf16.msra.mxu0 %v2768_v37 }
 0x111   : > { %1944 = vmatpush2.bf16.msra.mxu1 %v2771_v38 }
 0x113   : > { %1893 = vmatmul.mubr.bf16.vlgmr.msra.gmra.mxu0 %v2335_v43 }
 0x114   : > { %1946 = vmatmul.mubr.bf16.vlgmr.msra.gmra.mxu1 %v2337_v44  ;;  %1902 = vmatprep.mubr.bf16.mxu0 %v2344_v45 }
 0x115   : > { %1955 = vmatprep.mubr.bf16.mxu1 %v2346_v46 }
 0x11b   : > { %1903 = vmatmul.mubr.bf16.gmra.mxu0 %v2343_v47  ;;  %v888_v47 = vld [vmem:[#allocation2 + $0x28] sm:$0xff] }
 0x11c   : > { %1956 = vmatmul.mubr.bf16.gmra.mxu1 %v2345_v48 }
 0x193   : > { %v1788_v49 = vpop.f32.mrf.mxu0 }
 0x194   : > { %v1841_v50 = vpop.f32.mrf.mxu1 }
 0x195   : > { %v1790_v51 = vpop.f32.mrf.mxu0  ;;  %v1842_v1 = vadd.f32 %v1841_v50, %v1788_v49 }
 0x196   : > { %v1843_v52 = vpop.f32.mrf.mxu1 }
 0x197   : > { %v1792_v53 = vpop.f32.mrf.mxu0  ;;  %v1844_v4 = vadd.f32 %v1843_v52, %v1790_v51  ;;  %v889_v52 = vld [vmem:[#allocation2 + $0x38] sm:$0xff] }
 0x198   : > { %v1845_v54 = vpop.f32.mrf.mxu1 }
 0x199   : > { %v1794_v55 = vpop.f32.mrf.mxu0  ;;  %v1846_v9 = vadd.f32 %v1845_v54, %v1792_v53 }
 0x19a   : > { %v1847_v56 = vpop.f32.mrf.mxu1 }
 0x19b   : > { %v1798_v57 = vpop.f32.mrf.mxu0  ;;  %v1848_v15 = vadd.f32 %v1847_v56, %v1794_v55 }
 0x19c   : > { %v1851_v58 = vpop.f32.mrf.mxu1 }
 0x19d   : > { %v1800_v59 = vpop.f32.mrf.mxu0  ;;  %v1852_v22 = vadd.f32 %v1851_v58, %v1798_v57 }
 0x19e   : > { %v1853_v60 = vpop.f32.mrf.mxu1 }
 0x19f   : > { %v1802_v61 = vpop.f32.mrf.mxu0  ;;  %v1854_v29 = vadd.f32 %v1853_v60, %v1800_v59 }
 0x1a0   : > { %v1855_v62 = vpop.f32.mrf.mxu1 }
 0x1a1   : > { %v1804_v63 = vpop.f32.mrf.mxu0  ;;  %v1856_v36 = vadd.f32 %v1855_v62, %v1802_v61 }
 0x1a2   : > { %v1857_v0 = vpop.f32.mrf.mxu1 }
 0x1a3   : > { %v1858_v43 = vadd.f32 %v1857_v0, %v1804_v63 }
 0x1d3   : > { %v1894_v2 = vpop.f32.mrf.mxu0 }
 0x1d4   : > { %v1947_v3 = vpop.f32.mrf.mxu1  ;;  %v1895_v5 = vadd.f32 %v1894_v2, %v1842_v1 }
 0x1d5   : > { %v1896_v7 = vpop.f32.mrf.mxu0 }
 0x1d6   : > { %v1949_v8 = vpop.f32.mrf.mxu1  ;;  %v1948_v10 = vadd.f32 %v1947_v3, %v1895_v5  ;;  %v1897_v11 = vadd.f32 %v1896_v7, %v1844_v4 }
 0x1d7   : > { %v1898_v13 = vpop.f32.mrf.mxu0 }
 0x1d8   : > { %v1951_v14 = vpop.f32.mrf.mxu1  ;;  %v1966_v16 = vadd.f32 %v1948_v10, %v882_v6  ;;  %v1950_v17 = vadd.f32 %v1949_v8, %v1897_v11  ;;  %v1899_v18 = vadd.f32 %v1898_v13, %v1846_v9 }
 0x1d9   : > { %v1900_v20 = vpop.f32.mrf.mxu0 }
 0x1da   : > { %v1953_v21 = vpop.f32.mrf.mxu1  ;;  %1974 = vst [vmem:[#allocation2 + $0x30] sm:$0xff] %v1966_v16  ;;  %v1967_v23 = vadd.f32 %v1950_v17, %v883_v12  ;;  %v1952_v24 = vadd.f32 %v1951_v14, %v1899_v18  ;;  %v1901_v25 = vadd.f32 %v1900_v20, %v1848_v15 }
 0x1db   : > { %v1904_v27 = vpop.f32.mrf.mxu0 }
 0x1dc   : > { %v1957_v28 = vpop.f32.mrf.mxu1  ;;  %1975 = vst [vmem:[#allocation2] sm:$0xff] %v1967_v23  ;;  %v1968_v30 = vadd.f32 %v1952_v24, %v884_v19  ;;  %v1954_v31 = vadd.f32 %v1953_v21, %v1901_v25  ;;  %v1905_v32 = vadd.f32 %v1904_v27, %v1852_v22 }
 0x1dd   : > { %v1906_v34 = vpop.f32.mrf.mxu0 }
 0x1de   : > { %v1959_v35 = vpop.f32.mrf.mxu1  ;;  %1976 = vst [vmem:[#allocation2 + $0x18] sm:$0xff] %v1968_v30  ;;  %v1969_v37 = vadd.f32 %v1954_v31, %v885_v26  ;;  %v1958_v38 = vadd.f32 %v1957_v28, %v1905_v32  ;;  %v1907_v39 = vadd.f32 %v1906_v34, %v1854_v29 }
 0x1df   : > { %v1908_v41 = vpop.f32.mrf.mxu0 }
 0x1e0   : > { %v1961_v42 = vpop.f32.mrf.mxu1  ;;  %1977 = vst [vmem:[#allocation2 + $0x10] sm:$0xff] %v1969_v37  ;;  %v1970_v44 = vadd.f32 %v1958_v38, %v886_v33  ;;  %v1960_v45 = vadd.f32 %v1959_v35, %v1907_v39  ;;  %v1909_v46 = vadd.f32 %v1908_v41, %v1856_v36 }
 0x1e1   : > { %v1910_v48 = vpop.f32.mrf.mxu0 }
 0x1e2   : > { %1978 = vst [vmem:[#allocation2 + $0x8] sm:$0xff] %v1970_v44  ;;  %v1971_v49 = vadd.f32 %v1960_v45, %v887_v40  ;;  %v1962_v50 = vadd.f32 %v1961_v42, %v1909_v46  ;;  %v1911_v51 = vadd.f32 %v1910_v48, %v1858_v43  ;;  %v1963_v53 = vpop.f32.mrf.mxu1 }
 0x1e4   : > { %1979 = vst [vmem:[#allocation2 + $0x20] sm:$0xff] %v1971_v49  ;;  %v1972_v54 = vadd.f32 %v1962_v50, %v888_v47  ;;  %v1964_v55 = vadd.f32 %v1963_v53, %v1911_v51  ;;  %1985 = sbr.rel (%p2475_p5) target bundleno = 514 (0x202), region = 97 }
 0x1e6   : > { %1980 = vst [vmem:[#allocation2 + $0x28] sm:$0xff] %v1972_v54  ;;  %v1973_v56 = vadd.f32 %v1964_v55, %v889_v52 }
 0x1e8   : > { %1981 = vst [vmem:[#allocation2 + $0x38] sm:$0xff] %v1973_v56 }
 0x1e9   : > { %v1986_v57 = vld [vmem:[#allocation2 + $0x30] sm:$0xff]  ;;  %v1988_v58 = vld [vmem:[#allocation2 + $0x18] sm:$0xff]  ;;  %v1990_v59 = vld [vmem:[#allocation2 + $0x8] sm:$0xff]  ;;  %v2863_v60 = vmov 0.0  }
 0x1ea   : > { %1998 = vst [vmem:[%s3290_s9] sm:$0xff] %v2863_v60  ;;  %2000 = vst [vmem:[%s3295_s24] sm:$0xff] %v2863_v60  ;;  %v2004_v62 = vadd.f32 %v1988_v58, %v1986_v57  ;;  %v1987_v63 = vld [vmem:[#allocation2] sm:$0xff]  ;;  %v1989_v0 = vld [vmem:[#allocation2 + $0x10] sm:$0xff]  ;;  %v2028_v1 = vmul.f32 %v1986_v57, %v1986_v57  ;;  %v2030_v2 = vmul.f32 %v1988_v58, %v1988_v58 }
 0x1eb   : > { %v2032_v3 = vmul.f32 %v1990_v59, %v1990_v59  ;;  %1999 = vst [vmem:[%s3290_s9 + $0x8] sm:$0xff] %v2863_v60  ;;  %2001 = vst [vmem:[%s3295_s24 + $0x8] sm:$0xff] %v2863_v60  ;;  %v1991_v4 = vld [vmem:[#allocation2 + $0x20] sm:$0xff]  ;;  %v2013_v6 = vadd.f32 %v1989_v0, %v1987_v63  ;;  %v2029_v8 = vmul.f32 %v1987_v63, %v1987_v63 }
 0x1ec   : > { %v2031_v9 = vmul.f32 %v1989_v0, %v1989_v0  ;;  %v2005_v10 = vadd.f32 %v2004_v62, %v1990_v59  ;;  %v2036_v11 = vadd.f32 %v2030_v2, %v2028_v1  ;;  %v2033_v12 = vmul.f32 %v1991_v4, %v1991_v4 }
 0x1ed   : > { %v1992_v61 = vld [vmem:[#allocation2 + $0x28] sm:$0xff]  ;;  %v2014_v14 = vadd.f32 %v2013_v6, %v1991_v4  ;;  %v2487_v16 = vpack.c.bf16 %v1987_v63, %v1986_v57  ;;  %v2488_v17 = vpack.c.bf16 %v1989_v0, %v1988_v58  ;;  %v2489_v20 = vpack.c.bf16 %v1991_v4, %v1990_v59 }
 0x1ee   : > { %v2034_v7 = vmul.f32 %v1992_v61, %v1992_v61  ;;  %v2045_v15 = vadd.f32 %v2031_v9, %v2029_v8  ;;  %v2006_v18 = vadd.f32 %v2005_v10, %v1992_v61  ;;  %v2037_v19 = vadd.f32 %v2036_v11, %v2032_v3 }
 0x1ef   : > { %v1993_v5 = vld [vmem:[#allocation2 + $0x38] sm:$0xff]  ;;  %2082 = vst [vmem:[%s3301_s15] sm:$0xff] %v2487_v16  ;;  %2083 = vst [vmem:[%s3301_s15 + $0x8] sm:$0xff] %v2488_v17 }
 0x1f0   : > { %v2035_v13 = vmul.f32 %v1993_v5, %v1993_v5  ;;  %v2490_v21 = vpack.c.bf16 %v1993_v5, %v1992_v61  ;;  %v2015_v22 = vadd.f32 %v2014_v14, %v1993_v5  ;;  %v2046_v23 = vadd.f32 %v2045_v15, %v2033_v12  ;;  %2084 = vst [vmem:[%s3301_s15 + $0x10] sm:$0xff] %v2489_v20 }
 0x1f1   : > { %v2007_v24 = vrot.slane %v2006_v18, 4  ;;  %v2038_v25 = vadd.f32 %v2037_v19, %v2034_v7  ;;  %v2002_v42 = vld [vmem:[%s3290_s9] sm:$0xff] }
 0x1f2   : > { %2085 = vst [vmem:[%s3301_s15 + $0x18] sm:$0xff] %v2490_v21  ;;  %v2016_v26 = vrot.slane %v2015_v22, 4  ;;  %v2047_v27 = vadd.f32 %v2046_v23, %v2035_v13  ;;  %v2026_v48 = vld [vmem:[%s3295_s24] sm:$0xff] }
 0x1f3   : > { %v2008_v28 = vadd.f32 %v2007_v24, %v2006_v18  ;;  %v2039_v29 = vrot.slane %v2038_v25, 4 }
 0x1f4   : > { %v2017_v30 = vadd.f32 %v2016_v26, %v2015_v22  ;;  %v2048_v31 = vrot.slane %v2047_v27, 4 }
 0x1f5   : > { %v2009_v32 = vrot.slane %v2008_v28, 2  ;;  %v2040_v33 = vadd.f32 %v2039_v29, %v2038_v25 }
 0x1f6   : > { %v2018_v34 = vrot.slane %v2017_v30, 2  ;;  %v2049_v35 = vadd.f32 %v2048_v31, %v2047_v27 }
 0x1f7   : > { %v2010_v36 = vadd.f32 %v2009_v32, %v2008_v28  ;;  %v2041_v37 = vrot.slane %v2040_v33, 2 }
 0x1f8   : > { %v2019_v38 = vadd.f32 %v2018_v34, %v2017_v30  ;;  %v2050_v39 = vrot.slane %v2049_v35, 2 }
 0x1f9   : > { %v2011_v40 = vrot.slane %v2010_v36, 1  ;;  %v2042_v41 = vadd.f32 %v2041_v37, %v2040_v33 }
 0x1fa   : > { %v2020_v43 = vrot.slane %v2019_v38, 1  ;;  %v2051_v44 = vadd.f32 %v2050_v39, %v2049_v35 }
 0x1fb   : > { %v2012_v45 = vadd.f32 %v2011_v40, %v2010_v36  ;;  %v2043_v46 = vrot.slane %v2042_v41, 1 }
 0x1fc   : > { %v2021_v47 = vadd.f32 %v2020_v43, %v2019_v38  ;;  %v2052_v49 = vrot.slane %v2051_v44, 1 }
 0x1fd   : > { %v2022_v50 = vadd.f32 %v2012_v45, %v2002_v42  ;;  %v2044_v51 = vadd.f32 %v2043_v46, %v2042_v41 }
 0x1fe   : > { %v2053_v52 = vadd.f32 %v2052_v49, %v2051_v44  ;;  %2025 = vst [vmem:[%s3290_s9 + $0x8] sm:$0xff] %v2021_v47 }
 0x1ff   : > { %2024 = vst [vmem:[%s3290_s9] sm:$0xff] %v2022_v50  ;;  %v2054_v53 = vadd.f32 %v2044_v51, %v2026_v48 }
 0x200   : > { %2057 = vst [vmem:[%s3295_s24 + $0x8] sm:$0xff] %v2053_v52 }
 0x201   : > { %2056 = vst [vmem:[%s3295_s24] sm:$0xff] %v2054_v53 }
 0x202 PF: > { %2102 = sbr.rel (!%p2983_p12) target bundleno = 519 (0x207), region = 105  ;;  %s2491_s1 = sshll.u32 (%p2983_p12), %s2848_s22, 3  ;;  %v2143_v54 = vld [vmem:[%s3301_s15] sm:$0xff] (%p2983_p12)  ;;  %v2145_v55 = vld [vmem:[%s3301_s15 + $0x8] sm:$0xff] (%p2983_p12)  ;;  %v2147_v56 = vld [vmem:[%s3301_s15 + $0x10] sm:$0xff] (%p2983_p12) }
 0x203   : > { %s2108_s28 = scalar_lea.vmem (%p2983_p12), %s3524_s2, %s2491_s1  ;;  %v2149_v57 = vld [vmem:[%s3301_s15 + $0x18] sm:$0xff] (%p2983_p12) }
 0x204   : > { %2144 = vst [vmem:[%s2108_s28] sm:$0xff] (%p2983_p12), %v2143_v54  ;;  %2146 = vst [vmem:[%s2108_s28 + $0x10] sm:$0xff] (%p2983_p12), %v2145_v55 }
 0x205   : > { %2148 = vst [vmem:[%s2108_s28 + $0x20] sm:$0xff] (%p2983_p12), %v2147_v56  ;;  %2150 = vst [vmem:[%s2108_s28 + $0x30] sm:$0xff] (%p2983_p12), %v2149_v57 }
 0x207 PF: > { %s15_s25 = sadd.s32 1, %s2860_s25   ;;  %s3540_s22 = sld [smem:[#allocation6_spill]] }
 0x208   : > { %p12_p6 = scmp.ge.s32.totalorder %s15_s25, 10   ;;  %s3541_s24 = sld [smem:[#allocation7_spill]] }
 0x209   : > { %s3542_s14 = sld [smem:[#allocation8_spill]]  ;;  %s3543_s15 = smov %s2824_s16 }
 0x20a   : > { %s3544_s16 = smov %s2981_s13  ;;  %s3545_s17 = smov %s2832_s18 }
 0x20b   : > { %s3546_s18 = smov %s2978_s12  ;;  %s3547_s19 = smov %s2840_s20 }
 0x20c   : > { %s3548_s20 = smov %s2964_s7  ;;  %s3549_s21 = smov %s2852_s23 }
 0x20d   :  { %14 = sbr.rel (!%p12_p6) target bundleno = 9 (0x9), region = 206 }
 0x20e   : > { %s3550_s23 = smov %s3541_s24 }
 0x20f   : > { %s3551_s24 = smov %s3542_s14 }

// kernel: discriminator_forward.15
= control target key start
LH: loop header
LB: loop body
LE: loop exit
PB: predicated region body
PF: predicated region fallthrough
CT: control target
= control target key end

     0   :  { %v243_v0 = vlaneseq  ;;  %vm1089_vm0 = vcmask 7168   ;;  %s1771_s1 = inlined_call_operand.vmem [shape: bf16[1,8192], index: 1, kind: input, shape index: {}]   ;;  %s1772_s0 = inlined_call_operand.vmem [shape: bf16[16,8192], index: 0, kind: input, shape index: {}]   ;;  %s1773_s2 = inlined_call_operand.vmem [shape: f32[16,1], index: 2, kind: output, shape index: {}]  }
   0x1   :  { %v208_v1 = vld [vmem:[%s1771_s1 + $0x28] sm:$0xff]  ;;  %v209_v2 = vld [vmem:[%s1771_s1 + $0x30] sm:$0xff]  ;;  %v210_v4 = vld [vmem:[%s1771_s1 + $0x38] sm:$0xff] }
   0x2   :  { %v244_v3 = vshrl.u32 %v243_v0, 7  ;;  %v221_v5 = vunpack.c.l.bf16 %v208_v1  ;;  %v222_v6 = vunpack.c.h.bf16 %v208_v1  ;;  %v223_v7 = vunpack.c.l.bf16 %v209_v2  ;;  %v207_v35 = vld [vmem:[%s1771_s1 + $0x20] sm:$0xff] }
   0x3   :  { %v224_v12 = vunpack.c.h.bf16 %v209_v2  ;;  %v225_v13 = vunpack.c.l.bf16 %v210_v4  ;;  %v1138_v14 = vunpack.c.h.bf16 %v210_v4  ;;  %v1171_v40 = vunpack.c.l.bf16 %v207_v35  ;;  %v203_v2 = vld [vmem:[%s1771_s1] sm:$0xff] }
   0x4   :  { %v1130_v8 = vsub.s32 0, %v244_v3  ;;  %v1132_v9 = vsub.s32 2, %v244_v3  ;;  %v1134_v10 = vsub.s32 4, %v244_v3  ;;  %v1136_v11 = vsub.s32 6, %v244_v3 }
   0x5   :  { %v1173_v41 = vunpack.c.h.bf16 %v207_v35 }
   0x6   :  { %v406_v15 = vrot.slane %v221_v5, %v1130_v8  ;;  %v410_v16 = vrot.slane %v221_v5, %v1132_v9  ;;  %v414_v17 = vrot.slane %v221_v5, %v1134_v10  ;;  %v418_v18 = vrot.slane %v221_v5, %v1136_v11 }
   0x7   :  { %v422_v19 = vrot.slane %v222_v6, %v1130_v8  ;;  %v426_v20 = vrot.slane %v222_v6, %v1132_v9  ;;  %v430_v21 = vrot.slane %v222_v6, %v1134_v10  ;;  %v434_v22 = vrot.slane %v222_v6, %v1136_v11 }
   0x8   :  { %v438_v23 = vrot.slane %v223_v7, %v1130_v8  ;;  %v442_v24 = vrot.slane %v223_v7, %v1132_v9  ;;  %v446_v25 = vrot.slane %v223_v7, %v1134_v10  ;;  %v450_v26 = vrot.slane %v223_v7, %v1136_v11 }
   0x9   :  { %v454_v27 = vrot.slane %v224_v12, %v1130_v8  ;;  %v458_v28 = vrot.slane %v224_v12, %v1132_v9  ;;  %v462_v29 = vrot.slane %v224_v12, %v1134_v10  ;;  %v466_v30 = vrot.slane %v224_v12, %v1136_v11 }
   0xa   :  { %v470_v31 = vrot.slane %v225_v13, %v1130_v8  ;;  %v474_v32 = vrot.slane %v225_v13, %v1132_v9  ;;  %v478_v33 = vrot.slane %v225_v13, %v1134_v10  ;;  %v482_v34 = vrot.slane %v225_v13, %v1136_v11 }
   0xb   :  { %v486_v36 = vrot.slane %v1138_v14, %v1130_v8  ;;  %v490_v37 = vrot.slane %v1138_v14, %v1132_v9  ;;  %v494_v38 = vrot.slane %v1138_v14, %v1134_v10  ;;  %v498_v39 = vrot.slane %v1138_v14, %v1136_v11 }
   0xc   :  { %v378_v42 = vrot.slane %v1171_v40, %v1132_v9  ;;  %v382_v43 = vrot.slane %v1171_v40, %v1134_v10  ;;  %v386_v44 = vrot.slane %v1171_v40, %v1136_v11  ;;  %v394_v45 = vrot.slane %v1173_v41, %v1132_v9 }
   0xd   :  { %v398_v46 = vrot.slane %v1173_v41, %v1134_v10  ;;  %v402_v47 = vrot.slane %v1173_v41, %v1136_v11  ;;  %v1206_v54 = vrot.slane %v406_v15, %v1130_v8  ;;  %v1209_v55 = vrot.slane %v410_v16, %v1130_v8 }
   0xe   :  { %v1188_v48 = vrot.slane %v378_v42, %v1130_v8  ;;  %v1191_v49 = vrot.slane %v382_v43, %v1130_v8  ;;  %v1194_v50 = vrot.slane %v386_v44, %v1130_v8  ;;  %v1197_v51 = vrot.slane %v394_v45, %v1130_v8  ;;  %v14_v44 = vld [vmem:[%s1772_s0 + $0x18] sm:$0xff] }
   0xf   :  { %v1200_v52 = vrot.slane %v398_v46, %v1130_v8  ;;  %v1203_v53 = vrot.slane %v402_v47, %v1130_v8  ;;  %v1212_v56 = vrot.slane %v414_v17, %v1130_v8  ;;  %v1215_v57 = vrot.slane %v418_v18, %v1130_v8 }
  0x10   :  { %v1218_v58 = vrot.slane %v422_v19, %v1130_v8  ;;  %v1221_v59 = vrot.slane %v426_v20, %v1130_v8  ;;  %v1224_v60 = vrot.slane %v430_v21, %v1130_v8  ;;  %v1227_v61 = vrot.slane %v434_v22, %v1130_v8  ;;  %v11_v20 = vld [vmem:[%s1772_s0] sm:$0xff] }
  0x11   :  { %1796 = vst [vmem:[#allocation2_spill] sm:$0xff] %v1212_v56  ;;  %1797 = vst [vmem:[#allocation3_spill] sm:$0xff] %v1215_v57  ;;  %v1230_v62 = vrot.slane %v438_v23, %v1130_v8  ;;  %v1233_v63 = vrot.slane %v442_v24, %v1130_v8  ;;  %v1236_v0 = vrot.slane %v446_v25, %v1130_v8  ;;  %v211_v19 = vunpack.c.l.bf16 %v203_v2  ;;  %v12_v25 = vld [vmem:[%s1772_s0 + $0x8] sm:$0xff] }
  0x12   :  { %1798 = vst [vmem:[#allocation4_spill] sm:$0xff] %v1218_v58  ;;  %1799 = vst [vmem:[#allocation5_spill] sm:$0xff] %v1221_v59  ;;  %v1239_v1 = vrot.slane %v450_v26, %v1130_v8  ;;  %v1245_v3 = vrot.slane %v454_v27, %v1130_v8  ;;  %v1248_v4 = vrot.slane %v458_v28, %v1130_v8  ;;  %v212_v23 = vunpack.c.h.bf16 %v203_v2 }
  0x13   :  { %1800 = vst [vmem:[#allocation6_spill] sm:$0xff] %v1224_v60  ;;  %1801 = vst [vmem:[#allocation7_spill] sm:$0xff] %v1227_v61  ;;  %v1251_v5 = vrot.slane %v462_v29, %v1130_v8  ;;  %v1254_v6 = vrot.slane %v466_v30, %v1130_v8  ;;  %v1257_v7 = vrot.slane %v470_v31, %v1130_v8  ;;  %v75_v26 = vunpack.c.l.bf16 %v11_v20  ;;  %v13_v31 = vld [vmem:[%s1772_s0 + $0x10] sm:$0xff] }
  0x14   :  { %1802 = vst [vmem:[#allocation8_spill] sm:$0xff] %v1230_v62  ;;  %1803 = vst [vmem:[#allocation9_spill] sm:$0xff] %v1233_v63  ;;  %v1260_v12 = vrot.slane %v474_v32, %v1130_v8  ;;  %v1263_v13 = vrot.slane %v478_v33, %v1130_v8  ;;  %v1266_v14 = vrot.slane %v482_v34, %v1130_v8  ;;  %v76_v27 = vunpack.c.h.bf16 %v11_v20 }
  0x15   :  { %1804 = vst [vmem:[#allocation10_spill] sm:$0xff] %v1236_v0  ;;  %1805 = vst [vmem:[#allocation11_spill] sm:$0xff] %v1239_v1  ;;  %v1269_v15 = vrot.slane %v486_v36, %v1130_v8  ;;  %v1272_v16 = vrot.slane %v490_v37, %v1130_v8  ;;  %v1275_v17 = vrot.slane %v494_v38, %v1130_v8  ;;  %v77_v32 = vunpack.c.l.bf16 %v12_v25  ;;  %v204_v36 = vld [vmem:[%s1771_s1 + $0x8] sm:$0xff] }
  0x16   :  { %1806 = vst [vmem:[#allocation12_spill] sm:$0xff] %v1245_v3  ;;  %1807 = vst [vmem:[#allocation13_spill] sm:$0xff] %v1248_v4  ;;  %v1278_v18 = vrot.slane %v498_v39, %v1130_v8  ;;  %v246_v21 = vrot.slane %v211_v19, %v1130_v8  ;;  %v250_v22 = vrot.slane %v211_v19, %v1132_v9  ;;  %v78_v35 = vunpack.c.h.bf16 %v12_v25 }
  0x17   :  { %1808 = vst [vmem:[#allocation14_spill] sm:$0xff] %v1251_v5  ;;  %1809 = vst [vmem:[#allocation15_spill] sm:$0xff] %v1254_v6  ;;  %v254_v24 = vrot.slane %v211_v19, %v1134_v10  ;;  %v258_v28 = vrot.slane %v211_v19, %v1136_v11  ;;  %v262_v33 = vrot.slane %v212_v23, %v1130_v8  ;;  %v79_v43 = vunpack.c.l.bf16 %v13_v31 }
  0x18   :  { %1810 = vst [vmem:[#allocation16_spill] sm:$0xff] %v1257_v7  ;;  %1811 = vst [vmem:[#allocation17_spill] sm:$0xff] %v1260_v12  ;;  %v1291_v29 = vrot.slane %v246_v21, %v1130_v8  ;;  %v1294_v30 = vrot.slane %v250_v22, %v1130_v8  ;;  %v266_v37 = vrot.slane %v212_v23, %v1132_v9  ;;  %v213_v45 = vunpack.c.l.bf16 %v204_v36  ;;  %v19_v7 = vld [vmem:[%s1772_s0 + $0x40] sm:$0xff] }
  0x19   :  { %1812 = vst [vmem:[#allocation18_spill] sm:$0xff] %v1263_v13  ;;  %1813 = vst [vmem:[#allocation19_spill] sm:$0xff] %v1266_v14  ;;  %v1301_v34 = vrot.slane %v254_v24, %v1130_v8  ;;  %v1308_v38 = vrot.slane %v258_v28, %v1130_v8  ;;  %v270_v46 = vrot.slane %v212_v23, %v1134_v10  ;;  %v80_v19 = vunpack.c.h.bf16 %v13_v31  ;;  %v18_v13 = vld [vmem:[%s1772_s0 + $0x38] sm:$0xff] }
  0x1a   :  { %1814 = vst [vmem:[#allocation20_spill] sm:$0xff] %v1269_v15  ;;  %1815 = vst [vmem:[#allocation21_spill] sm:$0xff] %v1272_v16  ;;  %v819_v39 = vmul.f32 %v1291_v29, %v75_v26  ;;  %v820_v42 = vmul.f32 %v1294_v30, %v76_v27  ;;  %v1317_v47 = vrot.slane %v262_v33, %v1130_v8  ;;  %v81_v25 = vunpack.c.l.bf16 %v14_v44  ;;  %v15_v26 = vld [vmem:[%s1772_s0 + $0x20] sm:$0xff]  ;;  %v17_v16 = vld [vmem:[%s1772_s0 + $0x30] sm:$0xff] }
  0x1b   :  { %1816 = vst [vmem:[#allocation22_spill] sm:$0xff] %v1275_v17  ;;  %1817 = vst [vmem:[#allocation23_spill] sm:$0xff] %v1278_v18  ;;  %v821_v2 = vmul.f32 %v1301_v34, %v77_v32  ;;  %v274_v20 = vrot.slane %v212_v23, %v1136_v11  ;;  %v1322_v21 = vrot.slane %v266_v37, %v1130_v8  ;;  %v82_v23 = vunpack.c.h.bf16 %v14_v44  ;;  %v16_v17 = vld [vmem:[%s1772_s0 + $0x28] sm:$0xff] }
  0x1c   :  { %v822_v22 = vmul.f32 %v1308_v38, %v78_v35  ;;  %v947_v24 = vadd.f32 %v820_v42, %v819_v39  ;;  %v278_v27 = vrot.slane %v213_v45, %v1130_v8  ;;  %v1330_v28 = vrot.slane %v270_v46, %v1130_v8 }
  0x1d   :  { %v823_v31 = vmul.f32 %v1317_v47, %v79_v43  ;;  %v282_v33 = vrot.slane %v213_v45, %v1132_v9  ;;  %v1335_v37 = vrot.slane %v274_v20, %v1130_v8  ;;  %v824_v35 = vmul.f32 %v1322_v21, %v80_v19 }
  0x1e   :  { %v948_v32 = vadd.f32 %v947_v24, %v821_v2  ;;  %v83_v42 = vunpack.c.l.bf16 %v15_v26  ;;  %v214_v18 = vunpack.c.h.bf16 %v204_v36  ;;  %v286_v46 = vrot.slane %v213_v45, %v1134_v10 }
  0x1f   :  { %v1343_v43 = vrot.slane %v278_v27, %v1130_v8  ;;  %v825_v44 = vmul.f32 %v1330_v28, %v81_v25  ;;  %v84_v24 = vunpack.c.h.bf16 %v15_v26  ;;  %v290_v20 = vrot.slane %v213_v45, %v1136_v11  ;;  %v205_v27 = vld [vmem:[%s1771_s1 + $0x10] sm:$0xff] }
  0x20   :  { %v949_v39 = vadd.f32 %v948_v32, %v822_v22  ;;  %v1348_v19 = vrot.slane %v282_v33, %v1130_v8  ;;  %v826_v36 = vmul.f32 %v1335_v37, %v82_v23  ;;  %v85_v32 = vunpack.c.l.bf16 %v16_v17 }
  0x21   :  { %v294_v25 = vrot.slane %v214_v18, %v1130_v8  ;;  %v1359_v26 = vrot.slane %v286_v46, %v1130_v8  ;;  %v827_v45 = vmul.f32 %v1343_v43, %v83_v42  ;;  %v86_v33 = vunpack.c.h.bf16 %v16_v17 }
  0x22   :  { %v950_v2 = vadd.f32 %v949_v39, %v823_v31  ;;  %v298_v23 = vrot.slane %v214_v18, %v1132_v9  ;;  %v828_v39 = vmul.f32 %v1348_v19, %v84_v24  ;;  %v87_v15 = vunpack.c.l.bf16 %v17_v16 }
  0x23   :  { %v215_v14 = vunpack.c.l.bf16 %v205_v27  ;;  %v302_v46 = vrot.slane %v214_v18, %v1134_v10  ;;  %v1372_v42 = vrot.slane %v294_v25, %v1130_v8  ;;  %v829_v17 = vmul.f32 %v1359_v26, %v85_v32 }
  0x24   :  { %v951_v22 = vadd.f32 %v950_v2, %v824_v35  ;;  %v1364_v35 = vrot.slane %v290_v20, %v1130_v8  ;;  %v306_v20 = vrot.slane %v214_v18, %v1136_v11  ;;  %v1377_v24 = vrot.slane %v298_v23, %v1130_v8 }
  0x25   :  { %v89_v12 = vunpack.c.l.bf16 %v18_v13  ;;  %v310_v25 = vrot.slane %v215_v14, %v1130_v8  ;;  %v1385_v6 = vrot.slane %v302_v46, %v1130_v8  ;;  %v90_v18 = vunpack.c.h.bf16 %v18_v13  ;;  %v20_v46 = vld [vmem:[%s1772_s0 + $0x48] sm:$0xff] }
  0x26   :  { %v952_v31 = vadd.f32 %v951_v22, %v825_v44  ;;  %v88_v22 = vunpack.c.h.bf16 %v17_v16  ;;  %v831_v16 = vmul.f32 %v1372_v42, %v87_v15  ;;  %v1390_v23 = vrot.slane %v306_v20, %v1130_v8 }
  0x27   :  { %v318_v5 = vrot.slane %v215_v14, %v1134_v10  ;;  %v1400_v15 = vrot.slane %v310_v25, %v1130_v8  ;;  %v833_v13 = vmul.f32 %v1385_v6, %v89_v12  ;;  %v92_v20 = vunpack.c.h.bf16 %v19_v7  ;;  %v44_v12 = vld [vmem:[%s1772_s0 + $0x108] sm:$0xff] }
  0x28   :  { %v953_v2 = vadd.f32 %v952_v31, %v826_v36  ;;  %v830_v36 = vmul.f32 %v1364_v35, %v86_v33  ;;  %v832_v33 = vmul.f32 %v1377_v24, %v88_v22  ;;  %v43_v22 = vld [vmem:[%s1772_s0 + $0x100] sm:$0xff]  ;;  %v834_v25 = vmul.f32 %v1390_v23, %v90_v18 }
  0x29   :  { %v140_v4 = vunpack.c.h.bf16 %v43_v22  ;;  %v141_v1 = vunpack.c.l.bf16 %v44_v12 }
  0x2a   :  { %v954_v44 = vadd.f32 %v953_v2, %v827_v45  ;;  %v314_v45 = vrot.slane %v215_v14, %v1132_v9  ;;  %v91_v2 = vunpack.c.l.bf16 %v19_v7  ;;  %v206_v7 = vld [vmem:[%s1771_s1 + $0x18] sm:$0xff] }
  0x2b   :  { %v884_v61 = vmul.f32 %v1294_v30, %v140_v4  ;;  %v885_v57 = vmul.f32 %v1301_v34, %v141_v1 }
  0x2c   :  { %v955_v31 = vadd.f32 %v954_v44, %v828_v39  ;;  %v1393_v44 = vunpack.c.h.bf16 %v205_v27  ;;  %v21_v27 = vld [vmem:[%s1772_s0 + $0x50] sm:$0xff]  ;;  %v835_v18 = vmul.f32 %v1400_v15, %v91_v2 }
  0x2d   :  { %v95_v3 = vunpack.c.l.bf16 %v21_v27  ;;  %v45_v2 = vld [vmem:[%s1772_s0 + $0x110] sm:$0xff] }
  0x2e   :  { %v956_v32 = vadd.f32 %v955_v31, %v829_v17  ;;  %v1411_v31 = vrot.slane %v314_v45, %v1130_v8  ;;  %v1423_v45 = vrot.slane %v318_v5, %v1130_v8  ;;  %v330_v0 = vrot.slane %v1393_v44, %v1132_v9 }
  0x2f   :  { %v334_v60 = vrot.slane %v1393_v44, %v1134_v10  ;;  %v143_v58 = vunpack.c.l.bf16 %v45_v2  ;;  %v338_v4 = vrot.slane %v1393_v44, %v1136_v11 }
  0x30   :  { %v957_v39 = vadd.f32 %v956_v32, %v830_v36  ;;  %v322_v36 = vrot.slane %v215_v14, %v1136_v11  ;;  %v326_v14 = vrot.slane %v1393_v44, %v1130_v8  ;;  %v836_v62 = vmul.f32 %v1411_v31, %v92_v20 }
  0x31   :  { %v1455_v30 = vrot.slane %v330_v0, %v1130_v8  ;;  %v1465_v44 = vrot.slane %v334_v60, %v1130_v8  ;;  %v47_v60 = vld [vmem:[%s1772_s0 + $0x120] sm:$0xff] }
  0x32   :  { %v958_v17 = vadd.f32 %v957_v39, %v831_v16  ;;  %v93_v16 = vunpack.c.l.bf16 %v20_v46  ;;  %v139_v39 = vunpack.c.l.bf16 %v43_v22  ;;  %v22_v22 = vld [vmem:[%s1772_s0 + $0x58] sm:$0xff]  ;;  %v1432_v63 = vrot.slane %v322_v36, %v1130_v8 }
  0x33   :  { %v1445_v36 = vrot.slane %v326_v14, %v1130_v8  ;;  %v97_v59 = vunpack.c.l.bf16 %v22_v22  ;;  %v144_v14 = vunpack.c.h.bf16 %v45_v2 }
  0x34   :  { %v959_v32 = vadd.f32 %v958_v17, %v832_v33  ;;  %v94_v17 = vunpack.c.h.bf16 %v20_v46  ;;  %v1438_v46 = vunpack.c.l.bf16 %v206_v7  ;;  %v837_v20 = vmul.f32 %v1423_v45, %v93_v16 }
  0x35   :  { %v98_v16 = vunpack.c.h.bf16 %v22_v22  ;;  %v839_v0 = vmul.f32 %v1445_v36, %v95_v3  ;;  %v1478_v3 = vunpack.c.h.bf16 %v206_v7  ;;  %v147_v7 = vunpack.c.l.bf16 %v47_v60 }
  0x36   :  { %v960_v33 = vadd.f32 %v959_v32, %v833_v13  ;;  %v142_v13 = vunpack.c.h.bf16 %v44_v12  ;;  %v883_v32 = vmul.f32 %v1291_v29, %v139_v39  ;;  %v23_v29 = vld [vmem:[%s1772_s0 + $0x60] sm:$0xff]  ;;  %v838_v12 = vmul.f32 %v1432_v63, %v94_v17 }
  0x37   :  { %v99_v17 = vunpack.c.l.bf16 %v23_v29  ;;  %v346_v22 = vrot.slane %v1438_v46, %v1132_v9 }
  0x38   :  { %v961_v5 = vadd.f32 %v960_v33, %v834_v25  ;;  %v96_v33 = vunpack.c.h.bf16 %v21_v27  ;;  %v46_v27 = vld [vmem:[%s1772_s0 + $0x118] sm:$0xff]  ;;  %v886_v1 = vmul.f32 %v1308_v38, %v142_v13  ;;  %v1012_v34 = vadd.f32 %v884_v61, %v883_v32 }
  0x39   :  { %v1472_v38 = vrot.slane %v338_v4, %v1130_v8  ;;  %v146_v13 = vunpack.c.h.bf16 %v46_v27  ;;  %v888_v32 = vmul.f32 %v1322_v21, %v144_v14  ;;  %v1494_v21 = vrot.slane %v346_v22, %v1130_v8 }
  0x3a   :  { %v962_v25 = vadd.f32 %v961_v5, %v835_v18  ;;  %v342_v18 = vrot.slane %v1438_v46, %v1130_v8  ;;  %v1013_v56 = vadd.f32 %v1012_v34, %v885_v57  ;;  %v840_v61 = vmul.f32 %v1455_v30, %v96_v33  ;;  %v24_v57 = vld [vmem:[%s1772_s0 + $0x68] sm:$0xff] }
  0x3b   :  { %v841_v33 = vmul.f32 %v1465_v44, %v97_v59  ;;  %v842_v14 = vmul.f32 %v1472_v38, %v98_v16  ;;  %v48_v34 = vld [vmem:[%s1772_s0 + $0x128] sm:$0xff]  ;;  %v101_v59 = vunpack.c.l.bf16 %v24_v57 }
  0x3c   :  { %v963_v39 = vadd.f32 %v962_v25, %v836_v62  ;;  %v145_v62 = vunpack.c.l.bf16 %v46_v27  ;;  %v887_v25 = vmul.f32 %v1317_v47, %v143_v58  ;;  %v1014_v58 = vadd.f32 %v1013_v56, %v886_v1 }
  0x3d   :  { %v350_v47 = vrot.slane %v1438_v46, %v1134_v10  ;;  %v354_v56 = vrot.slane %v1438_v46, %v1136_v11  ;;  %v358_v46 = vrot.slane %v1478_v3, %v1130_v8  ;;  %v149_v22 = vunpack.c.l.bf16 %v48_v34 }
  0x3e   :  { %v964_v5 = vadd.f32 %v963_v39, %v837_v20  ;;  %v1487_v20 = vrot.slane %v342_v18, %v1130_v8  ;;  %v889_v39 = vmul.f32 %v1330_v28, %v145_v62  ;;  %v1015_v27 = vadd.f32 %v1014_v58, %v887_v25  ;;  %v25_v28 = vld [vmem:[%s1772_s0 + $0x70] sm:$0xff] }
  0x3f   :  { %v148_v18 = vunpack.c.h.bf16 %v47_v60  ;;  %v102_v25 = vunpack.c.h.bf16 %v24_v57  ;;  %v1514_v60 = vrot.slane %v354_v56, %v1130_v8  ;;  %v49_v58 = vld [vmem:[%s1772_s0 + $0x130] sm:$0xff]  ;;  %v893_v56 = vmul.f32 %v1359_v26, %v149_v22 }
  0x40   :  { %v965_v2 = vadd.f32 %v964_v5, %v838_v12  ;;  %v100_v12 = vunpack.c.h.bf16 %v23_v29  ;;  %v890_v29 = vmul.f32 %v1335_v37, %v146_v13  ;;  %v1507_v5 = vrot.slane %v350_v47, %v1130_v8 }
  0x41   :  { %v843_v16 = vmul.f32 %v1487_v20, %v99_v17  ;;  %v362_v37 = vrot.slane %v1478_v3, %v1132_v9  ;;  %v103_v17 = vunpack.c.l.bf16 %v25_v28  ;;  %v150_v47 = vunpack.c.h.bf16 %v48_v34 }
  0x42   :  { %v966_v4 = vadd.f32 %v965_v2, %v839_v0  ;;  %v1016_v0 = vadd.f32 %v1015_v27, %v888_v32  ;;  %v844_v13 = vmul.f32 %v1494_v21, %v100_v12  ;;  %v892_v57 = vmul.f32 %v1348_v19, %v148_v18  ;;  %v50_v18 = vld [vmem:[%s1772_s0 + $0x138] sm:$0xff] }
  0x43   :  { %v366_v9 = vrot.slane %v1478_v3, %v1134_v10  ;;  %v845_v12 = vmul.f32 %v1507_v5, %v101_v59  ;;  %v151_v27 = vunpack.c.l.bf16 %v49_v58  ;;  %v370_v19 = vrot.slane %v1478_v3, %v1136_v11 }
  0x44   :  { %v967_v1 = vadd.f32 %v966_v4, %v840_v61  ;;  %v891_v61 = vmul.f32 %v1343_v43, %v147_v7  ;;  %v1017_v2 = vadd.f32 %v1016_v0, %v889_v39  ;;  %v26_v43 = vld [vmem:[%s1772_s0 + $0x78] sm:$0xff]  ;;  %v1527_v4 = vrot.slane %v358_v46, %v1130_v8 }
  0x45   :  { %v104_v39 = vunpack.c.h.bf16 %v25_v28  ;;  %v846_v34 = vmul.f32 %v1514_v60, %v102_v25  ;;  %v105_v59 = vunpack.c.l.bf16 %v26_v43  ;;  %v894_v0 = vmul.f32 %v1364_v35, %v150_v47 }
  0x46   :  { %v968_v62 = vadd.f32 %v967_v1, %v841_v33  ;;  %v1018_v33 = vadd.f32 %v1017_v2, %v890_v29  ;;  %v1534_v1 = vrot.slane %v362_v37, %v1130_v8  ;;  %v152_v29 = vunpack.c.h.bf16 %v49_v58  ;;  %v51_v37 = vld [vmem:[%s1772_s0 + $0x140] sm:$0xff] }
  0x47   :  { %v374_v26 = vrot.slane %v1171_v40, %v1130_v8  ;;  %v1544_v11 = vrot.slane %v366_v9, %v1130_v8  ;;  %v847_v3 = vmul.f32 %v1527_v4, %v103_v17  ;;  %v895_v25 = vmul.f32 %v1372_v42, %v151_v27  ;;  %v52_v27 = vld [vmem:[%s1772_s0 + $0x148] sm:$0xff] }
  0x48   :  { %v969_v32 = vadd.f32 %v968_v62, %v842_v14  ;;  %v1019_v14 = vadd.f32 %v1018_v33, %v891_v61  ;;  %v153_v62 = vunpack.c.l.bf16 %v50_v18  ;;  %v106_v61 = vunpack.c.h.bf16 %v26_v43  ;;  %v28_v33 = vld [vmem:[%s1772_s0 + $0x88] sm:$0xff] }
  0x49   :  { %v1552_v35 = vrot.slane %v370_v19, %v1130_v8  ;;  %v848_v40 = vmul.f32 %v1534_v1, %v104_v39  ;;  %v1560_v47 = vrot.slane %v374_v26, %v1130_v8  ;;  %v849_v42 = vmul.f32 %v1544_v11, %v105_v59  ;;  %v29_v59 = vld [vmem:[%s1772_s0 + $0x90] sm:$0xff] }
  0x4a   :  { %v970_v7 = vadd.f32 %v969_v32, %v843_v16  ;;  %v1020_v28 = vadd.f32 %v1019_v14, %v892_v57  ;;  %v27_v16 = vld [vmem:[%s1772_s0 + $0x80] sm:$0xff]  ;;  %v896_v32 = vmul.f32 %v1377_v24, %v152_v29  ;;  %v155_v43 = vunpack.c.l.bf16 %v51_v37 }
  0x4b   :  { %v107_v17 = vunpack.c.l.bf16 %v27_v16  ;;  %v897_v9 = vmul.f32 %v1385_v6, %v153_v62  ;;  %v850_v39 = vmul.f32 %v1552_v35, %v106_v61  ;;  %v157_v29 = vunpack.c.l.bf16 %v52_v27 }
  0x4c   :  { %v971_v10 = vadd.f32 %v970_v7, %v844_v13  ;;  %v1021_v22 = vadd.f32 %v1020_v28, %v893_v56  ;;  %v154_v13 = vunpack.c.h.bf16 %v50_v18  ;;  %v108_v7 = vunpack.c.h.bf16 %v27_v16 }
  0x4d   :  { %v156_v56 = vunpack.c.h.bf16 %v51_v37  ;;  %v851_v18 = vmul.f32 %v1560_v47, %v107_v17  ;;  %v110_v26 = vunpack.c.h.bf16 %v28_v33  ;;  %v901_v37 = vmul.f32 %v1423_v45, %v157_v29  ;;  %v31_v45 = vld [vmem:[%s1772_s0 + $0xa0] sm:$0xff] }
  0x4e   :  { %v972_v46 = vadd.f32 %v971_v10, %v845_v12  ;;  %v1022_v58 = vadd.f32 %v1021_v22, %v894_v0  ;;  %v898_v14 = vmul.f32 %v1390_v23, %v154_v13  ;;  %v390_v10 = vrot.slane %v1173_v41, %v1130_v8 }
  0x4f   :  { %v899_v0 = vmul.f32 %v1400_v15, %v155_v43  ;;  %v158_v41 = vunpack.c.h.bf16 %v52_v27  ;;  %v900_v16 = vmul.f32 %v1411_v31, %v156_v56 }
  0x50   :  { %v973_v2 = vadd.f32 %v972_v46, %v846_v34  ;;  %v1023_v12 = vadd.f32 %v1022_v58, %v895_v25  ;;  %v109_v34 = vunpack.c.l.bf16 %v28_v33  ;;  %v53_v46 = vld [vmem:[%s1772_s0 + $0x150] sm:$0xff]  ;;  %v111_v25 = vunpack.c.l.bf16 %v29_v59 }
  0x51   :  { %v1585_v22 = vrot.slane %v390_v10, %v1130_v8  ;;  %v854_v58 = vmul.f32 %v1194_v50, %v110_v26  ;;  %v54_v8 = vld [vmem:[%s1772_s0 + $0x158] sm:$0xff]  ;;  %v160_v17 = vunpack.c.h.bf16 %v53_v46  ;;  %v115_v10 = vunpack.c.l.bf16 %v31_v45 }
  0x52   :  { %v974_v57 = vadd.f32 %v973_v2, %v847_v3  ;;  %v1024_v19 = vadd.f32 %v1023_v12, %v896_v32  ;;  %v852_v3 = vmul.f32 %v1188_v48, %v108_v7  ;;  %v853_v61 = vmul.f32 %v1191_v49, %v109_v34 }
  0x53   :  { %v159_v2 = vunpack.c.l.bf16 %v53_v46  ;;  %v112_v32 = vunpack.c.h.bf16 %v29_v59  ;;  %v855_v43 = vmul.f32 %v1585_v22, %v111_v25  ;;  %v161_v12 = vunpack.c.l.bf16 %v54_v8 }
  0x54   :  { %v975_v24 = vadd.f32 %v974_v57, %v848_v40  ;;  %v1025_v28 = vadd.f32 %v1024_v19, %v897_v9  ;;  %v30_v40 = vld [vmem:[%s1772_s0 + $0x98] sm:$0xff]  ;;  %v904_v19 = vmul.f32 %v1455_v30, %v160_v17  ;;  %v56_v30 = vld [vmem:[%s1772_s0 + $0x168] sm:$0xff]  ;;  %v1818_v17 = vld [vmem:[#allocation2_spill] sm:$0xff] }
  0x55   :  { %v113_v33 = vunpack.c.l.bf16 %v30_v40  ;;  %v903_v7 = vmul.f32 %v1445_v36, %v159_v2  ;;  %v856_v27 = vmul.f32 %v1197_v51, %v112_v32  ;;  %v32_v36 = vld [vmem:[%s1772_s0 + $0xa8] sm:$0xff]  ;;  %v905_v29 = vmul.f32 %v1465_v44, %v161_v12  ;;  %v33_v44 = vld [vmem:[%s1772_s0 + $0xb0] sm:$0xff] }
  0x56   :  { %v976_v6 = vadd.f32 %v975_v24, %v849_v42  ;;  %v1026_v62 = vadd.f32 %v1025_v28, %v898_v14  ;;  %v902_v42 = vmul.f32 %v1432_v63, %v158_v41  ;;  %v114_v24 = vunpack.c.h.bf16 %v30_v40  ;;  %v55_v63 = vld [vmem:[%s1772_s0 + $0x160] sm:$0xff]  ;;  %v1819_v12 = vld [vmem:[#allocation3_spill] sm:$0xff] }
  0x57   :  { %v162_v14 = vunpack.c.h.bf16 %v54_v8  ;;  %v163_v59 = vunpack.c.l.bf16 %v55_v63  ;;  %v116_v28 = vunpack.c.h.bf16 %v31_v45  ;;  %v118_v2 = vunpack.c.h.bf16 %v32_v36 }
  0x58   :  { %v977_v23 = vadd.f32 %v976_v6, %v850_v39  ;;  %v1027_v13 = vadd.f32 %v1026_v62, %v899_v0  ;;  %v858_v26 = vmul.f32 %v1203_v53, %v114_v24  ;;  %v859_v62 = vmul.f32 %v1206_v54, %v115_v10 }
  0x59   :  { %v906_v46 = vmul.f32 %v1472_v38, %v162_v14  ;;  %v57_v38 = vld [vmem:[%s1772_s0 + $0x170] sm:$0xff]  ;;  %v166_v32 = vunpack.c.h.bf16 %v56_v30  ;;  %v119_v8 = vunpack.c.l.bf16 %v33_v44  ;;  %v120_v45 = vunpack.c.h.bf16 %v33_v44 }
  0x5a   :  { %v978_v15 = vadd.f32 %v977_v23, %v851_v18  ;;  %v1028_v57 = vadd.f32 %v1027_v13, %v900_v16  ;;  %v857_v18 = vmul.f32 %v1200_v52, %v113_v33  ;;  %v164_v23 = vunpack.c.h.bf16 %v55_v63  ;;  %v1820_v14 = vld [vmem:[#allocation4_spill] sm:$0xff] }
  0x5b   :  { %v117_v16 = vunpack.c.l.bf16 %v32_v36  ;;  %v167_v33 = vunpack.c.l.bf16 %v57_v38  ;;  %v168_v24 = vunpack.c.h.bf16 %v57_v38 }
  0x5c   :  { %v979_v31 = vadd.f32 %v978_v15, %v852_v3  ;;  %v1029_v39 = vadd.f32 %v1028_v57, %v901_v37  ;;  %v907_v15 = vmul.f32 %v1487_v20, %v163_v59  ;;  %v860_v37 = vmul.f32 %v1209_v55, %v116_v28  ;;  %v34_v20 = vld [vmem:[%s1772_s0 + $0xb8] sm:$0xff] }
  0x5d   :  { %v121_v63 = vunpack.c.l.bf16 %v34_v20  ;;  %v122_v36 = vunpack.c.h.bf16 %v34_v20  ;;  %v1821_v59 = vld [vmem:[#allocation5_spill] sm:$0xff] }
  0x5e   :  { %v980_v9 = vadd.f32 %v979_v31, %v853_v61  ;;  %v1030_v34 = vadd.f32 %v1029_v39, %v902_v42  ;;  %v165_v61 = vunpack.c.l.bf16 %v56_v30  ;;  %v861_v42 = vmul.f32 %v1818_v17, %v117_v16 }
  0x60   :  { %v981_v56 = vadd.f32 %v980_v9, %v854_v58  ;;  %v1031_v0 = vadd.f32 %v1030_v34, %v903_v7  ;;  %v908_v58 = vmul.f32 %v1494_v21, %v164_v23  ;;  %v862_v7 = vmul.f32 %v1819_v12, %v118_v2  ;;  %v58_v21 = vld [vmem:[%s1772_s0 + $0x178] sm:$0xff]  ;;  %v1822_v23 = vld [vmem:[#allocation6_spill] sm:$0xff] }
  0x61   :  { %v169_v10 = vunpack.c.l.bf16 %v58_v21  ;;  %v170_v28 = vunpack.c.h.bf16 %v58_v21 }
  0x62   :  { %v982_v6 = vadd.f32 %v981_v56, %v855_v43  ;;  %v1032_v41 = vadd.f32 %v1031_v0, %v904_v19  ;;  %v909_v43 = vmul.f32 %v1507_v5, %v165_v61  ;;  %v863_v19 = vmul.f32 %v1820_v14, %v119_v8  ;;  %v35_v5 = vld [vmem:[%s1772_s0 + $0xc0] sm:$0xff]  ;;  %v1823_v61 = vld [vmem:[#allocation7_spill] sm:$0xff] }
  0x63   :  { %v123_v30 = vunpack.c.l.bf16 %v35_v5  ;;  %v124_v44 = vunpack.c.h.bf16 %v35_v5 }
  0x64   :  { %v983_v3 = vadd.f32 %v982_v6, %v856_v27  ;;  %v1033_v40 = vadd.f32 %v1032_v41, %v905_v29  ;;  %v910_v27 = vmul.f32 %v1514_v60, %v166_v32  ;;  %v864_v29 = vmul.f32 %v1821_v59, %v120_v45  ;;  %v59_v60 = vld [vmem:[%s1772_s0 + $0x180] sm:$0xff]  ;;  %v1824_v32 = vld [vmem:[#allocation8_spill] sm:$0xff] }
  0x65   :  { %v171_v16 = vunpack.c.l.bf16 %v59_v60  ;;  %v172_v2 = vunpack.c.h.bf16 %v59_v60 }
  0x66   :  { %v984_v25 = vadd.f32 %v983_v3, %v857_v18  ;;  %v1034_v31 = vadd.f32 %v1033_v40, %v906_v46  ;;  %v911_v18 = vmul.f32 %v1527_v4, %v167_v33  ;;  %v865_v46 = vmul.f32 %v1822_v23, %v121_v63  ;;  %v36_v4 = vld [vmem:[%s1772_s0 + $0xc8] sm:$0xff]  ;;  %v1825_v33 = vld [vmem:[#allocation9_spill] sm:$0xff] }
  0x67   :  { %v125_v38 = vunpack.c.l.bf16 %v36_v4  ;;  %v126_v20 = vunpack.c.h.bf16 %v36_v4 }
  0x68   :  { %v985_v13 = vadd.f32 %v984_v25, %v858_v26  ;;  %v1035_v9 = vadd.f32 %v1034_v31, %v907_v15  ;;  %v912_v26 = vmul.f32 %v1534_v1, %v168_v24  ;;  %v866_v15 = vmul.f32 %v1823_v61, %v122_v36  ;;  %v60_v1 = vld [vmem:[%s1772_s0 + $0x188] sm:$0xff]  ;;  %v1826_v24 = vld [vmem:[#allocation10_spill] sm:$0xff] }
  0x69   :  { %v173_v8 = vunpack.c.l.bf16 %v60_v1  ;;  %v174_v45 = vunpack.c.h.bf16 %v60_v1 }
  0x6a   :  { %v986_v57 = vadd.f32 %v985_v13, %v859_v62  ;;  %v1036_v56 = vadd.f32 %v1035_v9, %v908_v58  ;;  %v913_v62 = vmul.f32 %v1544_v11, %v169_v10  ;;  %v867_v58 = vmul.f32 %v1824_v32, %v123_v30  ;;  %v37_v11 = vld [vmem:[%s1772_s0 + $0xd0] sm:$0xff]  ;;  %v1827_v10 = vld [vmem:[#allocation11_spill] sm:$0xff] }
  0x6b   :  { %v127_v21 = vunpack.c.l.bf16 %v37_v11  ;;  %v128_v5 = vunpack.c.h.bf16 %v37_v11 }
  0x6c   :  { %v987_v39 = vadd.f32 %v986_v57, %v860_v37  ;;  %v1037_v6 = vadd.f32 %v1036_v56, %v909_v43  ;;  %v914_v37 = vmul.f32 %v1552_v35, %v170_v28  ;;  %v868_v43 = vmul.f32 %v1825_v33, %v124_v44  ;;  %v61_v35 = vld [vmem:[%s1772_s0 + $0x190] sm:$0xff] }
  0x6d   :  { %v175_v63 = vunpack.c.l.bf16 %v61_v35  ;;  %v176_v36 = vunpack.c.h.bf16 %v61_v35  ;;  %v1828_v28 = vld [vmem:[#allocation12_spill] sm:$0xff] }
  0x6e   :  { %v988_v34 = vadd.f32 %v987_v39, %v861_v42  ;;  %v1038_v3 = vadd.f32 %v1037_v6, %v910_v27  ;;  %v915_v42 = vmul.f32 %v1560_v47, %v171_v16  ;;  %v869_v27 = vmul.f32 %v1826_v24, %v125_v38  ;;  %v38_v47 = vld [vmem:[%s1772_s0 + $0xd8] sm:$0xff] }
  0x6f   :  { %v129_v60 = vunpack.c.l.bf16 %v38_v47  ;;  %v130_v4 = vunpack.c.h.bf16 %v38_v47  ;;  %v1829_v16 = vld [vmem:[#allocation13_spill] sm:$0xff] }
  0x70   :  { %v989_v0 = vadd.f32 %v988_v34, %v862_v7  ;;  %v1039_v25 = vadd.f32 %v1038_v3, %v911_v18  ;;  %v916_v7 = vmul.f32 %v1188_v48, %v172_v2  ;;  %v870_v18 = vmul.f32 %v1827_v10, %v126_v20  ;;  %v62_v48 = vld [vmem:[%s1772_s0 + $0x198] sm:$0xff]  ;;  %v1830_v2 = vld [vmem:[#allocation14_spill] sm:$0xff] }
  0x71   :  { %v177_v30 = vunpack.c.l.bf16 %v62_v48  ;;  %v178_v44 = vunpack.c.h.bf16 %v62_v48 }
  0x72   :  { %v990_v41 = vadd.f32 %v989_v0, %v863_v19  ;;  %v1040_v13 = vadd.f32 %v1039_v25, %v912_v26  ;;  %v917_v19 = vmul.f32 %v1191_v49, %v173_v8  ;;  %v871_v26 = vmul.f32 %v1828_v28, %v127_v21  ;;  %v39_v49 = vld [vmem:[%s1772_s0 + $0xe0] sm:$0xff]  ;;  %v1831_v8 = vld [vmem:[#allocation15_spill] sm:$0xff] }
  0x73   :  { %v131_v1 = vunpack.c.l.bf16 %v39_v49  ;;  %v132_v11 = vunpack.c.h.bf16 %v39_v49 }
  0x74   :  { %v991_v40 = vadd.f32 %v990_v41, %v864_v29  ;;  %v1041_v57 = vadd.f32 %v1040_v13, %v913_v62  ;;  %v918_v29 = vmul.f32 %v1194_v50, %v174_v45  ;;  %v872_v62 = vmul.f32 %v1829_v16, %v128_v5  ;;  %v63_v50 = vld [vmem:[%s1772_s0 + $0x1a0] sm:$0xff]  ;;  %v1832_v45 = vld [vmem:[#allocation16_spill] sm:$0xff] }
  0x75   :  { %v179_v38 = vunpack.c.l.bf16 %v63_v50  ;;  %v180_v20 = vunpack.c.h.bf16 %v63_v50 }
  0x76   :  { %v992_v31 = vadd.f32 %v991_v40, %v865_v46  ;;  %v1042_v39 = vadd.f32 %v1041_v57, %v914_v37  ;;  %v919_v46 = vmul.f32 %v1585_v22, %v175_v63  ;;  %v873_v37 = vmul.f32 %v1830_v2, %v129_v60  ;;  %v40_v22 = vld [vmem:[%s1772_s0 + $0xe8] sm:$0xff]  ;;  %v1833_v63 = vld [vmem:[#allocation17_spill] sm:$0xff] }
  0x77   :  { %v133_v35 = vunpack.c.l.bf16 %v40_v22  ;;  %v134_v47 = vunpack.c.h.bf16 %v40_v22  ;;  %v1837_v22 = vld [vmem:[#allocation21_spill] sm:$0xff] }
  0x78   :  { %v993_v9 = vadd.f32 %v992_v31, %v866_v15  ;;  %v1043_v34 = vadd.f32 %v1042_v39, %v915_v42  ;;  %v920_v15 = vmul.f32 %v1197_v51, %v176_v36  ;;  %v874_v42 = vmul.f32 %v1831_v8, %v130_v4  ;;  %v64_v51 = vld [vmem:[%s1772_s0 + $0x1a8] sm:$0xff]  ;;  %v1834_v36 = vld [vmem:[#allocation18_spill] sm:$0xff] }
  0x79   :  { %v181_v21 = vunpack.c.l.bf16 %v64_v51  ;;  %v182_v5 = vunpack.c.h.bf16 %v64_v51 }
  0x7a   :  { %v994_v56 = vadd.f32 %v993_v9, %v867_v58  ;;  %v1044_v0 = vadd.f32 %v1043_v34, %v916_v7  ;;  %v921_v58 = vmul.f32 %v1200_v52, %v177_v30  ;;  %v875_v7 = vmul.f32 %v1832_v45, %v131_v1  ;;  %v41_v52 = vld [vmem:[%s1772_s0 + $0xf0] sm:$0xff]  ;;  %v1835_v30 = vld [vmem:[#allocation19_spill] sm:$0xff] }
  0x7b   :  { %v135_v48 = vunpack.c.l.bf16 %v41_v52  ;;  %v136_v49 = vunpack.c.h.bf16 %v41_v52  ;;  %v68_v52 = vld [vmem:[%s1772_s0 + $0x1c8] sm:$0xff] }
  0x7c   :  { %v995_v6 = vadd.f32 %v994_v56, %v868_v43  ;;  %v1045_v41 = vadd.f32 %v1044_v0, %v917_v19  ;;  %v922_v43 = vmul.f32 %v1203_v53, %v178_v44  ;;  %v876_v19 = vmul.f32 %v1833_v63, %v132_v11  ;;  %v65_v53 = vld [vmem:[%s1772_s0 + $0x1b0] sm:$0xff] }
  0x7d   :  { %v183_v60 = vunpack.c.l.bf16 %v65_v53  ;;  %v184_v4 = vunpack.c.h.bf16 %v65_v53  ;;  %v1836_v44 = vld [vmem:[#allocation20_spill] sm:$0xff] }
  0x7e   :  { %v996_v3 = vadd.f32 %v995_v6, %v869_v27  ;;  %v1046_v40 = vadd.f32 %v1045_v41, %v918_v29  ;;  %v923_v27 = vmul.f32 %v1206_v54, %v179_v38  ;;  %v877_v29 = vmul.f32 %v1834_v36, %v133_v35  ;;  %v42_v54 = vld [vmem:[%s1772_s0 + $0xf8] sm:$0xff]  ;;  %v1839_v35 = vld [vmem:[#allocation23_spill] sm:$0xff] }
  0x7f   :  { %v137_v50 = vunpack.c.l.bf16 %v42_v54  ;;  %v880_v38 = vmul.f32 %v1837_v22, %v136_v49 }
  0x80   :  { %v997_v25 = vadd.f32 %v996_v3, %v870_v18  ;;  %v1047_v31 = vadd.f32 %v1046_v40, %v919_v46  ;;  %v924_v18 = vmul.f32 %v1209_v55, %v180_v20  ;;  %v878_v46 = vmul.f32 %v1835_v30, %v134_v47  ;;  %v66_v55 = vld [vmem:[%s1772_s0 + $0x1b8] sm:$0xff] }
  0x81   :  { %v185_v1 = vunpack.c.l.bf16 %v66_v55  ;;  %v186_v11 = vunpack.c.h.bf16 %v66_v55  ;;  %v189_v47 = vunpack.c.l.bf16 %v68_v52 }
  0x82   :  { %v998_v13 = vadd.f32 %v997_v25, %v871_v26  ;;  %v1048_v9 = vadd.f32 %v1047_v31, %v920_v15  ;;  %v925_v26 = vmul.f32 %v1818_v17, %v181_v21  ;;  %v879_v15 = vmul.f32 %v1836_v44, %v135_v48  ;;  %v67_v31 = vld [vmem:[%s1772_s0 + $0x1c0] sm:$0xff] }
  0x83   :  { %v927_v17 = vmul.f32 %v1820_v14, %v183_v60  ;;  %v188_v21 = vunpack.c.h.bf16 %v67_v31 }
  0x84   :  { %v999_v57 = vadd.f32 %v998_v13, %v872_v62  ;;  %v1049_v56 = vadd.f32 %v1048_v9, %v921_v58  ;;  %v926_v62 = vmul.f32 %v1819_v12, %v182_v5  ;;  %v138_v13 = vunpack.c.h.bf16 %v42_v54 }
  0x85   :  { %v928_v12 = vmul.f32 %v1821_v59, %v184_v4  ;;  %v929_v9 = vmul.f32 %v1822_v23, %v185_v1  ;;  %v69_v23 = vld [vmem:[%s1772_s0 + $0x1d0] sm:$0xff]  ;;  %v190_v5 = vunpack.c.h.bf16 %v68_v52 }
  0x86   :  { %v1000_v39 = vadd.f32 %v999_v57, %v873_v37  ;;  %v1050_v6 = vadd.f32 %v1049_v56, %v922_v43  ;;  %v1838_v57 = vld [vmem:[#allocation22_spill] sm:$0xff]  ;;  %v187_v43 = vunpack.c.l.bf16 %v67_v31  ;;  %v191_v48 = vunpack.c.l.bf16 %v69_v23 }
  0x87   :  { %v881_v51 = vmul.f32 %v1838_v57, %v137_v50  ;;  %v934_v54 = vmul.f32 %v1827_v10, %v190_v5  ;;  %v72_v10 = vld [vmem:[%s1772_s0 + $0x1e8] sm:$0xff] }
  0x88   :  { %v1001_v34 = vadd.f32 %v1000_v39, %v874_v42  ;;  %v1051_v3 = vadd.f32 %v1050_v6, %v923_v27  ;;  %v930_v27 = vmul.f32 %v1823_v61, %v186_v11 }
  0x8a   :  { %v1002_v0 = vadd.f32 %v1001_v34, %v875_v7  ;;  %v1052_v25 = vadd.f32 %v1051_v3, %v924_v18  ;;  %v882_v7 = vmul.f32 %v1839_v35, %v138_v13  ;;  %v932_v18 = vmul.f32 %v1825_v33, %v188_v21  ;;  %v71_v33 = vld [vmem:[%s1772_s0 + $0x1e0] sm:$0xff] }
  0x8b   :  { %v935_v3 = vmul.f32 %v1828_v28, %v191_v48  ;;  %v195_v55 = vunpack.c.l.bf16 %v71_v33 }
  0x8c   :  { %v1003_v41 = vadd.f32 %v1002_v0, %v876_v19  ;;  %v1053_v37 = vadd.f32 %v1052_v25, %v925_v26  ;;  %v931_v19 = vmul.f32 %v1824_v32, %v187_v43  ;;  %v70_v0 = vld [vmem:[%s1772_s0 + $0x1d8] sm:$0xff]  ;;  %v192_v32 = vunpack.c.h.bf16 %v69_v23 }
  0x8d   :  { %v193_v26 = vunpack.c.l.bf16 %v70_v0  ;;  %v196_v25 = vunpack.c.h.bf16 %v71_v33 }
  0x8e   :  { %v1004_v40 = vadd.f32 %v1003_v41, %v877_v29  ;;  %v1054_v42 = vadd.f32 %v1053_v37, %v926_v62  ;;  %v933_v29 = vmul.f32 %v1826_v24, %v189_v47  ;;  %v936_v24 = vmul.f32 %v1829_v16, %v192_v32  ;;  %v73_v16 = vld [vmem:[%s1772_s0 + $0x1f0] sm:$0xff] }
  0x8f   :  { %v937_v4 = vmul.f32 %v1830_v2, %v193_v26  ;;  %v940_v2 = vmul.f32 %v1833_v63, %v196_v25  ;;  %v199_v13 = vunpack.c.l.bf16 %v73_v16  ;;  %v200_v31 = vunpack.c.h.bf16 %v73_v16 }
  0x90   :  { %v1005_v58 = vadd.f32 %v1004_v40, %v878_v46  ;;  %v1055_v14 = vadd.f32 %v1054_v42, %v927_v17  ;;  %v194_v46 = vunpack.c.h.bf16 %v70_v0  ;;  %v939_v40 = vmul.f32 %v1832_v45, %v195_v55 }
  0x91   :  { %v198_v17 = vunpack.c.h.bf16 %v72_v10  ;;  %v943_v42 = vmul.f32 %v1836_v44, %v199_v13  ;;  %v944_v63 = vmul.f32 %v1837_v22, %v200_v31 }
  0x92   :  { %v1006_v20 = vadd.f32 %v1005_v58, %v879_v15  ;;  %v1056_v56 = vadd.f32 %v1055_v14, %v928_v12  ;;  %v938_v28 = vmul.f32 %v1831_v8, %v194_v46  ;;  %v197_v15 = vunpack.c.l.bf16 %v72_v10  ;;  %v74_v8 = vld [vmem:[%s1772_s0 + $0x1f8] sm:$0xff] }
  0x93   :  { %v942_v45 = vmul.f32 %v1835_v30, %v198_v17  ;;  %v201_v12 = vunpack.c.l.bf16 %v74_v8 }
  0x94   :  { %v1007_v39 = vadd.f32 %v1006_v20, %v880_v38  ;;  %v1057_v34 = vadd.f32 %v1056_v56, %v929_v9  ;;  %v941_v38 = vmul.f32 %v1834_v36, %v197_v15  ;;  %v202_v20 = vunpack.c.h.bf16 %v74_v8 }
  0x95   :  { %v945_v9 = vmul.f32 %v1838_v57, %v201_v12 }
  0x96   :  { %v1008_v59 = vadd.f32 %v1007_v39, %v881_v51  ;;  %v1058_v6 = vadd.f32 %v1057_v34, %v930_v27  ;;  %v946_v14 = vmul.f32 %v1839_v35, %v202_v20 }
  0x98   :  { %v1009_v53 = vadd.f32 %v1008_v59, %v882_v7  ;;  %v1059_v61 = vadd.f32 %v1058_v6, %v931_v19 }
  0x9a   :  { %1010 = vadd.xlane.f32.xlu0 %v1009_v53  ;;  %v1060_v60 = vadd.f32 %v1059_v61, %v932_v18 }
  0x9c   :  { %v1061_v49 = vadd.f32 %v1060_v60, %v933_v29 }
  0x9e   :  { %v1062_v41 = vadd.f32 %v1061_v49, %v934_v54 }
  0xa0   :  { %v1063_v62 = vadd.f32 %v1062_v41, %v935_v3 }
  0xa2   :  { %v1064_v50 = vadd.f32 %v1063_v62, %v936_v24 }
  0xa4   :  { %v1065_v1 = vadd.f32 %v1064_v50, %v937_v4 }
  0xa6   :  { %v1066_v37 = vadd.f32 %v1065_v1, %v938_v28 }
  0xa8   :  { %v1067_v58 = vadd.f32 %v1066_v37, %v939_v40 }
  0xaa   :  { %v1068_v11 = vadd.f32 %v1067_v58, %v940_v2 }
  0xac   :  { %v1069_v51 = vadd.f32 %v1068_v11, %v941_v38 }
  0xae   :  { %v1070_v43 = vadd.f32 %v1069_v51, %v942_v45 }
  0xb0   :  { %v1071_v36 = vadd.f32 %v1070_v43, %v943_v42 }
  0xb2   :  { %v1072_v7 = vadd.f32 %v1071_v36, %v944_v63 }
  0xb4   :  { %v1073_v39 = vadd.f32 %v1072_v7, %v945_v9 }
  0xb6   :  { %v1074_v52 = vadd.f32 %v1073_v39, %v946_v14 }
  0xb8   :  { %1075 = vadd.xlane.f32.xlu0 %v1074_v52 }
 0x123   :  { %v1011_v21 = vpop.xlane.xlu0 %1010 }
 0x124   :  { %v1096_v30 = vmul.f32 -1.442695, %v1011_v21 }
 0x126   :  { %1098 = vpow2.f32 %v1096_v30 }
 0x133   :  { %v1099_v27 = vpop.eup %1098 }
 0x134   :  { %v1083_v56 = vadd.f32 1.0, %v1099_v27 }
 0x136   :  { %1100 = vrcp.f32 %v1083_v56 }
 0x141   :  { %v1076_v59 = vpop.xlane.xlu0 %1075 }
 0x142   :  { %v1097_v22 = vmul.f32 -1.442695, %v1076_v59 }
 0x143   :  { %v1101_v44 = vpop.eup %1100 }
 0x144   :  { %1090 = vst.msk [vmem:[%s1773_s2] sm:$0xff] %vm1089_vm0, %v1101_v44  ;;  %1102 = vpow2.f32 %v1097_v22 }
 0x151   :  { %v1103_v57 = vpop.eup %1102 }
 0x152   :  { %v1084_v35 = vadd.f32 1.0, %v1103_v57 }
 0x154   :  { %1104 = vrcp.f32 %v1084_v35 }
 0x161   :  { %v1105_v47 = vpop.eup %1104 }
 0x162   :  { %1091 = vst.msk [vmem:[%s1773_s2 + $0x8] sm:$0xff] %vm1089_vm0, %v1105_v47 }

</bundles_post_ra>
